<compile_context>
chip_gen: v7x
topology: tpu7x:2x2x1
jax: 0.10.0
libtpu: 0.0.40
codegen_flags: <defaults>
</compile_context>

<pallas_src>
import functools

import numpy as np
import jax
import jax.numpy as jnp
from jax.experimental import pallas as pl
from jax.experimental.pallas import tpu as pltpu

K = 8                      # conv kernel size
DIL = 2                    # conv dilation
POOL = 5                   # max-pool window / stride
PAD = DIL * (K - 1) // 2   # = 7, 'same' left pad
NOFF = POOL + DIL * (K - 1)   # 19 distinct offsets (pool phase + dilated tap): 0..18
NBLK = NOFF // 2 + 1          # 10 offset blocks per parity plane


def _encoder_kernel(xd_ref, g2_ref, g3_ref,
                    wf1_ref, b1_ref, wf2_ref, b2_ref, wf3_ref, b3_ref,
                    wh_ref, bh_ref, out_ref, scr2_ref, scr3_ref,
                    *, chans, louts):
  c1, c2, c3 = chans          # conv input channels per layer
  l1, l2, l3 = louts          # pooled output length per layer

  def conv_relu_pool(read_a, wf, brow, lout):
    """Dilated conv (taps folded into contraction) + ReLU + MaxPool1d(5)."""
    cout = wf.shape[0]
    bias = jnp.broadcast_to(brow, (cout, lout))       # hoisted: one broadcast per layer
    pooled = None
    for r in range(POOL):                             # pool phase r -> conv positions 5*j + r
      y = jnp.dot(wf, read_a(r), preferred_element_type=jnp.float32) + bias
      y = jnp.maximum(y, 0.0)                         # ReLU (LeakyReLU after ReLU is a no-op)
      pooled = y if pooled is None else jnp.maximum(pooled, y)   # MaxPool1d(5)
    return pooled                                     # (cout, lout)

  def decimate(pooled, g_ref, scr_ref, cin):
    """scr[par, m*cin+ci, j] = pooled_samepad[ci, 5*j + 2*m + par] via exact 0/1 matmuls."""
    for off in range(NOFF):
      blk = jnp.dot(pooled, g_ref[off], preferred_element_type=jnp.float32)  # (cin, l_next)
      par, m = off % 2, off // 2
      scr_ref[par, m * cin:(m + 1) * cin, :] = blk

  # ---- conv1 + ReLU + (dropout: identity) + pool1; taps sliced straight from the ref ----
  def a1(r):
    s0 = (r // 2) * c1
    return xd_ref[0, r % 2, s0:s0 + K * c1, :]
  p1 = conv_relu_pool(a1, wf1_ref[...], b1_ref[...], l1)        # (4, l1)

  # ---- conv2 + ReLU + pool2 ----
  decimate(p1, g2_ref, scr2_ref, c2)
  def a2(r):
    s0 = (r // 2) * c2
    return scr2_ref[r % 2, s0:s0 + K * c2, :]
  p2 = conv_relu_pool(a2, wf2_ref[...], b2_ref[...], l2)        # (4, l2)

  # ---- conv3 + ReLU (== LeakyReLU(0.3)∘ReLU) + pool3 ----
  decimate(p2, g3_ref, scr3_ref, c3)
  def a3(r):
    s0 = (r // 2) * c3
    return scr3_ref[r % 2, s0:s0 + K * c3, :]
  p3 = conv_relu_pool(a3, wf3_ref[...], b3_ref[...], l3)        # (1, l3)

  # ---- AdaptiveAvgPool1d(1000) + Flatten + Linear folded into one (l3, out) matmul ----
  out_ref[0] = (jnp.dot(p3, wh_ref[...], preferred_element_type=jnp.float32)
                + bh_ref[...])


def adaptive_avg_pool_matrix(l_in, l_out):
  """Exact PyTorch AdaptiveAvgPool1d bin boundaries as an (l_in, l_out) averaging matrix."""
  P = np.zeros((l_in, l_out), np.float32)
  for i in range(l_out):
    s = (i * l_in) // l_out
    e = -((-(i + 1) * l_in) // l_out)      # ceil
    P[s:e, i] = 1.0 / (e - s)
  return jnp.asarray(P)


def _decimation_matrices(l_prev, l_next):
  """g[off, p, j] = 1 iff p == 5*j + off - 7 (left 'same' pad folded in, OOB -> 0)."""
  g = np.zeros((NOFF, l_prev, l_next), np.float32)
  for off in range(NOFF):
    for j in range(l_next):
      p = POOL * j + off - PAD
      if 0 <= p < l_prev:
        g[off, p, j] = 1.0
  return jnp.asarray(g)


def encoder_forward(x_ncl, params):
  """x_ncl: (B, C_in, L) PyTorch Conv1d layout. Returns (B, output_size)."""
  x = x_ncl.astype(jnp.float32)
  B, C1, L = x.shape
  w1, b1 = params["w1"], params["b1"]      # (4, C1, K), (4,)
  w2, b2 = params["w2"], params["b2"]      # (4, 4, K)
  w3, b3 = params["w3"], params["b3"]      # (1, 4, K)
  wd, bd = params["wd"], params["bd"]      # (out, 1000), (out,)
  C2, C3, O3 = w2.shape[1], w3.shape[1], w3.shape[0]
  assert O3 == 1                            # Encoder's conv3 has a single output channel
  out_size = wd.shape[0]
  L1, L2, L3 = L // POOL, L // POOL ** 2, L // POOL ** 3

  # --- one-time XLA glue: offset-decimated layer-1 input (B, 2, NBLK*C1, L1) ---
  need = POOL * L1 + NOFF - POOL                      # highest padded index used + 1
  xp = jnp.pad(x, ((0, 0), (0, 0), (PAD, need - L - PAD)))
  slabs = [xp[:, :, off:off + POOL * L1:POOL] for off in range(NOFF)]   # each (B, C1, L1)
  even = jnp.concatenate([slabs[2 * m] for m in range(NBLK)], axis=1)
  odd = jnp.concatenate([slabs[2 * m + 1] for m in range(NBLK - 1)]
                        + [jnp.zeros_like(slabs[0])], axis=1)
  xd = jnp.stack([even, odd], axis=1)                 # (B, 2, NBLK*C1, L1)

  # --- exact 0/1 decimation matrices for the two in-kernel layer boundaries ---
  g2 = _decimation_matrices(L1, L2)                   # (NOFF, L1, L2)
  g3 = _decimation_matrices(L2, L3)                   # (NOFF, L2, L3)

  # --- fold the 8 conv taps into the contraction: (Cout, K*Cin), row order (k, ci) ---
  def fold(w):
    co, ci, k = w.shape
    return jnp.transpose(w, (0, 2, 1)).reshape(co, k * ci)
  wf1, wf2, wf3 = fold(w1), fold(w2), fold(w3)
  b1c, b2c, b3c = b1.reshape(-1, 1), b2.reshape(-1, 1), b3.reshape(-1, 1)

  # --- collapse AdaptiveAvgPool1d(1000) + Flatten + Linear into one (L3, out) matrix ---
  pool_mat = adaptive_avg_pool_matrix(O3 * L3, 1000)  # (16, 1000)
  wh = jnp.dot(pool_mat, wd.T)                        # (16, out_size)
  bh = bd.reshape(1, out_size)

  kern = functools.partial(_encoder_kernel, chans=(C1, C2, C3), louts=(L1, L2, L3))
  out = pl.pallas_call(
      kern,
      out_shape=jax.ShapeDtypeStruct((B, 1, out_size), jnp.float32),
      grid=(B,),
      in_specs=[
          pl.BlockSpec((1, 2, NBLK * C1, L1), lambda b: (b, 0, 0, 0)),
          pl.BlockSpec((NOFF, L1, L2), lambda b: (0, 0, 0)),
          pl.BlockSpec((NOFF, L2, L3), lambda b: (0, 0, 0)),
          pl.BlockSpec(wf1.shape, lambda b: (0, 0)),
          pl.BlockSpec(b1c.shape, lambda b: (0, 0)),
          pl.BlockSpec(wf2.shape, lambda b: (0, 0)),
          pl.BlockSpec(b2c.shape, lambda b: (0, 0)),
          pl.BlockSpec(wf3.shape, lambda b: (0, 0)),
          pl.BlockSpec(b3c.shape, lambda b: (0, 0)),
          pl.BlockSpec(wh.shape, lambda b: (0, 0)),
          pl.BlockSpec(bh.shape, lambda b: (0, 0)),
      ],
      out_specs=pl.BlockSpec((1, 1, out_size), lambda b: (b, 0, 0)),
      scratch_shapes=[
          pltpu.VMEM((2, NBLK * C2, L2), jnp.float32),   # decimated input of conv2
          pltpu.VMEM((2, NBLK * C3, L3), jnp.float32),   # decimated input of conv3
      ],
      compiler_params=pltpu.CompilerParams(dimension_semantics=("parallel",)),
  )(xd, g2, g3, wf1, b1c, wf2, b2c, wf3, b3c, wh, bh)
  return out.reshape(B, out_size)


def _ref_forward(x, params):
  """Pure-JAX/XLA reference of the PyTorch Encoder forward (inference mode)."""
  def conv_same(h, w, b):
    out = jax.lax.conv_general_dilated(
        h, w, window_strides=(1,), padding=[(PAD, PAD)], rhs_dilation=(DIL,),
        dimension_numbers=("NCH", "OIH", "NCH"))
    return out + b[None, :, None]

  def relu_pool(h):
    Bb, C, Ln = h.shape
    h = jnp.maximum(h, 0.0)
    return jnp.max(h[:, :, :(Ln // POOL) * POOL].reshape(Bb, C, Ln // POOL, POOL), axis=-1)

  h = relu_pool(conv_same(x, params["w1"], params["b1"]))
  h = relu_pool(conv_same(h, params["w2"], params["b2"]))
  h = relu_pool(conv_same(h, params["w3"], params["b3"]))   # LeakyReLU(0.3)∘ReLU == ReLU
  Bb, C, L3 = h.shape
  flat = h.reshape(Bb, C * L3)
  pm = adaptive_avg_pool_matrix(C * L3, 1000)
  return jnp.dot(flat, pm) @ params["wd"].T + params["bd"]


def init_params(key, input_channel, output_size):
  keys = jax.random.split(key, 8)

  def u(k, shape, fan_in):
    bound = 1.0 / np.sqrt(fan_in)
    return jax.random.uniform(k, shape, jnp.float32, -bound, bound)

  return {
      "w1": u(keys[0], (4, input_channel, K), input_channel * K),
      "b1": u(keys[1], (4,), input_channel * K),
      "w2": u(keys[2], (4, 4, K), 4 * K),
      "b2": u(keys[3], (4,), 4 * K),
      "w3": u(keys[4], (1, 4, K), 4 * K),
      "b3": u(keys[5], (1,), 4 * K),
      "wd": u(keys[6], (output_size, 1000), 1000),
      "bd": u(keys[7], (output_size,), 1000),
  }


if __name__ == "__main__":
  B, C_in, L, out_size = 2, 4, 2000, 8     # L: 2000 -> 400 -> 80 -> 16 after the 3 pools
  kx, kp = jax.random.split(jax.random.PRNGKey(0))
  x = jax.random.normal(kx, (B, C_in, L), jnp.float32)
  params = init_params(kp, C_in, out_size)

  y = jax.jit(lambda inp: encoder_forward(inp, params))(x)
  jax.block_until_ready(y)
  assert y.shape == (B, out_size) and y.dtype == jnp.float32

  y_ref = _ref_forward(x, params)
  np.testing.assert_allclose(np.asarray(y), np.asarray(y_ref), rtol=1e-3, atol=1e-3)
  print("KERNEL_OK")
</pallas_src>

<mosaic_0001>
module attributes {stable_mosaic.version = 11 : i64} {
  func.func @_encoder_kernel(%arg0: i32, %arg1: memref<1x2x40x400xf32, #tpu.memory_space<vmem>>, %arg2: memref<19x400x80xf32, #tpu.memory_space<vmem>>, %arg3: memref<19x80x16xf32, #tpu.memory_space<vmem>>, %arg4: memref<4x32xf32, #tpu.memory_space<vmem>>, %arg5: memref<4x1xf32, #tpu.memory_space<vmem>>, %arg6: memref<4x32xf32, #tpu.memory_space<vmem>>, %arg7: memref<4x1xf32, #tpu.memory_space<vmem>>, %arg8: memref<1x32xf32, #tpu.memory_space<vmem>>, %arg9: memref<1x1xf32, #tpu.memory_space<vmem>>, %arg10: memref<16x8xf32, #tpu.memory_space<vmem>>, %arg11: memref<1x8xf32, #tpu.memory_space<vmem>>, %arg12: memref<1x1x8xf32, #tpu.memory_space<vmem>>, %arg13: memref<2x40x80xf32, #tpu.memory_space<vmem>>, %arg14: memref<2x40x16xf32, #tpu.memory_space<vmem>>) attributes {dimension_semantics = [#tpu.dimension_semantics<parallel>], iteration_bounds = array<i64: 2>, scalar_prefetch = 0 : i64, scratch_operands = 2 : i64, tpu.core_type = #tpu.core_type<tc>, window_params = [{transform_indices = @transform_0, window_bounds = array<i64: 1, 2, 40, 400>}, {pipeline_mode = #tpu.pipeline_mode<synchronous>, transform_indices = @transform_1, window_bounds = array<i64: 19, 400, 80>}, {pipeline_mode = #tpu.pipeline_mode<synchronous>, transform_indices = @transform_2, window_bounds = array<i64: 19, 80, 16>}, {pipeline_mode = #tpu.pipeline_mode<synchronous>, transform_indices = @transform_3, window_bounds = array<i64: 4, 32>}, {pipeline_mode = #tpu.pipeline_mode<synchronous>, transform_indices = @transform_4, window_bounds = array<i64: 4, 1>}, {pipeline_mode = #tpu.pipeline_mode<synchronous>, transform_indices = @transform_5, window_bounds = array<i64: 4, 32>}, {pipeline_mode = #tpu.pipeline_mode<synchronous>, transform_indices = @transform_6, window_bounds = array<i64: 4, 1>}, {pipeline_mode = #tpu.pipeline_mode<synchronous>, transform_indices = @transform_7, window_bounds = array<i64: 1, 32>}, {pipeline_mode = #tpu.pipeline_mode<synchronous>, transform_indices = @transform_8, window_bounds = array<i64: 1, 1>}, {pipeline_mode = #tpu.pipeline_mode<synchronous>, transform_indices = @transform_9, window_bounds = array<i64: 16, 8>}, {pipeline_mode = #tpu.pipeline_mode<synchronous>, transform_indices = @transform_10, window_bounds = array<i64: 1, 8>}, {transform_indices = @transform_11, window_bounds = array<i64: 1, 1, 8>}]} {
    %c0 = arith.constant 0 : index
    %c0_0 = arith.constant 0 : index
    %0 = vector.load %arg4[%c0, %c0_0] : memref<4x32xf32, #tpu.memory_space<vmem>>, vector<4x32xf32>
    %c0_1 = arith.constant 0 : index
    %c0_2 = arith.constant 0 : index
    %1 = vector.load %arg5[%c0_1, %c0_2] : memref<4x1xf32, #tpu.memory_space<vmem>>, vector<4x1xf32>
    %2 = vector.shape_cast %1 : vector<4x1xf32> to vector<4x1xf32>
    %3 = vector.broadcast %2 : vector<4x1xf32> to vector<4x400xf32>
    %c0_3 = arith.constant 0 : index
    %c0_4 = arith.constant 0 : index
    %c0_5 = arith.constant 0 : index
    %c0_6 = arith.constant 0 : index
    %4 = vector.load %arg1[%c0_3, %c0_4, %c0_5, %c0_6] : memref<1x2x40x400xf32, #tpu.memory_space<vmem>>, vector<1x1x32x400xf32>
    %5 = vector.shape_cast %4 : vector<1x1x32x400xf32> to vector<32x400xf32>
    %cst = arith.constant dense<0.000000e+00> : vector<4x400xf32>
    %6 = tpu.matmul %0, %5, %cst {dimension_numbers = #tpu.dot_dimension_numbers<[1], [0], [0], [1], [0, 0, 1, 1], [], []>} : vector<4x32xf32>, vector<32x400xf32>, vector<4x400xf32> -> vector<4x400xf32>
    %7 = arith.addf %6, %3 : vector<4x400xf32>
    %cst_7 = arith.constant 0.000000e+00 : f32
    %8 = vector.broadcast %cst_7 : f32 to vector<4x400xf32>
    %9 = arith.maximumf %7, %8 : vector<4x400xf32>
    %c0_8 = arith.constant 0 : index
    %c1 = arith.constant 1 : index
    %c0_9 = arith.constant 0 : index
    %c0_10 = arith.constant 0 : index
    %10 = vector.load %arg1[%c0_8, %c1, %c0_9, %c0_10] : memref<1x2x40x400xf32, #tpu.memory_space<vmem>>, vector<1x1x32x400xf32>
    %11 = vector.shape_cast %10 : vector<1x1x32x400xf32> to vector<32x400xf32>
    %cst_11 = arith.constant dense<0.000000e+00> : vector<4x400xf32>
    %12 = tpu.matmul %0, %11, %cst_11 {dimension_numbers = #tpu.dot_dimension_numbers<[1], [0], [0], [1], [0, 0, 1, 1], [], []>} : vector<4x32xf32>, vector<32x400xf32>, vector<4x400xf32> -> vector<4x400xf32>
    %13 = arith.addf %12, %3 : vector<4x400xf32>
    %cst_12 = arith.constant 0.000000e+00 : f32
    %14 = vector.broadcast %cst_12 : f32 to vector<4x400xf32>
    %15 = arith.maximumf %13, %14 : vector<4x400xf32>
    %16 = arith.maximumf %9, %15 : vector<4x400xf32>
    %c0_13 = arith.constant 0 : index
    %c0_14 = arith.constant 0 : index
    %c4 = arith.constant 4 : index
    %c0_15 = arith.constant 0 : index
    %17 = vector.load %arg1[%c0_13, %c0_14, %c4, %c0_15] : memref<1x2x40x400xf32, #tpu.memory_space<vmem>>, vector<1x1x32x400xf32>
    %18 = vector.shape_cast %17 : vector<1x1x32x400xf32> to vector<32x400xf32>
    %cst_16 = arith.constant dense<0.000000e+00> : vector<4x400xf32>
    %19 = tpu.matmul %0, %18, %cst_16 {dimension_numbers = #tpu.dot_dimension_numbers<[1], [0], [0], [1], [0, 0, 1, 1], [], []>} : vector<4x32xf32>, vector<32x400xf32>, vector<4x400xf32> -> vector<4x400xf32>
    %20 = arith.addf %19, %3 : vector<4x400xf32>
    %cst_17 = arith.constant 0.000000e+00 : f32
    %21 = vector.broadcast %cst_17 : f32 to vector<4x400xf32>
    %22 = arith.maximumf %20, %21 : vector<4x400xf32>
    %23 = arith.maximumf %16, %22 : vector<4x400xf32>
    %c0_18 = arith.constant 0 : index
    %c1_19 = arith.constant 1 : index
    %c4_20 = arith.constant 4 : index
    %c0_21 = arith.constant 0 : index
    %24 = vector.load %arg1[%c0_18, %c1_19, %c4_20, %c0_21] : memref<1x2x40x400xf32, #tpu.memory_space<vmem>>, vector<1x1x32x400xf32>
    %25 = vector.shape_cast %24 : vector<1x1x32x400xf32> to vector<32x400xf32>
    %cst_22 = arith.constant dense<0.000000e+00> : vector<4x400xf32>
    %26 = tpu.matmul %0, %25, %cst_22 {dimension_numbers = #tpu.dot_dimension_numbers<[1], [0], [0], [1], [0, 0, 1, 1], [], []>} : vector<4x32xf32>, vector<32x400xf32>, vector<4x400xf32> -> vector<4x400xf32>
    %27 = arith.addf %26, %3 : vector<4x400xf32>
    %cst_23 = arith.constant 0.000000e+00 : f32
    %28 = vector.broadcast %cst_23 : f32 to vector<4x400xf32>
    %29 = arith.maximumf %27, %28 : vector<4x400xf32>
    %30 = arith.maximumf %23, %29 : vector<4x400xf32>
    %c0_24 = arith.constant 0 : index
    %c0_25 = arith.constant 0 : index
    %c8 = arith.constant 8 : index
    %c0_26 = arith.constant 0 : index
    %31 = vector.load %arg1[%c0_24, %c0_25, %c8, %c0_26] : memref<1x2x40x400xf32, #tpu.memory_space<vmem>>, vector<1x1x32x400xf32>
    %32 = vector.shape_cast %31 : vector<1x1x32x400xf32> to vector<32x400xf32>
    %cst_27 = arith.constant dense<0.000000e+00> : vector<4x400xf32>
    %33 = tpu.matmul %0, %32, %cst_27 {dimension_numbers = #tpu.dot_dimension_numbers<[1], [0], [0], [1], [0, 0, 1, 1], [], []>} : vector<4x32xf32>, vector<32x400xf32>, vector<4x400xf32> -> vector<4x400xf32>
    %34 = arith.addf %33, %3 : vector<4x400xf32>
    %cst_28 = arith.constant 0.000000e+00 : f32
    %35 = vector.broadcast %cst_28 : f32 to vector<4x400xf32>
    %36 = arith.maximumf %34, %35 : vector<4x400xf32>
    %37 = arith.maximumf %30, %36 : vector<4x400xf32>
    %c0_29 = arith.constant 0 : index
    %c0_30 = arith.constant 0 : index
    %c0_31 = arith.constant 0 : index
    %38 = vector.load %arg2[%c0_29, %c0_30, %c0_31] : memref<19x400x80xf32, #tpu.memory_space<vmem>>, vector<1x400x80xf32>
    %39 = vector.shape_cast %38 : vector<1x400x80xf32> to vector<400x80xf32>
    %cst_32 = arith.constant dense<0.000000e+00> : vector<4x80xf32>
    %40 = tpu.matmul %37, %39, %cst_32 {dimension_numbers = #tpu.dot_dimension_numbers<[1], [0], [0], [1], [0, 0, 1, 1], [], []>} : vector<4x400xf32>, vector<400x80xf32>, vector<4x80xf32> -> vector<4x80xf32>
    %c0_33 = arith.constant 0 : index
    %c0_34 = arith.constant 0 : index
    %c0_35 = arith.constant 0 : index
    %41 = vector.load %arg13[%c0_33, %c0_34, %c0_35] : memref<2x40x80xf32, #tpu.memory_space<vmem>>, vector<1x4x80xf32>
    %42 = vector.shape_cast %41 : vector<1x4x80xf32> to vector<4x80xf32>
    %43 = vector.shape_cast %40 : vector<4x80xf32> to vector<1x4x80xf32>
    tpu.vector_store %arg13[%c0_33, %c0_34, %c0_35], %43 {strides = array<i32>} : memref<2x40x80xf32, #tpu.memory_space<vmem>>, vector<1x4x80xf32>,
    %c1_36 = arith.constant 1 : index
    %c0_37 = arith.constant 0 : index
    %c0_38 = arith.constant 0 : index
    %44 = vector.load %arg2[%c1_36, %c0_37, %c0_38] : memref<19x400x80xf32, #tpu.memory_space<vmem>>, vector<1x400x80xf32>
    %45 = vector.shape_cast %44 : vector<1x400x80xf32> to vector<400x80xf32>
    %cst_39 = arith.constant dense<0.000000e+00> : vector<4x80xf32>
    %46 = tpu.matmul %37, %45, %cst_39 {dimension_numbers = #tpu.dot_dimension_numbers<[1], [0], [0], [1], [0, 0, 1, 1], [], []>} : vector<4x400xf32>, vector<400x80xf32>, vector<4x80xf32> -> vector<4x80xf32>
    %c1_40 = arith.constant 1 : index
    %c0_41 = arith.constant 0 : index
    %c0_42 = arith.constant 0 : index
    %47 = vector.load %arg13[%c1_40, %c0_41, %c0_42] : memref<2x40x80xf32, #tpu.memory_space<vmem>>, vector<1x4x80xf32>
    %48 = vector.shape_cast %47 : vector<1x4x80xf32> to vector<4x80xf32>
    %49 = vector.shape_cast %46 : vector<4x80xf32> to vector<1x4x80xf32>
    tpu.vector_store %arg13[%c1_40, %c0_41, %c0_42], %49 {strides = array<i32>} : memref<2x40x80xf32, #tpu.memory_space<vmem>>, vector<1x4x80xf32>,
    %c2 = arith.constant 2 : index
    %c0_43 = arith.constant 0 : index
    %c0_44 = arith.constant 0 : index
    %50 = vector.load %arg2[%c2, %c0_43, %c0_44] : memref<19x400x80xf32, #tpu.memory_space<vmem>>, vector<1x400x80xf32>
    %51 = vector.shape_cast %50 : vector<1x400x80xf32> to vector<400x80xf32>
    %cst_45 = arith.constant dense<0.000000e+00> : vector<4x80xf32>
    %52 = tpu.matmul %37, %51, %cst_45 {dimension_numbers = #tpu.dot_dimension_numbers<[1], [0], [0], [1], [0, 0, 1, 1], [], []>} : vector<4x400xf32>, vector<400x80xf32>, vector<4x80xf32> -> vector<4x80xf32>
    %c0_46 = arith.constant 0 : index
    %c4_47 = arith.constant 4 : index
    %c0_48 = arith.constant 0 : index
    %53 = vector.load %arg13[%c0_46, %c4_47, %c0_48] : memref<2x40x80xf32, #tpu.memory_space<vmem>>, vector<1x4x80xf32>
    %54 = vector.shape_cast %53 : vector<1x4x80xf32> to vector<4x80xf32>
    %55 = vector.shape_cast %52 : vector<4x80xf32> to vector<1x4x80xf32>
    tpu.vector_store %arg13[%c0_46, %c4_47, %c0_48], %55 {strides = array<i32>} : memref<2x40x80xf32, #tpu.memory_space<vmem>>, vector<1x4x80xf32>,
    %c3 = arith.constant 3 : index
    %c0_49 = arith.constant 0 : index
    %c0_50 = arith.constant 0 : index
    %56 = vector.load %arg2[%c3, %c0_49, %c0_50] : memref<19x400x80xf32, #tpu.memory_space<vmem>>, vector<1x400x80xf32>
    %57 = vector.shape_cast %56 : vector<1x400x80xf32> to vector<400x80xf32>
    %cst_51 = arith.constant dense<0.000000e+00> : vector<4x80xf32>
    %58 = tpu.matmul %37, %57, %cst_51 {dimension_numbers = #tpu.dot_dimension_numbers<[1], [0], [0], [1], [0, 0, 1, 1], [], []>} : vector<4x400xf32>, vector<400x80xf32>, vector<4x80xf32> -> vector<4x80xf32>
    %c1_52 = arith.constant 1 : index
    %c4_53 = arith.constant 4 : index
    %c0_54 = arith.constant 0 : index
    %59 = vector.load %arg13[%c1_52, %c4_53, %c0_54] : memref<2x40x80xf32, #tpu.memory_space<vmem>>, vector<1x4x80xf32>
    %60 = vector.shape_cast %59 : vector<1x4x80xf32> to vector<4x80xf32>
    %61 = vector.shape_cast %58 : vector<4x80xf32> to vector<1x4x80xf32>
    tpu.vector_store %arg13[%c1_52, %c4_53, %c0_54], %61 {strides = array<i32>} : memref<2x40x80xf32, #tpu.memory_space<vmem>>, vector<1x4x80xf32>,
    %c4_55 = arith.constant 4 : index
    %c0_56 = arith.constant 0 : index
    %c0_57 = arith.constant 0 : index
    %62 = vector.load %arg2[%c4_55, %c0_56, %c0_57] : memref<19x400x80xf32, #tpu.memory_space<vmem>>, vector<1x400x80xf32>
    %63 = vector.shape_cast %62 : vector<1x400x80xf32> to vector<400x80xf32>
    %cst_58 = arith.constant dense<0.000000e+00> : vector<4x80xf32>
    %64 = tpu.matmul %37, %63, %cst_58 {dimension_numbers = #tpu.dot_dimension_numbers<[1], [0], [0], [1], [0, 0, 1, 1], [], []>} : vector<4x400xf32>, vector<400x80xf32>, vector<4x80xf32> -> vector<4x80xf32>
    %c0_59 = arith.constant 0 : index
    %c8_60 = arith.constant 8 : index
    %c0_61 = arith.constant 0 : index
    %65 = vector.load %arg13[%c0_59, %c8_60, %c0_61] : memref<2x40x80xf32, #tpu.memory_space<vmem>>, vector<1x4x80xf32>
    %66 = vector.shape_cast %65 : vector<1x4x80xf32> to vector<4x80xf32>
    %67 = vector.shape_cast %64 : vector<4x80xf32> to vector<1x4x80xf32>
    tpu.vector_store %arg13[%c0_59, %c8_60, %c0_61], %67 {strides = array<i32>} : memref<2x40x80xf32, #tpu.memory_space<vmem>>, vector<1x4x80xf32>,
    %c5 = arith.constant 5 : index
    %c0_62 = arith.constant 0 : index
    %c0_63 = arith.constant 0 : index
    %68 = vector.load %arg2[%c5, %c0_62, %c0_63] : memref<19x400x80xf32, #tpu.memory_space<vmem>>, vector<1x400x80xf32>
    %69 = vector.shape_cast %68 : vector<1x400x80xf32> to vector<400x80xf32>
    %cst_64 = arith.constant dense<0.000000e+00> : vector<4x80xf32>
    %70 = tpu.matmul %37, %69, %cst_64 {dimension_numbers = #tpu.dot_dimension_numbers<[1], [0], [0], [1], [0, 0, 1, 1], [], []>} : vector<4x400xf32>, vector<400x80xf32>, vector<4x80xf32> -> vector<4x80xf32>
    %c1_65 = arith.constant 1 : index
    %c8_66 = arith.constant 8 : index
    %c0_67 = arith.constant 0 : index
    %71 = vector.load %arg13[%c1_65, %c8_66, %c0_67] : memref<2x40x80xf32, #tpu.memory_space<vmem>>, vector<1x4x80xf32>
    %72 = vector.shape_cast %71 : vector<1x4x80xf32> to vector<4x80xf32>
    %73 = vector.shape_cast %70 : vector<4x80xf32> to vector<1x4x80xf32>
    tpu.vector_store %arg13[%c1_65, %c8_66, %c0_67], %73 {strides = array<i32>} : memref<2x40x80xf32, #tpu.memory_space<vmem>>, vector<1x4x80xf32>,
    %c6 = arith.constant 6 : index
    %c0_68 = arith.constant 0 : index
    %c0_69 = arith.constant 0 : index
    %74 = vector.load %arg2[%c6, %c0_68, %c0_69] : memref<19x400x80xf32, #tpu.memory_space<vmem>>, vector<1x400x80xf32>
    %75 = vector.shape_cast %74 : vector<1x400x80xf32> to vector<400x80xf32>
    %cst_70 = arith.constant dense<0.000000e+00> : vector<4x80xf32>
    %76 = tpu.matmul %37, %75, %cst_70 {dimension_numbers = #tpu.dot_dimension_numbers<[1], [0], [0], [1], [0, 0, 1, 1], [], []>} : vector<4x400xf32>, vector<400x80xf32>, vector<4x80xf32> -> vector<4x80xf32>
    %c0_71 = arith.constant 0 : index
    %c12 = arith.constant 12 : index
    %c0_72 = arith.constant 0 : index
    %77 = vector.load %arg13[%c0_71, %c12, %c0_72] : memref<2x40x80xf32, #tpu.memory_space<vmem>>, vector<1x4x80xf32>
    %78 = vector.shape_cast %77 : vector<1x4x80xf32> to vector<4x80xf32>
    %79 = vector.shape_cast %76 : vector<4x80xf32> to vector<1x4x80xf32>
    tpu.vector_store %arg13[%c0_71, %c12, %c0_72], %79 {strides = array<i32>} : memref<2x40x80xf32, #tpu.memory_space<vmem>>, vector<1x4x80xf32>,
    %c7 = arith.constant 7 : index
    %c0_73 = arith.constant 0 : index
    %c0_74 = arith.constant 0 : index
    %80 = vector.load %arg2[%c7, %c0_73, %c0_74] : memref<19x400x80xf32, #tpu.memory_space<vmem>>, vector<1x400x80xf32>
    %81 = vector.shape_cast %80 : vector<1x400x80xf32> to vector<400x80xf32>
    %cst_75 = arith.constant dense<0.000000e+00> : vector<4x80xf32>
    %82 = tpu.matmul %37, %81, %cst_75 {dimension_numbers = #tpu.dot_dimension_numbers<[1], [0], [0], [1], [0, 0, 1, 1], [], []>} : vector<4x400xf32>, vector<400x80xf32>, vector<4x80xf32> -> vector<4x80xf32>
    %c1_76 = arith.constant 1 : index
    %c12_77 = arith.constant 12 : index
    %c0_78 = arith.constant 0 : index
    %83 = vector.load %arg13[%c1_76, %c12_77, %c0_78] : memref<2x40x80xf32, #tpu.memory_space<vmem>>, vector<1x4x80xf32>
    %84 = vector.shape_cast %83 : vector<1x4x80xf32> to vector<4x80xf32>
    %85 = vector.shape_cast %82 : vector<4x80xf32> to vector<1x4x80xf32>
    tpu.vector_store %arg13[%c1_76, %c12_77, %c0_78], %85 {strides = array<i32>} : memref<2x40x80xf32, #tpu.memory_space<vmem>>, vector<1x4x80xf32>,
    %c8_79 = arith.constant 8 : index
    %c0_80 = arith.constant 0 : index
    %c0_81 = arith.constant 0 : index
    %86 = vector.load %arg2[%c8_79, %c0_80, %c0_81] : memref<19x400x80xf32, #tpu.memory_space<vmem>>, vector<1x400x80xf32>
    %87 = vector.shape_cast %86 : vector<1x400x80xf32> to vector<400x80xf32>
    %cst_82 = arith.constant dense<0.000000e+00> : vector<4x80xf32>
    %88 = tpu.matmul %37, %87, %cst_82 {dimension_numbers = #tpu.dot_dimension_numbers<[1], [0], [0], [1], [0, 0, 1, 1], [], []>} : vector<4x400xf32>, vector<400x80xf32>, vector<4x80xf32> -> vector<4x80xf32>
    %c0_83 = arith.constant 0 : index
    %c16 = arith.constant 16 : index
    %c0_84 = arith.constant 0 : index
    %89 = vector.load %arg13[%c0_83, %c16, %c0_84] : memref<2x40x80xf32, #tpu.memory_space<vmem>>, vector<1x4x80xf32>
    %90 = vector.shape_cast %89 : vector<1x4x80xf32> to vector<4x80xf32>
    %91 = vector.shape_cast %88 : vector<4x80xf32> to vector<1x4x80xf32>
    tpu.vector_store %arg13[%c0_83, %c16, %c0_84], %91 {strides = array<i32>} : memref<2x40x80xf32, #tpu.memory_space<vmem>>, vector<1x4x80xf32>,
    %c9 = arith.constant 9 : index
    %c0_85 = arith.constant 0 : index
    %c0_86 = arith.constant 0 : index
    %92 = vector.load %arg2[%c9, %c0_85, %c0_86] : memref<19x400x80xf32, #tpu.memory_space<vmem>>, vector<1x400x80xf32>
    %93 = vector.shape_cast %92 : vector<1x400x80xf32> to vector<400x80xf32>
    %cst_87 = arith.constant dense<0.000000e+00> : vector<4x80xf32>
    %94 = tpu.matmul %37, %93, %cst_87 {dimension_numbers = #tpu.dot_dimension_numbers<[1], [0], [0], [1], [0, 0, 1, 1], [], []>} : vector<4x400xf32>, vector<400x80xf32>, vector<4x80xf32> -> vector<4x80xf32>
    %c1_88 = arith.constant 1 : index
    %c16_89 = arith.constant 16 : index
    %c0_90 = arith.constant 0 : index
    %95 = vector.load %arg13[%c1_88, %c16_89, %c0_90] : memref<2x40x80xf32, #tpu.memory_space<vmem>>, vector<1x4x80xf32>
    %96 = vector.shape_cast %95 : vector<1x4x80xf32> to vector<4x80xf32>
    %97 = vector.shape_cast %94 : vector<4x80xf32> to vector<1x4x80xf32>
    tpu.vector_store %arg13[%c1_88, %c16_89, %c0_90], %97 {strides = array<i32>} : memref<2x40x80xf32, #tpu.memory_space<vmem>>, vector<1x4x80xf32>,
    %c10 = arith.constant 10 : index
    %c0_91 = arith.constant 0 : index
    %c0_92 = arith.constant 0 : index
    %98 = vector.load %arg2[%c10, %c0_91, %c0_92] : memref<19x400x80xf32, #tpu.memory_space<vmem>>, vector<1x400x80xf32>
    %99 = vector.shape_cast %98 : vector<1x400x80xf32> to vector<400x80xf32>
    %cst_93 = arith.constant dense<0.000000e+00> : vector<4x80xf32>
    %100 = tpu.matmul %37, %99, %cst_93 {dimension_numbers = #tpu.dot_dimension_numbers<[1], [0], [0], [1], [0, 0, 1, 1], [], []>} : vector<4x400xf32>, vector<400x80xf32>, vector<4x80xf32> -> vector<4x80xf32>
    %c0_94 = arith.constant 0 : index
    %c20 = arith.constant 20 : index
    %c0_95 = arith.constant 0 : index
    %101 = vector.load %arg13[%c0_94, %c20, %c0_95] : memref<2x40x80xf32, #tpu.memory_space<vmem>>, vector<1x4x80xf32>
    %102 = vector.shape_cast %101 : vector<1x4x80xf32> to vector<4x80xf32>
    %103 = vector.shape_cast %100 : vector<4x80xf32> to vector<1x4x80xf32>
    tpu.vector_store %arg13[%c0_94, %c20, %c0_95], %103 {strides = array<i32>} : memref<2x40x80xf32, #tpu.memory_space<vmem>>, vector<1x4x80xf32>,
    %c11 = arith.constant 11 : index
    %c0_96 = arith.constant 0 : index
    %c0_97 = arith.constant 0 : index
    %104 = vector.load %arg2[%c11, %c0_96, %c0_97] : memref<19x400x80xf32, #tpu.memory_space<vmem>>, vector<1x400x80xf32>
    %105 = vector.shape_cast %104 : vector<1x400x80xf32> to vector<400x80xf32>
    %cst_98 = arith.constant dense<0.000000e+00> : vector<4x80xf32>
    %106 = tpu.matmul %37, %105, %cst_98 {dimension_numbers = #tpu.dot_dimension_numbers<[1], [0], [0], [1], [0, 0, 1, 1], [], []>} : vector<4x400xf32>, vector<400x80xf32>, vector<4x80xf32> -> vector<4x80xf32>
    %c1_99 = arith.constant 1 : index
    %c20_100 = arith.constant 20 : index
    %c0_101 = arith.constant 0 : index
    %107 = vector.load %arg13[%c1_99, %c20_100, %c0_101] : memref<2x40x80xf32, #tpu.memory_space<vmem>>, vector<1x4x80xf32>
    %108 = vector.shape_cast %107 : vector<1x4x80xf32> to vector<4x80xf32>
    %109 = vector.shape_cast %106 : vector<4x80xf32> to vector<1x4x80xf32>
    tpu.vector_store %arg13[%c1_99, %c20_100, %c0_101], %109 {strides = array<i32>} : memref<2x40x80xf32, #tpu.memory_space<vmem>>, vector<1x4x80xf32>,
    %c12_102 = arith.constant 12 : index
    %c0_103 = arith.constant 0 : index
    %c0_104 = arith.constant 0 : index
    %110 = vector.load %arg2[%c12_102, %c0_103, %c0_104] : memref<19x400x80xf32, #tpu.memory_space<vmem>>, vector<1x400x80xf32>
    %111 = vector.shape_cast %110 : vector<1x400x80xf32> to vector<400x80xf32>
    %cst_105 = arith.constant dense<0.000000e+00> : vector<4x80xf32>
    %112 = tpu.matmul %37, %111, %cst_105 {dimension_numbers = #tpu.dot_dimension_numbers<[1], [0], [0], [1], [0, 0, 1, 1], [], []>} : vector<4x400xf32>, vector<400x80xf32>, vector<4x80xf32> -> vector<4x80xf32>
    %c0_106 = arith.constant 0 : index
    %c24 = arith.constant 24 : index
    %c0_107 = arith.constant 0 : index
    %113 = vector.load %arg13[%c0_106, %c24, %c0_107] : memref<2x40x80xf32, #tpu.memory_space<vmem>>, vector<1x4x80xf32>
    %114 = vector.shape_cast %113 : vector<1x4x80xf32> to vector<4x80xf32>
    %115 = vector.shape_cast %112 : vector<4x80xf32> to vector<1x4x80xf32>
    tpu.vector_store %arg13[%c0_106, %c24, %c0_107], %115 {strides = array<i32>} : memref<2x40x80xf32, #tpu.memory_space<vmem>>, vector<1x4x80xf32>,
    %c13 = arith.constant 13 : index
    %c0_108 = arith.constant 0 : index
    %c0_109 = arith.constant 0 : index
    %116 = vector.load %arg2[%c13, %c0_108, %c0_109] : memref<19x400x80xf32, #tpu.memory_space<vmem>>, vector<1x400x80xf32>
    %117 = vector.shape_cast %116 : vector<1x400x80xf32> to vector<400x80xf32>
    %cst_110 = arith.constant dense<0.000000e+00> : vector<4x80xf32>
    %118 = tpu.matmul %37, %117, %cst_110 {dimension_numbers = #tpu.dot_dimension_numbers<[1], [0], [0], [1], [0, 0, 1, 1], [], []>} : vector<4x400xf32>, vector<400x80xf32>, vector<4x80xf32> -> vector<4x80xf32>
    %c1_111 = arith.constant 1 : index
    %c24_112 = arith.constant 24 : index
    %c0_113 = arith.constant 0 : index
    %119 = vector.load %arg13[%c1_111, %c24_112, %c0_113] : memref<2x40x80xf32, #tpu.memory_space<vmem>>, vector<1x4x80xf32>
    %120 = vector.shape_cast %119 : vector<1x4x80xf32> to vector<4x80xf32>
    %121 = vector.shape_cast %118 : vector<4x80xf32> to vector<1x4x80xf32>
    tpu.vector_store %arg13[%c1_111, %c24_112, %c0_113], %121 {strides = array<i32>} : memref<2x40x80xf32, #tpu.memory_space<vmem>>, vector<1x4x80xf32>,
    %c14 = arith.constant 14 : index
    %c0_114 = arith.constant 0 : index
    %c0_115 = arith.constant 0 : index
    %122 = vector.load %arg2[%c14, %c0_114, %c0_115] : memref<19x400x80xf32, #tpu.memory_space<vmem>>, vector<1x400x80xf32>
    %123 = vector.shape_cast %122 : vector<1x400x80xf32> to vector<400x80xf32>
    %cst_116 = arith.constant dense<0.000000e+00> : vector<4x80xf32>
    %124 = tpu.matmul %37, %123, %cst_116 {dimension_numbers = #tpu.dot_dimension_numbers<[1], [0], [0], [1], [0, 0, 1, 1], [], []>} : vector<4x400xf32>, vector<400x80xf32>, vector<4x80xf32> -> vector<4x80xf32>
    %c0_117 = arith.constant 0 : index
    %c28 = arith.constant 28 : index
    %c0_118 = arith.constant 0 : index
    %125 = vector.load %arg13[%c0_117, %c28, %c0_118] : memref<2x40x80xf32, #tpu.memory_space<vmem>>, vector<1x4x80xf32>
    %126 = vector.shape_cast %125 : vector<1x4x80xf32> to vector<4x80xf32>
    %127 = vector.shape_cast %124 : vector<4x80xf32> to vector<1x4x80xf32>
    tpu.vector_store %arg13[%c0_117, %c28, %c0_118], %127 {strides = array<i32>} : memref<2x40x80xf32, #tpu.memory_space<vmem>>, vector<1x4x80xf32>,
    %c15 = arith.constant 15 : index
    %c0_119 = arith.constant 0 : index
    %c0_120 = arith.constant 0 : index
    %128 = vector.load %arg2[%c15, %c0_119, %c0_120] : memref<19x400x80xf32, #tpu.memory_space<vmem>>, vector<1x400x80xf32>
    %129 = vector.shape_cast %128 : vector<1x400x80xf32> to vector<400x80xf32>
    %cst_121 = arith.constant dense<0.000000e+00> : vector<4x80xf32>
    %130 = tpu.matmul %37, %129, %cst_121 {dimension_numbers = #tpu.dot_dimension_numbers<[1], [0], [0], [1], [0, 0, 1, 1], [], []>} : vector<4x400xf32>, vector<400x80xf32>, vector<4x80xf32> -> vector<4x80xf32>
    %c1_122 = arith.constant 1 : index
    %c28_123 = arith.constant 28 : index
    %c0_124 = arith.constant 0 : index
    %131 = vector.load %arg13[%c1_122, %c28_123, %c0_124] : memref<2x40x80xf32, #tpu.memory_space<vmem>>, vector<1x4x80xf32>
    %132 = vector.shape_cast %131 : vector<1x4x80xf32> to vector<4x80xf32>
    %133 = vector.shape_cast %130 : vector<4x80xf32> to vector<1x4x80xf32>
    tpu.vector_store %arg13[%c1_122, %c28_123, %c0_124], %133 {strides = array<i32>} : memref<2x40x80xf32, #tpu.memory_space<vmem>>, vector<1x4x80xf32>,
    %c16_125 = arith.constant 16 : index
    %c0_126 = arith.constant 0 : index
    %c0_127 = arith.constant 0 : index
    %134 = vector.load %arg2[%c16_125, %c0_126, %c0_127] : memref<19x400x80xf32, #tpu.memory_space<vmem>>, vector<1x400x80xf32>
    %135 = vector.shape_cast %134 : vector<1x400x80xf32> to vector<400x80xf32>
    %cst_128 = arith.constant dense<0.000000e+00> : vector<4x80xf32>
    %136 = tpu.matmul %37, %135, %cst_128 {dimension_numbers = #tpu.dot_dimension_numbers<[1], [0], [0], [1], [0, 0, 1, 1], [], []>} : vector<4x400xf32>, vector<400x80xf32>, vector<4x80xf32> -> vector<4x80xf32>
    %c0_129 = arith.constant 0 : index
    %c32 = arith.constant 32 : index
    %c0_130 = arith.constant 0 : index
    %137 = vector.load %arg13[%c0_129, %c32, %c0_130] : memref<2x40x80xf32, #tpu.memory_space<vmem>>, vector<1x4x80xf32>
    %138 = vector.shape_cast %137 : vector<1x4x80xf32> to vector<4x80xf32>
    %139 = vector.shape_cast %136 : vector<4x80xf32> to vector<1x4x80xf32>
    tpu.vector_store %arg13[%c0_129, %c32, %c0_130], %139 {strides = array<i32>} : memref<2x40x80xf32, #tpu.memory_space<vmem>>, vector<1x4x80xf32>,
    %c17 = arith.constant 17 : index
    %c0_131 = arith.constant 0 : index
    %c0_132 = arith.constant 0 : index
    %140 = vector.load %arg2[%c17, %c0_131, %c0_132] : memref<19x400x80xf32, #tpu.memory_space<vmem>>, vector<1x400x80xf32>
    %141 = vector.shape_cast %140 : vector<1x400x80xf32> to vector<400x80xf32>
    %cst_133 = arith.constant dense<0.000000e+00> : vector<4x80xf32>
    %142 = tpu.matmul %37, %141, %cst_133 {dimension_numbers = #tpu.dot_dimension_numbers<[1], [0], [0], [1], [0, 0, 1, 1], [], []>} : vector<4x400xf32>, vector<400x80xf32>, vector<4x80xf32> -> vector<4x80xf32>
    %c1_134 = arith.constant 1 : index
    %c32_135 = arith.constant 32 : index
    %c0_136 = arith.constant 0 : index
    %143 = vector.load %arg13[%c1_134, %c32_135, %c0_136] : memref<2x40x80xf32, #tpu.memory_space<vmem>>, vector<1x4x80xf32>
    %144 = vector.shape_cast %143 : vector<1x4x80xf32> to vector<4x80xf32>
    %145 = vector.shape_cast %142 : vector<4x80xf32> to vector<1x4x80xf32>
    tpu.vector_store %arg13[%c1_134, %c32_135, %c0_136], %145 {strides = array<i32>} : memref<2x40x80xf32, #tpu.memory_space<vmem>>, vector<1x4x80xf32>,
    %c18 = arith.constant 18 : index
    %c0_137 = arith.constant 0 : index
    %c0_138 = arith.constant 0 : index
    %146 = vector.load %arg2[%c18, %c0_137, %c0_138] : memref<19x400x80xf32, #tpu.memory_space<vmem>>, vector<1x400x80xf32>
    %147 = vector.shape_cast %146 : vector<1x400x80xf32> to vector<400x80xf32>
    %cst_139 = arith.constant dense<0.000000e+00> : vector<4x80xf32>
    %148 = tpu.matmul %37, %147, %cst_139 {dimension_numbers = #tpu.dot_dimension_numbers<[1], [0], [0], [1], [0, 0, 1, 1], [], []>} : vector<4x400xf32>, vector<400x80xf32>, vector<4x80xf32> -> vector<4x80xf32>
    %c0_140 = arith.constant 0 : index
    %c36 = arith.constant 36 : index
    %c0_141 = arith.constant 0 : index
    %149 = vector.load %arg13[%c0_140, %c36, %c0_141] : memref<2x40x80xf32, #tpu.memory_space<vmem>>, vector<1x4x80xf32>
    %150 = vector.shape_cast %149 : vector<1x4x80xf32> to vector<4x80xf32>
    %151 = vector.shape_cast %148 : vector<4x80xf32> to vector<1x4x80xf32>
    tpu.vector_store %arg13[%c0_140, %c36, %c0_141], %151 {strides = array<i32>} : memref<2x40x80xf32, #tpu.memory_space<vmem>>, vector<1x4x80xf32>,
    %c0_142 = arith.constant 0 : index
    %c0_143 = arith.constant 0 : index
    %152 = vector.load %arg6[%c0_142, %c0_143] : memref<4x32xf32, #tpu.memory_space<vmem>>, vector<4x32xf32>
    %c0_144 = arith.constant 0 : index
    %c0_145 = arith.constant 0 : index
    %153 = vector.load %arg7[%c0_144, %c0_145] : memref<4x1xf32, #tpu.memory_space<vmem>>, vector<4x1xf32>
    %154 = vector.shape_cast %153 : vector<4x1xf32> to vector<4x1xf32>
    %155 = vector.broadcast %154 : vector<4x1xf32> to vector<4x80xf32>
    %c0_146 = arith.constant 0 : index
    %c0_147 = arith.constant 0 : index
    %c0_148 = arith.constant 0 : index
    %156 = vector.load %arg13[%c0_146, %c0_147, %c0_148] : memref<2x40x80xf32, #tpu.memory_space<vmem>>, vector<1x32x80xf32>
    %157 = vector.shape_cast %156 : vector<1x32x80xf32> to vector<32x80xf32>
    %cst_149 = arith.constant dense<0.000000e+00> : vector<4x80xf32>
    %158 = tpu.matmul %152, %157, %cst_149 {dimension_numbers = #tpu.dot_dimension_numbers<[1], [0], [0], [1], [0, 0, 1, 1], [], []>} : vector<4x32xf32>, vector<32x80xf32>, vector<4x80xf32> -> vector<4x80xf32>
    %159 = arith.addf %158, %155 : vector<4x80xf32>
    %cst_150 = arith.constant 0.000000e+00 : f32
    %160 = vector.broadcast %cst_150 : f32 to vector<4x80xf32>
    %161 = arith.maximumf %159, %160 : vector<4x80xf32>
    %c1_151 = arith.constant 1 : index
    %c0_152 = arith.constant 0 : index
    %c0_153 = arith.constant 0 : index
    %162 = vector.load %arg13[%c1_151, %c0_152, %c0_153] : memref<2x40x80xf32, #tpu.memory_space<vmem>>, vector<1x32x80xf32>
    %163 = vector.shape_cast %162 : vector<1x32x80xf32> to vector<32x80xf32>
    %cst_154 = arith.constant dense<0.000000e+00> : vector<4x80xf32>
    %164 = tpu.matmul %152, %163, %cst_154 {dimension_numbers = #tpu.dot_dimension_numbers<[1], [0], [0], [1], [0, 0, 1, 1], [], []>} : vector<4x32xf32>, vector<32x80xf32>, vector<4x80xf32> -> vector<4x80xf32>
    %165 = arith.addf %164, %155 : vector<4x80xf32>
    %cst_155 = arith.constant 0.000000e+00 : f32
    %166 = vector.broadcast %cst_155 : f32 to vector<4x80xf32>
    %167 = arith.maximumf %165, %166 : vector<4x80xf32>
    %168 = arith.maximumf %161, %167 : vector<4x80xf32>
    %c0_156 = arith.constant 0 : index
    %c4_157 = arith.constant 4 : index
    %c0_158 = arith.constant 0 : index
    %169 = vector.load %arg13[%c0_156, %c4_157, %c0_158] : memref<2x40x80xf32, #tpu.memory_space<vmem>>, vector<1x32x80xf32>
    %170 = vector.shape_cast %169 : vector<1x32x80xf32> to vector<32x80xf32>
    %cst_159 = arith.constant dense<0.000000e+00> : vector<4x80xf32>
    %171 = tpu.matmul %152, %170, %cst_159 {dimension_numbers = #tpu.dot_dimension_numbers<[1], [0], [0], [1], [0, 0, 1, 1], [], []>} : vector<4x32xf32>, vector<32x80xf32>, vector<4x80xf32> -> vector<4x80xf32>
    %172 = arith.addf %171, %155 : vector<4x80xf32>
    %cst_160 = arith.constant 0.000000e+00 : f32
    %173 = vector.broadcast %cst_160 : f32 to vector<4x80xf32>
    %174 = arith.maximumf %172, %173 : vector<4x80xf32>
    %175 = arith.maximumf %168, %174 : vector<4x80xf32>
    %c1_161 = arith.constant 1 : index
    %c4_162 = arith.constant 4 : index
    %c0_163 = arith.constant 0 : index
    %176 = vector.load %arg13[%c1_161, %c4_162, %c0_163] : memref<2x40x80xf32, #tpu.memory_space<vmem>>, vector<1x32x80xf32>
    %177 = vector.shape_cast %176 : vector<1x32x80xf32> to vector<32x80xf32>
    %cst_164 = arith.constant dense<0.000000e+00> : vector<4x80xf32>
    %178 = tpu.matmul %152, %177, %cst_164 {dimension_numbers = #tpu.dot_dimension_numbers<[1], [0], [0], [1], [0, 0, 1, 1], [], []>} : vector<4x32xf32>, vector<32x80xf32>, vector<4x80xf32> -> vector<4x80xf32>
    %179 = arith.addf %178, %155 : vector<4x80xf32>
    %cst_165 = arith.constant 0.000000e+00 : f32
    %180 = vector.broadcast %cst_165 : f32 to vector<4x80xf32>
    %181 = arith.maximumf %179, %180 : vector<4x80xf32>
    %182 = arith.maximumf %175, %181 : vector<4x80xf32>
    %c0_166 = arith.constant 0 : index
    %c8_167 = arith.constant 8 : index
    %c0_168 = arith.constant 0 : index
    %183 = vector.load %arg13[%c0_166, %c8_167, %c0_168] : memref<2x40x80xf32, #tpu.memory_space<vmem>>, vector<1x32x80xf32>
    %184 = vector.shape_cast %183 : vector<1x32x80xf32> to vector<32x80xf32>
    %cst_169 = arith.constant dense<0.000000e+00> : vector<4x80xf32>
    %185 = tpu.matmul %152, %184, %cst_169 {dimension_numbers = #tpu.dot_dimension_numbers<[1], [0], [0], [1], [0, 0, 1, 1], [], []>} : vector<4x32xf32>, vector<32x80xf32>, vector<4x80xf32> -> vector<4x80xf32>
    %186 = arith.addf %185, %155 : vector<4x80xf32>
    %cst_170 = arith.constant 0.000000e+00 : f32
    %187 = vector.broadcast %cst_170 : f32 to vector<4x80xf32>
    %188 = arith.maximumf %186, %187 : vector<4x80xf32>
    %189 = arith.maximumf %182, %188 : vector<4x80xf32>
    %c0_171 = arith.constant 0 : index
    %c0_172 = arith.constant 0 : index
    %c0_173 = arith.constant 0 : index
    %190 = vector.load %arg3[%c0_171, %c0_172, %c0_173] : memref<19x80x16xf32, #tpu.memory_space<vmem>>, vector<1x80x16xf32>
    %191 = vector.shape_cast %190 : vector<1x80x16xf32> to vector<80x16xf32>
    %cst_174 = arith.constant dense<0.000000e+00> : vector<4x16xf32>
    %192 = tpu.matmul %189, %191, %cst_174 {dimension_numbers = #tpu.dot_dimension_numbers<[1], [0], [0], [1], [0, 0, 1, 1], [], []>} : vector<4x80xf32>, vector<80x16xf32>, vector<4x16xf32> -> vector<4x16xf32>
    %c0_175 = arith.constant 0 : index
    %c0_176 = arith.constant 0 : index
    %c0_177 = arith.constant 0 : index
    %193 = vector.load %arg14[%c0_175, %c0_176, %c0_177] : memref<2x40x16xf32, #tpu.memory_space<vmem>>, vector<1x4x16xf32>
    %194 = vector.shape_cast %193 : vector<1x4x16xf32> to vector<4x16xf32>
    %195 = vector.shape_cast %192 : vector<4x16xf32> to vector<1x4x16xf32>
    tpu.vector_store %arg14[%c0_175, %c0_176, %c0_177], %195 {strides = array<i32>} : memref<2x40x16xf32, #tpu.memory_space<vmem>>, vector<1x4x16xf32>,
    %c1_178 = arith.constant 1 : index
    %c0_179 = arith.constant 0 : index
    %c0_180 = arith.constant 0 : index
    %196 = vector.load %arg3[%c1_178, %c0_179, %c0_180] : memref<19x80x16xf32, #tpu.memory_space<vmem>>, vector<1x80x16xf32>
    %197 = vector.shape_cast %196 : vector<1x80x16xf32> to vector<80x16xf32>
    %cst_181 = arith.constant dense<0.000000e+00> : vector<4x16xf32>
    %198 = tpu.matmul %189, %197, %cst_181 {dimension_numbers = #tpu.dot_dimension_numbers<[1], [0], [0], [1], [0, 0, 1, 1], [], []>} : vector<4x80xf32>, vector<80x16xf32>, vector<4x16xf32> -> vector<4x16xf32>
    %c1_182 = arith.constant 1 : index
    %c0_183 = arith.constant 0 : index
    %c0_184 = arith.constant 0 : index
    %199 = vector.load %arg14[%c1_182, %c0_183, %c0_184] : memref<2x40x16xf32, #tpu.memory_space<vmem>>, vector<1x4x16xf32>
    %200 = vector.shape_cast %199 : vector<1x4x16xf32> to vector<4x16xf32>
    %201 = vector.shape_cast %198 : vector<4x16xf32> to vector<1x4x16xf32>
    tpu.vector_store %arg14[%c1_182, %c0_183, %c0_184], %201 {strides = array<i32>} : memref<2x40x16xf32, #tpu.memory_space<vmem>>, vector<1x4x16xf32>,
    %c2_185 = arith.constant 2 : index
    %c0_186 = arith.constant 0 : index
    %c0_187 = arith.constant 0 : index
    %202 = vector.load %arg3[%c2_185, %c0_186, %c0_187] : memref<19x80x16xf32, #tpu.memory_space<vmem>>, vector<1x80x16xf32>
    %203 = vector.shape_cast %202 : vector<1x80x16xf32> to vector<80x16xf32>
    %cst_188 = arith.constant dense<0.000000e+00> : vector<4x16xf32>
    %204 = tpu.matmul %189, %203, %cst_188 {dimension_numbers = #tpu.dot_dimension_numbers<[1], [0], [0], [1], [0, 0, 1, 1], [], []>} : vector<4x80xf32>, vector<80x16xf32>, vector<4x16xf32> -> vector<4x16xf32>
    %c0_189 = arith.constant 0 : index
    %c4_190 = arith.constant 4 : index
    %c0_191 = arith.constant 0 : index
    %205 = vector.load %arg14[%c0_189, %c4_190, %c0_191] : memref<2x40x16xf32, #tpu.memory_space<vmem>>, vector<1x4x16xf32>
    %206 = vector.shape_cast %205 : vector<1x4x16xf32> to vector<4x16xf32>
    %207 = vector.shape_cast %204 : vector<4x16xf32> to vector<1x4x16xf32>
    tpu.vector_store %arg14[%c0_189, %c4_190, %c0_191], %207 {strides = array<i32>} : memref<2x40x16xf32, #tpu.memory_space<vmem>>, vector<1x4x16xf32>,
    %c3_192 = arith.constant 3 : index
    %c0_193 = arith.constant 0 : index
    %c0_194 = arith.constant 0 : index
    %208 = vector.load %arg3[%c3_192, %c0_193, %c0_194] : memref<19x80x16xf32, #tpu.memory_space<vmem>>, vector<1x80x16xf32>
    %209 = vector.shape_cast %208 : vector<1x80x16xf32> to vector<80x16xf32>
    %cst_195 = arith.constant dense<0.000000e+00> : vector<4x16xf32>
    %210 = tpu.matmul %189, %209, %cst_195 {dimension_numbers = #tpu.dot_dimension_numbers<[1], [0], [0], [1], [0, 0, 1, 1], [], []>} : vector<4x80xf32>, vector<80x16xf32>, vector<4x16xf32> -> vector<4x16xf32>
    %c1_196 = arith.constant 1 : index
    %c4_197 = arith.constant 4 : index
    %c0_198 = arith.constant 0 : index
    %211 = vector.load %arg14[%c1_196, %c4_197, %c0_198] : memref<2x40x16xf32, #tpu.memory_space<vmem>>, vector<1x4x16xf32>
    %212 = vector.shape_cast %211 : vector<1x4x16xf32> to vector<4x16xf32>
    %213 = vector.shape_cast %210 : vector<4x16xf32> to vector<1x4x16xf32>
    tpu.vector_store %arg14[%c1_196, %c4_197, %c0_198], %213 {strides = array<i32>} : memref<2x40x16xf32, #tpu.memory_space<vmem>>, vector<1x4x16xf32>,
    %c4_199 = arith.constant 4 : index
    %c0_200 = arith.constant 0 : index
    %c0_201 = arith.constant 0 : index
    %214 = vector.load %arg3[%c4_199, %c0_200, %c0_201] : memref<19x80x16xf32, #tpu.memory_space<vmem>>, vector<1x80x16xf32>
    %215 = vector.shape_cast %214 : vector<1x80x16xf32> to vector<80x16xf32>
    %cst_202 = arith.constant dense<0.000000e+00> : vector<4x16xf32>
    %216 = tpu.matmul %189, %215, %cst_202 {dimension_numbers = #tpu.dot_dimension_numbers<[1], [0], [0], [1], [0, 0, 1, 1], [], []>} : vector<4x80xf32>, vector<80x16xf32>, vector<4x16xf32> -> vector<4x16xf32>
    %c0_203 = arith.constant 0 : index
    %c8_204 = arith.constant 8 : index
    %c0_205 = arith.constant 0 : index
    %217 = vector.load %arg14[%c0_203, %c8_204, %c0_205] : memref<2x40x16xf32, #tpu.memory_space<vmem>>, vector<1x4x16xf32>
    %218 = vector.shape_cast %217 : vector<1x4x16xf32> to vector<4x16xf32>
    %219 = vector.shape_cast %216 : vector<4x16xf32> to vector<1x4x16xf32>
    tpu.vector_store %arg14[%c0_203, %c8_204, %c0_205], %219 {strides = array<i32>} : memref<2x40x16xf32, #tpu.memory_space<vmem>>, vector<1x4x16xf32>,
    %c5_206 = arith.constant 5 : index
    %c0_207 = arith.constant 0 : index
    %c0_208 = arith.constant 0 : index
    %220 = vector.load %arg3[%c5_206, %c0_207, %c0_208] : memref<19x80x16xf32, #tpu.memory_space<vmem>>, vector<1x80x16xf32>
    %221 = vector.shape_cast %220 : vector<1x80x16xf32> to vector<80x16xf32>
    %cst_209 = arith.constant dense<0.000000e+00> : vector<4x16xf32>
    %222 = tpu.matmul %189, %221, %cst_209 {dimension_numbers = #tpu.dot_dimension_numbers<[1], [0], [0], [1], [0, 0, 1, 1], [], []>} : vector<4x80xf32>, vector<80x16xf32>, vector<4x16xf32> -> vector<4x16xf32>
    %c1_210 = arith.constant 1 : index
    %c8_211 = arith.constant 8 : index
    %c0_212 = arith.constant 0 : index
    %223 = vector.load %arg14[%c1_210, %c8_211, %c0_212] : memref<2x40x16xf32, #tpu.memory_space<vmem>>, vector<1x4x16xf32>
    %224 = vector.shape_cast %223 : vector<1x4x16xf32> to vector<4x16xf32>
    %225 = vector.shape_cast %222 : vector<4x16xf32> to vector<1x4x16xf32>
    tpu.vector_store %arg14[%c1_210, %c8_211, %c0_212], %225 {strides = array<i32>} : memref<2x40x16xf32, #tpu.memory_space<vmem>>, vector<1x4x16xf32>,
    %c6_213 = arith.constant 6 : index
    %c0_214 = arith.constant 0 : index
    %c0_215 = arith.constant 0 : index
    %226 = vector.load %arg3[%c6_213, %c0_214, %c0_215] : memref<19x80x16xf32, #tpu.memory_space<vmem>>, vector<1x80x16xf32>
    %227 = vector.shape_cast %226 : vector<1x80x16xf32> to vector<80x16xf32>
    %cst_216 = arith.constant dense<0.000000e+00> : vector<4x16xf32>
    %228 = tpu.matmul %189, %227, %cst_216 {dimension_numbers = #tpu.dot_dimension_numbers<[1], [0], [0], [1], [0, 0, 1, 1], [], []>} : vector<4x80xf32>, vector<80x16xf32>, vector<4x16xf32> -> vector<4x16xf32>
    %c0_217 = arith.constant 0 : index
    %c12_218 = arith.constant 12 : index
    %c0_219 = arith.constant 0 : index
    %229 = vector.load %arg14[%c0_217, %c12_218, %c0_219] : memref<2x40x16xf32, #tpu.memory_space<vmem>>, vector<1x4x16xf32>
    %230 = vector.shape_cast %229 : vector<1x4x16xf32> to vector<4x16xf32>
    %231 = vector.shape_cast %228 : vector<4x16xf32> to vector<1x4x16xf32>
    tpu.vector_store %arg14[%c0_217, %c12_218, %c0_219], %231 {strides = array<i32>} : memref<2x40x16xf32, #tpu.memory_space<vmem>>, vector<1x4x16xf32>,
    %c7_220 = arith.constant 7 : index
    %c0_221 = arith.constant 0 : index
    %c0_222 = arith.constant 0 : index
    %232 = vector.load %arg3[%c7_220, %c0_221, %c0_222] : memref<19x80x16xf32, #tpu.memory_space<vmem>>, vector<1x80x16xf32>
    %233 = vector.shape_cast %232 : vector<1x80x16xf32> to vector<80x16xf32>
    %cst_223 = arith.constant dense<0.000000e+00> : vector<4x16xf32>
    %234 = tpu.matmul %189, %233, %cst_223 {dimension_numbers = #tpu.dot_dimension_numbers<[1], [0], [0], [1], [0, 0, 1, 1], [], []>} : vector<4x80xf32>, vector<80x16xf32>, vector<4x16xf32> -> vector<4x16xf32>
    %c1_224 = arith.constant 1 : index
    %c12_225 = arith.constant 12 : index
    %c0_226 = arith.constant 0 : index
    %235 = vector.load %arg14[%c1_224, %c12_225, %c0_226] : memref<2x40x16xf32, #tpu.memory_space<vmem>>, vector<1x4x16xf32>
    %236 = vector.shape_cast %235 : vector<1x4x16xf32> to vector<4x16xf32>
    %237 = vector.shape_cast %234 : vector<4x16xf32> to vector<1x4x16xf32>
    tpu.vector_store %arg14[%c1_224, %c12_225, %c0_226], %237 {strides = array<i32>} : memref<2x40x16xf32, #tpu.memory_space<vmem>>, vector<1x4x16xf32>,
    %c8_227 = arith.constant 8 : index
    %c0_228 = arith.constant 0 : index
    %c0_229 = arith.constant 0 : index
    %238 = vector.load %arg3[%c8_227, %c0_228, %c0_229] : memref<19x80x16xf32, #tpu.memory_space<vmem>>, vector<1x80x16xf32>
    %239 = vector.shape_cast %238 : vector<1x80x16xf32> to vector<80x16xf32>
    %cst_230 = arith.constant dense<0.000000e+00> : vector<4x16xf32>
    %240 = tpu.matmul %189, %239, %cst_230 {dimension_numbers = #tpu.dot_dimension_numbers<[1], [0], [0], [1], [0, 0, 1, 1], [], []>} : vector<4x80xf32>, vector<80x16xf32>, vector<4x16xf32> -> vector<4x16xf32>
    %c0_231 = arith.constant 0 : index
    %c16_232 = arith.constant 16 : index
    %c0_233 = arith.constant 0 : index
    %241 = vector.load %arg14[%c0_231, %c16_232, %c0_233] : memref<2x40x16xf32, #tpu.memory_space<vmem>>, vector<1x4x16xf32>
    %242 = vector.shape_cast %241 : vector<1x4x16xf32> to vector<4x16xf32>
    %243 = vector.shape_cast %240 : vector<4x16xf32> to vector<1x4x16xf32>
    tpu.vector_store %arg14[%c0_231, %c16_232, %c0_233], %243 {strides = array<i32>} : memref<2x40x16xf32, #tpu.memory_space<vmem>>, vector<1x4x16xf32>,
    %c9_234 = arith.constant 9 : index
    %c0_235 = arith.constant 0 : index
    %c0_236 = arith.constant 0 : index
    %244 = vector.load %arg3[%c9_234, %c0_235, %c0_236] : memref<19x80x16xf32, #tpu.memory_space<vmem>>, vector<1x80x16xf32>
    %245 = vector.shape_cast %244 : vector<1x80x16xf32> to vector<80x16xf32>
    %cst_237 = arith.constant dense<0.000000e+00> : vector<4x16xf32>
    %246 = tpu.matmul %189, %245, %cst_237 {dimension_numbers = #tpu.dot_dimension_numbers<[1], [0], [0], [1], [0, 0, 1, 1], [], []>} : vector<4x80xf32>, vector<80x16xf32>, vector<4x16xf32> -> vector<4x16xf32>
    %c1_238 = arith.constant 1 : index
    %c16_239 = arith.constant 16 : index
    %c0_240 = arith.constant 0 : index
    %247 = vector.load %arg14[%c1_238, %c16_239, %c0_240] : memref<2x40x16xf32, #tpu.memory_space<vmem>>, vector<1x4x16xf32>
    %248 = vector.shape_cast %247 : vector<1x4x16xf32> to vector<4x16xf32>
    %249 = vector.shape_cast %246 : vector<4x16xf32> to vector<1x4x16xf32>
    tpu.vector_store %arg14[%c1_238, %c16_239, %c0_240], %249 {strides = array<i32>} : memref<2x40x16xf32, #tpu.memory_space<vmem>>, vector<1x4x16xf32>,
    %c10_241 = arith.constant 10 : index
    %c0_242 = arith.constant 0 : index
    %c0_243 = arith.constant 0 : index
    %250 = vector.load %arg3[%c10_241, %c0_242, %c0_243] : memref<19x80x16xf32, #tpu.memory_space<vmem>>, vector<1x80x16xf32>
    %251 = vector.shape_cast %250 : vector<1x80x16xf32> to vector<80x16xf32>
    %cst_244 = arith.constant dense<0.000000e+00> : vector<4x16xf32>
    %252 = tpu.matmul %189, %251, %cst_244 {dimension_numbers = #tpu.dot_dimension_numbers<[1], [0], [0], [1], [0, 0, 1, 1], [], []>} : vector<4x80xf32>, vector<80x16xf32>, vector<4x16xf32> -> vector<4x16xf32>
    %c0_245 = arith.constant 0 : index
    %c20_246 = arith.constant 20 : index
    %c0_247 = arith.constant 0 : index
    %253 = vector.load %arg14[%c0_245, %c20_246, %c0_247] : memref<2x40x16xf32, #tpu.memory_space<vmem>>, vector<1x4x16xf32>
    %254 = vector.shape_cast %253 : vector<1x4x16xf32> to vector<4x16xf32>
    %255 = vector.shape_cast %252 : vector<4x16xf32> to vector<1x4x16xf32>
    tpu.vector_store %arg14[%c0_245, %c20_246, %c0_247], %255 {strides = array<i32>} : memref<2x40x16xf32, #tpu.memory_space<vmem>>, vector<1x4x16xf32>,
    %c11_248 = arith.constant 11 : index
    %c0_249 = arith.constant 0 : index
    %c0_250 = arith.constant 0 : index
    %256 = vector.load %arg3[%c11_248, %c0_249, %c0_250] : memref<19x80x16xf32, #tpu.memory_space<vmem>>, vector<1x80x16xf32>
    %257 = vector.shape_cast %256 : vector<1x80x16xf32> to vector<80x16xf32>
    %cst_251 = arith.constant dense<0.000000e+00> : vector<4x16xf32>
    %258 = tpu.matmul %189, %257, %cst_251 {dimension_numbers = #tpu.dot_dimension_numbers<[1], [0], [0], [1], [0, 0, 1, 1], [], []>} : vector<4x80xf32>, vector<80x16xf32>, vector<4x16xf32> -> vector<4x16xf32>
    %c1_252 = arith.constant 1 : index
    %c20_253 = arith.constant 20 : index
    %c0_254 = arith.constant 0 : index
    %259 = vector.load %arg14[%c1_252, %c20_253, %c0_254] : memref<2x40x16xf32, #tpu.memory_space<vmem>>, vector<1x4x16xf32>
    %260 = vector.shape_cast %259 : vector<1x4x16xf32> to vector<4x16xf32>
    %261 = vector.shape_cast %258 : vector<4x16xf32> to vector<1x4x16xf32>
    tpu.vector_store %arg14[%c1_252, %c20_253, %c0_254], %261 {strides = array<i32>} : memref<2x40x16xf32, #tpu.memory_space<vmem>>, vector<1x4x16xf32>,
    %c12_255 = arith.constant 12 : index
    %c0_256 = arith.constant 0 : index
    %c0_257 = arith.constant 0 : index
    %262 = vector.load %arg3[%c12_255, %c0_256, %c0_257] : memref<19x80x16xf32, #tpu.memory_space<vmem>>, vector<1x80x16xf32>
    %263 = vector.shape_cast %262 : vector<1x80x16xf32> to vector<80x16xf32>
    %cst_258 = arith.constant dense<0.000000e+00> : vector<4x16xf32>
    %264 = tpu.matmul %189, %263, %cst_258 {dimension_numbers = #tpu.dot_dimension_numbers<[1], [0], [0], [1], [0, 0, 1, 1], [], []>} : vector<4x80xf32>, vector<80x16xf32>, vector<4x16xf32> -> vector<4x16xf32>
    %c0_259 = arith.constant 0 : index
    %c24_260 = arith.constant 24 : index
    %c0_261 = arith.constant 0 : index
    %265 = vector.load %arg14[%c0_259, %c24_260, %c0_261] : memref<2x40x16xf32, #tpu.memory_space<vmem>>, vector<1x4x16xf32>
    %266 = vector.shape_cast %265 : vector<1x4x16xf32> to vector<4x16xf32>
    %267 = vector.shape_cast %264 : vector<4x16xf32> to vector<1x4x16xf32>
    tpu.vector_store %arg14[%c0_259, %c24_260, %c0_261], %267 {strides = array<i32>} : memref<2x40x16xf32, #tpu.memory_space<vmem>>, vector<1x4x16xf32>,
    %c13_262 = arith.constant 13 : index
    %c0_263 = arith.constant 0 : index
    %c0_264 = arith.constant 0 : index
    %268 = vector.load %arg3[%c13_262, %c0_263, %c0_264] : memref<19x80x16xf32, #tpu.memory_space<vmem>>, vector<1x80x16xf32>
    %269 = vector.shape_cast %268 : vector<1x80x16xf32> to vector<80x16xf32>
    %cst_265 = arith.constant dense<0.000000e+00> : vector<4x16xf32>
    %270 = tpu.matmul %189, %269, %cst_265 {dimension_numbers = #tpu.dot_dimension_numbers<[1], [0], [0], [1], [0, 0, 1, 1], [], []>} : vector<4x80xf32>, vector<80x16xf32>, vector<4x16xf32> -> vector<4x16xf32>
    %c1_266 = arith.constant 1 : index
    %c24_267 = arith.constant 24 : index
    %c0_268 = arith.constant 0 : index
    %271 = vector.load %arg14[%c1_266, %c24_267, %c0_268] : memref<2x40x16xf32, #tpu.memory_space<vmem>>, vector<1x4x16xf32>
    %272 = vector.shape_cast %271 : vector<1x4x16xf32> to vector<4x16xf32>
    %273 = vector.shape_cast %270 : vector<4x16xf32> to vector<1x4x16xf32>
    tpu.vector_store %arg14[%c1_266, %c24_267, %c0_268], %273 {strides = array<i32>} : memref<2x40x16xf32, #tpu.memory_space<vmem>>, vector<1x4x16xf32>,
    %c14_269 = arith.constant 14 : index
    %c0_270 = arith.constant 0 : index
    %c0_271 = arith.constant 0 : index
    %274 = vector.load %arg3[%c14_269, %c0_270, %c0_271] : memref<19x80x16xf32, #tpu.memory_space<vmem>>, vector<1x80x16xf32>
    %275 = vector.shape_cast %274 : vector<1x80x16xf32> to vector<80x16xf32>
    %cst_272 = arith.constant dense<0.000000e+00> : vector<4x16xf32>
    %276 = tpu.matmul %189, %275, %cst_272 {dimension_numbers = #tpu.dot_dimension_numbers<[1], [0], [0], [1], [0, 0, 1, 1], [], []>} : vector<4x80xf32>, vector<80x16xf32>, vector<4x16xf32> -> vector<4x16xf32>
    %c0_273 = arith.constant 0 : index
    %c28_274 = arith.constant 28 : index
    %c0_275 = arith.constant 0 : index
    %277 = vector.load %arg14[%c0_273, %c28_274, %c0_275] : memref<2x40x16xf32, #tpu.memory_space<vmem>>, vector<1x4x16xf32>
    %278 = vector.shape_cast %277 : vector<1x4x16xf32> to vector<4x16xf32>
    %279 = vector.shape_cast %276 : vector<4x16xf32> to vector<1x4x16xf32>
    tpu.vector_store %arg14[%c0_273, %c28_274, %c0_275], %279 {strides = array<i32>} : memref<2x40x16xf32, #tpu.memory_space<vmem>>, vector<1x4x16xf32>,
    %c15_276 = arith.constant 15 : index
    %c0_277 = arith.constant 0 : index
    %c0_278 = arith.constant 0 : index
    %280 = vector.load %arg3[%c15_276, %c0_277, %c0_278] : memref<19x80x16xf32, #tpu.memory_space<vmem>>, vector<1x80x16xf32>
    %281 = vector.shape_cast %280 : vector<1x80x16xf32> to vector<80x16xf32>
    %cst_279 = arith.constant dense<0.000000e+00> : vector<4x16xf32>
    %282 = tpu.matmul %189, %281, %cst_279 {dimension_numbers = #tpu.dot_dimension_numbers<[1], [0], [0], [1], [0, 0, 1, 1], [], []>} : vector<4x80xf32>, vector<80x16xf32>, vector<4x16xf32> -> vector<4x16xf32>
    %c1_280 = arith.constant 1 : index
    %c28_281 = arith.constant 28 : index
    %c0_282 = arith.constant 0 : index
    %283 = vector.load %arg14[%c1_280, %c28_281, %c0_282] : memref<2x40x16xf32, #tpu.memory_space<vmem>>, vector<1x4x16xf32>
    %284 = vector.shape_cast %283 : vector<1x4x16xf32> to vector<4x16xf32>
    %285 = vector.shape_cast %282 : vector<4x16xf32> to vector<1x4x16xf32>
    tpu.vector_store %arg14[%c1_280, %c28_281, %c0_282], %285 {strides = array<i32>} : memref<2x40x16xf32, #tpu.memory_space<vmem>>, vector<1x4x16xf32>,
    %c16_283 = arith.constant 16 : index
    %c0_284 = arith.constant 0 : index
    %c0_285 = arith.constant 0 : index
    %286 = vector.load %arg3[%c16_283, %c0_284, %c0_285] : memref<19x80x16xf32, #tpu.memory_space<vmem>>, vector<1x80x16xf32>
    %287 = vector.shape_cast %286 : vector<1x80x16xf32> to vector<80x16xf32>
    %cst_286 = arith.constant dense<0.000000e+00> : vector<4x16xf32>
    %288 = tpu.matmul %189, %287, %cst_286 {dimension_numbers = #tpu.dot_dimension_numbers<[1], [0], [0], [1], [0, 0, 1, 1], [], []>} : vector<4x80xf32>, vector<80x16xf32>, vector<4x16xf32> -> vector<4x16xf32>
    %c0_287 = arith.constant 0 : index
    %c32_288 = arith.constant 32 : index
    %c0_289 = arith.constant 0 : index
    %289 = vector.load %arg14[%c0_287, %c32_288, %c0_289] : memref<2x40x16xf32, #tpu.memory_space<vmem>>, vector<1x4x16xf32>
    %290 = vector.shape_cast %289 : vector<1x4x16xf32> to vector<4x16xf32>
    %291 = vector.shape_cast %288 : vector<4x16xf32> to vector<1x4x16xf32>
    tpu.vector_store %arg14[%c0_287, %c32_288, %c0_289], %291 {strides = array<i32>} : memref<2x40x16xf32, #tpu.memory_space<vmem>>, vector<1x4x16xf32>,
    %c17_290 = arith.constant 17 : index
    %c0_291 = arith.constant 0 : index
    %c0_292 = arith.constant 0 : index
    %292 = vector.load %arg3[%c17_290, %c0_291, %c0_292] : memref<19x80x16xf32, #tpu.memory_space<vmem>>, vector<1x80x16xf32>
    %293 = vector.shape_cast %292 : vector<1x80x16xf32> to vector<80x16xf32>
    %cst_293 = arith.constant dense<0.000000e+00> : vector<4x16xf32>
    %294 = tpu.matmul %189, %293, %cst_293 {dimension_numbers = #tpu.dot_dimension_numbers<[1], [0], [0], [1], [0, 0, 1, 1], [], []>} : vector<4x80xf32>, vector<80x16xf32>, vector<4x16xf32> -> vector<4x16xf32>
    %c1_294 = arith.constant 1 : index
    %c32_295 = arith.constant 32 : index
    %c0_296 = arith.constant 0 : index
    %295 = vector.load %arg14[%c1_294, %c32_295, %c0_296] : memref<2x40x16xf32, #tpu.memory_space<vmem>>, vector<1x4x16xf32>
    %296 = vector.shape_cast %295 : vector<1x4x16xf32> to vector<4x16xf32>
    %297 = vector.shape_cast %294 : vector<4x16xf32> to vector<1x4x16xf32>
    tpu.vector_store %arg14[%c1_294, %c32_295, %c0_296], %297 {strides = array<i32>} : memref<2x40x16xf32, #tpu.memory_space<vmem>>, vector<1x4x16xf32>,
    %c18_297 = arith.constant 18 : index
    %c0_298 = arith.constant 0 : index
    %c0_299 = arith.constant 0 : index
    %298 = vector.load %arg3[%c18_297, %c0_298, %c0_299] : memref<19x80x16xf32, #tpu.memory_space<vmem>>, vector<1x80x16xf32>
    %299 = vector.shape_cast %298 : vector<1x80x16xf32> to vector<80x16xf32>
    %cst_300 = arith.constant dense<0.000000e+00> : vector<4x16xf32>
    %300 = tpu.matmul %189, %299, %cst_300 {dimension_numbers = #tpu.dot_dimension_numbers<[1], [0], [0], [1], [0, 0, 1, 1], [], []>} : vector<4x80xf32>, vector<80x16xf32>, vector<4x16xf32> -> vector<4x16xf32>
    %c0_301 = arith.constant 0 : index
    %c36_302 = arith.constant 36 : index
    %c0_303 = arith.constant 0 : index
    %301 = vector.load %arg14[%c0_301, %c36_302, %c0_303] : memref<2x40x16xf32, #tpu.memory_space<vmem>>, vector<1x4x16xf32>
    %302 = vector.shape_cast %301 : vector<1x4x16xf32> to vector<4x16xf32>
    %303 = vector.shape_cast %300 : vector<4x16xf32> to vector<1x4x16xf32>
    tpu.vector_store %arg14[%c0_301, %c36_302, %c0_303], %303 {strides = array<i32>} : memref<2x40x16xf32, #tpu.memory_space<vmem>>, vector<1x4x16xf32>,
    %c0_304 = arith.constant 0 : index
    %c0_305 = arith.constant 0 : index
    %304 = vector.load %arg8[%c0_304, %c0_305] : memref<1x32xf32, #tpu.memory_space<vmem>>, vector<1x32xf32>
    %c0_306 = arith.constant 0 : index
    %c0_307 = arith.constant 0 : index
    %305 = vector.load %arg9[%c0_306, %c0_307] : memref<1x1xf32, #tpu.memory_space<vmem>>, vector<1x1xf32>
    %306 = vector.shape_cast %305 : vector<1x1xf32> to vector<1x1xf32>
    %307 = vector.broadcast %306 : vector<1x1xf32> to vector<1x16xf32>
    %c0_308 = arith.constant 0 : index
    %c0_309 = arith.constant 0 : index
    %c0_310 = arith.constant 0 : index
    %308 = vector.load %arg14[%c0_308, %c0_309, %c0_310] : memref<2x40x16xf32, #tpu.memory_space<vmem>>, vector<1x32x16xf32>
    %309 = vector.shape_cast %308 : vector<1x32x16xf32> to vector<32x16xf32>
    %cst_311 = arith.constant dense<0.000000e+00> : vector<1x16xf32>
    %310 = tpu.matmul %304, %309, %cst_311 {dimension_numbers = #tpu.dot_dimension_numbers<[1], [0], [0], [1], [0, 0, 1, 1], [], []>} : vector<1x32xf32>, vector<32x16xf32>, vector<1x16xf32> -> vector<1x16xf32>
    %311 = arith.addf %310, %307 : vector<1x16xf32>
    %cst_312 = arith.constant 0.000000e+00 : f32
    %312 = vector.broadcast %cst_312 : f32 to vector<1x16xf32>
    %313 = arith.maximumf %311, %312 : vector<1x16xf32>
    %c1_313 = arith.constant 1 : index
    %c0_314 = arith.constant 0 : index
    %c0_315 = arith.constant 0 : index
    %314 = vector.load %arg14[%c1_313, %c0_314, %c0_315] : memref<2x40x16xf32, #tpu.memory_space<vmem>>, vector<1x32x16xf32>
    %315 = vector.shape_cast %314 : vector<1x32x16xf32> to vector<32x16xf32>
    %cst_316 = arith.constant dense<0.000000e+00> : vector<1x16xf32>
    %316 = tpu.matmul %304, %315, %cst_316 {dimension_numbers = #tpu.dot_dimension_numbers<[1], [0], [0], [1], [0, 0, 1, 1], [], []>} : vector<1x32xf32>, vector<32x16xf32>, vector<1x16xf32> -> vector<1x16xf32>
    %317 = arith.addf %316, %307 : vector<1x16xf32>
    %cst_317 = arith.constant 0.000000e+00 : f32
    %318 = vector.broadcast %cst_317 : f32 to vector<1x16xf32>
    %319 = arith.maximumf %317, %318 : vector<1x16xf32>
    %320 = arith.maximumf %313, %319 : vector<1x16xf32>
    %c0_318 = arith.constant 0 : index
    %c4_319 = arith.constant 4 : index
    %c0_320 = arith.constant 0 : index
    %321 = vector.load %arg14[%c0_318, %c4_319, %c0_320] : memref<2x40x16xf32, #tpu.memory_space<vmem>>, vector<1x32x16xf32>
    %322 = vector.shape_cast %321 : vector<1x32x16xf32> to vector<32x16xf32>
    %cst_321 = arith.constant dense<0.000000e+00> : vector<1x16xf32>
    %323 = tpu.matmul %304, %322, %cst_321 {dimension_numbers = #tpu.dot_dimension_numbers<[1], [0], [0], [1], [0, 0, 1, 1], [], []>} : vector<1x32xf32>, vector<32x16xf32>, vector<1x16xf32> -> vector<1x16xf32>
    %324 = arith.addf %323, %307 : vector<1x16xf32>
    %cst_322 = arith.constant 0.000000e+00 : f32
    %325 = vector.broadcast %cst_322 : f32 to vector<1x16xf32>
    %326 = arith.maximumf %324, %325 : vector<1x16xf32>
    %327 = arith.maximumf %320, %326 : vector<1x16xf32>
    %c1_323 = arith.constant 1 : index
    %c4_324 = arith.constant 4 : index
    %c0_325 = arith.constant 0 : index
    %328 = vector.load %arg14[%c1_323, %c4_324, %c0_325] : memref<2x40x16xf32, #tpu.memory_space<vmem>>, vector<1x32x16xf32>
    %329 = vector.shape_cast %328 : vector<1x32x16xf32> to vector<32x16xf32>
    %cst_326 = arith.constant dense<0.000000e+00> : vector<1x16xf32>
    %330 = tpu.matmul %304, %329, %cst_326 {dimension_numbers = #tpu.dot_dimension_numbers<[1], [0], [0], [1], [0, 0, 1, 1], [], []>} : vector<1x32xf32>, vector<32x16xf32>, vector<1x16xf32> -> vector<1x16xf32>
    %331 = arith.addf %330, %307 : vector<1x16xf32>
    %cst_327 = arith.constant 0.000000e+00 : f32
    %332 = vector.broadcast %cst_327 : f32 to vector<1x16xf32>
    %333 = arith.maximumf %331, %332 : vector<1x16xf32>
    %334 = arith.maximumf %327, %333 : vector<1x16xf32>
    %c0_328 = arith.constant 0 : index
    %c8_329 = arith.constant 8 : index
    %c0_330 = arith.constant 0 : index
    %335 = vector.load %arg14[%c0_328, %c8_329, %c0_330] : memref<2x40x16xf32, #tpu.memory_space<vmem>>, vector<1x32x16xf32>
    %336 = vector.shape_cast %335 : vector<1x32x16xf32> to vector<32x16xf32>
    %cst_331 = arith.constant dense<0.000000e+00> : vector<1x16xf32>
    %337 = tpu.matmul %304, %336, %cst_331 {dimension_numbers = #tpu.dot_dimension_numbers<[1], [0], [0], [1], [0, 0, 1, 1], [], []>} : vector<1x32xf32>, vector<32x16xf32>, vector<1x16xf32> -> vector<1x16xf32>
    %338 = arith.addf %337, %307 : vector<1x16xf32>
    %cst_332 = arith.constant 0.000000e+00 : f32
    %339 = vector.broadcast %cst_332 : f32 to vector<1x16xf32>
    %340 = arith.maximumf %338, %339 : vector<1x16xf32>
    %341 = arith.maximumf %334, %340 : vector<1x16xf32>
    %c0_333 = arith.constant 0 : index
    %c0_334 = arith.constant 0 : index
    %342 = vector.load %arg10[%c0_333, %c0_334] : memref<16x8xf32, #tpu.memory_space<vmem>>, vector<16x8xf32>
    %cst_335 = arith.constant dense<0.000000e+00> : vector<1x8xf32>
    %343 = tpu.matmul %341, %342, %cst_335 {dimension_numbers = #tpu.dot_dimension_numbers<[1], [0], [0], [1], [0, 0, 1, 1], [], []>} : vector<1x16xf32>, vector<16x8xf32>, vector<1x8xf32> -> vector<1x8xf32>
    %c0_336 = arith.constant 0 : index
    %c0_337 = arith.constant 0 : index
    %344 = vector.load %arg11[%c0_336, %c0_337] : memref<1x8xf32, #tpu.memory_space<vmem>>, vector<1x8xf32>
    %345 = arith.addf %343, %344 : vector<1x8xf32>
    %c0_338 = arith.constant 0 : index
    %c0_339 = arith.constant 0 : index
    %c0_340 = arith.constant 0 : index
    %346 = vector.load %arg12[%c0_338, %c0_339, %c0_340] : memref<1x1x8xf32, #tpu.memory_space<vmem>>, vector<1x1x8xf32>
    %347 = vector.shape_cast %346 : vector<1x1x8xf32> to vector<1x8xf32>
    %348 = vector.shape_cast %345 : vector<1x8xf32> to vector<1x1x8xf32>
    tpu.vector_store %arg12[%c0_338, %c0_339, %c0_340], %348 {strides = array<i32>} : memref<1x1x8xf32, #tpu.memory_space<vmem>>, vector<1x1x8xf32>,
    return
  }
  func.func @transform_0(%arg0: i32) -> (i32, i32, i32, i32) {
    %c0_i32 = arith.constant 0 : i32
    %c0_i32_0 = arith.constant 0 : i32
    %c0_i32_1 = arith.constant 0 : i32
    %c0_i32_2 = arith.constant 0 : i32
    return %arg0, %c0_i32, %c0_i32_0, %c0_i32_1 : i32, i32, i32, i32
  }
  func.func @transform_1(%arg0: i32) -> (i32, i32, i32) {
    %c0_i32 = arith.constant 0 : i32
    %c0_i32_0 = arith.constant 0 : i32
    %c0_i32_1 = arith.constant 0 : i32
    %c0_i32_2 = arith.constant 0 : i32
    return %c0_i32, %c0_i32_0, %c0_i32_1 : i32, i32, i32
  }
  func.func @transform_2(%arg0: i32) -> (i32, i32, i32) {
    %c0_i32 = arith.constant 0 : i32
    %c0_i32_0 = arith.constant 0 : i32
    %c0_i32_1 = arith.constant 0 : i32
    %c0_i32_2 = arith.constant 0 : i32
    return %c0_i32, %c0_i32_0, %c0_i32_1 : i32, i32, i32
  }
  func.func @transform_3(%arg0: i32) -> (i32, i32) {
    %c0_i32 = arith.constant 0 : i32
    %c0_i32_0 = arith.constant 0 : i32
    %c0_i32_1 = arith.constant 0 : i32
    return %c0_i32, %c0_i32_0 : i32, i32
  }
  func.func @transform_4(%arg0: i32) -> (i32, i32) {
    %c0_i32 = arith.constant 0 : i32
    %c0_i32_0 = arith.constant 0 : i32
    %c0_i32_1 = arith.constant 0 : i32
    return %c0_i32, %c0_i32_0 : i32, i32
  }
  func.func @transform_5(%arg0: i32) -> (i32, i32) {
    %c0_i32 = arith.constant 0 : i32
    %c0_i32_0 = arith.constant 0 : i32
    %c0_i32_1 = arith.constant 0 : i32
    return %c0_i32, %c0_i32_0 : i32, i32
  }
  func.func @transform_6(%arg0: i32) -> (i32, i32) {
    %c0_i32 = arith.constant 0 : i32
    %c0_i32_0 = arith.constant 0 : i32
    %c0_i32_1 = arith.constant 0 : i32
    return %c0_i32, %c0_i32_0 : i32, i32
  }
  func.func @transform_7(%arg0: i32) -> (i32, i32) {
    %c0_i32 = arith.constant 0 : i32
    %c0_i32_0 = arith.constant 0 : i32
    %c0_i32_1 = arith.constant 0 : i32
    return %c0_i32, %c0_i32_0 : i32, i32
  }
  func.func @transform_8(%arg0: i32) -> (i32, i32) {
    %c0_i32 = arith.constant 0 : i32
    %c0_i32_0 = arith.constant 0 : i32
    %c0_i32_1 = arith.constant 0 : i32
    return %c0_i32, %c0_i32_0 : i32, i32
  }
  func.func @transform_9(%arg0: i32) -> (i32, i32) {
    %c0_i32 = arith.constant 0 : i32
    %c0_i32_0 = arith.constant 0 : i32
    %c0_i32_1 = arith.constant 0 : i32
    return %c0_i32, %c0_i32_0 : i32, i32
  }
  func.func @transform_10(%arg0: i32) -> (i32, i32) {
    %c0_i32 = arith.constant 0 : i32
    %c0_i32_0 = arith.constant 0 : i32
    %c0_i32_1 = arith.constant 0 : i32
    return %c0_i32, %c0_i32_0 : i32, i32
  }
  func.func @transform_11(%arg0: i32) -> (i32, i32, i32) {
    %c0_i32 = arith.constant 0 : i32
    %c0_i32_0 = arith.constant 0 : i32
    %c0_i32_1 = arith.constant 0 : i32
    return %arg0, %c0_i32, %c0_i32_0 : i32, i32, i32
  }
}

</mosaic_0001>

<bundles_post_ra>
// kernel: _lambda_.1
= control target key start
LH: loop header
LB: loop body
LE: loop exit
PB: predicated region body
PF: predicated region fallthrough
CT: control target
= control target key end

     0   :  { %s12656_s0 = inlined_call_operand.vmem [shape: f32[2,2,40,400], index: 0, kind: input, shape index: {}]   ;;  %s12657_s1 = inlined_call_operand.hbm [shape: f32[19,400,80], index: 1, kind: input, shape index: {}]   ;;  %s12658_s2 = inlined_call_operand.hbm [shape: f32[19,80,16], index: 2, kind: input, shape index: {}]   ;;  %s12659_s3 = inlined_call_operand.hbm [shape: f32[4,32], index: 3, kind: input, shape index: {}]   ;;  %s12660_s4 = inlined_call_operand.hbm [shape: f32[4,1], index: 4, kind: input, shape index: {}]   ;;  %s12661_s5 = inlined_call_operand.hbm [shape: f32[4,32], index: 5, kind: input, shape index: {}]   ;;  %s12662_s6 = inlined_call_operand.hbm [shape: f32[4,1], index: 6, kind: input, shape index: {}]   ;;  %s12663_s7 = inlined_call_operand.hbm [shape: f32[1,32], index: 7, kind: input, shape index: {}]   ;;  %s12664_s8 = inlined_call_operand.<no memory space> [shape: f32[1,1], index: 8, kind: input, shape index: {}]   ;;  %s12665_s9 = inlined_call_operand.hbm [shape: f32[16,8], index: 9, kind: input, shape index: {}]   ;;  %s12666_s10 = inlined_call_operand.hbm [shape: f32[1,8], index: 10, kind: input, shape index: {}]   ;;  %s12667_s11 = inlined_call_operand.hbm [shape: f32[2,1,8], index: 11, kind: output, shape index: {}]  }
   0x1   :  { %12679 = sst [smem:[#allocation33_spill]] %s12658_s2  ;;  %v16_v0 = vstv %s12664_s8 }
   0x2   :  { %17 = vst [vmem:[#allocation4] sm:$0x1] %v16_v0 }
   0x3   :  { %18 = vsyncpa [#allocation6], 0 }
   0x4   :  { %19 = vsyncpa [#allocation9], 0 }
   0x5   :  { %20 = vsyncpa [#allocation12], 0 }
   0x6   :  { %21 = vsyncpa [#allocation15], 0 }
   0x7   :  { %22 = vsyncpa [#allocation18], 0 }
   0x8   :  { %23 = vsyncpa [#allocation7], 0 }
   0x9   :  { %25 = vsyncpa [#allocation7 + $0x1], 0  ;;  %s11421_s19 = smov 0   ;;  %s11423_s20 = smov 0  }
   0xa   :  { %s11425_s21 = smov 0   ;;  %s11427_s22 = smov 0  }
   0xb LB: > { %12680 = sst [smem:[#allocation27_spill]] %s11328_s19  ;;  %s11442_s8 = sadd.s32 4294967295, %s11340_s22   ;;  %s11340_s22 = sphi %s11427_s22, %s12709_s22   ;;  %s11336_s21 = sphi %s11425_s21, %s12711_s21   ;;  %s11332_s20 = sphi %s11423_s20, %s12713_s20   ;;  %s11328_s19 = sphi %s11421_s19, %s12712_s19  }
   0xc   : > { %12681 = sst [smem:[#allocation28_spill]] %s11336_s21  ;;  %s7716_s23 = sadd.s32 4294967294, %s11340_s22  }
   0xd   : > { %12682 = sst [smem:[#allocation29_spill]] %s11340_s22  ;;  %s11446_s24 = sadd.s32 1, %s11340_s22  }
   0xe   : > { %12683 = sst [smem:[#allocation30_spill]] %s11446_s24  ;;  %s274_s25 = sadd.s32 1, %s11336_s21 }
   0xf   : > { %s271_s26 = ssub.s32 %s11340_s22, %s11446_s24  ;;  %p284_p0 = scmp.ne.s32.totalorder %s11336_s21, %s11332_s20 }
  0x10   : > { %p272_p1 = scmp.eq.s32.totalorder %s271_s26, 0  ;;  %p285_p2 = scmp.eq.s32.totalorder %s11442_s8, 1 }
  0x11   : > { %p290_p3 = scmp.ne.s32.totalorder %s11332_s20, %s11328_s19  ;;  %p291_p4 = scmp.eq.s32.totalorder %s7716_s23, 1 }
  0x12   : > { %s11457_s27 = scalar_select %p272_p1, %s11336_s21, %s274_s25  }
  0x13   : > { %p11459_p5 = por %p285_p2, %p284_p0  ;;  %p11463_p6 = por %p291_p4, %p290_p3 }
  0x14   : > { %12684 = sst [smem:[#allocation31_spill]] %s11457_s27  ;;  %p7717_p7 = scmp.ge.s32.totalorder %s11340_s22, 1 }
  0x15   : > { %s12685_s28 = scalar_select %p11459_p5, 1, 0 }
  0x16   : > { %s12686_s29 = scalar_select %p11463_p6, 1, 0 }
  0x17   : > { %p298_p8 = scmp.lt.s32.totalorder %s11340_s22, 3  ;;  %p12669_p9 = scmp.eq.s32.totalorder %s11442_s8, 0 }
  0x18   : > { %12687 = sst [smem:[#allocation32_spill]] %s12686_s29  ;;  %s11342_s12 = smov [#allocation8]  }
  0x19   : > { %p11470_p10 = pnand %p7717_p7, %p298_p8  ;;  %s323_s13 = sshll.u32 %s11342_s12, 4  ;;  %s11476_s13 = int_to_ptr.vmem [resolvable:$true] %s323_s13 }
  0x1a   : > { %s11343_s15 = smov [#allocation11]   ;;  %s11344_s17 = smov [#allocation14]  }
  0x1b   : > { %s12688_s30 = scalar_select %p11470_p10, 1, 0 }
  0x1c   : > { %p10906_p11 = pneg %p11470_p10  ;;  %s348_s16 = sshll.u32 %s11343_s15, 4  ;;  %s11484_s16 = int_to_ptr.vmem [resolvable:$true] %s348_s16 }
  0x1d   : > { %s11486_s18 = sshll.u32 %s11344_s17, 4  ;;  %s12690_s2 = sld [smem:[#allocation33_spill]]  ;;  %s371_s18 = int_to_ptr.vmem [resolvable:$true] %s11486_s18 }
  0x1e   : > { %p11480_p12 = pnand %p12669_p9, %p10906_p11 }
  0x20   : > { %p11496_p0 = pneg %p11480_p12 }
  0x23   : > { %s11006_s26 = scalar_lea.hbm %s12690_s2, 24320 }
  0x24   : > { %p11007_p13 = scmp.ne.s32.totalorder %s12690_s2, %s11006_s26  ;;  %p11013_p3 = scmp.lt.u32.totalorder %s11006_s26, %s12690_s2 }
  0x26   : > { %p11009_p1 = pnand %p11496_p0, %p11007_p13 }
  0x28   : > { %p11010_p2 = pneg %p11009_p1 }
  0x2a   : > { %p11015_p4 = pnand %p11013_p3, %p11010_p2 }
  0x2c   : > { %11018 = shalt.err (!%p11015_p4)
}
  0x2d   : > { %s11019_s27 = scalar_lea.vmem %s11476_s13, 24320  ;;  %p11027_p9 = scmp.lt.s32.totalorder %s11476_s13, %s11476_s13 }
  0x2e   : > { %p11020_p7 = scmp.ne.s32.totalorder %s11476_s13, %s11019_s27  ;;  %p11028_p6 = scmp.lt.s32.totalorder %s11019_s27, %s11019_s27 }
  0x30   : > { %p11022_p8 = pnand %p11020_p7, %p11496_p0  ;;  %p11029_p13 = por %p11028_p6, %p11027_p9 }
  0x32   : > { %p11023_p11 = pneg %p11022_p8 }
  0x34   : > { %p11030_p1 = pnand %p11029_p13, %p11023_p11 }
  0x36   : > { %11033 = shalt.err (!%p11030_p1)
}
  0x37   : > { %s12677_s23 = smov 128   ;;  %s11346_s25 = smov 8  }
  0x38   : > { %10912 = dma.hbm_to_vmem [thread:$0]  (!%p11480_p12), %s12690_s2, 24320, %s11476_s13, [#allocation9], %s12677_s23, %s12677_s23, %s11346_s25  }
  0x39   : > { %s11034_s27 = scalar_lea.hbm %s12660_s4, 64 }
  0x3a   : > { %p11035_p6 = scmp.ne.s32.totalorder %s12660_s4, %s11034_s27  ;;  %p11041_p3 = scmp.lt.u32.totalorder %s11034_s27, %s12660_s4 }
  0x3c   : > { %p11037_p9 = pnand %p11035_p6, %p11496_p0 }
  0x3e   : > { %p11038_p2 = pneg %p11037_p9 }
  0x40   : > { %p11043_p4 = pnand %p11041_p3, %p11038_p2 }
  0x42   : > { %11046 = shalt.err (!%p11043_p4)
}
  0x43   : > { %s11047_s13 = scalar_lea.vmem %s11484_s16, 64  ;;  %p11055_p13 = scmp.lt.s32.totalorder %s11484_s16, %s11484_s16 }
  0x44   : > { %p11048_p7 = scmp.ne.s32.totalorder %s11484_s16, %s11047_s13  ;;  %p11056_p1 = scmp.lt.s32.totalorder %s11047_s13, %s11047_s13 }
  0x46   : > { %p11050_p8 = pnand %p11048_p7, %p11496_p0  ;;  %p11057_p6 = por %p11056_p1, %p11055_p13 }
  0x48   : > { %p11051_p11 = pneg %p11050_p8 }
  0x4a   : > { %p11058_p9 = pnand %p11057_p6, %p11051_p11 }
  0x4c   : > { %11061 = shalt.err (!%p11058_p9)
}
  0x4d   : > { %10918 = dma.hbm_to_vmem [thread:$0]  (!%p11480_p12), %s12660_s4, 64, %s11484_s16, [#allocation12]  }
  0x4e   : > { %s11062_s26 = scalar_lea.hbm %s12662_s6, 64 }
  0x4f   : > { %p11063_p2 = scmp.ne.s32.totalorder %s12662_s6, %s11062_s26  ;;  %p11069_p7 = scmp.lt.u32.totalorder %s11062_s26, %s12662_s6 }
  0x51   : > { %p11065_p3 = pnand %p11063_p2, %p11496_p0 }
  0x53   : > { %p11066_p4 = pneg %p11065_p3 }
  0x55   : > { %p11071_p8 = pnand %p11069_p7, %p11066_p4 }
  0x57   : > { %11074 = shalt.err (!%p11071_p8)
}
  0x58   : > { %s11075_s13 = scalar_lea.vmem %s371_s18, 64  ;;  %p11083_p6 = scmp.lt.s32.totalorder %s371_s18, %s371_s18 }
  0x59   : > { %p11076_p11 = scmp.ne.s32.totalorder %s371_s18, %s11075_s13  ;;  %p11084_p9 = scmp.lt.s32.totalorder %s11075_s13, %s11075_s13 }
  0x5b   : > { %p11078_p13 = pnand %p11076_p11, %p11496_p0  ;;  %p11085_p5 = por %p11084_p9, %p11083_p6 }
  0x5d   : > { %p11079_p1 = pneg %p11078_p13 }
  0x5f   : > { %p11086_p10 = pnand %p11085_p5, %p11079_p1 }
  0x61   : > { %11089 = shalt.err (!%p11086_p10)
}
  0x62   : > { %10924 = dma.hbm_to_vmem [thread:$0]  (!%p11480_p12), %s12662_s6, 64, %s371_s18, [#allocation15]  }
  0x63   : > { %s11347_s22 = smov [#allocation17]   ;;  %s11348_s29 = smov [#allocation5]  }
  0x64   : > { %s394_s24 = sshll.u32 %s11347_s22, 4  ;;  %s310_s26 = sshll.u32 %s11348_s29, 4  ;;  %s395_s24 = int_to_ptr.vmem [resolvable:$true] %s394_s24  ;;  %s311_s26 = int_to_ptr.vmem [resolvable:$true] %s310_s26 }
  0x65   : > { %s11090_s17 = scalar_lea.hbm %s12665_s9, 256 }
  0x66   : > { %p11091_p5 = scmp.ne.s32.totalorder %s12665_s9, %s11090_s17  ;;  %p11097_p3 = scmp.lt.u32.totalorder %s11090_s17, %s12665_s9 }
  0x68   : > { %p11093_p10 = pnand %p11091_p5, %p11496_p0 }
  0x6a   : > { %p11094_p2 = pneg %p11093_p10 }
  0x6c   : > { %p11099_p4 = pnand %p11097_p3, %p11094_p2 }
  0x6e   : > { %11102 = shalt.err (!%p11099_p4)
}
  0x6f   : > { %s11103_s18 = scalar_lea.vmem %s395_s24, 256  ;;  %p11111_p13 = scmp.lt.s32.totalorder %s395_s24, %s395_s24 }
  0x70   : > { %p11104_p7 = scmp.ne.s32.totalorder %s395_s24, %s11103_s18  ;;  %p11112_p1 = scmp.lt.s32.totalorder %s11103_s18, %s11103_s18 }
  0x72   : > { %p11106_p8 = pnand %p11104_p7, %p11496_p0  ;;  %p11113_p6 = por %p11112_p1, %p11111_p13 }
  0x74   : > { %p11107_p11 = pneg %p11106_p8 }
  0x76   : > { %p11114_p9 = pnand %p11113_p6, %p11107_p11 }
  0x78   : > { %11117 = shalt.err (!%p11114_p9)
}
  0x79   : > { %s12692_s19 = smov 128   ;;  %s11118_s15 = scalar_lea.hbm %s12657_s1, 121600 }
  0x7a   : > { %10930 = dma.hbm_to_vmem [thread:$0]  (!%p11480_p12), %s12665_s9, 256, %s395_s24, [#allocation18], %s12692_s19, %s12692_s19, %s11346_s25  }
  0x7b   : > { %p11119_p5 = scmp.ne.s32.totalorder %s12657_s1, %s11118_s15  ;;  %p11125_p3 = scmp.lt.u32.totalorder %s11118_s15, %s12657_s1 }
  0x7d   : > { %p11121_p10 = pnand %p11119_p5, %p11496_p0 }
  0x7f   : > { %p11122_p2 = pneg %p11121_p10 }
  0x81   : > { %p11127_p4 = pnand %p11125_p3, %p11122_p2 }
  0x83   : > { %11130 = shalt.err (!%p11127_p4)
}
  0x84   : > { %s11131_s18 = scalar_lea.vmem %s311_s26, 121600  ;;  %p11139_p13 = scmp.lt.s32.totalorder %s311_s26, %s311_s26 }
  0x85   : > { %p11132_p7 = scmp.ne.s32.totalorder %s311_s26, %s11131_s18  ;;  %p11140_p1 = scmp.lt.s32.totalorder %s11131_s18, %s11131_s18 }
  0x87   : > { %p11134_p8 = pnand %p11132_p7, %p11496_p0  ;;  %p11141_p6 = por %p11140_p1, %p11139_p13 }
  0x89   : > { %p11135_p11 = pneg %p11134_p8 }
  0x8b   : > { %p11142_p9 = pnand %p11141_p6, %p11135_p11 }
  0x8d   : > { %11145 = shalt.err (!%p11142_p9)
}
  0x8e   : > { %10909 = dma.hbm_to_vmem [thread:$0]  (!%p11480_p12), %s12657_s1, 121600, %s311_s26, [#allocation6], %s12692_s19, %s12692_s19, %s11346_s25  }
  0x8f   : > { %s11349_s22 = smov [#allocation10]   ;;  %s11350_s12 = smov [#allocation13]  }
  0x90   : > { %s337_s29 = sshll.u32 %s11349_s22, 4  ;;  %s359_s15 = sshll.u32 %s11350_s12, 4  ;;  %s338_s29 = int_to_ptr.vmem [resolvable:$true] %s337_s29  ;;  %s360_s15 = int_to_ptr.vmem [resolvable:$true] %s359_s15 }
  0x91   : > { %s11146_s13 = scalar_lea.hbm %s12659_s3, 64 }
  0x92   : > { %p11147_p5 = scmp.ne.s32.totalorder %s12659_s3, %s11146_s13  ;;  %p11153_p3 = scmp.lt.u32.totalorder %s11146_s13, %s12659_s3 }
  0x94   : > { %p11149_p10 = pnand %p11147_p5, %p11496_p0 }
  0x96   : > { %p11150_p2 = pneg %p11149_p10 }
  0x98   : > { %p11155_p4 = pnand %p11153_p3, %p11150_p2 }
  0x9a   : > { %11158 = shalt.err (!%p11155_p4)
}
  0x9b   : > { %s11159_s25 = scalar_lea.vmem %s338_s29, 64  ;;  %p11167_p13 = scmp.lt.s32.totalorder %s338_s29, %s338_s29 }
  0x9c   : > { %p11160_p7 = scmp.ne.s32.totalorder %s338_s29, %s11159_s25  ;;  %p11168_p1 = scmp.lt.s32.totalorder %s11159_s25, %s11159_s25 }
  0x9e   : > { %p11162_p8 = pnand %p11160_p7, %p11496_p0  ;;  %p11169_p6 = por %p11168_p1, %p11167_p13 }
  0xa0   : > { %p11163_p11 = pneg %p11162_p8 }
  0xa2   : > { %p11170_p9 = pnand %p11169_p6, %p11163_p11 }
  0xa4   : > { %11173 = shalt.err (!%p11170_p9)
}
  0xa5   : > { %10915 = dma.hbm_to_vmem [thread:$0]  (!%p11480_p12), %s12659_s3, 64, %s338_s29, [#allocation9]  }
  0xa6   : > { %s11174_s22 = scalar_lea.hbm %s12661_s5, 64 }
  0xa7   : > { %p11175_p5 = scmp.ne.s32.totalorder %s12661_s5, %s11174_s22  ;;  %p11181_p3 = scmp.lt.u32.totalorder %s11174_s22, %s12661_s5 }
  0xa9   : > { %p11177_p10 = pnand %p11175_p5, %p11496_p0 }
  0xab   : > { %p11178_p2 = pneg %p11177_p10 }
  0xad   : > { %p11183_p4 = pnand %p11181_p3, %p11178_p2 }
  0xaf   : > { %11186 = shalt.err (!%p11183_p4)
}
  0xb0   : > { %s11187_s16 = scalar_lea.vmem %s360_s15, 64  ;;  %p11195_p13 = scmp.lt.s32.totalorder %s360_s15, %s360_s15 }
  0xb1   : > { %p11188_p7 = scmp.ne.s32.totalorder %s360_s15, %s11187_s16  ;;  %p11196_p1 = scmp.lt.s32.totalorder %s11187_s16, %s11187_s16 }
  0xb3   : > { %p11190_p8 = pnand %p11188_p7, %p11496_p0  ;;  %p11197_p6 = por %p11196_p1, %p11195_p13 }
  0xb5   : > { %p11191_p11 = pneg %p11190_p8 }
  0xb7   : > { %p11198_p9 = pnand %p11197_p6, %p11191_p11 }
  0xb9   : > { %11201 = shalt.err (!%p11198_p9)
}
  0xba   : > { %10921 = dma.hbm_to_vmem [thread:$0]  (!%p11480_p12), %s12661_s5, 64, %s360_s15, [#allocation12]  }
  0xbb   : > { %s11351_s24 = smov [#allocation16]   ;;  %s11352_s26 = smov [#allocation19]  }
  0xbc   : > { %s381_s25 = sshll.u32 %s11351_s24, 4  ;;  %s408_s19 = sshll.u32 %s11352_s26, 4  ;;  %s382_s25 = int_to_ptr.vmem [resolvable:$true] %s381_s25  ;;  %s409_s19 = int_to_ptr.vmem [resolvable:$true] %s408_s19 }
  0xbd   : > { %s11202_s22 = scalar_lea.hbm %s12663_s7, 16 }
  0xbe   : > { %p11203_p5 = scmp.ne.s32.totalorder %s12663_s7, %s11202_s22  ;;  %p11209_p3 = scmp.lt.u32.totalorder %s11202_s22, %s12663_s7 }
  0xc0   : > { %p11205_p10 = pnand %p11203_p5, %p11496_p0 }
  0xc2   : > { %p11206_p2 = pneg %p11205_p10 }
  0xc4   : > { %p11211_p4 = pnand %p11209_p3, %p11206_p2 }
  0xc6   : > { %11214 = shalt.err (!%p11211_p4)
}
  0xc7   : > { %s11215_s15 = scalar_lea.vmem %s382_s25, 16  ;;  %s11222_s16 = scalar_lea.vmem %s382_s25, 32 }
  0xc8   : > { %p11216_p7 = scmp.ne.s32.totalorder %s382_s25, %s11215_s15  ;;  %p11223_p13 = scmp.lt.s32.totalorder %s382_s25, %s382_s25 }
  0xc9   : > { %p11224_p1 = scmp.lt.s32.totalorder %s11222_s16, %s11215_s15 }
  0xca   : > { %p11218_p8 = pnand %p11216_p7, %p11496_p0 }
  0xcb   : > { %p11225_p6 = por %p11224_p1, %p11223_p13 }
  0xcc   : > { %p11219_p11 = pneg %p11218_p8 }
  0xce   : > { %p11226_p9 = pnand %p11225_p6, %p11219_p11 }
  0xd0   : > { %11229 = shalt.err (!%p11226_p9)
}
  0xd1   : > { %10927 = dma.hbm_to_vmem [thread:$0]  (!%p11480_p12), %s12663_s7, 16, %s382_s25, [#allocation15]  }
  0xd2   : > { %s11230_s2 = scalar_lea.hbm %s12666_s10, 16 }
  0xd3   : > { %p11231_p5 = scmp.ne.s32.totalorder %s12666_s10, %s11230_s2  ;;  %p11237_p3 = scmp.lt.u32.totalorder %s11230_s2, %s12666_s10 }
  0xd5   : > { %p11233_p10 = pnand %p11231_p5, %p11496_p0 }
  0xd7   : > { %p11234_p2 = pneg %p11233_p10 }
  0xd9   : > { %p11239_p4 = pnand %p11237_p3, %p11234_p2 }
  0xdb   : > { %11242 = shalt.err (!%p11239_p4)
}
  0xdc   : > { %s11243_s27 = scalar_lea.vmem %s409_s19, 16  ;;  %s11250_s25 = scalar_lea.vmem %s409_s19, 32 }
  0xdd   : > { %p11244_p7 = scmp.ne.s32.totalorder %s409_s19, %s11243_s27  ;;  %p11251_p13 = scmp.lt.s32.totalorder %s409_s19, %s409_s19 }
  0xde   : > { %p11252_p1 = scmp.lt.s32.totalorder %s11250_s25, %s11243_s27 }
  0xdf   : > { %p11246_p8 = pnand %p11244_p7, %p11496_p0 }
  0xe0   : > { %p11253_p6 = por %p11252_p1, %p11251_p13 }
  0xe1   : > { %p11247_p11 = pneg %p11246_p8 }
  0xe3   : > { %p11254_p9 = pnand %p11253_p6, %p11247_p11 }
  0xe5   : > { %11257 = shalt.err (!%p11254_p9)
}
  0xe6   : > { %10933 = dma.hbm_to_vmem [thread:$0]  (!%p11480_p12), %s12666_s10, 16, %s409_s19, [#allocation18]  }
  0xe7   : > { %p12693_p5 = scmp.ne.s32.totalorder %s12688_s30, 0 }
  0xe8   : > { %p12694_p10 = scmp.eq.s32.totalorder (!%p12693_p5), %s11442_s8, 0 }
  0xe9   : > { %429 = sbr.rel (%p12693_p5) target bundleno = 2453 (0x995), region = 64 }
  0xf0   : > { %11303 = dma.done.wait (%p12694_p10), [#allocation6], 121600   ;;  %p12695_p0 = pmov %p12694_p10 }
  0xf2   : > { %11305 = vsyncadd (%p12695_p0), [#allocation6], 4294845696  ;;  %p12696_p2 = pmov %p12695_p0 }
  0xf3   : > { %p12697_p3 = pmov %p12695_p0 }
  0xf4   : > { %11307 = dma.done.wait (%p12696_p2), [#allocation9], 24384  }
  0xf5   : > { %11309 = vsyncadd (%p12697_p3), [#allocation9], 4294942912  ;;  %p12698_p4 = pmov %p12695_p0 }
  0xf6   : > { %p12699_p12 = pmov %p12695_p0 }
  0xf7   : > { %11311 = dma.done.wait (%p12698_p4), [#allocation12], 128  }
  0xf8   : > { %11313 = vsyncadd (%p12699_p12), [#allocation12], 4294967168  ;;  %p12700_p7 = pmov %p12695_p0 }
  0xf9   : > { %p12701_p8 = pmov %p12695_p0 }
  0xfa   : > { %11315 = dma.done.wait (%p12700_p7), [#allocation15], 80  }
  0xfb   : > { %11317 = vsyncadd (%p12701_p8), [#allocation15], 4294967216  ;;  %p12702_p11 = pmov %p12695_p0 }
  0xfc   : > { %p12703_p13 = pmov %p12695_p0 }
  0xfd   : > { %11319 = dma.done.wait (%p12702_p11), [#allocation18], 272  }
  0xfe   : > { %11321 = vsyncadd (%p12703_p13), [#allocation18], 4294967024  ;;  %p500_p1 = scmp.lt.s32.totalorder %s11442_s8, 1  ;;  %v11353_v1 = vmov 0.0   ;;  %v11354_v2 = vmov 0   ;;  %vm885_vm0 = vcmask 1043456  }
  0xff   : > { %596 = vmatprep.mubr.f32.mxu0 %v11353_v1  ;;  %667 = vmatprep.mubr.f32.mxu1 %v11353_v1  ;;  %vm528_vm1 = vcmask 261120   ;;  %v11767_v35 = vld [vmem:[#allocation10] sm:$0xf]  ;;  %vm1534_vm2 = vcmask 130048   ;;  %vm1678_vm3 = vcmask 650240   ;;  %vm11356_vm4 = vmmov 0  }
 0x100   : > { %s501_s21 = scalar_select %p500_p1, %s11442_s8, 1  ;;  %11004 = vset.pattern.permute.xlu0 %v11354_v2  ;;  %11005 = vset.pattern.permute.xlu1 %v11354_v2  ;;  %vm5536_vm5 = vcmask 654336   ;;  %vm5610_vm6 = vcmask 125952   ;;  %vm7558_vm7 = vcmask 57344  }
 0x101   : > { %s498_s29 = sand.u32 1, %s11332_s20   ;;  %s7834_s18 = sshll.u32 %s11442_s8, 4 }
 0x102   : > { %s10867_s30 = smul.u32 320, %s501_s21  ;;  %s499_s24 = scalar_lea.vmem [#allocation20], %s498_s29 }
 0x103   : > { %s7573_s26 = sshll.u32 %s499_s24, 4  ;;  %s12614_s22 = scalar_lea.hbm %s12667_s11, %s7834_s18  ;;  %s12616_s26 = int_to_ptr.vmem [resolvable:$true] %s7573_s26 }
 0x104   : > { %s11705_s16 = scalar_lea.vmem %s12656_s0, %s10867_s30  ;;  %s7561_s12 = scalar_lea.sflag [#allocation7], %s498_s29 }
 0x105   : > { %v513_v3 = vld [vmem:[%s11705_s16 + $0x8] sm:$0xff]  ;;  %v515_v5 = vld [vmem:[%s11705_s16 + $0x18] sm:$0xff]  ;;  %v512_v8 = vld [vmem:[%s11705_s16] sm:$0xff]  ;;  %s11258_s17 = scalar_lea.vmem %s12616_s26, 16  ;;  %p12704_p9 = scmp.ne.s32.totalorder %s12685_s28, 0 }
 0x106   : > { %v11709_v4 = vld [vmem:[%s11705_s16 + $0x28] sm:$0xff]  ;;  %v11714_v7 = vld [vmem:[%s11705_s16 + $0x38] sm:$0xff]  ;;  %v11718_v9 = vld [vmem:[%s11705_s16 + $0x20] sm:$0xff]  ;;  %p11259_p6 = scmp.ne.s32.totalorder %s12616_s26, %s11258_s17  ;;  %s11357_s8 = smov [#allocation20]  }
 0x107   : > { %v9318_v6 = vpack.c.bf16 %v11709_v4, %v513_v3  ;;  %v9326_v10 = vpack.c.bf16 %v11714_v7, %v515_v5  ;;  %v9320_v11 = vpack.c.bf16 %v11718_v9, %v512_v8  ;;  %v514_v12 = vld [vmem:[%s11705_s16 + $0x10] sm:$0xff]  ;;  %v11727_v14 = vld [vmem:[%s11705_s16 + $0x48] sm:$0xff]  ;;  %v890_v15 = vrot.slane %v11709_v4, 4  ;;  %v11735_v18 = vld [vmem:[%s11705_s16 + $0x58] sm:$0xff]  ;;  %s11262_s27 = sshll.u32 %s11357_s8, 4  ;;  %s11263_s27 = int_to_ptr.vmem [resolvable:$false] %s11262_s27 }
 0x108   : > { %v11724_v13 = vld [vmem:[%s11705_s16 + $0x30] sm:$0xff]  ;;  %v11732_v17 = vld [vmem:[%s11705_s16 + $0x68] sm:$0xff]  ;;  %v11738_v19 = vld [vmem:[%s11705_s16 + $0x78] sm:$0xff]  ;;  %v900_v20 = vrot.slane %v11727_v14, 4  ;;  %v896_v21 = vrot.slane %v11714_v7, 4  ;;  %v904_v27 = vrot.slane %v11735_v18, 4  ;;  %p11260_p5 = pnand %p11259_p6, %p12704_p9  ;;  %p11265_p0 = scmp.lt.s32.totalorder %s12616_s26, %s11263_s27 }
 0x109   : > { %9319 = vmatprep.subr.bf16.mxu0 %v9318_v6  ;;  %v9328_v16 = vpack.c.bf16 %v11724_v13, %v514_v12  ;;  %9327 = vmatprep.subr.bf16.mxu1 %v9326_v10  ;;  %v9322_v22 = vpack.c.bf16 %v11732_v17, %v11727_v14  ;;  %v9330_v23 = vpack.c.bf16 %v11738_v19, %v11735_v18  ;;  %v11747_v24 = vld [vmem:[%s11705_s16 + $0x40] sm:$0xff]  ;;  %v11753_v26 = vld [vmem:[%s11705_s16 + $0x50] sm:$0xff]  ;;  %v908_v28 = vrot.slane %v11732_v17, 4  ;;  %v7742_v31 = vld [vmem:[%s11705_s16 + $0xa8] sm:$0xff]  ;;  %s11264_s25 = scalar_lea.vmem %s11263_s27, 32 }
 0x10a   : > { %9321 = vmatpush1.bf16.msra.mxu0 %v9320_v11  ;;  %v11750_v25 = vld [vmem:[%s11705_s16 + $0x60] sm:$0xff]  ;;  %v11760_v30 = vld [vmem:[%s11705_s16 + $0x70] sm:$0xff]  ;;  %v887_v32 = vrot.slane %v11718_v9, 4  ;;  %v893_v33 = vrot.slane %v11724_v13, 4  ;;  %v11770_v36 = vld [vmem:[%s11705_s16 + $0xc8] sm:$0xff]  ;;  %v11779_v39 = vsel %vm885_vm0, %v890_v15, %v900_v20  ;;  %v898_v40 = vrot.slane %v11747_v24, 4  ;;  %p11261_p10 = pneg %p11260_p5  ;;  %p11266_p2 = scmp.lt.s32.totalorder %s11264_s25, %s11258_s17 }
 0x10b   : > { %9329 = vmatpush1.bf16.msra.mxu1 %v9328_v16  ;;  %v9324_v29 = vpack.c.bf16 %v11750_v25, %v11747_v24  ;;  %9323 = vmatprep.subr.bf16.mxu0 %v9322_v22  ;;  %v9332_v34 = vpack.c.bf16 %v11760_v30, %v11753_v26  ;;  %v7744_v37 = vld [vmem:[%s11705_s16 + $0xb8] sm:$0xff]  ;;  %v902_v41 = vrot.slane %v11753_v26, 4  ;;  %v9334_v42 = vpack.c.bf16 %v11770_v36, %v7742_v31  ;;  %v7741_v44 = vld [vmem:[%s11705_s16 + $0xa0] sm:$0xff]  ;;  %v7743_v46 = vld [vmem:[%s11705_s16 + $0xb0] sm:$0xff] }
 0x10c   : > { %9331 = vmatprep.subr.bf16.mxu1 %v9330_v23  ;;  %v11774_v38 = vld [vmem:[%s11705_s16 + $0xd8] sm:$0xff]  ;;  %v11787_v45 = vld [vmem:[%s11705_s16 + $0xc0] sm:$0xff]  ;;  %v11793_v47 = vsel %vm885_vm0, %v896_v21, %v904_v27  ;;  %v912_v48 = vrot.slane %v11738_v19, 4  ;;  %v11798_v50 = vld [vmem:[%s11705_s16 + $0xd0] sm:$0xff]  ;;  %v11809_v53 = vsel %vm885_vm0, %v900_v20, %v908_v28  ;;  %v906_v54 = vrot.slane %v11750_v25, 4  ;;  %p11267_p3 = por %p11266_p2, %p11265_p0 }
 0x10d   : > { %v9342_v43 = vpack.c.bf16 %v11774_v38, %v7744_v37  ;;  %v9336_v49 = vpack.c.bf16 %v11787_v45, %v7741_v44  ;;  %v11801_v51 = vld [vmem:[%s11705_s16 + $0xe8] sm:$0xff]  ;;  %v910_v55 = vrot.slane %v11760_v30, 4  ;;  %v9344_v56 = vpack.c.bf16 %v11798_v50, %v7743_v46  ;;  %v11817_v58 = vld [vmem:[%s11705_s16 + $0xf8] sm:$0xff]  ;;  %v11823_v60 = vld [vmem:[%s11705_s16 + $0xe0] sm:$0xff] }
 0x10e   : > { %9325 = vmatpush1.bf16.msra.mxu0 %v9324_v29  ;;  %v11804_v52 = vld [vmem:[%s11705_s16 + $0x108] sm:$0xff]  ;;  %v11820_v59 = vld [vmem:[%s11705_s16 + $0x118] sm:$0xff]  ;;  %v1132_v61 = vrot.slane %v11770_v36, 4  ;;  %v1142_v62 = vrot.slane %v11801_v51, 4  ;;  %v11830_v0 = vld [vmem:[%s11705_s16 + $0x100] sm:$0xff]  ;;  %v11841_v5 = vsel %vm885_vm0, %v887_v32, %v898_v40  ;;  %v11846_v6 = vsel %vm885_vm0, %v893_v33, %v902_v41  ;;  %p11268_p4 = pnand %p11267_p3, %p11261_p10 }
 0x10f   : > { %9333 = vmatpush1.bf16.msra.mxu1 %v9332_v34  ;;  %9335 = vmatprep.subr.bf16.mxu0 %v9334_v42  ;;  %v9338_v57 = vpack.c.bf16 %v11804_v52, %v11801_v51  ;;  %v9346_v63 = vpack.c.bf16 %v11820_v59, %v11817_v58  ;;  %v11833_v2 = vld [vmem:[%s11705_s16 + $0xf0] sm:$0xff]  ;;  %v1138_v8 = vrot.slane %v11774_v38, 4  ;;  %v9340_v10 = vpack.c.bf16 %v11830_v0, %v11823_v60  ;;  %v846_v11 = vld [vmem:[%s11705_s16 + $0x8] sm:$0xf0]  ;;  %v848_v12 = vld [vmem:[%s11705_s16 + $0x18] sm:$0xf0] }
 0x110   : > { %9343 = vmatprep.subr.bf16.mxu1 %v9342_v43  ;;  %v11836_v3 = vld [vmem:[%s11705_s16 + $0x110] sm:$0xff]  ;;  %v845_v16 = vld [vmem:[%s11705_s16] sm:$0xf0]  ;;  %v11859_v20 = vsel %vm885_vm0, %v904_v27, %v912_v48  ;;  %v11864_v22 = vsel %vm885_vm0, %v898_v40, %v906_v54  ;;  %v11869_v23 = vsel %vm885_vm0, %v902_v41, %v910_v55  ;;  %v889_v29 = vrot.slane %v846_v11, 4  ;;  %v862_v41 = vld [vmem:[%s11705_s16 + $0x88] sm:$0xf] }
 0x111   : > { %7739 = vmatmul.mubr.msk.f32.vlgmr.msra.gmra.mrb[0].mxu0 %vm528_vm1, %v11767_v35  ;;  %v895_v31 = vrot.slane %v848_v12, 4  ;;  %v886_v34 = vrot.slane %v845_v16, 4  ;;  %v847_v37 = vld [vmem:[%s11705_s16 + $0x10] sm:$0xf0]  ;;  %v1146_v27 = vrot.slane %v11817_v58, 4  ;;  %v9348_v40 = vpack.c.bf16 %v11836_v3, %v11833_v2 }
 0x112   : > { %7740 = vmatmul.mubr.msk.f32.vlgmr.msra.gmra.mrb[0].mxu1 %vm528_vm1, %v11767_v35  ;;  %9337 = vmatpush1.bf16.msra.mxu0 %v9336_v49  ;;  %v892_v42 = vrot.slane %v847_v37, 4  ;;  %v864_v43 = vld [vmem:[%s11705_s16 + $0x98] sm:$0xf]  ;;  %v11884_v44 = vsel %vm885_vm0, %v1132_v61, %v1142_v62  ;;  %v1129_v46 = vrot.slane %v11787_v45, 4  ;;  %v891_v49 = vsel %vm885_vm0, %v889_v29, %v890_v15  ;;  %v861_v12 = vld [vmem:[%s11705_s16 + $0x80] sm:$0xf] }
 0x113   : > { %9345 = vmatpush1.bf16.msra.mxu1 %v9344_v56  ;;  %9339 = vmatprep.subr.bf16.mxu0 %v9338_v57  ;;  %v897_v56 = vsel %vm885_vm0, %v895_v31, %v896_v21  ;;  %v888_v57 = vsel %vm885_vm0, %v886_v34, %v887_v32  ;;  %v916_v11 = vrot.slane %v862_v41, 4  ;;  %v863_v16 = vld [vmem:[%s11705_s16 + $0x90] sm:$0xf]  ;;  %v9350_v45 = vpack.c.bf16 %v11779_v39, %v891_v49  ;;  %v7762_v21 = vld [vmem:[%s11705_s16 + $0xa8] sm:$0xf0] }
 0x114   : > { %9347 = vmatprep.subr.bf16.mxu1 %v9346_v63  ;;  %759 = vmatprep.mubr.f32.mxu0 %v11353_v1  ;;  %v9358_v63 = vpack.c.bf16 %v11793_v47, %v897_v56  ;;  %v9352_v37 = vpack.c.bf16 %v11841_v5, %v888_v57  ;;  %v894_v15 = vsel %vm885_vm0, %v892_v42, %v893_v33  ;;  %v7764_v29 = vld [vmem:[%s11705_s16 + $0xb8] sm:$0xf0]  ;;  %v7761_v31 = vld [vmem:[%s11705_s16 + $0xa0] sm:$0xf0]  ;;  %v920_v39 = vrot.slane %v864_v43, 4 }
 0x115   : > { %830 = vmatprep.mubr.f32.mxu1 %v11353_v1  ;;  %v9360_v32 = vpack.c.bf16 %v11846_v6, %v894_v15  ;;  %v917_v34 = vsel %vm885_vm0, %v908_v28, %v916_v11  ;;  %v914_v41 = vrot.slane %v861_v12, 4  ;;  %v918_v5 = vrot.slane %v863_v16, 4  ;;  %v7778_v56 = vld [vmem:[%s11705_s16 + $0x128] sm:$0xf] }
 0x116   : > { %9341 = vmatpush1.bf16.msra.mxu0 %v9340_v10  ;;  %v9354_v47 = vpack.c.bf16 %v917_v34, %v11809_v53  ;;  %v1131_v33 = vrot.slane %v7762_v21, 4  ;;  %v1137_v42 = vrot.slane %v7764_v29, 4  ;;  %v921_v10 = vsel %vm885_vm0, %v912_v48, %v920_v39  ;;  %v506_v36 = vld [vmem:[#allocation11] sm:$0xf] }
 0x117   : > { %9349 = vmatpush1.bf16.msra.mxu1 %v9348_v40  ;;  %9351 = vmatprep.subr.bf16.mxu0 %v9350_v45  ;;  %v915_v6 = vsel %vm885_vm0, %v906_v54, %v914_v41  ;;  %v1147_v28 = vsel %vm885_vm0, %v1138_v8, %v1146_v27  ;;  %v1128_v53 = vrot.slane %v7761_v31, 4  ;;  %v7763_v40 = vld [vmem:[%s11705_s16 + $0xb0] sm:$0xf0]  ;;  %v9362_v43 = vpack.c.bf16 %v921_v10, %v11859_v20  ;;  %v7777_v45 = vld [vmem:[%s11705_s16 + $0x120] sm:$0xf] }
 0x118   : > { %9359 = vmatprep.subr.bf16.mxu1 %v9358_v63  ;;  %v9356_v48 = vpack.c.bf16 %v915_v6, %v11864_v22  ;;  %v919_v54 = vsel %vm885_vm0, %v910_v55, %v918_v5  ;;  %v1133_v49 = vsel %vm885_vm0, %v1131_v33, %v1132_v61  ;;  %v1139_v20 = vsel %vm885_vm0, %v1137_v42, %v1138_v8  ;;  %v7780_v22 = vld [vmem:[%s11705_s16 + $0x138] sm:$0xf]  ;;  %v5138_v33 = vld [vmem:[#allocation14] sm:$0xf] }
 0x119   : > { %7757 = vmatmul.mubr.msk.f32.vlgmr.msra.gmra.mrb[2].mxu0 %vm528_vm1, %v11767_v35  ;;  %v9364_v57 = vpack.c.bf16 %v919_v54, %v11869_v23  ;;  %v9366_v11 = vpack.c.bf16 %v11884_v44, %v1133_v49  ;;  %v1140_v55 = vrot.slane %v11823_v60, 4  ;;  %v9374_v61 = vpack.c.bf16 %v1147_v28, %v1139_v20  ;;  %509 = vperm.xlu0 %11004, %v506_v36   ;;  %v1331_v6 = vld [vmem:[%s11705_s16 + $0x88] sm:$0xff]  ;;  %v1333_v28 = vld [vmem:[%s11705_s16 + $0x98] sm:$0xff] }
 0x11a   : > { %7758 = vmatmul.mubr.msk.f32.vlgmr.msra.gmra.mrb[2].mxu1 %vm528_vm1, %v11767_v35  ;;  %9353 = vmatpush1.bf16.msra.mxu0 %v9352_v37  ;;  %v1130_v12 = vsel %vm885_vm0, %v1128_v53, %v1129_v46  ;;  %v1134_v16 = vrot.slane %v7763_v40, 4  ;;  %v1135_v23 = vrot.slane %v11798_v50, 4  ;;  %v1144_v8 = vrot.slane %v11833_v2, 4  ;;  %v7779_v50 = vld [vmem:[%s11705_s16 + $0x130] sm:$0xf]  ;;  %v1330_v40 = vld [vmem:[%s11705_s16 + $0x80] sm:$0xff] }
 0x11b   : > { %9361 = vmatpush1.bf16.msra.mxu1 %v9360_v32  ;;  %9355 = vmatprep.subr.bf16.mxu0 %v9354_v47  ;;  %v1141_v38 = vsel %vm885_vm0, %v1129_v46, %v1140_v55  ;;  %v1150_v60 = vrot.slane %v11804_v52, 4  ;;  %v1158_v44 = vrot.slane %v7778_v56, 4  ;;  %v1154_v15 = vrot.slane %v11820_v59, 4  ;;  %v1485_v54 = vld [vmem:[#allocation5 + $0x8] sm:$0xff]  ;;  %v1518_v49 = vld [vmem:[#allocation5 + $0x110] sm:$0xff]  ;;  %v1503_v20 = vld [vmem:[#allocation5 + $0x98] sm:$0xff] }
 0x11c   : > { %9363 = vmatprep.subr.bf16.mxu1 %v9362_v43  ;;  %1002 = vmatprep.mubr.f32.mxu0 %v11353_v1  ;;  %v9368_v63 = vpack.c.bf16 %v1141_v38, %v1130_v12  ;;  %v1136_v37 = vsel %vm885_vm0, %v1134_v16, %v1135_v23  ;;  %v1162_v21 = vrot.slane %v7780_v22, 4  ;;  %v1145_v29 = vsel %vm885_vm0, %v1135_v23, %v1144_v8  ;;  %v1486_v22 = vld [vmem:[#allocation5 + $0x10] sm:$0xff]  ;;  %v1487_v36 = vld [vmem:[#allocation5 + $0x18] sm:$0xff]  ;;  %v1521_v16 = vld [vmem:[#allocation5 + $0x128] sm:$0xff] }
 0x11d   : > { %1073 = vmatprep.mubr.f32.mxu1 %v11353_v1  ;;  %v1151_v2 = vsel %vm885_vm0, %v1142_v62, %v1150_v60  ;;  %v1159_v52 = vsel %vm885_vm0, %v1150_v60, %v1158_v44  ;;  %v1148_v46 = vrot.slane %v11830_v0, 4  ;;  %v9376_v31 = vpack.c.bf16 %v1145_v29, %v1136_v37  ;;  %5141 = vperm.xlu0 %11004, %v5138_v33   ;;  %v1504_v38 = vld [vmem:[#allocation5 + $0xa0] sm:$0xff]  ;;  %v1507_v29 = vld [vmem:[#allocation5 + $0xb8] sm:$0xff]  ;;  %v1510_v33 = vld [vmem:[#allocation5 + $0xd0] sm:$0xff] }
 0x11e   : > { %9357 = vmatpush1.bf16.msra.mxu0 %v9356_v48  ;;  %v9370_v32 = vpack.c.bf16 %v1159_v52, %v1151_v2  ;;  %v1155_v59 = vsel %vm885_vm0, %v1146_v27, %v1154_v15  ;;  %v1156_v34 = vrot.slane %v7777_v45, 4  ;;  %v1163_v39 = vsel %vm885_vm0, %v1154_v15, %v1162_v21  ;;  %v1484_v48 = vld [vmem:[#allocation5] sm:$0xff]  ;;  %v1489_v45 = vld [vmem:[#allocation5 + $0x28] sm:$0xff]  ;;  %v1523_v15 = vld [vmem:[#allocation5 + $0x138] sm:$0xff] }
 0x11f   : > { %9365 = vmatpush1.bf16.msra.mxu1 %v9364_v57  ;;  %9367 = vmatprep.subr.bf16.mxu0 %v9366_v11  ;;  %v1149_v51 = vsel %vm885_vm0, %v1140_v55, %v1148_v46  ;;  %v1152_v62 = vrot.slane %v11836_v3, 4  ;;  %v1160_v41 = vrot.slane %v7779_v50, 4  ;;  %v9378_v0 = vpack.c.bf16 %v1163_v39, %v1155_v59  ;;  %v1519_v57 = vld [vmem:[#allocation5 + $0x118] sm:$0xff]  ;;  %v1488_v44 = vld [vmem:[#allocation5 + $0x20] sm:$0xff]  ;;  %v1506_v50 = vld [vmem:[#allocation5 + $0xb0] sm:$0xff] }
 0x120   : > { %9375 = vmatprep.subr.bf16.mxu1 %v9374_v61  ;;  %v1157_v47 = vsel %vm885_vm0, %v1148_v46, %v1156_v34  ;;  %v9382_v42 = vpack.c.bf16 %v11727_v14, %v11709_v4  ;;  %v9390_v10 = vpack.c.bf16 %v11735_v18, %v11714_v7  ;;  %v9384_v53 = vpack.c.bf16 %v11747_v24, %v11718_v9  ;;  %v1332_v18 = vld [vmem:[%s11705_s16 + $0x90] sm:$0xff]  ;;  %v1520_v61 = vld [vmem:[#allocation5 + $0x120] sm:$0xff]  ;;  %v1491_v46 = vld [vmem:[#allocation5 + $0x38] sm:$0xff] }
 0x121   : > { %7759 = vmatmul.mubr.msk.f32.vlgmr.msra.gmra.mrb[4].mxu0 %vm528_vm1, %v11767_v35  ;;  %v9372_v58 = vpack.c.bf16 %v1157_v47, %v1149_v51  ;;  %v1153_v27 = vsel %vm885_vm0, %v1144_v8, %v1152_v62  ;;  %v1161_v5 = vsel %vm885_vm0, %v1152_v62, %v1160_v41  ;;  %v9392_v4 = vpack.c.bf16 %v11753_v26, %v11724_v13  ;;  %v1500_v26 = vld [vmem:[#allocation5 + $0x80] sm:$0xff]  ;;  %v1505_v8 = vld [vmem:[#allocation5 + $0xa8] sm:$0xff]  ;;  %v1490_v52 = vld [vmem:[#allocation5 + $0x30] sm:$0xff] }
 0x122   : > { %7760 = vmatmul.mubr.msk.f32.vlgmr.msra.gmra.mrb[4].mxu1 %vm528_vm1, %v11767_v35  ;;  %9369 = vmatpush1.bf16.msra.mxu0 %v9368_v63  ;;  %v9380_v3 = vpack.c.bf16 %v1161_v5, %v1153_v27  ;;  %v9386_v14 = vpack.c.bf16 %v1331_v6, %v11732_v17  ;;  %v9394_v7 = vpack.c.bf16 %v1333_v28, %v11738_v19  ;;  %v1516_v17 = vld [vmem:[#allocation5 + $0x100] sm:$0xff]  ;;  %v1517_v19 = vld [vmem:[#allocation5 + $0x108] sm:$0xff]  ;;  %v1522_v63 = vld [vmem:[#allocation5 + $0x130] sm:$0xff] }
 0x123   : > { %9377 = vmatpush1.bf16.msra.mxu1 %v9376_v31  ;;  %9371 = vmatprep.subr.bf16.mxu0 %v9370_v32  ;;  %v9388_v9 = vpack.c.bf16 %v1330_v40, %v11750_v25  ;;  %v9396_v13 = vpack.c.bf16 %v1332_v18, %v11760_v30  ;;  %v9431_v24 = vpack.c.bf16 %v1517_v19, %v1516_v17  ;;  %v11355_v25 = vmov 0.0|0.0   ;;  %v1501_v30 = vld [vmem:[#allocation5 + $0x88] sm:$0xff]  ;;  %v1524_v31 = vld [vmem:[#allocation5 + $0x140] sm:$0xff]  ;;  %v1526_v47 = vld [vmem:[#allocation5 + $0x150] sm:$0xff] }
 0x124   : > { %9379 = vmatprep.subr.bf16.mxu1 %v9378_v0  ;;  %1244 = vmatprep.mubr.f32.mxu0 %v11353_v1  ;;  %v9398_v43 = vpack.c.bf16 %v1501_v30, %v1500_v26  ;;  %v9400_v56 = vpack.c.bf16 %v1485_v54, %v1484_v48  ;;  %v9434_v11 = vpack.c.bf16 %v1519_v57, %v1518_v49  ;;  %v1525_v59 = vld [vmem:[#allocation5 + $0x148] sm:$0xff]  ;;  %v1508_v39 = vld [vmem:[#allocation5 + $0xc0] sm:$0xff]  ;;  %v1527_v27 = vld [vmem:[#allocation5 + $0x158] sm:$0xff] }
 0x125   : > { %1315 = vmatprep.mubr.f32.mxu1 %v11353_v1  ;;  %v9404_v12 = vpack.c.bf16 %v1487_v36, %v1486_v22  ;;  %v9437_v23 = vpack.c.bf16 %v1521_v16, %v1520_v61  ;;  %v9406_v60 = vpack.c.bf16 %v1505_v8, %v1504_v38  ;;  %v9408_v37 = vpack.c.bf16 %v1489_v45, %v1488_v44  ;;  %v1509_v51 = vld [vmem:[#allocation5 + $0xc8] sm:$0xff]  ;;  %v1492_v41 = vld [vmem:[#allocation5 + $0x40] sm:$0xff]  ;;  %v1495_v6 = vld [vmem:[#allocation5 + $0x58] sm:$0xff] }
 0x126   : > { %9373 = vmatpush1.bf16.msra.mxu0 %v9372_v58  ;;  %v9440_v21 = vpack.c.bf16 %v1523_v15, %v1522_v63  ;;  %v9410_v2 = vpack.c.bf16 %v1507_v29, %v1506_v50  ;;  %v9412_v32 = vpack.c.bf16 %v1491_v46, %v1490_v52  ;;  %v9443_v34 = vpack.c.bf16 %v1525_v59, %v1524_v31  ;;  %v1493_v0 = vld [vmem:[#allocation5 + $0x48] sm:$0xff]  ;;  %v1528_v28 = vld [vmem:[#allocation5 + $0x160] sm:$0xff]  ;;  %v1530_v17 = vld [vmem:[#allocation5 + $0x170] sm:$0xff] }
 0x127   : > { %9381 = vmatpush1.bf16.msra.mxu1 %v9380_v3  ;;  %9383 = vmatprep.subr.bf16.mxu0 %v9382_v42  ;;  %v9414_v62 = vpack.c.bf16 %v1509_v51, %v1508_v39  ;;  %v9416_v58 = vpack.c.bf16 %v1493_v0, %v1492_v41  ;;  %v9446_v5 = vpack.c.bf16 %v1527_v27, %v1526_v47  ;;  %v1511_v3 = vld [vmem:[#allocation5 + $0xd8] sm:$0xff]  ;;  %v1512_v40 = vld [vmem:[#allocation5 + $0xe0] sm:$0xff]  ;;  %v1514_v30 = vld [vmem:[#allocation5 + $0xf0] sm:$0xff] }
 0x128   : > { %9391 = vmatprep.subr.bf16.mxu1 %v9390_v10  ;;  %v9418_v42 = vpack.c.bf16 %v1511_v3, %v1510_v33  ;;  %v1494_v10 = vld [vmem:[#allocation5 + $0x50] sm:$0xff]  ;;  %v1499_v49 = vld [vmem:[#allocation5 + $0x78] sm:$0xff] }
 0x129   : > { %7781 = vmatmul.mubr.msk.f32.vlgmr.msra.gmra.mrb[6].mxu0 %vm528_vm1, %v11767_v35  ;;  %v1498_v54 = vld [vmem:[#allocation5 + $0x70] sm:$0xff] }
 0x12a   : > { %7782 = vmatmul.mubr.msk.f32.vlgmr.msra.gmra.mrb[6].mxu1 %vm528_vm1, %v11767_v35  ;;  %9385 = vmatpush1.bf16.msra.mxu0 %v9384_v53  ;;  %v9420_v53 = vpack.c.bf16 %v1495_v6, %v1494_v10  ;;  %v9428_v57 = vpack.c.bf16 %v1499_v49, %v1498_v54 }
 0x12b   : > { %9393 = vmatpush1.bf16.msra.mxu1 %v9392_v4  ;;  %9387 = vmatprep.subr.bf16.mxu0 %v9386_v14  ;;  %v1529_v4 = vld [vmem:[#allocation5 + $0x168] sm:$0xff] }
 0x12c   : > { %9395 = vmatprep.subr.bf16.mxu1 %v9394_v7  ;;  %1398 = vmatprep.mubr.f32.mxu0 %v11353_v1  ;;  %v9449_v14 = vpack.c.bf16 %v1529_v4, %v1528_v28  ;;  %v1513_v7 = vld [vmem:[#allocation5 + $0xe8] sm:$0xff] }
 0x12d   : > { %1469 = vmatprep.mubr.f32.mxu1 %v11353_v1  ;;  %v9422_v18 = vpack.c.bf16 %v1513_v7, %v1512_v40 }
 0x12e   : > { %9389 = vmatpush1.bf16.msra.mxu0 %v9388_v9  ;;  %v1496_v9 = vld [vmem:[#allocation5 + $0x60] sm:$0xff] }
 0x12f   : > { %9397 = vmatpush1.bf16.msra.mxu1 %v9396_v13  ;;  %9399 = vmatprep.subr.bf16.mxu0 %v9398_v43  ;;  %v1497_v13 = vld [vmem:[#allocation5 + $0x68] sm:$0xff]  ;;  %v1515_v43 = vld [vmem:[#allocation5 + $0xf8] sm:$0xff] }
 0x130   : > { %9430 = vmatprep.subr.bf16.mxu1 %v11355_v25  ;;  %v9424_v19 = vpack.c.bf16 %v1497_v13, %v1496_v9  ;;  %v9426_v48 = vpack.c.bf16 %v1515_v43, %v1514_v30 }
 0x131   : > { %7783 = vmatmul.mubr.msk.f32.vlgmr.msra.gmra.mrb[8].mxu0 %vm528_vm1, %v11767_v35 }
 0x132   : > { %7784 = vmatmul.mubr.msk.f32.vlgmr.msra.gmra.mrb[8].mxu1 %vm528_vm1, %v11767_v35  ;;  %9401 = vmatpush3.bf16.msra.mxu0 %v9400_v56  ;;  %v1502_v35 = vld [vmem:[#allocation5 + $0x90] sm:$0xff]  ;;  %v1532_v56 = vld [vmem:[#allocation5 + $0x180] sm:$0xff] }
 0x133   : > { %9432 = vmatpush1.bf16.msra.mxu1 %v9431_v24  ;;  %v9402_v55 = vpack.c.bf16 %v1503_v20, %v1502_v35  ;;  %v1531_v24 = vld [vmem:[#allocation5 + $0x178] sm:$0xff]  ;;  %v1697_v20 = vld [vmem:[#allocation5 + $0x210] sm:$0xff] }
 0x134   : > { %9433 = vmatprep.subr.bf16.mxu1 %v11355_v25  ;;  %v9452_v26 = vpack.c.bf16 %v1531_v24, %v1530_v17 }
 0x135   : > { %9403 = vmatprep.subr.bf16.mxu0 %v9402_v55  ;;  %v1698_v55 = vld [vmem:[#allocation5 + $0x218] sm:$0xff] }
 0x136   : > { %9405 = vmatpush3.bf16.msra.mxu0 %v9404_v12  ;;  %v9457_v22 = vpack.c.bf16 %v1698_v55, %v1697_v20 }
 0x137   : > { %9435 = vmatpush1.bf16.msra.mxu1 %v9434_v11  ;;  %9407 = vmatprep.subr.bf16.mxu0 %v9406_v60  ;;  %v1533_v11 = vld [vmem:[#allocation5 + $0x188] sm:$0xff] }
 0x138   : > { %9436 = vmatprep.subr.bf16.mxu1 %v11355_v25  ;;  %v9455_v35 = vpack.c.bf16 %v1533_v11, %v1532_v56 }
 0x13a   : > { %9409 = vmatpush3.bf16.msra.mxu0 %v9408_v37 }
 0x13b   : > { %9438 = vmatpush1.bf16.msra.mxu1 %v9437_v23  ;;  %9411 = vmatprep.subr.bf16.mxu0 %v9410_v2 }
 0x13c   : > { %9439 = vmatprep.subr.bf16.mxu1 %v11355_v25 }
 0x13e   : > { %9413 = vmatpush3.bf16.msra.mxu0 %v9412_v32 }
 0x13f   : > { %9441 = vmatpush1.bf16.msra.mxu1 %v9440_v21  ;;  %9415 = vmatprep.subr.bf16.mxu0 %v9414_v62 }
 0x140   : > { %9442 = vmatprep.subr.bf16.mxu1 %v11355_v25 }
 0x142   : > { %9417 = vmatpush3.bf16.msra.mxu0 %v9416_v58 }
 0x143   : > { %9444 = vmatpush1.bf16.msra.mxu1 %v9443_v34  ;;  %9419 = vmatprep.subr.bf16.mxu0 %v9418_v42 }
 0x144   : > { %9445 = vmatprep.subr.bf16.mxu1 %v11355_v25 }
 0x146   : > { %9421 = vmatpush3.bf16.msra.mxu0 %v9420_v53 }
 0x147   : > { %9447 = vmatpush1.bf16.msra.mxu1 %v9446_v5  ;;  %9423 = vmatprep.subr.bf16.mxu0 %v9422_v18 }
 0x148   : > { %9448 = vmatprep.subr.bf16.mxu1 %v11355_v25 }
 0x14a   : > { %9425 = vmatpush3.bf16.msra.mxu0 %v9424_v19 }
 0x14b   : > { %9450 = vmatpush1.bf16.msra.mxu1 %v9449_v14  ;;  %9427 = vmatprep.subr.bf16.mxu0 %v9426_v48 }
 0x14c   : > { %9451 = vmatprep.subr.bf16.mxu1 %v11355_v25 }
 0x14e   : > { %9429 = vmatpush3.bf16.msra.mxu0 %v9428_v57 }
 0x14f   : > { %9453 = vmatpush1.bf16.msra.mxu1 %v9452_v26  ;;  %9458 = vmatprep.subr.bf16.mxu0 %v9457_v22 }
 0x150   : > { %9454 = vmatprep.subr.bf16.mxu1 %v11355_v25 }
 0x153   : > { %9456 = vmatpush1.bf16.msra.mxu1 %v9455_v35 }
 0x154   : > { %9489 = vmatprep.subr.bf16.mxu1 %v11355_v25 }
 0x198   : > { %v12014_v23 = vpop.permute.xlu0 %509 }
 0x1e4   : > { %v598_v36 = vpop.f32.mrb[0].mxu0 }
 0x1e5   : > { %v600_v61 = vpop.f32.mrb[1].mxu0  ;;  %v669_v12 = vpop.f32.mrb[0].mxu1  ;;  %v599_v8 = vadd.f32 %v598_v36, %v12014_v23 }
 0x1e6   : > { %v671_v16 = vpop.f32.mrb[1].mxu1  ;;  %v670_v38 = vadd.f32 %v669_v12, %v12014_v23  ;;  %v601_v44 = vadd.f32 %v600_v61, %v12014_v23 }
 0x1e7   : > { %v672_v60 = vadd.f32 %v671_v16, %v12014_v23  ;;  %v674_v52 = vmax.f32 %v599_v8, 0.0 }
 0x1e8   : > { %v676_v50 = vmax.f32 %v670_v38, 0.0  ;;  %v675_v59 = vmax.f32 %v601_v44, 0.0 }
 0x1e9   : > { %v677_v31 = vmax.f32 %v672_v60, 0.0 }
 0x1ec   : > { %v761_v45 = vpop.f32.mrb[2].mxu0 }
 0x1ed   : > { %v762_v63 = vadd.f32 %v761_v45, %v12014_v23  ;;  %v763_v37 = vpop.f32.mrb[3].mxu0  ;;  %v832_v15 = vpop.f32.mrb[2].mxu1  ;;  %v1681_v45 = vld [vmem:[#allocation5 + $0x190] sm:$0xff] }
 0x1ee   : > { %v764_v21 = vadd.f32 %v763_v37, %v12014_v23  ;;  %v833_v29 = vadd.f32 %v832_v15, %v12014_v23  ;;  %v834_v2 = vpop.f32.mrb[3].mxu1 }
 0x1ef   : > { %v837_v46 = vmax.f32 %v762_v63, 0.0  ;;  %v835_v32 = vadd.f32 %v834_v2, %v12014_v23  ;;  %v1682_v63 = vld [vmem:[#allocation5 + $0x198] sm:$0xff] }
 0x1f0   : > { %v838_v34 = vmax.f32 %v764_v21, 0.0  ;;  %v839_v39 = vmax.f32 %v833_v29, 0.0  ;;  %v1713_v21 = vld [vmem:[#allocation5 + $0x290] sm:$0xff] }
 0x1f1   : > { %v841_v51 = vmax.f32 %v674_v52, %v837_v46  ;;  %v840_v62 = vmax.f32 %v835_v32, 0.0  ;;  %v1699_v52 = vld [vmem:[#allocation5 + $0x220] sm:$0xff]  ;;  %v1700_v46 = vld [vmem:[#allocation5 + $0x228] sm:$0xff] }
 0x1f2   : > { %v842_v41 = vmax.f32 %v675_v59, %v838_v34  ;;  %v843_v0 = vmax.f32 %v676_v50, %v839_v39  ;;  %v1714_v50 = vld [vmem:[#allocation5 + $0x298] sm:$0xff]  ;;  %v9459_v59 = vpack.c.bf16 %v1682_v63, %v1681_v45  ;;  %v1683_v39 = vld [vmem:[#allocation5 + $0x1a0] sm:$0xff]  ;;  %v1725_v63 = vld [vmem:[#allocation5 + $0x2f0] sm:$0xff] }
 0x1f3   : > { %v844_v47 = vmax.f32 %v677_v31, %v840_v62  ;;  %v1715_v62 = vld [vmem:[#allocation5 + $0x2a0] sm:$0xff]  ;;  %v1694_v45 = vld [vmem:[#allocation5 + $0x1f8] sm:$0xff] }
 0x1f4   : > { %v1004_v58 = vpop.f32.mrb[4].mxu0 }
 0x1f5   : > { %v1005_v27 = vadd.f32 %v1004_v58, %v12014_v23  ;;  %v1006_v5 = vpop.f32.mrb[5].mxu0  ;;  %v1075_v33 = vpop.f32.mrb[4].mxu1  ;;  %v1702_v58 = vld [vmem:[#allocation5 + $0x238] sm:$0xff] }
 0x1f6   : > { %v1007_v3 = vadd.f32 %v1006_v5, %v12014_v23  ;;  %v1076_v42 = vadd.f32 %v1075_v33, %v12014_v23  ;;  %v1077_v10 = vpop.f32.mrb[5].mxu1 }
 0x1f7   : > { %v1080_v6 = vmax.f32 %v1005_v27, 0.0  ;;  %v1078_v28 = vadd.f32 %v1077_v10, %v12014_v23  ;;  %v1717_v10 = vld [vmem:[#allocation5 + $0x2b0] sm:$0xff] }
 0x1f8   : > { %v1081_v53 = vmax.f32 %v1007_v3, 0.0  ;;  %v1082_v4 = vmax.f32 %v1076_v42, 0.0  ;;  %v1685_v3 = vld [vmem:[#allocation5 + $0x1b0] sm:$0xff]  ;;  %v1686_v42 = vld [vmem:[#allocation5 + $0x1b8] sm:$0xff] }
 0x1f9   : > { %v1084_v14 = vmax.f32 %v841_v51, %v1080_v6  ;;  %v1083_v40 = vmax.f32 %v1078_v28, 0.0  ;;  %v1684_v51 = vld [vmem:[#allocation5 + $0x1a8] sm:$0xff]  ;;  %v1718_v6 = vld [vmem:[#allocation5 + $0x2b8] sm:$0xff]  ;;  %v1703_v28 = vld [vmem:[#allocation5 + $0x240] sm:$0xff] }
 0x1fa   : > { %v1085_v7 = vmax.f32 %v842_v41, %v1081_v53  ;;  %v1086_v18 = vmax.f32 %v843_v0, %v1082_v4  ;;  %v9461_v41 = vpack.c.bf16 %v1700_v46, %v1699_v52  ;;  %v1716_v0 = vld [vmem:[#allocation5 + $0x2a8] sm:$0xff]  ;;  %v9463_v27 = vpack.c.bf16 %v1684_v51, %v1683_v39  ;;  %v1695_v46 = vld [vmem:[#allocation5 + $0x200] sm:$0xff] }
 0x1fb   : > { %v1087_v9 = vmax.f32 %v844_v47, %v1083_v40  ;;  %v1701_v47 = vld [vmem:[#allocation5 + $0x230] sm:$0xff]  ;;  %v9493_v5 = vpack.c.bf16 %v1716_v0, %v1715_v62  ;;  %v1704_v53 = vld [vmem:[#allocation5 + $0x248] sm:$0xff]  ;;  %v9467_v4 = vpack.c.bf16 %v1686_v42, %v1685_v3  ;;  %v1890_v51 = vld [vmem:[#allocation5 + $0x3a0] sm:$0xff] }
 0x1fc   : > { %v1246_v13 = vpop.f32.mrb[6].mxu0  ;;  %v9465_v33 = vpack.c.bf16 %v1702_v58, %v1701_v47  ;;  %v9469_v40 = vpack.c.bf16 %v1704_v53, %v1703_v28  ;;  %v1728_v39 = vld [vmem:[#allocation5 + $0x308] sm:$0xff]  ;;  %v1729_v58 = vld [vmem:[#allocation5 + $0x310] sm:$0xff]  ;;  %v1893_v42 = vld [vmem:[#allocation5 + $0x3b8] sm:$0xff] }
 0x1fd   : > { %v1247_v17 = vadd.f32 %v1246_v13, %v12014_v23  ;;  %v1248_v19 = vpop.f32.mrb[7].mxu0  ;;  %v1317_v24 = vpop.f32.mrb[6].mxu1  ;;  %v1720_v13 = vld [vmem:[#allocation5 + $0x2c8] sm:$0xff]  ;;  %v1892_v3 = vld [vmem:[#allocation5 + $0x3b0] sm:$0xff] }
 0x1fe   : > { %v1249_v26 = vadd.f32 %v1248_v19, %v12014_v23  ;;  %v1318_v30 = vadd.f32 %v1317_v24, %v12014_v23  ;;  %v1319_v43 = vpop.f32.mrb[7].mxu1  ;;  %v1706_v19 = vld [vmem:[#allocation5 + $0x258] sm:$0xff]  ;;  %v1891_v62 = vld [vmem:[#allocation5 + $0x3a8] sm:$0xff]  ;;  %v9520_v28 = vpack.c.bf16 %v1893_v42, %v1892_v3  ;;  %v1876_v53 = vld [vmem:[#allocation5 + $0x330] sm:$0xff] }
 0x1ff   : > { %v1322_v48 = vmax.f32 %v1247_v17, 0.0  ;;  %v1320_v54 = vadd.f32 %v1319_v43, %v12014_v23  ;;  %v1705_v17 = vld [vmem:[#allocation5 + $0x250] sm:$0xff]  ;;  %v9516_v47 = vpack.c.bf16 %v1891_v62, %v1890_v51  ;;  %v1886_v62 = vld [vmem:[#allocation5 + $0x380] sm:$0xff] }
 0x200   : > { %v1323_v49 = vmax.f32 %v1249_v26, 0.0  ;;  %v1324_v56 = vmax.f32 %v1318_v30, 0.0  ;;  %v9473_v30 = vpack.c.bf16 %v1706_v19, %v1705_v17  ;;  %v1689_v43 = vld [vmem:[#allocation5 + $0x1d0] sm:$0xff]  ;;  %v1878_v17 = vld [vmem:[#allocation5 + $0x340] sm:$0xff]  ;;  %v1879_v19 = vld [vmem:[#allocation5 + $0x348] sm:$0xff] }
 0x201   : > { %v1326_v57 = vmax.f32 %v1084_v14, %v1322_v48  ;;  %v1325_v11 = vmax.f32 %v1320_v54, 0.0  ;;  %v9496_v14 = vpack.c.bf16 %v1718_v6, %v1717_v10  ;;  %v1690_v48 = vld [vmem:[#allocation5 + $0x1d8] sm:$0xff]  ;;  %v1721_v54 = vld [vmem:[#allocation5 + $0x2d0] sm:$0xff] }
 0x202   : > { %v1327_v35 = vmax.f32 %v1085_v7, %v1323_v49  ;;  %v1328_v20 = vmax.f32 %v1086_v18, %v1324_v56  ;;  %v1687_v7 = vld [vmem:[#allocation5 + $0x1c0] sm:$0xff]  ;;  %v1688_v18 = vld [vmem:[#allocation5 + $0x1c8] sm:$0xff]  ;;  %v1722_v49 = vld [vmem:[#allocation5 + $0x2d8] sm:$0xff] }
 0x203   : > { %v1329_v55 = vmax.f32 %v1087_v9, %v1325_v11  ;;  %v1719_v9 = vld [vmem:[#allocation5 + $0x2c0] sm:$0xff]  ;;  %v9471_v24 = vpack.c.bf16 %v1688_v18, %v1687_v7  ;;  %v9475_v11 = vpack.c.bf16 %v1690_v48, %v1689_v43  ;;  %v1895_v18 = vld [vmem:[#allocation5 + $0x3c8] sm:$0xff]  ;;  %v1896_v43 = vld [vmem:[#allocation5 + $0x3d0] sm:$0xff] }
 0x204   : > { %v1400_v22 = vpop.f32.mrb[8].mxu0  ;;  %v9499_v26 = vpack.c.bf16 %v1720_v13, %v1719_v9  ;;  %v1707_v56 = vld [vmem:[#allocation5 + $0x260] sm:$0xff]  ;;  %v1897_v48 = vld [vmem:[#allocation5 + $0x3d8] sm:$0xff]  ;;  %v1888_v42 = vld [vmem:[#allocation5 + $0x390] sm:$0xff] }
 0x205   : > { %v1401_v36 = vadd.f32 %v1400_v22, %v12014_v23  ;;  %v1471_v61 = vpop.f32.mrb[8].mxu1  ;;  %v1402_v12 = vpop.f32.mrb[9].mxu0  ;;  %v1692_v22 = vld [vmem:[#allocation5 + $0x1e8] sm:$0xff]  ;;  %v1894_v7 = vld [vmem:[#allocation5 + $0x3c0] sm:$0xff] }
 0x206   : > { %v1472_v16 = vadd.f32 %v1471_v61, %v12014_v23  ;;  %v1403_v38 = vadd.f32 %v1402_v12, %v12014_v23  ;;  %v1473_v8 = vpop.f32.mrb[9].mxu1  ;;  %v1724_v61 = vld [vmem:[#allocation5 + $0x2e8] sm:$0xff]  ;;  %v1709_v12 = vld [vmem:[#allocation5 + $0x270] sm:$0xff] }
 0x207   : > { %v1476_v60 = vmax.f32 %v1401_v36, 0.0  ;;  %v1474_v44 = vadd.f32 %v1473_v8, %v12014_v23  ;;  %v9490_v23 = vpack.c.bf16 %v1714_v50, %v1713_v21  ;;  %v1723_v36 = vld [vmem:[#allocation5 + $0x2e0] sm:$0xff]  ;;  %v1712_v21 = vld [vmem:[#allocation5 + $0x288] sm:$0xff] }
 0x208   : > { %v1478_v37 = vmax.f32 %v1472_v16, 0.0  ;;  %v1477_v15 = vmax.f32 %v1403_v38, 0.0  ;;  %v1710_v16 = vld [vmem:[#allocation5 + $0x278] sm:$0xff]  ;;  %v9505_v8 = vpack.c.bf16 %v1724_v61, %v1723_v36 }
 0x209   : > { %v12036_v29 = vmax.f32 %v1326_v57, %v1476_v60  ;;  %v1479_v2 = vmax.f32 %v1474_v44, 0.0  ;;  %v1708_v57 = vld [vmem:[#allocation5 + $0x268] sm:$0xff]  ;;  %v9481_v60 = vpack.c.bf16 %v1710_v16, %v1709_v12  ;;  %v1693_v44 = vld [vmem:[#allocation5 + $0x1f0] sm:$0xff]  ;;  %v1882_v16 = vld [vmem:[#allocation5 + $0x360] sm:$0xff] }
 0x20a   : > { %v12038_v31 = vmax.f32 %v1328_v20, %v1478_v37  ;;  %v12040_v32 = vmax.f32 %v1327_v35, %v1477_v15  ;;  %v9502_v35 = vpack.c.bf16 %v1722_v49, %v1721_v54  ;;  %v9477_v20 = vpack.c.bf16 %v1708_v57, %v1707_v56  ;;  %v1726_v37 = vld [vmem:[#allocation5 + $0x2f8] sm:$0xff]  ;;  %v1711_v15 = vld [vmem:[#allocation5 + $0x280] sm:$0xff]  ;;  %v1880_v57 = vld [vmem:[#allocation5 + $0x350] sm:$0xff] }
 0x20b   : > { %v12042_v34 = vmax.f32 %v1329_v55, %v1479_v2  ;;  %v1691_v55 = vld [vmem:[#allocation5 + $0x1e0] sm:$0xff]  ;;  %v9483_v50 = vpack.c.bf16 %v1694_v45, %v1693_v44  ;;  %v9508_v2 = vpack.c.bf16 %v1726_v37, %v1725_v63  ;;  %v9485_v52 = vpack.c.bf16 %v1712_v21, %v1711_v15  ;;  %v1900_v44 = vld [vmem:[#allocation5 + $0x3f0] sm:$0xff]  ;;  %v1901_v45 = vld [vmem:[#allocation5 + $0x3f8] sm:$0xff] }
 0x20c   : > { %1602 = vmatprep.mubr.f32.mxu0 %v12040_v32  ;;  %v9479_v38 = vpack.c.bf16 %v1692_v22, %v1691_v55  ;;  %v9526_v54 = vpack.c.bf16 %v1879_v19, %v1878_v17  ;;  %v9528_v56 = vpack.c.bf16 %v1897_v48, %v1896_v43  ;;  %v1898_v55 = vld [vmem:[#allocation5 + $0x3e0] sm:$0xff]  ;;  %v1899_v22 = vld [vmem:[#allocation5 + $0x3e8] sm:$0xff]  ;;  %v9536_v15 = vpack.c.bf16 %v1901_v45, %v1900_v44  ;;  %v1884_v21 = vld [vmem:[#allocation5 + $0x370] sm:$0xff] }
 0x20d   : > { %7785 = vmatprep.mubr.msk.f32.mxu1 %vm1534_vm2, %v12042_v34  ;;  %1603 = vmatmul.mubr.f32.vlgmr.msra.gmra.mrb[10].mxu0 %v12036_v29  ;;  %v9532_v12 = vpack.c.bf16 %v1899_v22, %v1898_v55  ;;  %v1921_v17 = vld [vmem:[#allocation5 + $0x498] sm:$0xff]  ;;  %v2084_v19 = vld [vmem:[#allocation5 + $0x540] sm:$0xff]  ;;  %v2070_v22 = vld [vmem:[#allocation5 + $0x4d0] sm:$0xff] }
 0x20e   : > { %1673 = vmatmul.mubr.f32.vlgmr.msra.gmra.mrb[10].mxu1 %v12038_v31  ;;  %9460 = vmatpush3.bf16.msra.mxu0 %v9459_v59  ;;  %v1696_v59 = vld [vmem:[#allocation5 + $0x208] sm:$0xff]  ;;  %v1922_v48 = vld [vmem:[#allocation5 + $0x4a0] sm:$0xff] }
 0x20f   : > { %9491 = vmatpush1.bf16.msra.mxu1 %v9490_v23  ;;  %1795 = vmatprep.mubr.f32.mxu0 %v12040_v32  ;;  %v1727_v23 = vld [vmem:[#allocation5 + $0x300] sm:$0xff]  ;;  %v2073_v45 = vld [vmem:[#allocation5 + $0x4e8] sm:$0xff] }
 0x210   : > { %7786 = vmatprep.mubr.msk.f32.mxu1 %vm1534_vm2, %v12042_v34  ;;  %9462 = vmatprep.subr.bf16.mxu0 %v9461_v41  ;;  %v9487_v41 = vpack.c.bf16 %v1696_v59, %v1695_v46  ;;  %v9511_v0 = vpack.c.bf16 %v1728_v39, %v1727_v23  ;;  %v1902_v46 = vld [vmem:[#allocation5 + $0x400] sm:$0xff]  ;;  %v1903_v59 = vld [vmem:[#allocation5 + $0x408] sm:$0xff] }
 0x211   : > { %9492 = vmatprep.subr.bf16.mxu1 %v11355_v25  ;;  %v9540_v51 = vpack.c.bf16 %v1903_v59, %v1902_v46  ;;  %v2072_v44 = vld [vmem:[#allocation5 + $0x4e0] sm:$0xff]  ;;  %v2074_v59 = vld [vmem:[#allocation5 + $0x4f0] sm:$0xff] }
 0x212   : > { %9464 = vmatpush3.bf16.msra.mxu0 %v9463_v27  ;;  %v1874_v27 = vld [vmem:[#allocation5 + $0x320] sm:$0xff] }
 0x213   : > { %9494 = vmatpush1.bf16.msra.mxu1 %v9493_v5  ;;  %9466 = vmatprep.subr.bf16.mxu0 %v9465_v33  ;;  %v1875_v5 = vld [vmem:[#allocation5 + $0x328] sm:$0xff]  ;;  %v1730_v33 = vld [vmem:[#allocation5 + $0x318] sm:$0xff] }
 0x214   : > { %9495 = vmatprep.subr.bf16.mxu1 %v11355_v25  ;;  %v9518_v10 = vpack.c.bf16 %v1875_v5, %v1874_v27  ;;  %v9514_v6 = vpack.c.bf16 %v1730_v33, %v1729_v58  ;;  %v1904_v58 = vld [vmem:[#allocation5 + $0x410] sm:$0xff]  ;;  %v1905_v27 = vld [vmem:[#allocation5 + $0x418] sm:$0xff] }
 0x215   : > { %v9544_v3 = vpack.c.bf16 %v1905_v27, %v1904_v58  ;;  %v2076_v27 = vld [vmem:[#allocation5 + $0x500] sm:$0xff] }
 0x216   : > { %9468 = vmatpush3.bf16.msra.mxu0 %v9467_v4  ;;  %v1877_v4 = vld [vmem:[#allocation5 + $0x338] sm:$0xff] }
 0x217   : > { %9497 = vmatpush1.bf16.msra.mxu1 %v9496_v14  ;;  %9470 = vmatprep.subr.bf16.mxu0 %v9469_v40  ;;  %v1906_v14 = vld [vmem:[#allocation5 + $0x420] sm:$0xff]  ;;  %v1907_v40 = vld [vmem:[#allocation5 + $0x428] sm:$0xff]  ;;  %v9522_v9 = vpack.c.bf16 %v1877_v4, %v1876_v53  ;;  %v2082_v53 = vld [vmem:[#allocation5 + $0x530] sm:$0xff] }
 0x218   : > { %9498 = vmatprep.subr.bf16.mxu1 %v11355_v25  ;;  %v9549_v13 = vpack.c.bf16 %v1907_v40, %v1906_v14  ;;  %v2083_v4 = vld [vmem:[#allocation5 + $0x538] sm:$0xff] }
 0x21a   : > { %9472 = vmatpush3.bf16.msra.mxu0 %v9471_v24  ;;  %v1908_v24 = vld [vmem:[#allocation5 + $0x430] sm:$0xff] }
 0x21b   : > { %9500 = vmatpush1.bf16.msra.mxu1 %v9499_v26  ;;  %9474 = vmatprep.subr.bf16.mxu0 %v9473_v30  ;;  %v9524_v26 = vpack.c.bf16 %v1895_v18, %v1894_v7  ;;  %v1909_v30 = vld [vmem:[#allocation5 + $0x438] sm:$0xff]  ;;  %v9575_v7 = vpack.c.bf16 %v2083_v4, %v2082_v53  ;;  %v1920_v18 = vld [vmem:[#allocation5 + $0x490] sm:$0xff] }
 0x21c   : > { %9501 = vmatprep.subr.bf16.mxu1 %v11355_v25  ;;  %v9552_v49 = vpack.c.bf16 %v1909_v30, %v1908_v24  ;;  %v2085_v24 = vld [vmem:[#allocation5 + $0x548] sm:$0xff]  ;;  %v9570_v30 = vpack.c.bf16 %v1921_v17, %v1920_v18  ;;  %v2078_v4 = vld [vmem:[#allocation5 + $0x510] sm:$0xff]  ;;  %v2096_v18 = vld [vmem:[#allocation5 + $0x5a0] sm:$0xff] }
 0x21d   : > { %v9579_v43 = vpack.c.bf16 %v2085_v24, %v2084_v19  ;;  %v2080_v24 = vld [vmem:[#allocation5 + $0x520] sm:$0xff] }
 0x21e   : > { %9476 = vmatpush3.bf16.msra.mxu0 %v9475_v11  ;;  %v1881_v11 = vld [vmem:[#allocation5 + $0x358] sm:$0xff] }
 0x21f   : > { %9503 = vmatpush1.bf16.msra.mxu1 %v9502_v35  ;;  %9478 = vmatprep.subr.bf16.mxu0 %v9477_v20  ;;  %v1910_v35 = vld [vmem:[#allocation5 + $0x440] sm:$0xff]  ;;  %v1911_v20 = vld [vmem:[#allocation5 + $0x448] sm:$0xff]  ;;  %v9530_v36 = vpack.c.bf16 %v1881_v11, %v1880_v57  ;;  %v2086_v57 = vld [vmem:[#allocation5 + $0x550] sm:$0xff] }
 0x220   : > { %9504 = vmatprep.subr.bf16.mxu1 %v11355_v25  ;;  %v9555_v61 = vpack.c.bf16 %v1911_v20, %v1910_v35  ;;  %v2087_v11 = vld [vmem:[#allocation5 + $0x558] sm:$0xff] }
 0x221   : > { %v9583_v55 = vpack.c.bf16 %v2087_v11, %v2086_v57  ;;  %v2110_v11 = vld [vmem:[#allocation5 + $0x610] sm:$0xff] }
 0x222   : > { %9480 = vmatpush3.bf16.msra.mxu0 %v9479_v38  ;;  %v1883_v38 = vld [vmem:[#allocation5 + $0x368] sm:$0xff] }
 0x223   : > { %9506 = vmatpush1.bf16.msra.mxu1 %v9505_v8  ;;  %9482 = vmatprep.subr.bf16.mxu0 %v9481_v60  ;;  %v1912_v8 = vld [vmem:[#allocation5 + $0x450] sm:$0xff]  ;;  %v1913_v60 = vld [vmem:[#allocation5 + $0x458] sm:$0xff]  ;;  %v9534_v63 = vpack.c.bf16 %v1883_v38, %v1882_v16  ;;  %v2088_v16 = vld [vmem:[#allocation5 + $0x560] sm:$0xff] }
 0x224   : > { %9507 = vmatprep.subr.bf16.mxu1 %v11355_v25  ;;  %v9558_v37 = vpack.c.bf16 %v1913_v60, %v1912_v8  ;;  %v2089_v38 = vld [vmem:[#allocation5 + $0x568] sm:$0xff] }
 0x226   : > { %9484 = vmatpush3.bf16.msra.mxu0 %v9483_v50  ;;  %v1885_v50 = vld [vmem:[#allocation5 + $0x378] sm:$0xff] }
 0x227   : > { %9509 = vmatpush1.bf16.msra.mxu1 %v9508_v2  ;;  %9486 = vmatprep.subr.bf16.mxu0 %v9485_v52  ;;  %v1914_v2 = vld [vmem:[#allocation5 + $0x460] sm:$0xff]  ;;  %v1915_v52 = vld [vmem:[#allocation5 + $0x468] sm:$0xff]  ;;  %v9538_v23 = vpack.c.bf16 %v1885_v50, %v1884_v21  ;;  %v2090_v21 = vld [vmem:[#allocation5 + $0x570] sm:$0xff] }
 0x228   : > { %9510 = vmatprep.subr.bf16.mxu1 %v11355_v25  ;;  %v9561_v39 = vpack.c.bf16 %v1915_v52, %v1914_v2  ;;  %v2091_v50 = vld [vmem:[#allocation5 + $0x578] sm:$0xff]  ;;  %v9589_v2 = vpack.c.bf16 %v2073_v45, %v2072_v44  ;;  %v2113_v44 = vld [vmem:[#allocation5 + $0x628] sm:$0xff]  ;;  %v2278_v45 = vld [vmem:[#allocation5 + $0x6e0] sm:$0xff] }
 0x229   : > { %v9591_v46 = vpack.c.bf16 %v2091_v50, %v2090_v21  ;;  %v2114_v50 = vld [vmem:[#allocation5 + $0x630] sm:$0xff] }
 0x22a   : > { %9488 = vmatpush3.bf16.msra.mxu0 %v9487_v41  ;;  %v1887_v41 = vld [vmem:[#allocation5 + $0x388] sm:$0xff] }
 0x22b   : > { %9512 = vmatpush1.bf16.msra.mxu1 %v9511_v0  ;;  %9517 = vmatprep.subr.bf16.mxu0 %v9516_v47  ;;  %v1916_v0 = vld [vmem:[#allocation5 + $0x470] sm:$0xff]  ;;  %v1917_v47 = vld [vmem:[#allocation5 + $0x478] sm:$0xff]  ;;  %v9542_v5 = vpack.c.bf16 %v1887_v41, %v1886_v62  ;;  %v2092_v62 = vld [vmem:[#allocation5 + $0x580] sm:$0xff] }
 0x22c   : > { %9513 = vmatprep.subr.bf16.mxu1 %v11355_v25  ;;  %v9564_v33 = vpack.c.bf16 %v1917_v47, %v1916_v0  ;;  %v2093_v41 = vld [vmem:[#allocation5 + $0x588] sm:$0xff] }
 0x22d   : > { %1796 = vmatmul.mubr.f32.vlgmr.msra.gmra.mrb[12].mxu0 %v12036_v29  ;;  %v9595_v58 = vpack.c.bf16 %v2093_v41, %v2092_v62  ;;  %v2264_v41 = vld [vmem:[#allocation5 + $0x670] sm:$0xff] }
 0x22e   : > { %9519 = vmatpush3.bf16.msra.mxu0 %v9518_v10  ;;  %1988 = vmatprep.mubr.f32.mxu0 %v12040_v32  ;;  %v1889_v10 = vld [vmem:[#allocation5 + $0x398] sm:$0xff] }
 0x22f   : > { %9515 = vmatpush1.bf16.msra.mxu1 %v9514_v6  ;;  %9521 = vmatprep.subr.bf16.mxu0 %v9520_v28  ;;  %v1918_v6 = vld [vmem:[#allocation5 + $0x480] sm:$0xff]  ;;  %v1919_v28 = vld [vmem:[#allocation5 + $0x488] sm:$0xff]  ;;  %v9546_v14 = vpack.c.bf16 %v1889_v10, %v1888_v42  ;;  %v2094_v42 = vld [vmem:[#allocation5 + $0x590] sm:$0xff] }
 0x230   : > { %9548 = vmatprep.subr.bf16.mxu1 %v11355_v25  ;;  %v9567_v40 = vpack.c.bf16 %v1919_v28, %v1918_v6  ;;  %v2095_v10 = vld [vmem:[#allocation5 + $0x598] sm:$0xff] }
 0x231   : > { %v9599_v53 = vpack.c.bf16 %v2095_v10, %v2094_v42  ;;  %v2266_v42 = vld [vmem:[#allocation5 + $0x680] sm:$0xff]  ;;  %v2267_v10 = vld [vmem:[#allocation5 + $0x688] sm:$0xff] }
 0x232   : > { %1866 = vmatmul.mubr.f32.vlgmr.msra.gmra.mrb[12].mxu1 %v12038_v31  ;;  %9523 = vmatpush3.bf16.msra.mxu0 %v9522_v9  ;;  %v2066_v9 = vld [vmem:[#allocation5 + $0x4b0] sm:$0xff] }
 0x233   : > { %9550 = vmatpush1.bf16.msra.mxu1 %v9549_v13  ;;  %7787 = vmatprep.mubr.msk.f32.mxu1 %vm1534_vm2, %v12042_v34  ;;  %v2067_v13 = vld [vmem:[#allocation5 + $0x4b8] sm:$0xff] }
 0x234   : > { %9525 = vmatprep.subr.bf16.mxu0 %v9524_v26  ;;  %9551 = vmatprep.subr.bf16.mxu1 %v11355_v25  ;;  %v9577_v26 = vpack.c.bf16 %v2067_v13, %v2066_v9  ;;  %v2097_v9 = vld [vmem:[#allocation5 + $0x5a8] sm:$0xff] }
 0x235   : > { %v9603_v19 = vpack.c.bf16 %v2097_v9, %v2096_v18  ;;  %v2268_v9 = vld [vmem:[#allocation5 + $0x690] sm:$0xff] }
 0x236   : > { %9527 = vmatpush3.bf16.msra.mxu0 %v9526_v54  ;;  %v2068_v54 = vld [vmem:[#allocation5 + $0x4c0] sm:$0xff] }
 0x237   : > { %9553 = vmatpush1.bf16.msra.mxu1 %v9552_v49  ;;  %9529 = vmatprep.subr.bf16.mxu0 %v9528_v56  ;;  %v2069_v49 = vld [vmem:[#allocation5 + $0x4c8] sm:$0xff] }
 0x238   : > { %9554 = vmatprep.subr.bf16.mxu1 %v11355_v25  ;;  %v1923_v56 = vld [vmem:[#allocation5 + $0x4a8] sm:$0xff]  ;;  %v9581_v35 = vpack.c.bf16 %v2069_v49, %v2068_v54 }
 0x239   : > { %v9573_v20 = vpack.c.bf16 %v1923_v56, %v1922_v48  ;;  %v2274_v48 = vld [vmem:[#allocation5 + $0x6c0] sm:$0xff]  ;;  %v2275_v54 = vld [vmem:[#allocation5 + $0x6c8] sm:$0xff] }
 0x23a   : > { %9531 = vmatpush3.bf16.msra.mxu0 %v9530_v36  ;;  %v2071_v36 = vld [vmem:[#allocation5 + $0x4d8] sm:$0xff]  ;;  %v9634_v57 = vpack.c.bf16 %v2275_v54, %v2274_v48  ;;  %v2270_v54 = vld [vmem:[#allocation5 + $0x6a0] sm:$0xff] }
 0x23b   : > { %9556 = vmatpush1.bf16.msra.mxu1 %v9555_v61  ;;  %9533 = vmatprep.subr.bf16.mxu0 %v9532_v12  ;;  %v2098_v61 = vld [vmem:[#allocation5 + $0x5b0] sm:$0xff]  ;;  %v2099_v12 = vld [vmem:[#allocation5 + $0x5b8] sm:$0xff]  ;;  %v9585_v8 = vpack.c.bf16 %v2071_v36, %v2070_v22 }
 0x23c   : > { %9557 = vmatprep.subr.bf16.mxu1 %v11355_v25  ;;  %v9608_v60 = vpack.c.bf16 %v2099_v12, %v2098_v61  ;;  %v2276_v22 = vld [vmem:[#allocation5 + $0x6d0] sm:$0xff]  ;;  %v2277_v36 = vld [vmem:[#allocation5 + $0x6d8] sm:$0xff] }
 0x23e   : > { %9535 = vmatpush3.bf16.msra.mxu0 %v9534_v63  ;;  %v2100_v63 = vld [vmem:[#allocation5 + $0x5c0] sm:$0xff] }
 0x23f   : > { %9559 = vmatpush1.bf16.msra.mxu1 %v9558_v37  ;;  %9537 = vmatprep.subr.bf16.mxu0 %v9536_v15  ;;  %v9587_v37 = vpack.c.bf16 %v2089_v38, %v2088_v16  ;;  %v2101_v15 = vld [vmem:[#allocation5 + $0x5c8] sm:$0xff]  ;;  %v9638_v16 = vpack.c.bf16 %v2277_v36, %v2276_v22  ;;  %v2112_v38 = vld [vmem:[#allocation5 + $0x620] sm:$0xff]  ;;  %v2272_v36 = vld [vmem:[#allocation5 + $0x6b0] sm:$0xff] }
 0x240   : > { %9560 = vmatprep.subr.bf16.mxu1 %v11355_v25  ;;  %v9611_v52 = vpack.c.bf16 %v2101_v15, %v2100_v63  ;;  %v2279_v63 = vld [vmem:[#allocation5 + $0x6e8] sm:$0xff]  ;;  %v9629_v15 = vpack.c.bf16 %v2113_v44, %v2112_v38  ;;  %v2466_v38 = vld [vmem:[#allocation5 + $0x850] sm:$0xff] }
 0x241   : > { %v9642_v21 = vpack.c.bf16 %v2279_v63, %v2278_v45  ;;  %v2300_v63 = vld [vmem:[#allocation5 + $0x790] sm:$0xff] }
 0x242   : > { %9539 = vmatpush3.bf16.msra.mxu0 %v9538_v23  ;;  %v2075_v23 = vld [vmem:[#allocation5 + $0x4f8] sm:$0xff] }
 0x243   : > { %9562 = vmatpush1.bf16.msra.mxu1 %v9561_v39  ;;  %9541 = vmatprep.subr.bf16.mxu0 %v9540_v51  ;;  %v2102_v39 = vld [vmem:[#allocation5 + $0x5d0] sm:$0xff]  ;;  %v2103_v51 = vld [vmem:[#allocation5 + $0x5d8] sm:$0xff]  ;;  %v9593_v0 = vpack.c.bf16 %v2075_v23, %v2074_v59 }
 0x244   : > { %9563 = vmatprep.subr.bf16.mxu1 %v11355_v25  ;;  %v9614_v47 = vpack.c.bf16 %v2103_v51, %v2102_v39  ;;  %v2280_v59 = vld [vmem:[#allocation5 + $0x6f0] sm:$0xff]  ;;  %v2281_v23 = vld [vmem:[#allocation5 + $0x6f8] sm:$0xff] }
 0x245   : > { %v9646_v62 = vpack.c.bf16 %v2281_v23, %v2280_v59  ;;  %v2302_v23 = vld [vmem:[#allocation5 + $0x7a0] sm:$0xff] }
 0x246   : > { %9543 = vmatpush3.bf16.msra.mxu0 %v9542_v5  ;;  %v2077_v5 = vld [vmem:[#allocation5 + $0x508] sm:$0xff] }
 0x247   : > { %9565 = vmatpush1.bf16.msra.mxu1 %v9564_v33  ;;  %9545 = vmatprep.subr.bf16.mxu0 %v9544_v3  ;;  %v2104_v33 = vld [vmem:[#allocation5 + $0x5e0] sm:$0xff]  ;;  %v2105_v3 = vld [vmem:[#allocation5 + $0x5e8] sm:$0xff]  ;;  %v9597_v6 = vpack.c.bf16 %v2077_v5, %v2076_v27 }
 0x248   : > { %9566 = vmatprep.subr.bf16.mxu1 %v11355_v25  ;;  %v9617_v28 = vpack.c.bf16 %v2105_v3, %v2104_v33  ;;  %v2282_v27 = vld [vmem:[#allocation5 + $0x700] sm:$0xff]  ;;  %v2283_v5 = vld [vmem:[#allocation5 + $0x708] sm:$0xff] }
 0x24a   : > { %9547 = vmatpush3.bf16.msra.mxu0 %v9546_v14  ;;  %v2079_v14 = vld [vmem:[#allocation5 + $0x518] sm:$0xff] }
 0x24b   : > { %9568 = vmatpush1.bf16.msra.mxu1 %v9567_v40  ;;  %9576 = vmatprep.subr.bf16.mxu0 %v9575_v7  ;;  %v2106_v40 = vld [vmem:[#allocation5 + $0x5f0] sm:$0xff]  ;;  %v2107_v7 = vld [vmem:[#allocation5 + $0x5f8] sm:$0xff]  ;;  %v9601_v13 = vpack.c.bf16 %v2079_v14, %v2078_v4 }
 0x24c   : > { %9569 = vmatprep.subr.bf16.mxu1 %v11355_v25  ;;  %v9620_v17 = vpack.c.bf16 %v2107_v7, %v2106_v40  ;;  %v2284_v4 = vld [vmem:[#allocation5 + $0x710] sm:$0xff]  ;;  %v2285_v14 = vld [vmem:[#allocation5 + $0x718] sm:$0xff]  ;;  %v9652_v40 = vpack.c.bf16 %v2267_v10, %v2266_v42  ;;  %v2472_v10 = vld [vmem:[#allocation5 + $0x880] sm:$0xff] }
 0x24d   : > { %1989 = vmatmul.mubr.f32.vlgmr.msra.gmra.mrb[14].mxu0 %v12036_v29  ;;  %v9654_v18 = vpack.c.bf16 %v2285_v14, %v2284_v4  ;;  %v2305_v42 = vld [vmem:[#allocation5 + $0x7b8] sm:$0xff]  ;;  %v2306_v14 = vld [vmem:[#allocation5 + $0x7c0] sm:$0xff] }
 0x24e   : > { %9578 = vmatpush3.bf16.msra.mxu0 %v9577_v26  ;;  %2180 = vmatprep.mubr.f32.mxu0 %v12040_v32  ;;  %v2081_v26 = vld [vmem:[#allocation5 + $0x528] sm:$0xff] }
 0x24f   : > { %9571 = vmatpush1.bf16.msra.mxu1 %v9570_v30  ;;  %9580 = vmatprep.subr.bf16.mxu0 %v9579_v43  ;;  %v2108_v30 = vld [vmem:[#allocation5 + $0x600] sm:$0xff]  ;;  %v2109_v43 = vld [vmem:[#allocation5 + $0x608] sm:$0xff]  ;;  %v9605_v49 = vpack.c.bf16 %v2081_v26, %v2080_v24 }
 0x250   : > { %9572 = vmatprep.subr.bf16.mxu1 %v11355_v25  ;;  %v9623_v56 = vpack.c.bf16 %v2109_v43, %v2108_v30  ;;  %v2286_v24 = vld [vmem:[#allocation5 + $0x720] sm:$0xff]  ;;  %v2287_v26 = vld [vmem:[#allocation5 + $0x728] sm:$0xff] }
 0x251   : > { %v9658_v48 = vpack.c.bf16 %v2287_v26, %v2286_v24  ;;  %v2458_v26 = vld [vmem:[#allocation5 + $0x810] sm:$0xff] }
 0x252   : > { %9582 = vmatpush3.bf16.msra.mxu0 %v9581_v35  ;;  %v2258_v35 = vld [vmem:[#allocation5 + $0x640] sm:$0xff] }
 0x253   : > { %9574 = vmatpush1.bf16.msra.mxu1 %v9573_v20  ;;  %9584 = vmatprep.subr.bf16.mxu0 %v9583_v55  ;;  %v2259_v20 = vld [vmem:[#allocation5 + $0x648] sm:$0xff]  ;;  %v2111_v55 = vld [vmem:[#allocation5 + $0x618] sm:$0xff] }
 0x254   : > { %9607 = vmatprep.subr.bf16.mxu1 %v11355_v25  ;;  %v9636_v61 = vpack.c.bf16 %v2259_v20, %v2258_v35  ;;  %v9626_v12 = vpack.c.bf16 %v2111_v55, %v2110_v11  ;;  %v2288_v11 = vld [vmem:[#allocation5 + $0x730] sm:$0xff]  ;;  %v2289_v35 = vld [vmem:[#allocation5 + $0x738] sm:$0xff] }
 0x255   : > { %v9662_v22 = vpack.c.bf16 %v2289_v35, %v2288_v11  ;;  %v2460_v11 = vld [vmem:[#allocation5 + $0x820] sm:$0xff]  ;;  %v2461_v35 = vld [vmem:[#allocation5 + $0x828] sm:$0xff] }
 0x256   : > { %2059 = vmatmul.mubr.f32.vlgmr.msra.gmra.mrb[14].mxu1 %v12038_v31  ;;  %9586 = vmatpush3.bf16.msra.mxu0 %v9585_v8  ;;  %v2260_v8 = vld [vmem:[#allocation5 + $0x650] sm:$0xff] }
 0x257   : > { %9609 = vmatpush1.bf16.msra.mxu1 %v9608_v60  ;;  %7788 = vmatprep.mubr.msk.f32.mxu1 %vm1534_vm2, %v12042_v34  ;;  %v2261_v60 = vld [vmem:[#allocation5 + $0x658] sm:$0xff] }
 0x258   : > { %9588 = vmatprep.subr.bf16.mxu0 %v9587_v37  ;;  %9610 = vmatprep.subr.bf16.mxu1 %v11355_v25  ;;  %v9640_v37 = vpack.c.bf16 %v2261_v60, %v2260_v8  ;;  %v2467_v8 = vld [vmem:[#allocation5 + $0x858] sm:$0xff] }
 0x259   : > { %v9693_v45 = vpack.c.bf16 %v2467_v8, %v2466_v38  ;;  %v2462_v8 = vld [vmem:[#allocation5 + $0x830] sm:$0xff] }
 0x25a   : > { %9590 = vmatpush3.bf16.msra.mxu0 %v9589_v2  ;;  %v2262_v2 = vld [vmem:[#allocation5 + $0x660] sm:$0xff] }
 0x25b   : > { %9612 = vmatpush1.bf16.msra.mxu1 %v9611_v52  ;;  %9592 = vmatprep.subr.bf16.mxu0 %v9591_v46  ;;  %v2263_v52 = vld [vmem:[#allocation5 + $0x668] sm:$0xff]  ;;  %v2115_v46 = vld [vmem:[#allocation5 + $0x638] sm:$0xff] }
 0x25c   : > { %9613 = vmatprep.subr.bf16.mxu1 %v11355_v25  ;;  %v9644_v39 = vpack.c.bf16 %v2263_v52, %v2262_v2  ;;  %v9632_v51 = vpack.c.bf16 %v2115_v46, %v2114_v50  ;;  %v2468_v50 = vld [vmem:[#allocation5 + $0x860] sm:$0xff]  ;;  %v2469_v2 = vld [vmem:[#allocation5 + $0x868] sm:$0xff] }
 0x25d   : > { %v9697_v59 = vpack.c.bf16 %v2469_v2, %v2468_v50  ;;  %v2464_v2 = vld [vmem:[#allocation5 + $0x840] sm:$0xff] }
 0x25e   : > { %9594 = vmatpush3.bf16.msra.mxu0 %v9593_v0  ;;  %v2265_v0 = vld [vmem:[#allocation5 + $0x678] sm:$0xff] }
 0x25f   : > { %9615 = vmatpush1.bf16.msra.mxu1 %v9614_v47  ;;  %9596 = vmatprep.subr.bf16.mxu0 %v9595_v58  ;;  %v2290_v47 = vld [vmem:[#allocation5 + $0x740] sm:$0xff]  ;;  %v2291_v58 = vld [vmem:[#allocation5 + $0x748] sm:$0xff]  ;;  %v9648_v33 = vpack.c.bf16 %v2265_v0, %v2264_v41  ;;  %v2470_v41 = vld [vmem:[#allocation5 + $0x870] sm:$0xff] }
 0x260   : > { %9616 = vmatprep.subr.bf16.mxu1 %v11355_v25  ;;  %v9667_v3 = vpack.c.bf16 %v2291_v58, %v2290_v47  ;;  %v2471_v0 = vld [vmem:[#allocation5 + $0x878] sm:$0xff] }
 0x262   : > { %9598 = vmatpush3.bf16.msra.mxu0 %v9597_v6  ;;  %v2292_v6 = vld [vmem:[#allocation5 + $0x750] sm:$0xff] }
 0x263   : > { %9618 = vmatpush1.bf16.msra.mxu1 %v9617_v28  ;;  %9600 = vmatprep.subr.bf16.mxu0 %v9599_v53  ;;  %v9650_v28 = vpack.c.bf16 %v2283_v5, %v2282_v27  ;;  %v2293_v53 = vld [vmem:[#allocation5 + $0x758] sm:$0xff]  ;;  %v9701_v27 = vpack.c.bf16 %v2471_v0, %v2470_v41  ;;  %v2304_v5 = vld [vmem:[#allocation5 + $0x7b0] sm:$0xff] }
 0x264   : > { %9619 = vmatprep.subr.bf16.mxu1 %v11355_v25  ;;  %v9670_v7 = vpack.c.bf16 %v2293_v53, %v2292_v6  ;;  %v2473_v6 = vld [vmem:[#allocation5 + $0x888] sm:$0xff]  ;;  %v9688_v53 = vpack.c.bf16 %v2305_v42, %v2304_v5  ;;  %v2490_v0 = vld [vmem:[#allocation5 + $0x910] sm:$0xff] }
 0x265   : > { %v9705_v4 = vpack.c.bf16 %v2473_v6, %v2472_v10  ;;  %v2660_v5 = vld [vmem:[#allocation5 + $0x9f0] sm:$0xff]  ;;  %v2492_v6 = vld [vmem:[#allocation5 + $0x920] sm:$0xff] }
 0x266   : > { %9602 = vmatpush3.bf16.msra.mxu0 %v9601_v13  ;;  %v2269_v13 = vld [vmem:[#allocation5 + $0x698] sm:$0xff] }
 0x267   : > { %9621 = vmatpush1.bf16.msra.mxu1 %v9620_v17  ;;  %9604 = vmatprep.subr.bf16.mxu0 %v9603_v19  ;;  %v2294_v17 = vld [vmem:[#allocation5 + $0x760] sm:$0xff]  ;;  %v2295_v19 = vld [vmem:[#allocation5 + $0x768] sm:$0xff]  ;;  %v9656_v30 = vpack.c.bf16 %v2269_v13, %v2268_v9  ;;  %v2474_v9 = vld [vmem:[#allocation5 + $0x890] sm:$0xff] }
 0x268   : > { %9622 = vmatprep.subr.bf16.mxu1 %v11355_v25  ;;  %v9673_v43 = vpack.c.bf16 %v2295_v19, %v2294_v17  ;;  %v2475_v13 = vld [vmem:[#allocation5 + $0x898] sm:$0xff] }
 0x269   : > { %v9709_v24 = vpack.c.bf16 %v2475_v13, %v2474_v9  ;;  %v2494_v13 = vld [vmem:[#allocation5 + $0x930] sm:$0xff] }
 0x26a   : > { %9606 = vmatpush3.bf16.msra.mxu0 %v9605_v49  ;;  %v2271_v49 = vld [vmem:[#allocation5 + $0x6a8] sm:$0xff] }
 0x26b   : > { %9624 = vmatpush1.bf16.msra.mxu1 %v9623_v56  ;;  %9635 = vmatprep.subr.bf16.mxu0 %v9634_v57  ;;  %v2296_v56 = vld [vmem:[#allocation5 + $0x770] sm:$0xff]  ;;  %v2297_v57 = vld [vmem:[#allocation5 + $0x778] sm:$0xff]  ;;  %v9660_v20 = vpack.c.bf16 %v2271_v49, %v2270_v54  ;;  %v2476_v54 = vld [vmem:[#allocation5 + $0x8a0] sm:$0xff] }
 0x26c   : > { %9625 = vmatprep.subr.bf16.mxu1 %v11355_v25  ;;  %v9676_v55 = vpack.c.bf16 %v2297_v57, %v2296_v56  ;;  %v2477_v49 = vld [vmem:[#allocation5 + $0x8a8] sm:$0xff] }
 0x26d   : > { %2181 = vmatmul.mubr.f32.vlgmr.msra.gmra.mrb[16].mxu0 %v12036_v29 }
 0x26e   : > { %9637 = vmatpush3.bf16.msra.mxu0 %v9636_v61  ;;  %2372 = vmatprep.mubr.f32.mxu0 %v12040_v32  ;;  %v2273_v61 = vld [vmem:[#allocation5 + $0x6b8] sm:$0xff] }
 0x26f   : > { %9627 = vmatpush1.bf16.msra.mxu1 %v9626_v12  ;;  %9639 = vmatprep.subr.bf16.mxu0 %v9638_v16  ;;  %v2298_v12 = vld [vmem:[#allocation5 + $0x780] sm:$0xff]  ;;  %v2299_v16 = vld [vmem:[#allocation5 + $0x788] sm:$0xff]  ;;  %v9664_v60 = vpack.c.bf16 %v2273_v61, %v2272_v36  ;;  %v2478_v36 = vld [vmem:[#allocation5 + $0x8b0] sm:$0xff] }
 0x270   : > { %9628 = vmatprep.subr.bf16.mxu1 %v11355_v25  ;;  %v9679_v44 = vpack.c.bf16 %v2299_v16, %v2298_v12  ;;  %v2479_v61 = vld [vmem:[#allocation5 + $0x8b8] sm:$0xff]  ;;  %v9715_v12 = vpack.c.bf16 %v2461_v35, %v2460_v11  ;;  %v2497_v11 = vld [vmem:[#allocation5 + $0x948] sm:$0xff]  ;;  %v2666_v35 = vld [vmem:[#allocation5 + $0xa20] sm:$0xff] }
 0x271   : > { %v9717_v38 = vpack.c.bf16 %v2479_v61, %v2478_v36  ;;  %v2498_v61 = vld [vmem:[#allocation5 + $0x950] sm:$0xff] }
 0x272   : > { %9641 = vmatpush3.bf16.msra.mxu0 %v9640_v37  ;;  %v2450_v37 = vld [vmem:[#allocation5 + $0x7d0] sm:$0xff] }
 0x273   : > { %9630 = vmatpush1.bf16.msra.mxu1 %v9629_v15  ;;  %9643 = vmatprep.subr.bf16.mxu0 %v9642_v21  ;;  %v2451_v15 = vld [vmem:[#allocation5 + $0x7d8] sm:$0xff] }
 0x274   : > { %9631 = vmatprep.subr.bf16.mxu1 %v11355_v25  ;;  %v2301_v21 = vld [vmem:[#allocation5 + $0x798] sm:$0xff]  ;;  %v9695_v52 = vpack.c.bf16 %v2451_v15, %v2450_v37  ;;  %v2481_v37 = vld [vmem:[#allocation5 + $0x8c8] sm:$0xff] }
 0x275   : > { %v9682_v46 = vpack.c.bf16 %v2301_v21, %v2300_v63  ;;  %v2480_v63 = vld [vmem:[#allocation5 + $0x8c0] sm:$0xff] }
 0x276   : > { %9645 = vmatpush3.bf16.msra.mxu0 %v9644_v39  ;;  %v2452_v39 = vld [vmem:[#allocation5 + $0x7e0] sm:$0xff]  ;;  %v9721_v50 = vpack.c.bf16 %v2481_v37, %v2480_v63  ;;  %v2652_v37 = vld [vmem:[#allocation5 + $0x9b0] sm:$0xff] }
 0x277   : > { %9633 = vmatpush1.bf16.msra.mxu1 %v9632_v51  ;;  %9647 = vmatprep.subr.bf16.mxu0 %v9646_v62  ;;  %v2453_v51 = vld [vmem:[#allocation5 + $0x7e8] sm:$0xff] }
 0x278   : > { %9666 = vmatprep.subr.bf16.mxu1 %v11355_v25  ;;  %v2303_v62 = vld [vmem:[#allocation5 + $0x7a8] sm:$0xff]  ;;  %v9699_v47 = vpack.c.bf16 %v2453_v51, %v2452_v39 }
 0x279   : > { %v9685_v58 = vpack.c.bf16 %v2303_v62, %v2302_v23  ;;  %v2658_v23 = vld [vmem:[#allocation5 + $0x9e0] sm:$0xff]  ;;  %v2659_v39 = vld [vmem:[#allocation5 + $0x9e8] sm:$0xff] }
 0x27a   : > { %2251 = vmatmul.mubr.f32.vlgmr.msra.gmra.mrb[16].mxu1 %v12038_v31  ;;  %9649 = vmatpush3.bf16.msra.mxu0 %v9648_v33  ;;  %v2454_v33 = vld [vmem:[#allocation5 + $0x7f0] sm:$0xff]  ;;  %v9752_v41 = vpack.c.bf16 %v2659_v39, %v2658_v23  ;;  %v2654_v23 = vld [vmem:[#allocation5 + $0x9c0] sm:$0xff]  ;;  %v2655_v39 = vld [vmem:[#allocation5 + $0x9c8] sm:$0xff] }
 0x27b   : > { %9668 = vmatpush1.bf16.msra.mxu1 %v9667_v3  ;;  %7789 = vmatprep.mubr.msk.f32.mxu1 %vm1534_vm2, %v12042_v34  ;;  %v2455_v3 = vld [vmem:[#allocation5 + $0x7f8] sm:$0xff] }
 0x27c   : > { %9651 = vmatprep.subr.bf16.mxu0 %v9650_v28  ;;  %9669 = vmatprep.subr.bf16.mxu1 %v11355_v25  ;;  %v9703_v28 = vpack.c.bf16 %v2455_v3, %v2454_v33  ;;  %v2661_v33 = vld [vmem:[#allocation5 + $0x9f8] sm:$0xff] }
 0x27d   : > { %v9756_v10 = vpack.c.bf16 %v2661_v33, %v2660_v5  ;;  %v2656_v33 = vld [vmem:[#allocation5 + $0x9d0] sm:$0xff] }
 0x27e   : > { %9653 = vmatpush3.bf16.msra.mxu0 %v9652_v40  ;;  %v2456_v40 = vld [vmem:[#allocation5 + $0x800] sm:$0xff] }
 0x27f   : > { %9671 = vmatpush1.bf16.msra.mxu1 %v9670_v7  ;;  %9655 = vmatprep.subr.bf16.mxu0 %v9654_v18  ;;  %v2457_v7 = vld [vmem:[#allocation5 + $0x808] sm:$0xff] }
 0x280   : > { %9672 = vmatprep.subr.bf16.mxu1 %v11355_v25  ;;  %v2307_v18 = vld [vmem:[#allocation5 + $0x7c8] sm:$0xff]  ;;  %v9707_v17 = vpack.c.bf16 %v2457_v7, %v2456_v40 }
 0x281   : > { %v9691_v19 = vpack.c.bf16 %v2307_v18, %v2306_v14  ;;  %v2662_v14 = vld [vmem:[#allocation5 + $0xa00] sm:$0xff]  ;;  %v2663_v40 = vld [vmem:[#allocation5 + $0xa08] sm:$0xff] }
 0x282   : > { %9657 = vmatpush3.bf16.msra.mxu0 %v9656_v30  ;;  %v2459_v30 = vld [vmem:[#allocation5 + $0x818] sm:$0xff]  ;;  %v9760_v9 = vpack.c.bf16 %v2663_v40, %v2662_v14  ;;  %v2680_v40 = vld [vmem:[#allocation5 + $0xa90] sm:$0xff] }
 0x283   : > { %9674 = vmatpush1.bf16.msra.mxu1 %v9673_v43  ;;  %9659 = vmatprep.subr.bf16.mxu0 %v9658_v48  ;;  %v2482_v43 = vld [vmem:[#allocation5 + $0x8d0] sm:$0xff]  ;;  %v2483_v48 = vld [vmem:[#allocation5 + $0x8d8] sm:$0xff]  ;;  %v9711_v56 = vpack.c.bf16 %v2459_v30, %v2458_v26 }
 0x284   : > { %9675 = vmatprep.subr.bf16.mxu1 %v11355_v25  ;;  %v9726_v57 = vpack.c.bf16 %v2483_v48, %v2482_v43  ;;  %v2664_v26 = vld [vmem:[#allocation5 + $0xa10] sm:$0xff]  ;;  %v2665_v30 = vld [vmem:[#allocation5 + $0xa18] sm:$0xff] }
 0x286   : > { %9661 = vmatpush3.bf16.msra.mxu0 %v9660_v20  ;;  %v2484_v20 = vld [vmem:[#allocation5 + $0x8e0] sm:$0xff] }
 0x287   : > { %9677 = vmatpush1.bf16.msra.mxu1 %v9676_v55  ;;  %9663 = vmatprep.subr.bf16.mxu0 %v9662_v22  ;;  %v9713_v55 = vpack.c.bf16 %v2477_v49, %v2476_v54  ;;  %v2485_v22 = vld [vmem:[#allocation5 + $0x8e8] sm:$0xff]  ;;  %v9764_v54 = vpack.c.bf16 %v2665_v30, %v2664_v26  ;;  %v2496_v49 = vld [vmem:[#allocation5 + $0x940] sm:$0xff] }
 0x288   : > { %9678 = vmatprep.subr.bf16.mxu1 %v11355_v25  ;;  %v9729_v16 = vpack.c.bf16 %v2485_v22, %v2484_v20  ;;  %v2667_v20 = vld [vmem:[#allocation5 + $0xa28] sm:$0xff]  ;;  %v9747_v22 = vpack.c.bf16 %v2497_v11, %v2496_v49  ;;  %v2682_v30 = vld [vmem:[#allocation5 + $0xaa0] sm:$0xff]  ;;  %v2854_v49 = vld [vmem:[#allocation5 + $0xb90] sm:$0xff] }
 0x289   : > { %v9768_v36 = vpack.c.bf16 %v2667_v20, %v2666_v35  ;;  %v2684_v20 = vld [vmem:[#allocation5 + $0xab0] sm:$0xff] }
 0x28a   : > { %9665 = vmatpush3.bf16.msra.mxu0 %v9664_v60  ;;  %v2463_v60 = vld [vmem:[#allocation5 + $0x838] sm:$0xff] }
 0x28b   : > { %9680 = vmatpush1.bf16.msra.mxu1 %v9679_v44  ;;  %9694 = vmatprep.subr.bf16.mxu0 %v9693_v45  ;;  %v2486_v44 = vld [vmem:[#allocation5 + $0x8f0] sm:$0xff]  ;;  %v2487_v45 = vld [vmem:[#allocation5 + $0x8f8] sm:$0xff]  ;;  %v9719_v15 = vpack.c.bf16 %v2463_v60, %v2462_v8 }
 0x28c   : > { %9681 = vmatprep.subr.bf16.mxu1 %v11355_v25  ;;  %v9732_v21 = vpack.c.bf16 %v2487_v45, %v2486_v44  ;;  %v2668_v8 = vld [vmem:[#allocation5 + $0xa30] sm:$0xff]  ;;  %v2669_v60 = vld [vmem:[#allocation5 + $0xa38] sm:$0xff] }
 0x28d   : > { %2373 = vmatmul.mubr.f32.vlgmr.msra.gmra.mrb[18].mxu0 %v12036_v29  ;;  %v9772_v63 = vpack.c.bf16 %v2669_v60, %v2668_v8  ;;  %v2686_v60 = vld [vmem:[#allocation5 + $0xac0] sm:$0xff] }
 0x28e   : > { %9696 = vmatpush3.bf16.msra.mxu0 %v9695_v52  ;;  %2564 = vmatprep.mubr.f32.mxu0 %v12040_v32  ;;  %v2465_v52 = vld [vmem:[#allocation5 + $0x848] sm:$0xff] }
 0x28f   : > { %9683 = vmatpush1.bf16.msra.mxu1 %v9682_v46  ;;  %9698 = vmatprep.subr.bf16.mxu0 %v9697_v59  ;;  %v2488_v46 = vld [vmem:[#allocation5 + $0x900] sm:$0xff]  ;;  %v2489_v59 = vld [vmem:[#allocation5 + $0x908] sm:$0xff]  ;;  %v9723_v51 = vpack.c.bf16 %v2465_v52, %v2464_v2 }
 0x290   : > { %9684 = vmatprep.subr.bf16.mxu1 %v11355_v25  ;;  %v9735_v62 = vpack.c.bf16 %v2489_v59, %v2488_v46  ;;  %v2670_v2 = vld [vmem:[#allocation5 + $0xa40] sm:$0xff]  ;;  %v2671_v52 = vld [vmem:[#allocation5 + $0xa48] sm:$0xff] }
 0x292   : > { %9700 = vmatpush3.bf16.msra.mxu0 %v9699_v47  ;;  %v2642_v47 = vld [vmem:[#allocation5 + $0x960] sm:$0xff] }
 0x293   : > { %9686 = vmatpush1.bf16.msra.mxu1 %v9685_v58  ;;  %9702 = vmatprep.subr.bf16.mxu0 %v9701_v27  ;;  %v2643_v58 = vld [vmem:[#allocation5 + $0x968] sm:$0xff]  ;;  %v2491_v27 = vld [vmem:[#allocation5 + $0x918] sm:$0xff] }
 0x294   : > { %9687 = vmatprep.subr.bf16.mxu1 %v11355_v25  ;;  %v9754_v3 = vpack.c.bf16 %v2643_v58, %v2642_v47  ;;  %v9738_v42 = vpack.c.bf16 %v2491_v27, %v2490_v0  ;;  %v2672_v0 = vld [vmem:[#allocation5 + $0xa50] sm:$0xff]  ;;  %v2673_v47 = vld [vmem:[#allocation5 + $0xa58] sm:$0xff]  ;;  %v9778_v58 = vpack.c.bf16 %v2655_v39, %v2654_v23  ;;  %v2860_v39 = vld [vmem:[#allocation5 + $0xbc0] sm:$0xff] }
 0x295   : > { %v9780_v5 = vpack.c.bf16 %v2673_v47, %v2672_v0  ;;  %v2689_v23 = vld [vmem:[#allocation5 + $0xad8] sm:$0xff]  ;;  %v2690_v47 = vld [vmem:[#allocation5 + $0xae0] sm:$0xff] }
 0x296   : > { %9704 = vmatpush3.bf16.msra.mxu0 %v9703_v28  ;;  %v2644_v28 = vld [vmem:[#allocation5 + $0x970] sm:$0xff] }
 0x297   : > { %9689 = vmatpush1.bf16.msra.mxu1 %v9688_v53  ;;  %9706 = vmatprep.subr.bf16.mxu0 %v9705_v4  ;;  %v2645_v53 = vld [vmem:[#allocation5 + $0x978] sm:$0xff]  ;;  %v2493_v4 = vld [vmem:[#allocation5 + $0x928] sm:$0xff] }
 0x298   : > { %9690 = vmatprep.subr.bf16.mxu1 %v11355_v25  ;;  %v9758_v7 = vpack.c.bf16 %v2645_v53, %v2644_v28  ;;  %v9741_v18 = vpack.c.bf16 %v2493_v4, %v2492_v6  ;;  %v2850_v6 = vld [vmem:[#allocation5 + $0xb70] sm:$0xff]  ;;  %v2851_v28 = vld [vmem:[#allocation5 + $0xb78] sm:$0xff] }
 0x299   : > { %v9811_v14 = vpack.c.bf16 %v2851_v28, %v2850_v6  ;;  %v2846_v28 = vld [vmem:[#allocation5 + $0xb50] sm:$0xff] }
 0x29a   : > { %9708 = vmatpush3.bf16.msra.mxu0 %v9707_v17  ;;  %v2646_v17 = vld [vmem:[#allocation5 + $0x980] sm:$0xff] }
 0x29b   : > { %9692 = vmatpush1.bf16.msra.mxu1 %v9691_v19  ;;  %9710 = vmatprep.subr.bf16.mxu0 %v9709_v24  ;;  %v2647_v19 = vld [vmem:[#allocation5 + $0x988] sm:$0xff]  ;;  %v2495_v24 = vld [vmem:[#allocation5 + $0x938] sm:$0xff] }
 0x29c   : > { %9725 = vmatprep.subr.bf16.mxu1 %v11355_v25  ;;  %v9762_v43 = vpack.c.bf16 %v2647_v19, %v2646_v17  ;;  %v9744_v48 = vpack.c.bf16 %v2495_v24, %v2494_v13  ;;  %v2852_v13 = vld [vmem:[#allocation5 + $0xb80] sm:$0xff]  ;;  %v2853_v17 = vld [vmem:[#allocation5 + $0xb88] sm:$0xff] }
 0x29d   : > { %v9815_v26 = vpack.c.bf16 %v2853_v17, %v2852_v13  ;;  %v2865_v13 = vld [vmem:[#allocation5 + $0xbe8] sm:$0xff] }
 0x29e   : > { %2443 = vmatmul.mubr.f32.vlgmr.msra.gmra.mrb[18].mxu1 %v12038_v31  ;;  %9712 = vmatpush3.bf16.msra.mxu0 %v9711_v56  ;;  %v2648_v56 = vld [vmem:[#allocation5 + $0x990] sm:$0xff] }
 0x29f   : > { %9727 = vmatpush1.bf16.msra.mxu1 %v9726_v57  ;;  %7790 = vmatprep.mubr.msk.f32.mxu1 %vm1534_vm2, %v12042_v34  ;;  %v2649_v57 = vld [vmem:[#allocation5 + $0x998] sm:$0xff] }
 0x2a0   : > { %9714 = vmatprep.subr.bf16.mxu0 %v9713_v55  ;;  %9728 = vmatprep.subr.bf16.mxu1 %v11355_v25  ;;  %v9766_v55 = vpack.c.bf16 %v2649_v57, %v2648_v56  ;;  %v2855_v56 = vld [vmem:[#allocation5 + $0xb98] sm:$0xff] }
 0x2a1   : > { %v9819_v35 = vpack.c.bf16 %v2855_v56, %v2854_v49  ;;  %v2869_v56 = vld [vmem:[#allocation5 + $0xc08] sm:$0xff] }
 0x2a2   : > { %9716 = vmatpush3.bf16.msra.mxu0 %v9715_v12  ;;  %v2650_v12 = vld [vmem:[#allocation5 + $0x9a0] sm:$0xff] }
 0x2a3   : > { %9730 = vmatpush1.bf16.msra.mxu1 %v9729_v16  ;;  %9718 = vmatprep.subr.bf16.mxu0 %v9717_v38  ;;  %v2651_v16 = vld [vmem:[#allocation5 + $0x9a8] sm:$0xff]  ;;  %v2499_v38 = vld [vmem:[#allocation5 + $0x958] sm:$0xff] }
 0x2a4   : > { %9731 = vmatprep.subr.bf16.mxu1 %v11355_v25  ;;  %v9770_v44 = vpack.c.bf16 %v2651_v16, %v2650_v12  ;;  %v9750_v45 = vpack.c.bf16 %v2499_v38, %v2498_v61  ;;  %v2856_v61 = vld [vmem:[#allocation5 + $0xba0] sm:$0xff]  ;;  %v2857_v12 = vld [vmem:[#allocation5 + $0xba8] sm:$0xff] }
 0x2a5   : > { %v9823_v8 = vpack.c.bf16 %v2857_v12, %v2856_v61  ;;  %v3027_v61 = vld [vmem:[#allocation5 + $0xc88] sm:$0xff]  ;;  %v2871_v12 = vld [vmem:[#allocation5 + $0xc18] sm:$0xff] }
 0x2a6   : > { %9720 = vmatpush3.bf16.msra.mxu0 %v9719_v15  ;;  %v2653_v15 = vld [vmem:[#allocation5 + $0x9b8] sm:$0xff] }
 0x2a7   : > { %9733 = vmatpush1.bf16.msra.mxu1 %v9732_v21  ;;  %9722 = vmatprep.subr.bf16.mxu0 %v9721_v50  ;;  %v2674_v21 = vld [vmem:[#allocation5 + $0xa60] sm:$0xff]  ;;  %v2675_v50 = vld [vmem:[#allocation5 + $0xa68] sm:$0xff]  ;;  %v9774_v46 = vpack.c.bf16 %v2653_v15, %v2652_v37  ;;  %v2858_v37 = vld [vmem:[#allocation5 + $0xbb0] sm:$0xff] }
 0x2a8   : > { %9734 = vmatprep.subr.bf16.mxu1 %v11355_v25  ;;  %v9785_v59 = vpack.c.bf16 %v2675_v50, %v2674_v21  ;;  %v2859_v15 = vld [vmem:[#allocation5 + $0xbb8] sm:$0xff] }
 0x2aa   : > { %9724 = vmatpush3.bf16.msra.mxu0 %v9723_v51  ;;  %v2676_v51 = vld [vmem:[#allocation5 + $0xa70] sm:$0xff] }
 0x2ab   : > { %9736 = vmatpush1.bf16.msra.mxu1 %v9735_v62  ;;  %9753 = vmatprep.subr.bf16.mxu0 %v9752_v41  ;;  %v9776_v62 = vpack.c.bf16 %v2671_v52, %v2670_v2  ;;  %v2677_v41 = vld [vmem:[#allocation5 + $0xa78] sm:$0xff]  ;;  %v9827_v2 = vpack.c.bf16 %v2859_v15, %v2858_v37  ;;  %v2688_v52 = vld [vmem:[#allocation5 + $0xad0] sm:$0xff]  ;;  %v2873_v15 = vld [vmem:[#allocation5 + $0xc28] sm:$0xff] }
 0x2ac   : > { %9737 = vmatprep.subr.bf16.mxu1 %v11355_v25  ;;  %v9788_v27 = vpack.c.bf16 %v2677_v41, %v2676_v51  ;;  %v2861_v51 = vld [vmem:[#allocation5 + $0xbc8] sm:$0xff]  ;;  %v9806_v41 = vpack.c.bf16 %v2689_v23, %v2688_v52  ;;  %v3029_v37 = vld [vmem:[#allocation5 + $0xc98] sm:$0xff]  ;;  %v3030_v23 = vld [vmem:[#allocation5 + $0xca0] sm:$0xff] }
 0x2ad   : > { %2565 = vmatmul.mubr.f32.vlgmr.msra.gmra.mrb[20].mxu0 %v12036_v29  ;;  %v9831_v0 = vpack.c.bf16 %v2861_v51, %v2860_v39  ;;  %v3031_v39 = vld [vmem:[#allocation5 + $0xca8] sm:$0xff]  ;;  %v2875_v51 = vld [vmem:[#allocation5 + $0xc38] sm:$0xff] }
 0x2ae   : > { %9755 = vmatpush3.bf16.msra.mxu0 %v9754_v3  ;;  %2756 = vmatprep.mubr.f32.mxu0 %v12040_v32  ;;  %v2657_v3 = vld [vmem:[#allocation5 + $0x9d8] sm:$0xff] }
 0x2af   : > { %9739 = vmatpush1.bf16.msra.mxu1 %v9738_v42  ;;  %9757 = vmatprep.subr.bf16.mxu0 %v9756_v10  ;;  %v2678_v42 = vld [vmem:[#allocation5 + $0xa80] sm:$0xff]  ;;  %v2679_v10 = vld [vmem:[#allocation5 + $0xa88] sm:$0xff]  ;;  %v9782_v53 = vpack.c.bf16 %v2657_v3, %v2656_v33  ;;  %v2862_v33 = vld [vmem:[#allocation5 + $0xbd0] sm:$0xff] }
 0x2b0   : > { %9740 = vmatprep.subr.bf16.mxu1 %v11355_v25  ;;  %v9791_v4 = vpack.c.bf16 %v2679_v10, %v2678_v42  ;;  %v2863_v3 = vld [vmem:[#allocation5 + $0xbd8] sm:$0xff] }
 0x2b1   : > { %v9835_v6 = vpack.c.bf16 %v2863_v3, %v2862_v33  ;;  %v3033_v33 = vld [vmem:[#allocation5 + $0xcb8] sm:$0xff]  ;;  %v2877_v3 = vld [vmem:[#allocation5 + $0xc48] sm:$0xff] }
 0x2b2   : > { %9759 = vmatpush3.bf16.msra.mxu0 %v9758_v7  ;;  %v2834_v7 = vld [vmem:[#allocation5 + $0xaf0] sm:$0xff] }
 0x2b3   : > { %9742 = vmatpush1.bf16.msra.mxu1 %v9741_v18  ;;  %9761 = vmatprep.subr.bf16.mxu0 %v9760_v9  ;;  %v2835_v18 = vld [vmem:[#allocation5 + $0xaf8] sm:$0xff] }
 0x2b4   : > { %9743 = vmatprep.subr.bf16.mxu1 %v11355_v25  ;;  %v2681_v9 = vld [vmem:[#allocation5 + $0xa98] sm:$0xff]  ;;  %v9813_v19 = vpack.c.bf16 %v2835_v18, %v2834_v7 }
 0x2b5   : > { %v9794_v24 = vpack.c.bf16 %v2681_v9, %v2680_v40  ;;  %v2867_v40 = vld [vmem:[#allocation5 + $0xbf8] sm:$0xff]  ;;  %v2864_v9 = vld [vmem:[#allocation5 + $0xbe0] sm:$0xff] }
 0x2b6   : > { %9763 = vmatpush3.bf16.msra.mxu0 %v9762_v43  ;;  %v2836_v43 = vld [vmem:[#allocation5 + $0xb00] sm:$0xff]  ;;  %v9839_v49 = vpack.c.bf16 %v2865_v13, %v2864_v9  ;;  %v3053_v9 = vld [vmem:[#allocation5 + $0xd58] sm:$0xff] }
 0x2b7   : > { %9745 = vmatpush1.bf16.msra.mxu1 %v9744_v48  ;;  %9765 = vmatprep.subr.bf16.mxu0 %v9764_v54  ;;  %v2837_v48 = vld [vmem:[#allocation5 + $0xb08] sm:$0xff] }
 0x2b8   : > { %9746 = vmatprep.subr.bf16.mxu1 %v11355_v25  ;;  %v2683_v54 = vld [vmem:[#allocation5 + $0xaa8] sm:$0xff]  ;;  %v9817_v57 = vpack.c.bf16 %v2837_v48, %v2836_v43  ;;  %v2868_v48 = vld [vmem:[#allocation5 + $0xc00] sm:$0xff] }
 0x2b9   : > { %v9797_v11 = vpack.c.bf16 %v2683_v54, %v2682_v30  ;;  %v2848_v30 = vld [vmem:[#allocation5 + $0xb60] sm:$0xff]  ;;  %v2849_v43 = vld [vmem:[#allocation5 + $0xb68] sm:$0xff] }
 0x2ba   : > { %9767 = vmatpush3.bf16.msra.mxu0 %v9766_v55  ;;  %v2838_v55 = vld [vmem:[#allocation5 + $0xb10] sm:$0xff] }
 0x2bb   : > { %9748 = vmatpush1.bf16.msra.mxu1 %v9747_v22  ;;  %9769 = vmatprep.subr.bf16.mxu0 %v9768_v36  ;;  %v2839_v22 = vld [vmem:[#allocation5 + $0xb18] sm:$0xff] }
 0x2bc   : > { %9749 = vmatprep.subr.bf16.mxu1 %v11355_v25  ;;  %v2685_v36 = vld [vmem:[#allocation5 + $0xab8] sm:$0xff]  ;;  %v9821_v16 = vpack.c.bf16 %v2839_v22, %v2838_v55  ;;  %v2870_v22 = vld [vmem:[#allocation5 + $0xc10] sm:$0xff] }
 0x2bd   : > { %v9800_v38 = vpack.c.bf16 %v2685_v36, %v2684_v20  ;;  %v9847_v20 = vpack.c.bf16 %v2869_v56, %v2868_v48  ;;  %v3026_v36 = vld [vmem:[#allocation5 + $0xc80] sm:$0xff] }
 0x2be   : > { %9771 = vmatpush3.bf16.msra.mxu0 %v9770_v44  ;;  %v2840_v44 = vld [vmem:[#allocation5 + $0xb20] sm:$0xff] }
 0x2bf   : > { %9751 = vmatpush1.bf16.msra.mxu1 %v9750_v45  ;;  %9773 = vmatprep.subr.bf16.mxu0 %v9772_v63  ;;  %v2841_v45 = vld [vmem:[#allocation5 + $0xb28] sm:$0xff]  ;;  %v3054_v48 = vld [vmem:[#allocation5 + $0xd60] sm:$0xff] }
 0x2c0   : > { %9784 = vmatprep.subr.bf16.mxu1 %v11355_v25  ;;  %v2687_v63 = vld [vmem:[#allocation5 + $0xac8] sm:$0xff]  ;;  %v9825_v21 = vpack.c.bf16 %v2841_v45, %v2840_v44  ;;  %v2872_v45 = vld [vmem:[#allocation5 + $0xc20] sm:$0xff] }
 0x2c1   : > { %v9803_v50 = vpack.c.bf16 %v2687_v63, %v2686_v60  ;;  %v9850_v60 = vpack.c.bf16 %v2871_v12, %v2870_v22  ;;  %v3028_v63 = vld [vmem:[#allocation5 + $0xc90] sm:$0xff]  ;;  %v9853_v52 = vpack.c.bf16 %v2873_v15, %v2872_v45  ;;  %v2883_v22 = vld [vmem:[#allocation5 + $0xc78] sm:$0xff] }
 0x2c2   : > { %2635 = vmatmul.mubr.f32.vlgmr.msra.gmra.mrb[20].mxu1 %v12038_v31  ;;  %9775 = vmatpush3.bf16.msra.mxu0 %v9774_v46  ;;  %v2842_v46 = vld [vmem:[#allocation5 + $0xb30] sm:$0xff] }
 0x2c3   : > { %9786 = vmatpush1.bf16.msra.mxu1 %v9785_v59  ;;  %7791 = vmatprep.mubr.msk.f32.mxu1 %vm1534_vm2, %v12042_v34  ;;  %v2843_v59 = vld [vmem:[#allocation5 + $0xb38] sm:$0xff] }
 0x2c4   : > { %9777 = vmatprep.subr.bf16.mxu0 %v9776_v62  ;;  %9787 = vmatprep.subr.bf16.mxu1 %v11355_v25  ;;  %v9829_v62 = vpack.c.bf16 %v2843_v59, %v2842_v46  ;;  %v2874_v59 = vld [vmem:[#allocation5 + $0xc30] sm:$0xff] }
 0x2c6   : > { %9779 = vmatpush3.bf16.msra.mxu0 %v9778_v58  ;;  %v2844_v58 = vld [vmem:[#allocation5 + $0xb40] sm:$0xff] }
 0x2c7   : > { %9789 = vmatpush1.bf16.msra.mxu1 %v9788_v27  ;;  %9781 = vmatprep.subr.bf16.mxu0 %v9780_v5  ;;  %v2845_v27 = vld [vmem:[#allocation5 + $0xb48] sm:$0xff] }
 0x2c8   : > { %9790 = vmatprep.subr.bf16.mxu1 %v11355_v25  ;;  %v2691_v5 = vld [vmem:[#allocation5 + $0xae8] sm:$0xff]  ;;  %v9833_v42 = vpack.c.bf16 %v2845_v27, %v2844_v58  ;;  %v2876_v27 = vld [vmem:[#allocation5 + $0xc40] sm:$0xff] }
 0x2c9   : > { %v9809_v10 = vpack.c.bf16 %v2691_v5, %v2690_v47  ;;  %v9856_v47 = vpack.c.bf16 %v2875_v51, %v2874_v59  ;;  %v3032_v5 = vld [vmem:[#allocation5 + $0xcb0] sm:$0xff] }
 0x2ca   : > { %9783 = vmatpush3.bf16.msra.mxu0 %v9782_v53  ;;  %v2847_v53 = vld [vmem:[#allocation5 + $0xb58] sm:$0xff] }
 0x2cb   : > { %9792 = vmatpush1.bf16.msra.mxu1 %v9791_v4  ;;  %9812 = vmatprep.subr.bf16.mxu0 %v9811_v14  ;;  %v2866_v14 = vld [vmem:[#allocation5 + $0xbf0] sm:$0xff] }
 0x2cc   : > { %9793 = vmatprep.subr.bf16.mxu1 %v11355_v25 }
 0x2cd   : > { %2757 = vmatmul.mubr.f32.vlgmr.msra.gmra.mrb[22].mxu0 %v12036_v29 }
 0x2ce   : > { %9814 = vmatpush3.bf16.msra.mxu0 %v9813_v19  ;;  %2948 = vmatprep.mubr.f32.mxu0 %v12040_v32 }
 0x2cf   : > { %9795 = vmatpush1.bf16.msra.mxu1 %v9794_v24  ;;  %9816 = vmatprep.subr.bf16.mxu0 %v9815_v26  ;;  %v9837_v24 = vpack.c.bf16 %v2847_v53, %v2846_v28  ;;  %v9844_v26 = vpack.c.bf16 %v2867_v40, %v2866_v14  ;;  %v9859_v28 = vpack.c.bf16 %v2877_v3, %v2876_v27  ;;  %v3034_v14 = vld [vmem:[#allocation5 + $0xcc0] sm:$0xff]  ;;  %v3035_v40 = vld [vmem:[#allocation5 + $0xcc8] sm:$0xff]  ;;  %v3238_v27 = vld [vmem:[#allocation5 + $0xeb0] sm:$0xff] }
 0x2d0   : > { %9796 = vmatprep.subr.bf16.mxu1 %v11355_v25  ;;  %v9888_v13 = vpack.c.bf16 %v3035_v40, %v3034_v14  ;;  %v3241_v14 = vld [vmem:[#allocation5 + $0xec8] sm:$0xff] }
 0x2d2   : > { %9818 = vmatpush3.bf16.msra.mxu0 %v9817_v57  ;;  %v3042_v57 = vld [vmem:[#allocation5 + $0xd00] sm:$0xff] }
 0x2d3   : > { %9798 = vmatpush1.bf16.msra.mxu1 %v9797_v11  ;;  %9820 = vmatprep.subr.bf16.mxu0 %v9819_v35  ;;  %v3043_v11 = vld [vmem:[#allocation5 + $0xd08] sm:$0xff]  ;;  %v9841_v35 = vpack.c.bf16 %v2849_v43, %v2848_v30  ;;  %v3037_v30 = vld [vmem:[#allocation5 + $0xcd8] sm:$0xff] }
 0x2d4   : > { %9799 = vmatprep.subr.bf16.mxu1 %v11355_v25  ;;  %v9870_v55 = vpack.c.bf16 %v3043_v11, %v3042_v57  ;;  %v2881_v43 = vld [vmem:[#allocation5 + $0xc68] sm:$0xff]  ;;  %v2882_v11 = vld [vmem:[#allocation5 + $0xc70] sm:$0xff] }
 0x2d6   : > { %9822 = vmatpush3.bf16.msra.mxu0 %v9821_v16  ;;  %v3044_v16 = vld [vmem:[#allocation5 + $0xd10] sm:$0xff] }
 0x2d7   : > { %9801 = vmatpush1.bf16.msra.mxu1 %v9800_v38  ;;  %9824 = vmatprep.subr.bf16.mxu0 %v9823_v8  ;;  %v3045_v38 = vld [vmem:[#allocation5 + $0xd18] sm:$0xff]  ;;  %v9872_v8 = vpack.c.bf16 %v3027_v61, %v3026_v36  ;;  %v3056_v36 = vld [vmem:[#allocation5 + $0xd70] sm:$0xff] }
 0x2d8   : > { %9802 = vmatprep.subr.bf16.mxu1 %v11355_v25  ;;  %v9874_v44 = vpack.c.bf16 %v3045_v38, %v3044_v16  ;;  %v3057_v61 = vld [vmem:[#allocation5 + $0xd78] sm:$0xff]  ;;  %v3234_v16 = vld [vmem:[#allocation5 + $0xe90] sm:$0xff] }
 0x2d9   : > { %v3235_v38 = vld [vmem:[#allocation5 + $0xe98] sm:$0xff]  ;;  %v9898_v45 = vpack.c.bf16 %v3057_v61, %v3056_v36  ;;  %v3067_v36 = vld [vmem:[#allocation5 + $0xdc8] sm:$0xff] }
 0x2da   : > { %9826 = vmatpush3.bf16.msra.mxu0 %v9825_v21  ;;  %v3046_v21 = vld [vmem:[#allocation5 + $0xd20] sm:$0xff]  ;;  %v9929_v15 = vpack.c.bf16 %v3235_v38, %v3234_v16  ;;  %v3229_v16 = vld [vmem:[#allocation5 + $0xe68] sm:$0xff]  ;;  %v3246_v38 = vld [vmem:[#allocation5 + $0xef0] sm:$0xff] }
 0x2db   : > { %9804 = vmatpush1.bf16.msra.mxu1 %v9803_v50  ;;  %9828 = vmatprep.subr.bf16.mxu0 %v9827_v2  ;;  %v3047_v50 = vld [vmem:[#allocation5 + $0xd28] sm:$0xff]  ;;  %v9876_v2 = vpack.c.bf16 %v3029_v37, %v3028_v63  ;;  %v3040_v63 = vld [vmem:[#allocation5 + $0xcf0] sm:$0xff]  ;;  %v3041_v37 = vld [vmem:[#allocation5 + $0xcf8] sm:$0xff] }
 0x2dc   : > { %9805 = vmatprep.subr.bf16.mxu1 %v11355_v25  ;;  %v9878_v46 = vpack.c.bf16 %v3047_v50, %v3046_v21  ;;  %v3218_v21 = vld [vmem:[#allocation5 + $0xe10] sm:$0xff]  ;;  %v3219_v50 = vld [vmem:[#allocation5 + $0xe18] sm:$0xff] }
 0x2dd   : > { %v9931_v51 = vpack.c.bf16 %v3219_v50, %v3218_v21  ;;  %v3231_v21 = vld [vmem:[#allocation5 + $0xe78] sm:$0xff]  ;;  %v3248_v50 = vld [vmem:[#allocation5 + $0xf00] sm:$0xff] }
 0x2de   : > { %9830 = vmatpush3.bf16.msra.mxu0 %v9829_v62  ;;  %v3048_v62 = vld [vmem:[#allocation5 + $0xd30] sm:$0xff] }
 0x2df   : > { %9807 = vmatpush1.bf16.msra.mxu1 %v9806_v41  ;;  %9832 = vmatprep.subr.bf16.mxu0 %v9831_v0  ;;  %v3049_v41 = vld [vmem:[#allocation5 + $0xd38] sm:$0xff]  ;;  %v9880_v0 = vpack.c.bf16 %v3031_v39, %v3030_v23  ;;  %v9900_v39 = vpack.c.bf16 %v3041_v37, %v3040_v63 }
 0x2e0   : > { %v7869_v4 = vpop.f32.mrb[10].mxu0  ;;  %9808 = vmatprep.subr.bf16.mxu1 %v11355_v25  ;;  %v9882_v58 = vpack.c.bf16 %v3049_v41, %v3048_v62  ;;  %v3058_v62 = vld [vmem:[#allocation5 + $0xd80] sm:$0xff]  ;;  %v3059_v41 = vld [vmem:[#allocation5 + $0xd88] sm:$0xff]  ;;  %v3069_v63 = vld [vmem:[#allocation5 + $0xdd8] sm:$0xff] }
 0x2e1   : > { %v1674_v7 = vpop.f32.mrb[10].mxu1  ;;  %v7870_v18 = vpop.f32.mrb[11].mxu0 }
 0x2e2   : > { %v7871_v17 = vadd.f32 %v7870_v18, %v7869_v4  ;;  %v1676_v19 = vpop.f32.mrb[11].mxu1  ;;  %9834 = vmatpush3.bf16.msra.mxu0 %v9833_v42  ;;  %v3050_v42 = vld [vmem:[#allocation5 + $0xd40] sm:$0xff]  ;;  %v2878_v4 = vld [vmem:[#allocation5 + $0xc50] sm:$0xff] }
 0x2e3   : > { %9810 = vmatpush1.bf16.msra.mxu1 %v9809_v10  ;;  %9836 = vmatprep.subr.bf16.mxu0 %v9835_v6  ;;  %v3051_v10 = vld [vmem:[#allocation5 + $0xd48] sm:$0xff]  ;;  %v9884_v6 = vpack.c.bf16 %v3033_v33, %v3032_v5  ;;  %v3052_v18 = vld [vmem:[#allocation5 + $0xd50] sm:$0xff]  ;;  %v3239_v5 = vld [vmem:[#allocation5 + $0xeb8] sm:$0xff]  ;;  %v9903_v33 = vpack.c.bf16 %v3059_v41, %v3058_v62 }
 0x2e4   : > { %v1675_v54 = vadd.f32 %v7871_v17, %v1674_v7  ;;  %9843 = vmatprep.subr.bf16.mxu1 %v11355_v25  ;;  %v9886_v53 = vpack.c.bf16 %v3051_v10, %v3050_v42  ;;  %v2879_v7 = vld [vmem:[#allocation5 + $0xc58] sm:$0xff]  ;;  %v9890_v19 = vpack.c.bf16 %v3053_v9, %v3052_v18  ;;  %v3060_v42 = vld [vmem:[#allocation5 + $0xd90] sm:$0xff]  ;;  %v3062_v18 = vld [vmem:[#allocation5 + $0xda0] sm:$0xff] }
 0x2e5   : > { %v9862_v17 = vpack.c.bf16 %v2879_v7, %v2878_v4  ;;  %v3061_v10 = vld [vmem:[#allocation5 + $0xd98] sm:$0xff]  ;;  %v3240_v4 = vld [vmem:[#allocation5 + $0xec0] sm:$0xff]  ;;  %v3063_v9 = vld [vmem:[#allocation5 + $0xda8] sm:$0xff] }
 0x2e6   : > { %1679 = vst.msk [vmem:[#allocation2] sm:$0xf] %vm1678_vm3, %v1675_v54  ;;  %2827 = vmatmul.mubr.f32.vlgmr.msra.gmra.mrb[22].mxu1 %v12038_v31  ;;  %9838 = vmatpush3.bf16.msra.mxu0 %v9837_v24  ;;  %v2880_v24 = vld [vmem:[#allocation5 + $0xc60] sm:$0xff]  ;;  %v3055_v54 = vld [vmem:[#allocation5 + $0xd68] sm:$0xff]  ;;  %v9906_v40 = vpack.c.bf16 %v3061_v10, %v3060_v42  ;;  %v3251_v42 = vld [vmem:[#allocation5 + $0xf18] sm:$0xff] }
 0x2e7   : > { %9845 = vmatpush1.bf16.msra.mxu1 %v9844_v26  ;;  %7792 = vmatprep.mubr.msk.f32.mxu1 %vm1534_vm2, %v12042_v34  ;;  %v3036_v26 = vld [vmem:[#allocation5 + $0xcd0] sm:$0xff]  ;;  %v9865_v56 = vpack.c.bf16 %v2881_v43, %v2880_v24  ;;  %v9894_v57 = vpack.c.bf16 %v3055_v54, %v3054_v48  ;;  %v3065_v54 = vld [vmem:[#allocation5 + $0xdb8] sm:$0xff]  ;;  %v3232_v62 = vld [vmem:[#allocation5 + $0xe80] sm:$0xff] }
 0x2e8   : > { %9840 = vmatprep.subr.bf16.mxu0 %v9839_v49  ;;  %9846 = vmatprep.subr.bf16.mxu1 %v11355_v25  ;;  %v9892_v49 = vpack.c.bf16 %v3037_v30, %v3036_v26  ;;  %v3242_v24 = vld [vmem:[#allocation5 + $0xed0] sm:$0xff]  ;;  %v3243_v26 = vld [vmem:[#allocation5 + $0xed8] sm:$0xff]  ;;  %v9909_v30 = vpack.c.bf16 %v3063_v9, %v3062_v18  ;;  %v3233_v41 = vld [vmem:[#allocation5 + $0xe88] sm:$0xff] }
 0x2e9   : > { %v3064_v48 = vld [vmem:[#allocation5 + $0xdb0] sm:$0xff] }
 0x2ea   : > { %9842 = vmatpush3.bf16.msra.mxu0 %v9841_v35  ;;  %v3038_v35 = vld [vmem:[#allocation5 + $0xce0] sm:$0xff] }
 0x2eb   : > { %9848 = vmatpush1.bf16.msra.mxu1 %v9847_v20  ;;  %9871 = vmatprep.subr.bf16.mxu0 %v9870_v55  ;;  %v3039_v20 = vld [vmem:[#allocation5 + $0xce8] sm:$0xff] }
 0x2ec   : > { %9849 = vmatprep.subr.bf16.mxu1 %v11355_v25 }
 0x2ed   : > { %2949 = vmatmul.mubr.f32.vlgmr.msra.gmra.mrb[24].mxu0 %v12036_v29 }
 0x2ee   : > { %9873 = vmatpush3.bf16.msra.mxu0 %v9872_v8  ;;  %3140 = vmatprep.mubr.f32.mxu0 %v12040_v32 }
 0x2ef   : > { %9851 = vmatpush1.bf16.msra.mxu1 %v9850_v60  ;;  %9875 = vmatprep.subr.bf16.mxu0 %v9874_v44  ;;  %v9896_v60 = vpack.c.bf16 %v3039_v20, %v3038_v35  ;;  %v9868_v44 = vpack.c.bf16 %v2883_v22, %v2882_v11  ;;  %v3244_v11 = vld [vmem:[#allocation5 + $0xee0] sm:$0xff]  ;;  %v3245_v35 = vld [vmem:[#allocation5 + $0xee8] sm:$0xff]  ;;  %v9912_v20 = vpack.c.bf16 %v3065_v54, %v3064_v48  ;;  %v3255_v48 = vld [vmem:[#allocation5 + $0xf38] sm:$0xff] }
 0x2f0   : > { %9852 = vmatprep.subr.bf16.mxu1 %v11355_v25  ;;  %v3066_v22 = vld [vmem:[#allocation5 + $0xdc0] sm:$0xff]  ;;  %v9949_v61 = vpack.c.bf16 %v3245_v35, %v3244_v11  ;;  %v3428_v54 = vld [vmem:[#allocation5 + $0x1030] sm:$0xff] }
 0x2f1   : > { %v3256_v35 = vld [vmem:[#allocation5 + $0xf40] sm:$0xff] }
 0x2f2   : > { %9877 = vmatpush3.bf16.msra.mxu0 %v9876_v2 }
 0x2f3   : > { %9854 = vmatpush1.bf16.msra.mxu1 %v9853_v52  ;;  %9879 = vmatprep.subr.bf16.mxu0 %v9878_v46  ;;  %v3236_v52 = vld [vmem:[#allocation5 + $0xea0] sm:$0xff]  ;;  %v3237_v46 = vld [vmem:[#allocation5 + $0xea8] sm:$0xff] }
 0x2f4   : > { %9855 = vmatprep.subr.bf16.mxu1 %v11355_v25 }
 0x2f6   : > { %9881 = vmatpush3.bf16.msra.mxu0 %v9880_v0  ;;  %v9933_v0 = vpack.c.bf16 %v3237_v46, %v3236_v52 }
 0x2f7   : > { %9857 = vmatpush1.bf16.msra.mxu1 %v9856_v47  ;;  %9883 = vmatprep.subr.bf16.mxu0 %v9882_v58  ;;  %v3220_v47 = vld [vmem:[#allocation5 + $0xe20] sm:$0xff]  ;;  %v3221_v58 = vld [vmem:[#allocation5 + $0xe28] sm:$0xff] }
 0x2f8   : > { %9858 = vmatprep.subr.bf16.mxu1 %v11355_v25  ;;  %v9935_v3 = vpack.c.bf16 %v3221_v58, %v3220_v47 }
 0x2fa   : > { %9885 = vmatpush3.bf16.msra.mxu0 %v9884_v6  ;;  %v9937_v6 = vpack.c.bf16 %v3239_v5, %v3238_v27  ;;  %v9959_v27 = vpack.c.bf16 %v3233_v41, %v3232_v62  ;;  %v3072_v5 = vld [vmem:[#allocation5 + $0xdf0] sm:$0xff] }
 0x2fb   : > { %9860 = vmatpush1.bf16.msra.mxu1 %v9859_v28  ;;  %9887 = vmatprep.subr.bf16.mxu0 %v9886_v53  ;;  %v3222_v28 = vld [vmem:[#allocation5 + $0xe30] sm:$0xff]  ;;  %v3223_v53 = vld [vmem:[#allocation5 + $0xe38] sm:$0xff] }
 0x2fc   : > { %9861 = vmatprep.subr.bf16.mxu1 %v11355_v25  ;;  %v9939_v7 = vpack.c.bf16 %v3223_v53, %v3222_v28  ;;  %v3074_v28 = vld [vmem:[#allocation5 + $0xe00] sm:$0xff]  ;;  %v3075_v53 = vld [vmem:[#allocation5 + $0xe08] sm:$0xff] }
 0x2fe   : > { %9889 = vmatpush3.bf16.msra.mxu0 %v9888_v13  ;;  %v9941_v13 = vpack.c.bf16 %v3241_v14, %v3240_v4  ;;  %v3252_v4 = vld [vmem:[#allocation5 + $0xf20] sm:$0xff]  ;;  %v3253_v14 = vld [vmem:[#allocation5 + $0xf28] sm:$0xff] }
 0x2ff   : > { %9863 = vmatpush1.bf16.msra.mxu1 %v9862_v17  ;;  %9891 = vmatprep.subr.bf16.mxu0 %v9890_v19  ;;  %v3224_v17 = vld [vmem:[#allocation5 + $0xe40] sm:$0xff]  ;;  %v3225_v19 = vld [vmem:[#allocation5 + $0xe48] sm:$0xff] }
 0x300   : > { %v7904_v55 = vpop.f32.mrb[12].mxu0  ;;  %9864 = vmatprep.subr.bf16.mxu1 %v11355_v25  ;;  %v9943_v43 = vpack.c.bf16 %v3225_v19, %v3224_v17  ;;  %v9927_v17 = vpack.c.bf16 %v3075_v53, %v3074_v28  ;;  %v9965_v19 = vpack.c.bf16 %v3253_v14, %v3252_v4  ;;  %v3420_v28 = vld [vmem:[#allocation5 + $0xff0] sm:$0xff]  ;;  %v3421_v53 = vld [vmem:[#allocation5 + $0xff8] sm:$0xff]  ;;  %v3265_v14 = vld [vmem:[#allocation5 + $0xf88] sm:$0xff] }
 0x301   : > { %v7905_v12 = vpop.f32.mrb[13].mxu0 }
 0x302   : > { %v7906_v8 = vadd.f32 %v7905_v12, %v7904_v55  ;;  %9893 = vmatpush3.bf16.msra.mxu0 %v9892_v49  ;;  %v9945_v49 = vpack.c.bf16 %v3243_v26, %v3242_v24  ;;  %v3228_v12 = vld [vmem:[#allocation5 + $0xe60] sm:$0xff]  ;;  %v3254_v26 = vld [vmem:[#allocation5 + $0xf30] sm:$0xff] }
 0x303   : > { %9866 = vmatpush1.bf16.msra.mxu1 %v9865_v56  ;;  %9895 = vmatprep.subr.bf16.mxu0 %v9894_v57  ;;  %v3226_v56 = vld [vmem:[#allocation5 + $0xe50] sm:$0xff]  ;;  %v3227_v57 = vld [vmem:[#allocation5 + $0xe58] sm:$0xff] }
 0x304   : > { %9867 = vmatprep.subr.bf16.mxu1 %v11355_v25  ;;  %v9947_v55 = vpack.c.bf16 %v3227_v57, %v3226_v56  ;;  %v9968_v57 = vpack.c.bf16 %v3255_v48, %v3254_v26  ;;  %v3422_v26 = vld [vmem:[#allocation5 + $0x1000] sm:$0xff]  ;;  %v3440_v48 = vld [vmem:[#allocation5 + $0x1090] sm:$0xff] }
 0x305   : > { %v1867_v2 = vpop.f32.mrb[12].mxu1 }
 0x306   : > { %v1868_v59 = vadd.f32 %v7906_v8, %v1867_v2  ;;  %v1869_v23 = vpop.f32.mrb[13].mxu1  ;;  %9897 = vmatpush3.bf16.msra.mxu0 %v9896_v60  ;;  %v3247_v8 = vld [vmem:[#allocation5 + $0xef8] sm:$0xff]  ;;  %v9915_v60 = vpack.c.bf16 %v3067_v36, %v3066_v22  ;;  %v3249_v2 = vld [vmem:[#allocation5 + $0xf08] sm:$0xff]  ;;  %v3430_v36 = vld [vmem:[#allocation5 + $0x1040] sm:$0xff] }
 0x307   : > { %9869 = vmatpush1.bf16.msra.mxu1 %v9868_v44  ;;  %9899 = vmatprep.subr.bf16.mxu0 %v9898_v45  ;;  %v9951_v44 = vpack.c.bf16 %v3229_v16, %v3228_v12  ;;  %v3068_v45 = vld [vmem:[#allocation5 + $0xdd0] sm:$0xff]  ;;  %v9953_v37 = vpack.c.bf16 %v3247_v8, %v3246_v38  ;;  %v3071_v23 = vld [vmem:[#allocation5 + $0xde8] sm:$0xff] }
 0x308   : > { %1872 = vst.msk [vmem:[#allocation2 + $0x28] sm:$0xf] %vm1678_vm3, %v1868_v59  ;;  %9930 = vmatprep.subr.bf16.mxu1 %v9929_v15  ;;  %v3230_v15 = vld [vmem:[#allocation5 + $0xe70] sm:$0xff]  ;;  %v9918_v52 = vpack.c.bf16 %v3069_v63, %v3068_v45  ;;  %v3070_v59 = vld [vmem:[#allocation5 + $0xde0] sm:$0xff]  ;;  %v3257_v22 = vld [vmem:[#allocation5 + $0xf48] sm:$0xff] }
 0x309   : > { %v9955_v46 = vpack.c.bf16 %v3231_v21, %v3230_v15  ;;  %v9921_v58 = vpack.c.bf16 %v3071_v23, %v3070_v59  ;;  %v9971_v16 = vpack.c.bf16 %v3257_v22, %v3256_v35  ;;  %v3258_v8 = vld [vmem:[#allocation5 + $0xf50] sm:$0xff]  ;;  %v3259_v45 = vld [vmem:[#allocation5 + $0xf58] sm:$0xff]  ;;  %v3261_v59 = vld [vmem:[#allocation5 + $0xf68] sm:$0xff] }
 0x30a   : > { %3019 = vmatmul.mubr.f32.vlgmr.msra.gmra.mrb[24].mxu1 %v12038_v31  ;;  %9901 = vmatpush3.bf16.msra.mxu0 %v9900_v39  ;;  %v3432_v63 = vld [vmem:[#allocation5 + $0x1050] sm:$0xff]  ;;  %v9974_v21 = vpack.c.bf16 %v3259_v45, %v3258_v8  ;;  %v3434_v23 = vld [vmem:[#allocation5 + $0x1060] sm:$0xff] }
 0x30b   : > { %9932 = vmatpush3.bf16.msra.mxu1 %v9931_v51  ;;  %3332 = vmatprep.mubr.f32.mxu1 %v12040_v32  ;;  %v9957_v51 = vpack.c.bf16 %v3249_v2, %v3248_v50  ;;  %v3260_v2 = vld [vmem:[#allocation5 + $0xf60] sm:$0xff] }
 0x30c   : > { %9902 = vmatprep.subr.bf16.mxu0 %v11355_v25  ;;  %9934 = vmatprep.subr.bf16.mxu1 %v9933_v0  ;;  %v9977_v62 = vpack.c.bf16 %v3261_v59, %v3260_v2 }
 0x30d   : > { %3141 = vmatmul.mubr.f32.vlgmr.msra.gmra.mrb[26].mxu0 %v12036_v29 }
 0x30e   : > { %9904 = vmatpush1.bf16.msra.mxu0 %v9903_v33  ;;  %7793 = vmatprep.mubr.msk.f32.mxu0 %vm1534_vm2, %v12042_v34  ;;  %v3073_v33 = vld [vmem:[#allocation5 + $0xdf8] sm:$0xff] }
 0x30f   : > { %9936 = vmatpush3.bf16.msra.mxu1 %v9935_v3  ;;  %9905 = vmatprep.subr.bf16.mxu0 %v11355_v25  ;;  %v3250_v3 = vld [vmem:[#allocation5 + $0xf10] sm:$0xff]  ;;  %v9924_v10 = vpack.c.bf16 %v3073_v33, %v3072_v5  ;;  %v3437_v33 = vld [vmem:[#allocation5 + $0x1078] sm:$0xff] }
 0x310   : > { %9938 = vmatprep.subr.bf16.mxu1 %v9937_v6  ;;  %v9962_v6 = vpack.c.bf16 %v3251_v42, %v3250_v3  ;;  %v3436_v5 = vld [vmem:[#allocation5 + $0x1070] sm:$0xff] }
 0x312   : > { %9907 = vmatpush1.bf16.msra.mxu0 %v9906_v40  ;;  %v3426_v40 = vld [vmem:[#allocation5 + $0x1020] sm:$0xff] }
 0x313   : > { %9940 = vmatpush3.bf16.msra.mxu1 %v9939_v7  ;;  %9908 = vmatprep.subr.bf16.mxu0 %v11355_v25  ;;  %v3427_v7 = vld [vmem:[#allocation5 + $0x1028] sm:$0xff] }
 0x314   : > { %9942 = vmatprep.subr.bf16.mxu1 %v9941_v13  ;;  %v9988_v24 = vpack.c.bf16 %v3427_v7, %v3426_v40  ;;  %v3438_v40 = vld [vmem:[#allocation5 + $0x1080] sm:$0xff]  ;;  %v3439_v7 = vld [vmem:[#allocation5 + $0x1088] sm:$0xff] }
 0x316   : > { %9910 = vmatpush1.bf16.msra.mxu0 %v9909_v30  ;;  %v3410_v30 = vld [vmem:[#allocation5 + $0xfa0] sm:$0xff] }
 0x317   : > { %9944 = vmatpush3.bf16.msra.mxu1 %v9943_v43  ;;  %9911 = vmatprep.subr.bf16.mxu0 %v11355_v25  ;;  %v3411_v43 = vld [vmem:[#allocation5 + $0xfa8] sm:$0xff] }
 0x318   : > { %9946 = vmatprep.subr.bf16.mxu1 %v9945_v49  ;;  %v3429_v49 = vld [vmem:[#allocation5 + $0x1038] sm:$0xff]  ;;  %v9990_v56 = vpack.c.bf16 %v3411_v43, %v3410_v30  ;;  %v3423_v30 = vld [vmem:[#allocation5 + $0x1008] sm:$0xff] }
 0x319   : > { %v9992_v11 = vpack.c.bf16 %v3429_v49, %v3428_v54  ;;  %v3267_v43 = vld [vmem:[#allocation5 + $0xf98] sm:$0xff]  ;;  %v3618_v49 = vld [vmem:[#allocation5 + $0x11b0] sm:$0xff] }
 0x31a   : > { %9913 = vmatpush1.bf16.msra.mxu0 %v9912_v20  ;;  %v3412_v20 = vld [vmem:[#allocation5 + $0xfb0] sm:$0xff]  ;;  %v3441_v54 = vld [vmem:[#allocation5 + $0x1098] sm:$0xff] }
 0x31b   : > { %9948 = vmatpush3.bf16.msra.mxu1 %v9947_v55  ;;  %9914 = vmatprep.subr.bf16.mxu0 %v11355_v25  ;;  %v3413_v55 = vld [vmem:[#allocation5 + $0xfb8] sm:$0xff]  ;;  %v10016_v35 = vpack.c.bf16 %v3441_v54, %v3440_v48  ;;  %v3612_v48 = vld [vmem:[#allocation5 + $0x1180] sm:$0xff]  ;;  %v3613_v54 = vld [vmem:[#allocation5 + $0x1188] sm:$0xff] }
 0x31c   : > { %9950 = vmatprep.subr.bf16.mxu1 %v9949_v61  ;;  %v3431_v61 = vld [vmem:[#allocation5 + $0x1048] sm:$0xff]  ;;  %v9994_v12 = vpack.c.bf16 %v3413_v55, %v3412_v20  ;;  %v3424_v20 = vld [vmem:[#allocation5 + $0x1010] sm:$0xff]  ;;  %v3425_v55 = vld [vmem:[#allocation5 + $0x1018] sm:$0xff] }
 0x31d   : > { %v9996_v38 = vpack.c.bf16 %v3431_v61, %v3430_v36  ;;  %v3602_v36 = vld [vmem:[#allocation5 + $0x1130] sm:$0xff]  ;;  %v3603_v61 = vld [vmem:[#allocation5 + $0x1138] sm:$0xff] }
 0x31e   : > { %9916 = vmatpush1.bf16.msra.mxu0 %v9915_v60  ;;  %v3414_v60 = vld [vmem:[#allocation5 + $0xfc0] sm:$0xff]  ;;  %v10049_v8 = vpack.c.bf16 %v3603_v61, %v3602_v36  ;;  %v3614_v36 = vld [vmem:[#allocation5 + $0x1190] sm:$0xff]  ;;  %v3615_v61 = vld [vmem:[#allocation5 + $0x1198] sm:$0xff] }
 0x31f   : > { %9952 = vmatpush3.bf16.msra.mxu1 %v9951_v44  ;;  %9917 = vmatprep.subr.bf16.mxu0 %v11355_v25  ;;  %v3415_v44 = vld [vmem:[#allocation5 + $0xfc8] sm:$0xff] }
 0x320   : > { %v7939_v39 = vpop.f32.mrb[14].mxu0  ;;  %9954 = vmatprep.subr.bf16.mxu1 %v9953_v37  ;;  %v3433_v37 = vld [vmem:[#allocation5 + $0x1058] sm:$0xff]  ;;  %v9998_v15 = vpack.c.bf16 %v3415_v44, %v3414_v60  ;;  %v3442_v60 = vld [vmem:[#allocation5 + $0x10a0] sm:$0xff]  ;;  %v3443_v44 = vld [vmem:[#allocation5 + $0x10a8] sm:$0xff] }
 0x321   : > { %v7940_v0 = vpop.f32.mrb[15].mxu0  ;;  %v10000_v50 = vpack.c.bf16 %v3433_v37, %v3432_v63  ;;  %v3604_v63 = vld [vmem:[#allocation5 + $0x1140] sm:$0xff]  ;;  %v3605_v37 = vld [vmem:[#allocation5 + $0x1148] sm:$0xff] }
 0x322   : > { %v7941_v47 = vadd.f32 %v7940_v0, %v7939_v39  ;;  %9919 = vmatpush1.bf16.msra.mxu0 %v9918_v52  ;;  %v3416_v52 = vld [vmem:[#allocation5 + $0xfd0] sm:$0xff]  ;;  %v3435_v39 = vld [vmem:[#allocation5 + $0x1068] sm:$0xff]  ;;  %v10053_v59 = vpack.c.bf16 %v3605_v37, %v3604_v63 }
 0x323   : > { %9956 = vmatpush3.bf16.msra.mxu1 %v9955_v46  ;;  %9920 = vmatprep.subr.bf16.mxu0 %v11355_v25  ;;  %v3417_v46 = vld [vmem:[#allocation5 + $0xfd8] sm:$0xff]  ;;  %v10004_v41 = vpack.c.bf16 %v3435_v39, %v3434_v23  ;;  %v3262_v0 = vld [vmem:[#allocation5 + $0xf70] sm:$0xff]  ;;  %v3455_v63 = vld [vmem:[#allocation5 + $0x1108] sm:$0xff] }
 0x324   : > { %9958 = vmatprep.subr.bf16.mxu1 %v9957_v51  ;;  %v10002_v51 = vpack.c.bf16 %v3417_v46, %v3416_v52  ;;  %v10021_v46 = vpack.c.bf16 %v3443_v44, %v3442_v60  ;;  %v3444_v23 = vld [vmem:[#allocation5 + $0x10b0] sm:$0xff]  ;;  %v3445_v39 = vld [vmem:[#allocation5 + $0x10b8] sm:$0xff]  ;;  %v10073_v44 = vpack.c.bf16 %v3615_v61, %v3614_v36 }
 0x326   : > { %9922 = vmatpush1.bf16.msra.mxu0 %v9921_v58  ;;  %v3419_v58 = vld [vmem:[#allocation5 + $0xfe8] sm:$0xff] }
 0x327   : > { %9960 = vmatpush3.bf16.msra.mxu1 %v9959_v27  ;;  %9923 = vmatprep.subr.bf16.mxu0 %v11355_v25  ;;  %v3263_v27 = vld [vmem:[#allocation5 + $0xf78] sm:$0xff] }
 0x328   : > { %9961 = vmatprep.subr.bf16.mxu1 %v11355_v25  ;;  %v9980_v42 = vpack.c.bf16 %v3263_v27, %v3262_v0  ;;  %v3624_v0 = vld [vmem:[#allocation5 + $0x11e0] sm:$0xff] }
 0x329   : > { %v2060_v18 = vpop.f32.mrb[14].mxu1 }
 0x32a   : > { %v2061_v9 = vadd.f32 %v7941_v47, %v2060_v18  ;;  %v2062_v13 = vpop.f32.mrb[15].mxu1  ;;  %3333 = vmatmul.mubr.f32.vlgmr.msra.gmra.mrb[26].mxu1 %v12036_v29  ;;  %9925 = vmatpush1.bf16.msra.mxu0 %v9924_v10  ;;  %v3418_v47 = vld [vmem:[#allocation5 + $0xfe0] sm:$0xff]  ;;  %v10008_v10 = vpack.c.bf16 %v3437_v33, %v3436_v5  ;;  %v3447_v33 = vld [vmem:[#allocation5 + $0x10c8] sm:$0xff] }
 0x32b   : > { %9963 = vmatpush1.bf16.msra.mxu1 %v9962_v6  ;;  %7794 = vmatprep.mubr.msk.f32.mxu1 %vm1534_vm2, %v12042_v34  ;;  %v10006_v3 = vpack.c.bf16 %v3419_v58, %v3418_v47  ;;  %v3264_v6 = vld [vmem:[#allocation5 + $0xf80] sm:$0xff]  ;;  %v10010_v13 = vpack.c.bf16 %v3421_v53, %v3420_v28  ;;  %v3625_v47 = vld [vmem:[#allocation5 + $0x11e8] sm:$0xff]  ;;  %v10024_v58 = vpack.c.bf16 %v3445_v39, %v3444_v23  ;;  %v3627_v28 = vld [vmem:[#allocation5 + $0x11f8] sm:$0xff] }
 0x32c   : > { %2064 = vst.msk [vmem:[#allocation2 + $0x4] sm:$0xf] %vm1678_vm3, %v2061_v9  ;;  %9926 = vmatprep.subr.bf16.mxu0 %v11355_v25  ;;  %9964 = vmatprep.subr.bf16.mxu1 %v11355_v25  ;;  %v3446_v5 = vld [vmem:[#allocation5 + $0x10c0] sm:$0xff]  ;;  %v3635_v23 = vld [vmem:[#allocation5 + $0x1238] sm:$0xff] }
 0x32d   : > { %v10027_v53 = vpack.c.bf16 %v3447_v33, %v3446_v5 }
 0x32e   : > { %9928 = vmatpush1.bf16.msra.mxu0 %v9927_v17  ;;  %v9983_v17 = vpack.c.bf16 %v3265_v14, %v3264_v6  ;;  %v3626_v6 = vld [vmem:[#allocation5 + $0x11f0] sm:$0xff] }
 0x32f   : > { %9966 = vmatpush1.bf16.msra.mxu1 %v9965_v19  ;;  %9989 = vmatprep.subr.bf16.mxu0 %v9988_v24  ;;  %v10012_v19 = vpack.c.bf16 %v3439_v7, %v3438_v40  ;;  %v3266_v24 = vld [vmem:[#allocation5 + $0xf90] sm:$0xff]  ;;  %v3449_v40 = vld [vmem:[#allocation5 + $0x10d8] sm:$0xff]  ;;  %v10063_v7 = vpack.c.bf16 %v3627_v28, %v3626_v6  ;;  %v3795_v6 = vld [vmem:[#allocation5 + $0x12c8] sm:$0xff] }
 0x330   : > { %9967 = vmatprep.subr.bf16.mxu1 %v11355_v25  ;;  %v3448_v14 = vld [vmem:[#allocation5 + $0x10d0] sm:$0xff]  ;;  %v3639_v28 = vld [vmem:[#allocation5 + $0x1258] sm:$0xff] }
 0x331   : > { %3211 = vmatmul.mubr.f32.vlgmr.msra.gmra.mrb[28].mxu0 %v12038_v31 }
 0x332   : > { %9991 = vmatpush3.bf16.msra.mxu0 %v9990_v56  ;;  %3524 = vmatprep.mubr.f32.mxu0 %v12040_v32  ;;  %v3619_v56 = vld [vmem:[#allocation5 + $0x11b8] sm:$0xff] }
 0x333   : > { %9969 = vmatpush1.bf16.msra.mxu1 %v9968_v57  ;;  %9993 = vmatprep.subr.bf16.mxu0 %v9992_v11  ;;  %v10014_v57 = vpack.c.bf16 %v3423_v30, %v3422_v26  ;;  %v9986_v11 = vpack.c.bf16 %v3267_v43, %v3266_v24  ;;  %v10047_v22 = vpack.c.bf16 %v3619_v56, %v3618_v49  ;;  %v3450_v26 = vld [vmem:[#allocation5 + $0x10e0] sm:$0xff]  ;;  %v3451_v30 = vld [vmem:[#allocation5 + $0x10e8] sm:$0xff]  ;;  %v3630_v49 = vld [vmem:[#allocation5 + $0x1210] sm:$0xff] }
 0x334   : > { %9970 = vmatprep.subr.bf16.mxu1 %v11355_v25  ;;  %v3631_v56 = vld [vmem:[#allocation5 + $0x1218] sm:$0xff] }
 0x336   : > { %9995 = vmatpush3.bf16.msra.mxu0 %v9994_v12  ;;  %v3620_v12 = vld [vmem:[#allocation5 + $0x11c0] sm:$0xff] }
 0x337   : > { %9972 = vmatpush1.bf16.msra.mxu1 %v9971_v16  ;;  %9997 = vmatprep.subr.bf16.mxu0 %v9996_v38  ;;  %v3621_v16 = vld [vmem:[#allocation5 + $0x11c8] sm:$0xff]  ;;  %v10018_v38 = vpack.c.bf16 %v3425_v55, %v3424_v20  ;;  %v3453_v20 = vld [vmem:[#allocation5 + $0x10f8] sm:$0xff] }
 0x338   : > { %9973 = vmatprep.subr.bf16.mxu1 %v11355_v25  ;;  %v10051_v45 = vpack.c.bf16 %v3621_v16, %v3620_v12  ;;  %v3632_v16 = vld [vmem:[#allocation5 + $0x1220] sm:$0xff] }
 0x33a   : > { %9999 = vmatpush3.bf16.msra.mxu0 %v9998_v15 }
 0x33b   : > { %9975 = vmatpush1.bf16.msra.mxu1 %v9974_v21  ;;  %10001 = vmatprep.subr.bf16.mxu0 %v10000_v50  ;;  %v3622_v21 = vld [vmem:[#allocation5 + $0x11d0] sm:$0xff]  ;;  %v3623_v50 = vld [vmem:[#allocation5 + $0x11d8] sm:$0xff] }
 0x33c   : > { %9976 = vmatprep.subr.bf16.mxu1 %v11355_v25 }
 0x33e   : > { %10003 = vmatpush3.bf16.msra.mxu0 %v10002_v51  ;;  %v10055_v51 = vpack.c.bf16 %v3623_v50, %v3622_v21  ;;  %v3617_v21 = vld [vmem:[#allocation5 + $0x11a8] sm:$0xff] }
 0x33f   : > { %9978 = vmatpush1.bf16.msra.mxu1 %v9977_v62  ;;  %10005 = vmatprep.subr.bf16.mxu0 %v10004_v41  ;;  %v3606_v62 = vld [vmem:[#allocation5 + $0x1150] sm:$0xff]  ;;  %v3607_v41 = vld [vmem:[#allocation5 + $0x1158] sm:$0xff] }
 0x340   : > { %v7974_v4 = vpop.f32.mrb[16].mxu0  ;;  %9979 = vmatprep.subr.bf16.mxu1 %v11355_v25  ;;  %v10057_v27 = vpack.c.bf16 %v3607_v41, %v3606_v62  ;;  %v3458_v62 = vld [vmem:[#allocation5 + $0x1120] sm:$0xff]  ;;  %v3459_v41 = vld [vmem:[#allocation5 + $0x1128] sm:$0xff] }
 0x341   : > { %v7975_v18 = vpop.f32.mrb[17].mxu0  ;;  %v10045_v5 = vpack.c.bf16 %v3459_v41, %v3458_v62 }
 0x342   : > { %v7976_v9 = vadd.f32 %v7975_v18, %v7974_v4  ;;  %10007 = vmatpush3.bf16.msra.mxu0 %v10006_v3  ;;  %v10059_v3 = vpack.c.bf16 %v3625_v47, %v3624_v0  ;;  %v3610_v18 = vld [vmem:[#allocation5 + $0x1170] sm:$0xff]  ;;  %v3636_v0 = vld [vmem:[#allocation5 + $0x1240] sm:$0xff]  ;;  %v3637_v47 = vld [vmem:[#allocation5 + $0x1248] sm:$0xff] }
 0x343   : > { %9981 = vmatpush1.bf16.msra.mxu1 %v9980_v42  ;;  %10009 = vmatprep.subr.bf16.mxu0 %v10008_v10  ;;  %v3608_v42 = vld [vmem:[#allocation5 + $0x1160] sm:$0xff]  ;;  %v3609_v10 = vld [vmem:[#allocation5 + $0x1168] sm:$0xff]  ;;  %v10083_v33 = vpack.c.bf16 %v3637_v47, %v3636_v0  ;;  %v3804_v47 = vld [vmem:[#allocation5 + $0x1310] sm:$0xff] }
 0x344   : > { %9982 = vmatprep.subr.bf16.mxu1 %v11355_v25  ;;  %v10061_v4 = vpack.c.bf16 %v3609_v10, %v3608_v42  ;;  %v3638_v42 = vld [vmem:[#allocation5 + $0x1250] sm:$0xff]  ;;  %v3794_v10 = vld [vmem:[#allocation5 + $0x12c0] sm:$0xff] }
 0x345   : > { %v3648_v0 = vld [vmem:[#allocation5 + $0x12a0] sm:$0xff] }
 0x346   : > { %10011 = vmatpush3.bf16.msra.mxu0 %v10010_v13  ;;  %v3628_v13 = vld [vmem:[#allocation5 + $0x1200] sm:$0xff] }
 0x347   : > { %9984 = vmatpush1.bf16.msra.mxu1 %v9983_v17  ;;  %10013 = vmatprep.subr.bf16.mxu0 %v10012_v19  ;;  %v3629_v17 = vld [vmem:[#allocation5 + $0x1208] sm:$0xff]  ;;  %v10030_v19 = vpack.c.bf16 %v3449_v40, %v3448_v14 }
 0x348   : > { %9985 = vmatprep.subr.bf16.mxu1 %v11355_v25  ;;  %v10067_v43 = vpack.c.bf16 %v3629_v17, %v3628_v13  ;;  %v3640_v17 = vld [vmem:[#allocation5 + $0x1260] sm:$0xff] }
 0x34a   : > { %10015 = vmatpush3.bf16.msra.mxu0 %v10014_v57  ;;  %v10033_v57 = vpack.c.bf16 %v3451_v30, %v3450_v26  ;;  %v3641_v26 = vld [vmem:[#allocation5 + $0x1268] sm:$0xff]  ;;  %v3814_v30 = vld [vmem:[#allocation5 + $0x1360] sm:$0xff] }
 0x34b   : > { %9987 = vmatpush1.bf16.msra.mxu1 %v9986_v11  ;;  %10017 = vmatprep.subr.bf16.mxu0 %v10016_v35  ;;  %v10069_v11 = vpack.c.bf16 %v3613_v54, %v3612_v48  ;;  %v3452_v35 = vld [vmem:[#allocation5 + $0x10f0] sm:$0xff]  ;;  %v10089_v54 = vpack.c.bf16 %v3641_v26, %v3640_v17 }
 0x34c   : > { %10048 = vmatprep.subr.bf16.mxu1 %v10047_v22  ;;  %v10071_v22 = vpack.c.bf16 %v3631_v56, %v3630_v49  ;;  %v10036_v60 = vpack.c.bf16 %v3453_v20, %v3452_v35  ;;  %v3642_v56 = vld [vmem:[#allocation5 + $0x1270] sm:$0xff]  ;;  %v3643_v35 = vld [vmem:[#allocation5 + $0x1278] sm:$0xff] }
 0x34d   : > { %v2252_v15 = vpop.f32.mrb[16].mxu1  ;;  %v3816_v20 = vld [vmem:[#allocation5 + $0x1370] sm:$0xff]  ;;  %v10092_v36 = vpack.c.bf16 %v3643_v35, %v3642_v56 }
 0x34e   : > { %v2253_v2 = vadd.f32 %v7976_v9, %v2252_v15  ;;  %v2254_v52 = vpop.f32.mrb[17].mxu1  ;;  %3403 = vmatmul.mubr.f32.vlgmr.msra.gmra.mrb[28].mxu1 %v12038_v31  ;;  %10019 = vmatpush3.bf16.msra.mxu0 %v10018_v38  ;;  %v3611_v9 = vld [vmem:[#allocation5 + $0x1178] sm:$0xff]  ;;  %v3633_v38 = vld [vmem:[#allocation5 + $0x1228] sm:$0xff]  ;;  %v3616_v15 = vld [vmem:[#allocation5 + $0x11a0] sm:$0xff] }
 0x34f   : > { %10050 = vmatpush3.bf16.msra.mxu1 %v10049_v8  ;;  %3716 = vmatprep.mubr.f32.mxu1 %v12040_v32  ;;  %v10065_v24 = vpack.c.bf16 %v3611_v9, %v3610_v18  ;;  %v10075_v37 = vpack.c.bf16 %v3633_v38, %v3632_v16  ;;  %v3456_v52 = vld [vmem:[#allocation5 + $0x1110] sm:$0xff]  ;;  %v10108_v18 = vpack.c.bf16 %v3795_v6, %v3794_v10  ;;  %v3801_v38 = vld [vmem:[#allocation5 + $0x12f8] sm:$0xff] }
 0x350   : > { %2256 = vst.msk [vmem:[#allocation2 + $0x2c] sm:$0xf] %vm1678_vm3, %v2253_v2  ;;  %10020 = vmatprep.subr.bf16.mxu0 %v11355_v25  ;;  %10052 = vmatprep.subr.bf16.mxu1 %v10051_v45  ;;  %v3454_v45 = vld [vmem:[#allocation5 + $0x1100] sm:$0xff]  ;;  %v10077_v2 = vpack.c.bf16 %v3617_v21, %v3616_v15  ;;  %v10086_v9 = vpack.c.bf16 %v3639_v28, %v3638_v42  ;;  %v3800_v16 = vld [vmem:[#allocation5 + $0x12f0] sm:$0xff] }
 0x351   : > { %3525 = vmatmul.mubr.f32.vlgmr.msra.gmra.mrb[30].mxu0 %v12036_v29  ;;  %v10039_v50 = vpack.c.bf16 %v3455_v63, %v3454_v45  ;;  %v10120_v45 = vpack.c.bf16 %v3801_v38, %v3800_v16  ;;  %v3646_v15 = vld [vmem:[#allocation5 + $0x1290] sm:$0xff]  ;;  %v3802_v21 = vld [vmem:[#allocation5 + $0x1300] sm:$0xff]  ;;  %v3829_v38 = vld [vmem:[#allocation5 + $0x13d8] sm:$0xff] }
 0x352   : > { %10022 = vmatpush1.bf16.msra.mxu0 %v10021_v46  ;;  %7795 = vmatprep.mubr.msk.f32.mxu0 %vm1534_vm2, %v12042_v34  ;;  %v3457_v46 = vld [vmem:[#allocation5 + $0x1118] sm:$0xff]  ;;  %v3650_v6 = vld [vmem:[#allocation5 + $0x12b0] sm:$0xff]  ;;  %v3806_v28 = vld [vmem:[#allocation5 + $0x1320] sm:$0xff] }
 0x353   : > { %10054 = vmatpush3.bf16.msra.mxu1 %v10053_v59  ;;  %10023 = vmatprep.subr.bf16.mxu0 %v11355_v25  ;;  %v3634_v59 = vld [vmem:[#allocation5 + $0x1230] sm:$0xff]  ;;  %v10042_v39 = vpack.c.bf16 %v3457_v46, %v3456_v52  ;;  %v3647_v52 = vld [vmem:[#allocation5 + $0x1298] sm:$0xff] }
 0x354   : > { %10056 = vmatprep.subr.bf16.mxu1 %v10055_v51  ;;  %v10080_v51 = vpack.c.bf16 %v3635_v23, %v3634_v59  ;;  %v3820_v46 = vld [vmem:[#allocation5 + $0x1390] sm:$0xff]  ;;  %v3821_v59 = vld [vmem:[#allocation5 + $0x1398] sm:$0xff]  ;;  %v10098_v62 = vpack.c.bf16 %v3647_v52, %v3646_v15  ;;  %v3830_v52 = vld [vmem:[#allocation5 + $0x13e0] sm:$0xff] }
 0x355   : > { %v10126_v41 = vpack.c.bf16 %v3821_v59, %v3820_v46  ;;  %v3828_v16 = vld [vmem:[#allocation5 + $0x13d0] sm:$0xff]  ;;  %v3831_v46 = vld [vmem:[#allocation5 + $0x13e8] sm:$0xff] }
 0x356   : > { %10025 = vmatpush1.bf16.msra.mxu0 %v10024_v58  ;;  %v3810_v58 = vld [vmem:[#allocation5 + $0x1340] sm:$0xff] }
 0x357   : > { %10058 = vmatpush3.bf16.msra.mxu1 %v10057_v27  ;;  %10026 = vmatprep.subr.bf16.mxu0 %v11355_v25  ;;  %v3811_v27 = vld [vmem:[#allocation5 + $0x1348] sm:$0xff] }
 0x358   : > { %10060 = vmatprep.subr.bf16.mxu1 %v10059_v3  ;;  %v10106_v3 = vpack.c.bf16 %v3811_v27, %v3810_v58  ;;  %v3805_v58 = vld [vmem:[#allocation5 + $0x1318] sm:$0xff]  ;;  %v3649_v27 = vld [vmem:[#allocation5 + $0x12a8] sm:$0xff] }
 0x359   : > { %v10101_v42 = vpack.c.bf16 %v3649_v27, %v3648_v0 }
 0x35a   : > { %10028 = vmatpush1.bf16.msra.mxu0 %v10027_v53  ;;  %v3812_v53 = vld [vmem:[#allocation5 + $0x1350] sm:$0xff] }
 0x35b   : > { %10062 = vmatpush3.bf16.msra.mxu1 %v10061_v4  ;;  %10029 = vmatprep.subr.bf16.mxu0 %v11355_v25  ;;  %v3813_v4 = vld [vmem:[#allocation5 + $0x1358] sm:$0xff] }
 0x35c   : > { %10064 = vmatprep.subr.bf16.mxu1 %v10063_v7  ;;  %v10110_v13 = vpack.c.bf16 %v3813_v4, %v3812_v53  ;;  %v3807_v53 = vld [vmem:[#allocation5 + $0x1328] sm:$0xff]  ;;  %v3651_v4 = vld [vmem:[#allocation5 + $0x12b8] sm:$0xff] }
 0x35e   : > { %10031 = vmatpush1.bf16.msra.mxu0 %v10030_v19  ;;  %v3796_v19 = vld [vmem:[#allocation5 + $0x12d0] sm:$0xff] }
 0x35f   : > { %10066 = vmatpush3.bf16.msra.mxu1 %v10065_v24  ;;  %10032 = vmatprep.subr.bf16.mxu0 %v11355_v25  ;;  %v3797_v24 = vld [vmem:[#allocation5 + $0x12d8] sm:$0xff] }
 0x360   : > { %v8009_v55 = vpop.f32.mrb[18].mxu0  ;;  %10068 = vmatprep.subr.bf16.mxu1 %v10067_v43  ;;  %v3815_v43 = vld [vmem:[#allocation5 + $0x1368] sm:$0xff]  ;;  %v10112_v48 = vpack.c.bf16 %v3797_v24, %v3796_v19  ;;  %v3808_v19 = vld [vmem:[#allocation5 + $0x1330] sm:$0xff]  ;;  %v3809_v24 = vld [vmem:[#allocation5 + $0x1338] sm:$0xff] }
 0x361   : > { %v8010_v12 = vpop.f32.mrb[19].mxu0  ;;  %v10114_v49 = vpack.c.bf16 %v3815_v43, %v3814_v30  ;;  %v3986_v30 = vld [vmem:[#allocation5 + $0x1450] sm:$0xff]  ;;  %v3987_v43 = vld [vmem:[#allocation5 + $0x1458] sm:$0xff] }
 0x362   : > { %v8011_v8 = vadd.f32 %v8010_v12, %v8009_v55  ;;  %10034 = vmatpush1.bf16.msra.mxu0 %v10033_v57  ;;  %v3798_v57 = vld [vmem:[#allocation5 + $0x12e0] sm:$0xff]  ;;  %v3817_v55 = vld [vmem:[#allocation5 + $0x1378] sm:$0xff]  ;;  %v10167_v56 = vpack.c.bf16 %v3987_v43, %v3986_v30 }
 0x363   : > { %10070 = vmatpush3.bf16.msra.mxu1 %v10069_v11  ;;  %10035 = vmatprep.subr.bf16.mxu0 %v11355_v25  ;;  %v3799_v11 = vld [vmem:[#allocation5 + $0x12e8] sm:$0xff]  ;;  %v10118_v61 = vpack.c.bf16 %v3817_v55, %v3816_v20  ;;  %v3644_v12 = vld [vmem:[#allocation5 + $0x1280] sm:$0xff]  ;;  %v3837_v30 = vld [vmem:[#allocation5 + $0x1418] sm:$0xff] }
 0x364   : > { %10072 = vmatprep.subr.bf16.mxu1 %v10071_v22  ;;  %v10116_v22 = vpack.c.bf16 %v3799_v11, %v3798_v57  ;;  %v3826_v57 = vld [vmem:[#allocation5 + $0x13c0] sm:$0xff]  ;;  %v3827_v11 = vld [vmem:[#allocation5 + $0x13c8] sm:$0xff] }
 0x365   : > { %v3988_v20 = vld [vmem:[#allocation5 + $0x1460] sm:$0xff]  ;;  %v3989_v55 = vld [vmem:[#allocation5 + $0x1468] sm:$0xff] }
 0x366   : > { %10037 = vmatpush1.bf16.msra.mxu0 %v10036_v60  ;;  %v3818_v60 = vld [vmem:[#allocation5 + $0x1380] sm:$0xff] }
 0x367   : > { %10074 = vmatpush3.bf16.msra.mxu1 %v10073_v44  ;;  %10038 = vmatprep.subr.bf16.mxu0 %v11355_v25  ;;  %v3819_v44 = vld [vmem:[#allocation5 + $0x1388] sm:$0xff] }
 0x368   : > { %10076 = vmatprep.subr.bf16.mxu1 %v10075_v37  ;;  %v10122_v37 = vpack.c.bf16 %v3819_v44, %v3818_v60  ;;  %v3990_v60 = vld [vmem:[#allocation5 + $0x1470] sm:$0xff]  ;;  %v3991_v44 = vld [vmem:[#allocation5 + $0x1478] sm:$0xff] }
 0x36a   : > { %10040 = vmatpush1.bf16.msra.mxu0 %v10039_v50  ;;  %v3803_v50 = vld [vmem:[#allocation5 + $0x1308] sm:$0xff] }
 0x36b   : > { %10078 = vmatpush3.bf16.msra.mxu1 %v10077_v2  ;;  %10041 = vmatprep.subr.bf16.mxu0 %v11355_v25 }
 0x36c   : > { %10079 = vmatprep.subr.bf16.mxu1 %v11355_v25 }
 0x36e   : > { %3717 = vmatmul.mubr.f32.vlgmr.msra.gmra.mrb[30].mxu1 %v12036_v29  ;;  %10043 = vmatpush1.bf16.msra.mxu0 %v10042_v39 }
 0x36f   : > { %10081 = vmatpush1.bf16.msra.mxu1 %v10080_v51  ;;  %7796 = vmatprep.mubr.msk.f32.mxu1 %vm1534_vm2, %v12042_v34  ;;  %v10124_v51 = vpack.c.bf16 %v3803_v50, %v3802_v21  ;;  %v10142_v50 = vpack.c.bf16 %v3829_v38, %v3828_v16  ;;  %v3840_v16 = vld [vmem:[#allocation5 + $0x1430] sm:$0xff]  ;;  %v3841_v38 = vld [vmem:[#allocation5 + $0x1438] sm:$0xff] }
 0x370   : > { %10044 = vmatprep.subr.bf16.mxu0 %v11355_v25  ;;  %10082 = vmatprep.subr.bf16.mxu1 %v11355_v25 }
 0x371   : > { %v2444_v14 = vpop.f32.mrb[18].mxu1 }
 0x372   : > { %v2445_v40 = vadd.f32 %v8011_v8, %v2444_v14  ;;  %v2446_v7 = vpop.f32.mrb[19].mxu1  ;;  %10046 = vmatpush1.bf16.msra.mxu0 %v10045_v5  ;;  %v3645_v8 = vld [vmem:[#allocation5 + $0x1288] sm:$0xff]  ;;  %v3822_v5 = vld [vmem:[#allocation5 + $0x13a0] sm:$0xff]  ;;  %v3824_v14 = vld [vmem:[#allocation5 + $0x13b0] sm:$0xff] }
 0x373   : > { %10084 = vmatpush1.bf16.msra.mxu1 %v10083_v33  ;;  %10107 = vmatprep.subr.bf16.mxu0 %v10106_v3  ;;  %v10095_v63 = vpack.c.bf16 %v3645_v8, %v3644_v12  ;;  %v3823_v33 = vld [vmem:[#allocation5 + $0x13a8] sm:$0xff]  ;;  %v10128_v3 = vpack.c.bf16 %v3805_v58, %v3804_v47  ;;  %v4002_v7 = vld [vmem:[#allocation5 + $0x14d0] sm:$0xff]  ;;  %v10171_v12 = vpack.c.bf16 %v3989_v55, %v3988_v20  ;;  %v3833_v58 = vld [vmem:[#allocation5 + $0x13f8] sm:$0xff] }
 0x374   : > { %2448 = vst.msk [vmem:[#allocation2 + $0x8] sm:$0xf] %vm1678_vm3, %v2445_v40  ;;  %10085 = vmatprep.subr.bf16.mxu1 %v11355_v25  ;;  %v10130_v10 = vpack.c.bf16 %v3823_v33, %v3822_v5  ;;  %v3825_v40 = vld [vmem:[#allocation5 + $0x13b8] sm:$0xff]  ;;  %v3832_v47 = vld [vmem:[#allocation5 + $0x13f0] sm:$0xff]  ;;  %v3839_v20 = vld [vmem:[#allocation5 + $0x1428] sm:$0xff] }
 0x375   : > { %3595 = vmatmul.mubr.f32.vlgmr.msra.gmra.mrb[32].mxu0 %v12038_v31  ;;  %v10134_v17 = vpack.c.bf16 %v3825_v40, %v3824_v14  ;;  %v3994_v5 = vld [vmem:[#allocation5 + $0x1490] sm:$0xff]  ;;  %v3995_v33 = vld [vmem:[#allocation5 + $0x1498] sm:$0xff]  ;;  %v3996_v40 = vld [vmem:[#allocation5 + $0x14a0] sm:$0xff] }
 0x376   : > { %10109 = vmatpush3.bf16.msra.mxu0 %v10108_v18  ;;  %3908 = vmatprep.mubr.f32.mxu0 %v12040_v32  ;;  %v4003_v18 = vld [vmem:[#allocation5 + $0x14d8] sm:$0xff] }
 0x377   : > { %10087 = vmatpush1.bf16.msra.mxu1 %v10086_v9  ;;  %10111 = vmatprep.subr.bf16.mxu0 %v10110_v13  ;;  %v10132_v9 = vpack.c.bf16 %v3807_v53, %v3806_v28  ;;  %v10104_v13 = vpack.c.bf16 %v3651_v4, %v3650_v6  ;;  %v10165_v26 = vpack.c.bf16 %v4003_v18, %v4002_v7  ;;  %v3834_v28 = vld [vmem:[#allocation5 + $0x1400] sm:$0xff]  ;;  %v3835_v53 = vld [vmem:[#allocation5 + $0x1408] sm:$0xff] }
 0x378   : > { %10088 = vmatprep.subr.bf16.mxu1 %v11355_v25  ;;  %v10183_v6 = vpack.c.bf16 %v3995_v33, %v3994_v5  ;;  %v3997_v7 = vld [vmem:[#allocation5 + $0x14a8] sm:$0xff]  ;;  %v4024_v5 = vld [vmem:[#allocation5 + $0x1580] sm:$0xff]  ;;  %v4180_v33 = vld [vmem:[#allocation5 + $0x15f0] sm:$0xff] }
 0x37a   : > { %10113 = vmatpush3.bf16.msra.mxu0 %v10112_v48  ;;  %v4004_v48 = vld [vmem:[#allocation5 + $0x14e0] sm:$0xff] }
 0x37b   : > { %10090 = vmatpush1.bf16.msra.mxu1 %v10089_v54  ;;  %10115 = vmatprep.subr.bf16.mxu0 %v10114_v49  ;;  %v4005_v54 = vld [vmem:[#allocation5 + $0x14e8] sm:$0xff]  ;;  %v10136_v49 = vpack.c.bf16 %v3809_v24, %v3808_v19  ;;  %v10151_v19 = vpack.c.bf16 %v3835_v53, %v3834_v28  ;;  %v10187_v24 = vpack.c.bf16 %v3997_v7, %v3996_v40 }
 0x37c   : > { %10091 = vmatprep.subr.bf16.mxu1 %v11355_v25  ;;  %v10169_v35 = vpack.c.bf16 %v4005_v54, %v4004_v48  ;;  %v3998_v48 = vld [vmem:[#allocation5 + $0x14b0] sm:$0xff]  ;;  %v3999_v54 = vld [vmem:[#allocation5 + $0x14b8] sm:$0xff] }
 0x37e   : > { %10117 = vmatpush3.bf16.msra.mxu0 %v10116_v22  ;;  %v4006_v22 = vld [vmem:[#allocation5 + $0x14f0] sm:$0xff] }
 0x37f   : > { %10093 = vmatpush1.bf16.msra.mxu1 %v10092_v36  ;;  %10119 = vmatprep.subr.bf16.mxu0 %v10118_v61  ;;  %v4007_v36 = vld [vmem:[#allocation5 + $0x14f8] sm:$0xff]  ;;  %v10139_v61 = vpack.c.bf16 %v3827_v11, %v3826_v57  ;;  %v10191_v11 = vpack.c.bf16 %v3999_v54, %v3998_v48  ;;  %v4028_v48 = vld [vmem:[#allocation5 + $0x15a0] sm:$0xff]  ;;  %v4184_v54 = vld [vmem:[#allocation5 + $0x1610] sm:$0xff] }
 0x380   : > { %v8044_v2 = vpop.f32.mrb[20].mxu0  ;;  %10094 = vmatprep.subr.bf16.mxu1 %v11355_v25  ;;  %v10173_v8 = vpack.c.bf16 %v4007_v36, %v4006_v22  ;;  %v4000_v22 = vld [vmem:[#allocation5 + $0x14c0] sm:$0xff]  ;;  %v4001_v36 = vld [vmem:[#allocation5 + $0x14c8] sm:$0xff] }
 0x381   : > { %v8045_v23 = vpop.f32.mrb[21].mxu0 }
 0x382   : > { %v12204_v39 = vadd.f32 %v8045_v23, %v8044_v2  ;;  %10121 = vmatpush3.bf16.msra.mxu0 %v10120_v45  ;;  %v10175_v2 = vpack.c.bf16 %v3991_v44, %v3990_v60  ;;  %v3992_v23 = vld [vmem:[#allocation5 + $0x1480] sm:$0xff]  ;;  %v4019_v60 = vld [vmem:[#allocation5 + $0x1558] sm:$0xff]  ;;  %v10160_v44 = vpack.c.bf16 %v3841_v38, %v3840_v16  ;;  %v4187_v38 = vld [vmem:[#allocation5 + $0x1628] sm:$0xff] }
 0x383   : > { %10096 = vmatpush1.bf16.msra.mxu1 %v10095_v63  ;;  %10123 = vmatprep.subr.bf16.mxu0 %v10122_v37  ;;  %v4008_v63 = vld [vmem:[#allocation5 + $0x1500] sm:$0xff]  ;;  %v4009_v37 = vld [vmem:[#allocation5 + $0x1508] sm:$0xff] }
 0x384   : > { %10097 = vmatprep.subr.bf16.mxu1 %v11355_v25  ;;  %v10177_v59 = vpack.c.bf16 %v4009_v37, %v4008_v63  ;;  %v3842_v63 = vld [vmem:[#allocation5 + $0x1440] sm:$0xff]  ;;  %v3843_v37 = vld [vmem:[#allocation5 + $0x1448] sm:$0xff] }
 0x385   : > { %v4186_v16 = vld [vmem:[#allocation5 + $0x1620] sm:$0xff] }
 0x386   : > { %10125 = vmatpush3.bf16.msra.mxu0 %v10124_v51  ;;  %v3993_v51 = vld [vmem:[#allocation5 + $0x1488] sm:$0xff] }
 0x387   : > { %10099 = vmatpush1.bf16.msra.mxu1 %v10098_v62  ;;  %10127 = vmatprep.subr.bf16.mxu0 %v10126_v41  ;;  %v4010_v62 = vld [vmem:[#allocation5 + $0x1510] sm:$0xff]  ;;  %v10145_v41 = vpack.c.bf16 %v3831_v46, %v3830_v52  ;;  %v10179_v0 = vpack.c.bf16 %v3993_v51, %v3992_v23  ;;  %v10163_v52 = vpack.c.bf16 %v3843_v37, %v3842_v63  ;;  %v4178_v51 = vld [vmem:[#allocation5 + $0x15e0] sm:$0xff] }
 0x388   : > { %10100 = vmatprep.subr.bf16.mxu1 %v11355_v25  ;;  %v4022_v23 = vld [vmem:[#allocation5 + $0x1570] sm:$0xff] }
 0x38a   : > { %10129 = vmatpush3.bf16.msra.mxu0 %v10128_v3  ;;  %v4012_v3 = vld [vmem:[#allocation5 + $0x1520] sm:$0xff] }
 0x38b   : > { %10102 = vmatpush1.bf16.msra.mxu1 %v10101_v42  ;;  %10131 = vmatprep.subr.bf16.mxu0 %v10130_v10  ;;  %v4013_v42 = vld [vmem:[#allocation5 + $0x1528] sm:$0xff]  ;;  %v10148_v10 = vpack.c.bf16 %v3833_v58, %v3832_v47 }
 0x38c   : > { %10103 = vmatprep.subr.bf16.mxu1 %v11355_v25  ;;  %v10185_v14 = vpack.c.bf16 %v4013_v42, %v4012_v3  ;;  %v4181_v3 = vld [vmem:[#allocation5 + $0x15f8] sm:$0xff]  ;;  %v4025_v42 = vld [vmem:[#allocation5 + $0x1588] sm:$0xff] }
 0x38d   : > { %v10207_v40 = vpack.c.bf16 %v4025_v42, %v4024_v5  ;;  %v4387_v5 = vld [vmem:[#allocation5 + $0x17f8] sm:$0xff] }
 0x38e   : > { %10133 = vmatpush3.bf16.msra.mxu0 %v10132_v9  ;;  %v4014_v9 = vld [vmem:[#allocation5 + $0x1530] sm:$0xff] }
 0x38f   : > { %10105 = vmatpush1.bf16.msra.mxu1 %v10104_v13  ;;  %10135 = vmatprep.subr.bf16.mxu0 %v10134_v17  ;;  %v4015_v13 = vld [vmem:[#allocation5 + $0x1538] sm:$0xff] }
 0x390   : > { %10166 = vmatprep.subr.bf16.mxu1 %v10165_v26  ;;  %v3836_v26 = vld [vmem:[#allocation5 + $0x1410] sm:$0xff]  ;;  %v10189_v43 = vpack.c.bf16 %v4015_v13, %v4014_v9  ;;  %v4182_v9 = vld [vmem:[#allocation5 + $0x1600] sm:$0xff]  ;;  %v4183_v13 = vld [vmem:[#allocation5 + $0x1608] sm:$0xff] }
 0x391   : > { %v10154_v57 = vpack.c.bf16 %v3837_v30, %v3836_v26  ;;  %v4201_v26 = vld [vmem:[#allocation5 + $0x1698] sm:$0xff] }
 0x392   : > { %3787 = vmatmul.mubr.f32.vlgmr.msra.gmra.mrb[32].mxu1 %v12038_v31  ;;  %10137 = vmatpush3.bf16.msra.mxu0 %v10136_v49  ;;  %v4016_v49 = vld [vmem:[#allocation5 + $0x1540] sm:$0xff] }
 0x393   : > { %10168 = vmatpush3.bf16.msra.mxu1 %v10167_v56  ;;  %4100 = vmatprep.mubr.f32.mxu1 %v12040_v32  ;;  %v4017_v56 = vld [vmem:[#allocation5 + $0x1548] sm:$0xff] }
 0x394   : > { %10138 = vmatprep.subr.bf16.mxu0 %v11355_v25  ;;  %10170 = vmatprep.subr.bf16.mxu1 %v10169_v35  ;;  %v3838_v35 = vld [vmem:[#allocation5 + $0x1420] sm:$0xff]  ;;  %v10193_v55 = vpack.c.bf16 %v4017_v56, %v4016_v49  ;;  %v4185_v49 = vld [vmem:[#allocation5 + $0x1618] sm:$0xff] }
 0x395   : > { %v2636_v45 = vpop.f32.mrb[20].mxu1  ;;  %3909 = vmatmul.mubr.f32.vlgmr.msra.gmra.mrb[34].mxu0 %v12036_v29 }
 0x396   : > { %v2637_v15 = vadd.f32 %v12204_v39, %v2636_v45  ;;  %v2638_v21 = vpop.f32.mrb[21].mxu1  ;;  %10140 = vmatpush1.bf16.msra.mxu0 %v10139_v61  ;;  %7797 = vmatprep.mubr.msk.f32.mxu0 %vm1534_vm2, %v12042_v34  ;;  %v4011_v39 = vld [vmem:[#allocation5 + $0x1518] sm:$0xff]  ;;  %v10157_v61 = vpack.c.bf16 %v3839_v20, %v3838_v35  ;;  %v4203_v35 = vld [vmem:[#allocation5 + $0x16a8] sm:$0xff] }
 0x397   : > { %10172 = vmatpush3.bf16.msra.mxu1 %v10171_v12  ;;  %10141 = vmatprep.subr.bf16.mxu0 %v11355_v25  ;;  %v10181_v27 = vpack.c.bf16 %v4011_v39, %v4010_v62  ;;  %v10195_v12 = vpack.c.bf16 %v4001_v36, %v4000_v22  ;;  %v4021_v21 = vld [vmem:[#allocation5 + $0x1568] sm:$0xff]  ;;  %v4023_v39 = vld [vmem:[#allocation5 + $0x1578] sm:$0xff]  ;;  %v10238_v22 = vpack.c.bf16 %v4185_v49, %v4184_v54  ;;  %v4212_v54 = vld [vmem:[#allocation5 + $0x16f0] sm:$0xff] }
 0x398   : > { %2640 = vst.msk [vmem:[#allocation2 + $0x30] sm:$0xf] %vm1678_vm3, %v2637_v15  ;;  %10174 = vmatprep.subr.bf16.mxu1 %v10173_v8  ;;  %v4018_v8 = vld [vmem:[#allocation5 + $0x1550] sm:$0xff]  ;;  %v4020_v15 = vld [vmem:[#allocation5 + $0x1560] sm:$0xff]  ;;  %v4179_v62 = vld [vmem:[#allocation5 + $0x15e8] sm:$0xff]  ;;  %v10204_v58 = vpack.c.bf16 %v4023_v39, %v4022_v23 }
 0x399   : > { %v10198_v45 = vpack.c.bf16 %v4019_v60, %v4018_v8  ;;  %v10201_v46 = vpack.c.bf16 %v4021_v21, %v4020_v15  ;;  %v10226_v47 = vpack.c.bf16 %v4179_v62, %v4178_v51  ;;  %v4031_v8 = vld [vmem:[#allocation5 + $0x15b8] sm:$0xff]  ;;  %v4204_v60 = vld [vmem:[#allocation5 + $0x16b0] sm:$0xff]  ;;  %v4032_v15 = vld [vmem:[#allocation5 + $0x15c0] sm:$0xff] }
 0x39a   : > { %10143 = vmatpush1.bf16.msra.mxu0 %v10142_v50  ;;  %v4194_v50 = vld [vmem:[#allocation5 + $0x1660] sm:$0xff]  ;;  %v4188_v21 = vld [vmem:[#allocation5 + $0x1630] sm:$0xff]  ;;  %v4213_v49 = vld [vmem:[#allocation5 + $0x16f8] sm:$0xff] }
 0x39b   : > { %10176 = vmatpush3.bf16.msra.mxu1 %v10175_v2  ;;  %10144 = vmatprep.subr.bf16.mxu0 %v11355_v25  ;;  %v4195_v2 = vld [vmem:[#allocation5 + $0x1668] sm:$0xff]  ;;  %v4034_v62 = vld [vmem:[#allocation5 + $0x15d0] sm:$0xff]  ;;  %v4190_v39 = vld [vmem:[#allocation5 + $0x1640] sm:$0xff] }
 0x39c   : > { %10178 = vmatprep.subr.bf16.mxu1 %v10177_v59  ;;  %v10224_v59 = vpack.c.bf16 %v4195_v2, %v4194_v50  ;;  %v4189_v50 = vld [vmem:[#allocation5 + $0x1638] sm:$0xff]  ;;  %v4033_v2 = vld [vmem:[#allocation5 + $0x15c8] sm:$0xff] }
 0x39d   : > { %v10219_v23 = vpack.c.bf16 %v4033_v2, %v4032_v15  ;;  %v4217_v2 = vld [vmem:[#allocation5 + $0x1718] sm:$0xff] }
 0x39e   : > { %10146 = vmatpush1.bf16.msra.mxu0 %v10145_v41  ;;  %v4196_v41 = vld [vmem:[#allocation5 + $0x1670] sm:$0xff] }
 0x39f   : > { %10180 = vmatpush3.bf16.msra.mxu1 %v10179_v0  ;;  %10147 = vmatprep.subr.bf16.mxu0 %v11355_v25  ;;  %v4197_v0 = vld [vmem:[#allocation5 + $0x1678] sm:$0xff] }
 0x3a0   : > { %v8079_v4 = vpop.f32.mrb[22].mxu0  ;;  %10182 = vmatprep.subr.bf16.mxu1 %v10181_v27  ;;  %v10228_v27 = vpack.c.bf16 %v4197_v0, %v4196_v41  ;;  %v4191_v41 = vld [vmem:[#allocation5 + $0x1648] sm:$0xff]  ;;  %v4035_v0 = vld [vmem:[#allocation5 + $0x15d8] sm:$0xff] }
 0x3a1   : > { %v8080_v18 = vpop.f32.mrb[23].mxu0 }
 0x3a2   : > { %v12220_v17 = vadd.f32 %v8080_v18, %v8079_v4  ;;  %10149 = vmatpush1.bf16.msra.mxu0 %v10148_v10  ;;  %v4198_v10 = vld [vmem:[#allocation5 + $0x1680] sm:$0xff]  ;;  %v4026_v18 = vld [vmem:[#allocation5 + $0x1590] sm:$0xff] }
 0x3a3   : > { %10184 = vmatpush3.bf16.msra.mxu1 %v10183_v6  ;;  %10150 = vmatprep.subr.bf16.mxu0 %v11355_v25  ;;  %v4199_v6 = vld [vmem:[#allocation5 + $0x1688] sm:$0xff] }
 0x3a4   : > { %10186 = vmatprep.subr.bf16.mxu1 %v10185_v14  ;;  %v10230_v14 = vpack.c.bf16 %v4181_v3, %v4180_v33  ;;  %v10232_v7 = vpack.c.bf16 %v4199_v6, %v4198_v10  ;;  %v10250_v33 = vpack.c.bf16 %v4191_v41, %v4190_v39  ;;  %v10222_v3 = vpack.c.bf16 %v4035_v0, %v4034_v62  ;;  %v4192_v10 = vld [vmem:[#allocation5 + $0x1650] sm:$0xff]  ;;  %v4193_v6 = vld [vmem:[#allocation5 + $0x1658] sm:$0xff]  ;;  %v4396_v62 = vld [vmem:[#allocation5 + $0x1840] sm:$0xff] }
 0x3a5   : > { %v4397_v39 = vld [vmem:[#allocation5 + $0x1848] sm:$0xff] }
 0x3a6   : > { %10152 = vmatpush1.bf16.msra.mxu0 %v10151_v19  ;;  %v4027_v19 = vld [vmem:[#allocation5 + $0x1598] sm:$0xff] }
 0x3a7   : > { %10188 = vmatpush3.bf16.msra.mxu1 %v10187_v24  ;;  %10153 = vmatprep.subr.bf16.mxu0 %v11355_v25  ;;  %v4200_v24 = vld [vmem:[#allocation5 + $0x1690] sm:$0xff]  ;;  %v10210_v30 = vpack.c.bf16 %v4027_v19, %v4026_v18 }
 0x3a8   : > { %10190 = vmatprep.subr.bf16.mxu1 %v10189_v43  ;;  %v10236_v43 = vpack.c.bf16 %v4201_v26, %v4200_v24  ;;  %v4372_v24 = vld [vmem:[#allocation5 + $0x1780] sm:$0xff]  ;;  %v4373_v26 = vld [vmem:[#allocation5 + $0x1788] sm:$0xff] }
 0x3aa   : > { %10155 = vmatpush1.bf16.msra.mxu0 %v10154_v57  ;;  %v4029_v57 = vld [vmem:[#allocation5 + $0x15a8] sm:$0xff] }
 0x3ab   : > { %10192 = vmatpush3.bf16.msra.mxu1 %v10191_v11  ;;  %10156 = vmatprep.subr.bf16.mxu0 %v11355_v25  ;;  %v4202_v11 = vld [vmem:[#allocation5 + $0x16a0] sm:$0xff]  ;;  %v10213_v36 = vpack.c.bf16 %v4029_v57, %v4028_v48  ;;  %v10289_v48 = vpack.c.bf16 %v4373_v26, %v4372_v24  ;;  %v4374_v57 = vld [vmem:[#allocation5 + $0x1790] sm:$0xff]  ;;  %v4223_v24 = vld [vmem:[#allocation5 + $0x1748] sm:$0xff] }
 0x3ac   : > { %10194 = vmatprep.subr.bf16.mxu1 %v10193_v55 }
 0x3ae   : > { %10158 = vmatpush1.bf16.msra.mxu0 %v10157_v61  ;;  %v10240_v61 = vpack.c.bf16 %v4203_v35, %v4202_v11  ;;  %v4375_v11 = vld [vmem:[#allocation5 + $0x1798] sm:$0xff]  ;;  %v4392_v35 = vld [vmem:[#allocation5 + $0x1820] sm:$0xff] }
 0x3af   : > { %10196 = vmatpush3.bf16.msra.mxu1 %v10195_v12  ;;  %10159 = vmatprep.subr.bf16.mxu0 %v11355_v25  ;;  %v4030_v12 = vld [vmem:[#allocation5 + $0x15b0] sm:$0xff] }
 0x3b0   : > { %10197 = vmatprep.subr.bf16.mxu1 %v11355_v25  ;;  %v10216_v63 = vpack.c.bf16 %v4031_v8, %v4030_v12  ;;  %v4215_v12 = vld [vmem:[#allocation5 + $0x1708] sm:$0xff] }
 0x3b1   : > { %v4377_v8 = vld [vmem:[#allocation5 + $0x17a8] sm:$0xff] }
 0x3b2   : > { %4101 = vmatmul.mubr.f32.vlgmr.msra.gmra.mrb[34].mxu1 %v12036_v29  ;;  %10161 = vmatpush1.bf16.msra.mxu0 %v10160_v44  ;;  %v4205_v44 = vld [vmem:[#allocation5 + $0x16b8] sm:$0xff] }
 0x3b3   : > { %10199 = vmatpush1.bf16.msra.mxu1 %v10198_v45  ;;  %7798 = vmatprep.mubr.msk.f32.mxu1 %vm1534_vm2, %v12042_v34  ;;  %v10242_v45 = vpack.c.bf16 %v4187_v38, %v4186_v16  ;;  %v10244_v37 = vpack.c.bf16 %v4205_v44, %v4204_v60  ;;  %v4376_v38 = vld [vmem:[#allocation5 + $0x17a0] sm:$0xff]  ;;  %v4394_v44 = vld [vmem:[#allocation5 + $0x1830] sm:$0xff] }
 0x3b4   : > { %10162 = vmatprep.subr.bf16.mxu0 %v11355_v25  ;;  %10200 = vmatprep.subr.bf16.mxu1 %v11355_v25 }
 0x3b6   : > { %10164 = vmatpush1.bf16.msra.mxu0 %v10163_v52  ;;  %v4206_v52 = vld [vmem:[#allocation5 + $0x16c0] sm:$0xff] }
 0x3b7   : > { %10202 = vmatpush1.bf16.msra.mxu1 %v10201_v46  ;;  %10225 = vmatprep.subr.bf16.mxu0 %v10224_v59  ;;  %v4207_v46 = vld [vmem:[#allocation5 + $0x16c8] sm:$0xff]  ;;  %v10246_v59 = vpack.c.bf16 %v4189_v50, %v4188_v21  ;;  %v10297_v21 = vpack.c.bf16 %v4377_v8, %v4376_v38  ;;  %v4216_v50 = vld [vmem:[#allocation5 + $0x1710] sm:$0xff] }
 0x3b8   : > { %10203 = vmatprep.subr.bf16.mxu1 %v11355_v25  ;;  %v10248_v51 = vpack.c.bf16 %v4207_v46, %v4206_v52  ;;  %v10266_v41 = vpack.c.bf16 %v4217_v2, %v4216_v50 }
 0x3b9   : > { %v2828_v28 = vpop.f32.mrb[22].mxu1  ;;  %3979 = vmatmul.mubr.f32.vlgmr.msra.gmra.mrb[36].mxu0 %v12038_v31 }
 0x3ba   : > { %v2829_v53 = vadd.f32 %v12220_v17, %v2828_v28  ;;  %v2830_v4 = vpop.f32.mrb[23].mxu1  ;;  %10227 = vmatpush3.bf16.msra.mxu0 %v10226_v47  ;;  %4292 = vmatprep.mubr.f32.mxu0 %v12040_v32  ;;  %v10234_v17 = vpack.c.bf16 %v4183_v13, %v4182_v9  ;;  %v4208_v47 = vld [vmem:[#allocation5 + $0x16d0] sm:$0xff]  ;;  %v4210_v9 = vld [vmem:[#allocation5 + $0x16e0] sm:$0xff]  ;;  %v4211_v13 = vld [vmem:[#allocation5 + $0x16e8] sm:$0xff] }
 0x3bb   : > { %10205 = vmatpush1.bf16.msra.mxu1 %v10204_v58  ;;  %10229 = vmatprep.subr.bf16.mxu0 %v10228_v27  ;;  %v4209_v58 = vld [vmem:[#allocation5 + $0x16d8] sm:$0xff]  ;;  %v4386_v27 = vld [vmem:[#allocation5 + $0x17f0] sm:$0xff] }
 0x3bc   : > { %2832 = vst.msk [vmem:[#allocation2 + $0xc] sm:$0xf] %vm1678_vm3, %v2829_v53  ;;  %10206 = vmatprep.subr.bf16.mxu1 %v11355_v25  ;;  %v10252_v42 = vpack.c.bf16 %v4209_v58, %v4208_v47  ;;  %v10283_v28 = vpack.c.bf16 %v4387_v5, %v4386_v27  ;;  %v4370_v53 = vld [vmem:[#allocation5 + $0x1770] sm:$0xff]  ;;  %v4371_v4 = vld [vmem:[#allocation5 + $0x1778] sm:$0xff]  ;;  %v4218_v47 = vld [vmem:[#allocation5 + $0x1720] sm:$0xff]  ;;  %v10303_v27 = vpack.c.bf16 %v4397_v39, %v4396_v62 }
 0x3bd   : > { %v10285_v18 = vpack.c.bf16 %v4371_v4, %v4370_v53  ;;  %v4219_v58 = vld [vmem:[#allocation5 + $0x1728] sm:$0xff]  ;;  %v4380_v5 = vld [vmem:[#allocation5 + $0x17c0] sm:$0xff]  ;;  %v4221_v53 = vld [vmem:[#allocation5 + $0x1738] sm:$0xff] }
 0x3be   : > { %10231 = vmatpush3.bf16.msra.mxu0 %v10230_v14  ;;  %v4388_v14 = vld [vmem:[#allocation5 + $0x1800] sm:$0xff]  ;;  %v4583_v39 = vld [vmem:[#allocation5 + $0x19a8] sm:$0xff] }
 0x3bf   : > { %10208 = vmatpush1.bf16.msra.mxu1 %v10207_v40  ;;  %10233 = vmatprep.subr.bf16.mxu0 %v10232_v7  ;;  %v4389_v40 = vld [vmem:[#allocation5 + $0x1808] sm:$0xff]  ;;  %v10254_v7 = vpack.c.bf16 %v4193_v6, %v4192_v10  ;;  %v10269_v10 = vpack.c.bf16 %v4219_v58, %v4218_v47  ;;  %v4582_v62 = vld [vmem:[#allocation5 + $0x19a0] sm:$0xff] }
 0x3c0   : > { %v8114_v56 = vpop.f32.mrb[24].mxu0  ;;  %10209 = vmatprep.subr.bf16.mxu1 %v11355_v25  ;;  %v10287_v19 = vpack.c.bf16 %v4389_v40, %v4388_v14  ;;  %v4382_v14 = vld [vmem:[#allocation5 + $0x17d0] sm:$0xff]  ;;  %v4383_v40 = vld [vmem:[#allocation5 + $0x17d8] sm:$0xff] }
 0x3c1   : > { %v8115_v20 = vpop.f32.mrb[25].mxu0 }
 0x3c2   : > { %v12239_v55 = vadd.f32 %v8115_v20, %v8114_v56  ;;  %10235 = vmatpush3.bf16.msra.mxu0 %v10234_v17  ;;  %v4390_v17 = vld [vmem:[#allocation5 + $0x1810] sm:$0xff]  ;;  %v4393_v20 = vld [vmem:[#allocation5 + $0x1828] sm:$0xff] }
 0x3c3   : > { %10211 = vmatpush1.bf16.msra.mxu1 %v10210_v30  ;;  %10237 = vmatprep.subr.bf16.mxu0 %v10236_v43  ;;  %v4391_v30 = vld [vmem:[#allocation5 + $0x1818] sm:$0xff]  ;;  %v10257_v43 = vpack.c.bf16 %v4211_v13, %v4210_v9  ;;  %v10295_v16 = vpack.c.bf16 %v4393_v20, %v4392_v35  ;;  %v10309_v13 = vpack.c.bf16 %v4383_v40, %v4382_v14  ;;  %v4226_v20 = vld [vmem:[#allocation5 + $0x1760] sm:$0xff] }
 0x3c4   : > { %10212 = vmatprep.subr.bf16.mxu1 %v11355_v25  ;;  %v10291_v56 = vpack.c.bf16 %v4391_v30, %v4390_v17  ;;  %v4384_v17 = vld [vmem:[#allocation5 + $0x17e0] sm:$0xff]  ;;  %v4385_v30 = vld [vmem:[#allocation5 + $0x17e8] sm:$0xff] }
 0x3c5   : > { %v4412_v40 = vld [vmem:[#allocation5 + $0x18c0] sm:$0xff] }
 0x3c6   : > { %10239 = vmatpush3.bf16.msra.mxu0 %v10238_v22  ;;  %v10260_v22 = vpack.c.bf16 %v4213_v49, %v4212_v54  ;;  %v4224_v54 = vld [vmem:[#allocation5 + $0x1750] sm:$0xff]  ;;  %v4225_v49 = vld [vmem:[#allocation5 + $0x1758] sm:$0xff] }
 0x3c7   : > { %10214 = vmatpush1.bf16.msra.mxu1 %v10213_v36  ;;  %10241 = vmatprep.subr.bf16.mxu0 %v10240_v61  ;;  %v10293_v36 = vpack.c.bf16 %v4375_v11, %v4374_v57  ;;  %v4214_v61 = vld [vmem:[#allocation5 + $0x1700] sm:$0xff]  ;;  %v4403_v57 = vld [vmem:[#allocation5 + $0x1878] sm:$0xff]  ;;  %v10278_v11 = vpack.c.bf16 %v4225_v49, %v4224_v54  ;;  %v4414_v54 = vld [vmem:[#allocation5 + $0x18d0] sm:$0xff] }
 0x3c8   : > { %10215 = vmatprep.subr.bf16.mxu1 %v11355_v25  ;;  %v10263_v15 = vpack.c.bf16 %v4215_v12, %v4214_v61  ;;  %v4405_v61 = vld [vmem:[#allocation5 + $0x1888] sm:$0xff]  ;;  %v4578_v12 = vld [vmem:[#allocation5 + $0x1980] sm:$0xff] }
 0x3c9   : > { %v4570_v49 = vld [vmem:[#allocation5 + $0x1940] sm:$0xff] }
 0x3ca   : > { %10243 = vmatpush3.bf16.msra.mxu0 %v10242_v45  ;;  %v4395_v45 = vld [vmem:[#allocation5 + $0x1838] sm:$0xff] }
 0x3cb   : > { %10217 = vmatpush1.bf16.msra.mxu1 %v10216_v63  ;;  %10245 = vmatprep.subr.bf16.mxu0 %v10244_v37  ;;  %v10299_v46 = vpack.c.bf16 %v4395_v45, %v4394_v44  ;;  %v4406_v44 = vld [vmem:[#allocation5 + $0x1890] sm:$0xff]  ;;  %v4562_v45 = vld [vmem:[#allocation5 + $0x1900] sm:$0xff] }
 0x3cc   : > { %10218 = vmatprep.subr.bf16.mxu1 %v11355_v25 }
 0x3ce   : > { %10247 = vmatpush3.bf16.msra.mxu0 %v10246_v59  ;;  %v4378_v59 = vld [vmem:[#allocation5 + $0x17b0] sm:$0xff] }
 0x3cf   : > { %10220 = vmatpush1.bf16.msra.mxu1 %v10219_v23  ;;  %10249 = vmatprep.subr.bf16.mxu0 %v10248_v51  ;;  %v4379_v23 = vld [vmem:[#allocation5 + $0x17b8] sm:$0xff] }
 0x3d0   : > { %10221 = vmatprep.subr.bf16.mxu1 %v11355_v25  ;;  %v10301_v0 = vpack.c.bf16 %v4379_v23, %v4378_v59  ;;  %v4564_v59 = vld [vmem:[#allocation5 + $0x1910] sm:$0xff]  ;;  %v4565_v23 = vld [vmem:[#allocation5 + $0x1918] sm:$0xff] }
 0x3d1   : > { %v10348_v47 = vpack.c.bf16 %v4565_v23, %v4564_v59 }
 0x3d2   : > { %10251 = vmatpush3.bf16.msra.mxu0 %v10250_v33  ;;  %v4381_v33 = vld [vmem:[#allocation5 + $0x17c8] sm:$0xff] }
 0x3d3   : > { %10223 = vmatpush1.bf16.msra.mxu1 %v10222_v3  ;;  %10253 = vmatprep.subr.bf16.mxu0 %v10252_v42  ;;  %v4398_v3 = vld [vmem:[#allocation5 + $0x1850] sm:$0xff]  ;;  %v4399_v42 = vld [vmem:[#allocation5 + $0x1858] sm:$0xff]  ;;  %v10305_v6 = vpack.c.bf16 %v4381_v33, %v4380_v5  ;;  %v10350_v5 = vpack.c.bf16 %v4583_v39, %v4582_v62 }
 0x3d4   : > { %10284 = vmatprep.subr.bf16.mxu1 %v10283_v28  ;;  %v4220_v28 = vld [vmem:[#allocation5 + $0x1730] sm:$0xff]  ;;  %v10307_v4 = vpack.c.bf16 %v4399_v42, %v4398_v3  ;;  %v4566_v3 = vld [vmem:[#allocation5 + $0x1920] sm:$0xff]  ;;  %v4567_v42 = vld [vmem:[#allocation5 + $0x1928] sm:$0xff] }
 0x3d5   : > { %v10272_v9 = vpack.c.bf16 %v4221_v53, %v4220_v28  ;;  %v4410_v33 = vld [vmem:[#allocation5 + $0x18b0] sm:$0xff]  ;;  %v4585_v28 = vld [vmem:[#allocation5 + $0x19b8] sm:$0xff]  ;;  %v10352_v53 = vpack.c.bf16 %v4567_v42, %v4566_v3  ;;  %v4594_v42 = vld [vmem:[#allocation5 + $0x1a00] sm:$0xff] }
 0x3d6   : > { %4171 = vmatmul.mubr.f32.vlgmr.msra.gmra.mrb[36].mxu1 %v12038_v31  ;;  %10255 = vmatpush3.bf16.msra.mxu0 %v10254_v7  ;;  %v4400_v7 = vld [vmem:[#allocation5 + $0x1860] sm:$0xff]  ;;  %v4576_v62 = vld [vmem:[#allocation5 + $0x1970] sm:$0xff]  ;;  %v4577_v39 = vld [vmem:[#allocation5 + $0x1978] sm:$0xff] }
 0x3d7   : > { %10286 = vmatpush3.bf16.msra.mxu1 %v10285_v18  ;;  %4484 = vmatprep.mubr.f32.mxu1 %v12040_v32  ;;  %v4401_v18 = vld [vmem:[#allocation5 + $0x1868] sm:$0xff] }
 0x3d8   : > { %10256 = vmatprep.subr.bf16.mxu0 %v11355_v25  ;;  %10288 = vmatprep.subr.bf16.mxu1 %v10287_v19  ;;  %v4222_v19 = vld [vmem:[#allocation5 + $0x1740] sm:$0xff]  ;;  %v10311_v26 = vpack.c.bf16 %v4401_v18, %v4400_v7  ;;  %v4568_v7 = vld [vmem:[#allocation5 + $0x1930] sm:$0xff]  ;;  %v4569_v18 = vld [vmem:[#allocation5 + $0x1938] sm:$0xff] }
 0x3d9   : > { %4293 = vmatmul.mubr.f32.vlgmr.msra.gmra.mrb[38].mxu0 %v12036_v29 }
 0x3da   : > { %10258 = vmatpush1.bf16.msra.mxu0 %v10257_v43  ;;  %7799 = vmatprep.mubr.msk.f32.mxu0 %vm1534_vm2, %v12042_v34  ;;  %v10275_v43 = vpack.c.bf16 %v4223_v24, %v4222_v19  ;;  %v4586_v19 = vld [vmem:[#allocation5 + $0x19c0] sm:$0xff]  ;;  %v4587_v24 = vld [vmem:[#allocation5 + $0x19c8] sm:$0xff] }
 0x3db   : > { %10290 = vmatpush3.bf16.msra.mxu1 %v10289_v48  ;;  %10259 = vmatprep.subr.bf16.mxu0 %v11355_v25  ;;  %v10313_v48 = vpack.c.bf16 %v4385_v30, %v4384_v17  ;;  %v10356_v30 = vpack.c.bf16 %v4569_v18, %v4568_v7  ;;  %v4596_v18 = vld [vmem:[#allocation5 + $0x1a10] sm:$0xff] }
 0x3dc   : > { %10292 = vmatprep.subr.bf16.mxu1 %v10291_v56  ;;  %v4402_v56 = vld [vmem:[#allocation5 + $0x1870] sm:$0xff] }
 0x3dd   : > { %v3020_v60 = vpop.f32.mrb[24].mxu1  ;;  %v10316_v35 = vpack.c.bf16 %v4403_v57, %v4402_v56  ;;  %v4571_v56 = vld [vmem:[#allocation5 + $0x1948] sm:$0xff]  ;;  %v4415_v57 = vld [vmem:[#allocation5 + $0x18d8] sm:$0xff] }
 0x3de   : > { %v3021_v63 = vadd.f32 %v12239_v55, %v3020_v60  ;;  %v3022_v37 = vpop.f32.mrb[25].mxu1  ;;  %10261 = vmatpush1.bf16.msra.mxu0 %v10260_v22  ;;  %v4227_v22 = vld [vmem:[#allocation5 + $0x1768] sm:$0xff] }
 0x3df   : > { %10294 = vmatpush3.bf16.msra.mxu1 %v10293_v36  ;;  %10262 = vmatprep.subr.bf16.mxu0 %v11355_v25  ;;  %v4404_v36 = vld [vmem:[#allocation5 + $0x1880] sm:$0xff]  ;;  %v10281_v38 = vpack.c.bf16 %v4227_v22, %v4226_v20  ;;  %v4407_v37 = vld [vmem:[#allocation5 + $0x1898] sm:$0xff]  ;;  %v10360_v20 = vpack.c.bf16 %v4571_v56, %v4570_v49 }
 0x3e0   : > { %3024 = vst.msk [vmem:[#allocation2 + $0x34] sm:$0xf] %vm1678_vm3, %v3021_v63  ;;  %v8149_v52 = vpop.f32.mrb[26].mxu0  ;;  %10296 = vmatprep.subr.bf16.mxu1 %v10295_v16  ;;  %v4579_v16 = vld [vmem:[#allocation5 + $0x1988] sm:$0xff]  ;;  %v10319_v8 = vpack.c.bf16 %v4405_v61, %v4404_v36  ;;  %v10322_v2 = vpack.c.bf16 %v4407_v37, %v4406_v44  ;;  %v4416_v36 = vld [vmem:[#allocation5 + $0x18e0] sm:$0xff]  ;;  %v4572_v61 = vld [vmem:[#allocation5 + $0x1950] sm:$0xff] }
 0x3e1   : > { %v8150_v51 = vpop.f32.mrb[27].mxu0  ;;  %v10342_v60 = vpack.c.bf16 %v4579_v16, %v4578_v12  ;;  %v4563_v63 = vld [vmem:[#allocation5 + $0x1908] sm:$0xff]  ;;  %v4573_v12 = vld [vmem:[#allocation5 + $0x1958] sm:$0xff]  ;;  %v4574_v37 = vld [vmem:[#allocation5 + $0x1960] sm:$0xff] }
 0x3e2   : > { %v12255_v55 = vadd.f32 %v8150_v51, %v8149_v52  ;;  %10264 = vmatpush1.bf16.msra.mxu0 %v10263_v15  ;;  %v4580_v15 = vld [vmem:[#allocation5 + $0x1990] sm:$0xff]  ;;  %v10344_v50 = vpack.c.bf16 %v4563_v63, %v4562_v45  ;;  %v4409_v51 = vld [vmem:[#allocation5 + $0x18a8] sm:$0xff]  ;;  %v4760_v56 = vld [vmem:[#allocation5 + $0x1ac0] sm:$0xff] }
 0x3e3   : > { %10298 = vmatpush3.bf16.msra.mxu1 %v10297_v21  ;;  %10265 = vmatprep.subr.bf16.mxu0 %v11355_v25  ;;  %v4581_v21 = vld [vmem:[#allocation5 + $0x1998] sm:$0xff]  ;;  %v4417_v16 = vld [vmem:[#allocation5 + $0x18e8] sm:$0xff]  ;;  %v4418_v63 = vld [vmem:[#allocation5 + $0x18f0] sm:$0xff] }
 0x3e4   : > { %10300 = vmatprep.subr.bf16.mxu1 %v10299_v46  ;;  %v10346_v52 = vpack.c.bf16 %v4581_v21, %v4580_v15  ;;  %v4408_v46 = vld [vmem:[#allocation5 + $0x18a0] sm:$0xff]  ;;  %v10337_v44 = vpack.c.bf16 %v4417_v16, %v4416_v36  ;;  %v4575_v15 = vld [vmem:[#allocation5 + $0x1968] sm:$0xff]  ;;  %v4419_v21 = vld [vmem:[#allocation5 + $0x18f8] sm:$0xff] }
 0x3e5   : > { %v10368_v59 = vpack.c.bf16 %v4575_v15, %v4574_v37  ;;  %v10340_v23 = vpack.c.bf16 %v4419_v21, %v4418_v63  ;;  %v4601_v16 = vld [vmem:[#allocation5 + $0x1a38] sm:$0xff]  ;;  %v4780_v63 = vld [vmem:[#allocation5 + $0x1b60] sm:$0xff]  ;;  %v4781_v37 = vld [vmem:[#allocation5 + $0x1b68] sm:$0xff] }
 0x3e6   : > { %10267 = vmatpush1.bf16.msra.mxu0 %v10266_v41 }
 0x3e7   : > { %10302 = vmatpush3.bf16.msra.mxu1 %v10301_v0  ;;  %10268 = vmatprep.subr.bf16.mxu0 %v11355_v25 }
 0x3e8   : > { %10304 = vmatprep.subr.bf16.mxu1 %v10303_v27  ;;  %v10325_v27 = vpack.c.bf16 %v4409_v51, %v4408_v46  ;;  %v4771_v46 = vld [vmem:[#allocation5 + $0x1b18] sm:$0xff] }
 0x3ea   : > { %10270 = vmatpush1.bf16.msra.mxu0 %v10269_v10  ;;  %v4411_v10 = vld [vmem:[#allocation5 + $0x18b8] sm:$0xff] }
 0x3eb   : > { %10306 = vmatpush3.bf16.msra.mxu1 %v10305_v6  ;;  %10271 = vmatprep.subr.bf16.mxu0 %v11355_v25  ;;  %v4584_v6 = vld [vmem:[#allocation5 + $0x19b0] sm:$0xff] }
 0x3ec   : > { %10308 = vmatprep.subr.bf16.mxu1 %v10307_v4  ;;  %v10328_v4 = vpack.c.bf16 %v4411_v10, %v4410_v33  ;;  %v10354_v14 = vpack.c.bf16 %v4585_v28, %v4584_v6  ;;  %v10372_v33 = vpack.c.bf16 %v4577_v39, %v4576_v62  ;;  %v4595_v10 = vld [vmem:[#allocation5 + $0x1a08] sm:$0xff]  ;;  %v4756_v28 = vld [vmem:[#allocation5 + $0x1aa0] sm:$0xff] }
 0x3ee   : > { %10273 = vmatpush1.bf16.msra.mxu0 %v10272_v9 }
 0x3ef   : > { %10310 = vmatpush3.bf16.msra.mxu1 %v10309_v13  ;;  %10274 = vmatprep.subr.bf16.mxu0 %v11355_v25  ;;  %v4413_v13 = vld [vmem:[#allocation5 + $0x18c8] sm:$0xff] }
 0x3f0   : > { %10312 = vmatprep.subr.bf16.mxu1 %v10311_v26 }
 0x3f2   : > { %10276 = vmatpush1.bf16.msra.mxu0 %v10275_v43  ;;  %v10331_v43 = vpack.c.bf16 %v4413_v13, %v4412_v40  ;;  %v10375_v40 = vpack.c.bf16 %v4595_v10, %v4594_v42 }
 0x3f3   : > { %10314 = vmatpush3.bf16.msra.mxu1 %v10313_v48  ;;  %10277 = vmatprep.subr.bf16.mxu0 %v11355_v25  ;;  %v10358_v48 = vpack.c.bf16 %v4587_v24, %v4586_v19  ;;  %v4758_v19 = vld [vmem:[#allocation5 + $0x1ab0] sm:$0xff]  ;;  %v4759_v24 = vld [vmem:[#allocation5 + $0x1ab8] sm:$0xff] }
 0x3f4   : > { %10315 = vmatprep.subr.bf16.mxu1 %v11355_v25 }
 0x3f6   : > { %4485 = vmatmul.mubr.f32.vlgmr.msra.gmra.mrb[38].mxu1 %v12036_v29  ;;  %10279 = vmatpush1.bf16.msra.mxu0 %v10278_v11  ;;  %v4588_v11 = vld [vmem:[#allocation5 + $0x19d0] sm:$0xff] }
 0x3f7   : > { %10317 = vmatpush1.bf16.msra.mxu1 %v10316_v35  ;;  %7800 = vmatprep.mubr.msk.f32.mxu1 %vm1534_vm2, %v12042_v34  ;;  %v4589_v35 = vld [vmem:[#allocation5 + $0x19d8] sm:$0xff] }
 0x3f8   : > { %10280 = vmatprep.subr.bf16.mxu0 %v11355_v25  ;;  %10318 = vmatprep.subr.bf16.mxu1 %v11355_v25  ;;  %v10362_v22 = vpack.c.bf16 %v4589_v35, %v4588_v11  ;;  %v4778_v35 = vld [vmem:[#allocation5 + $0x1b50] sm:$0xff] }
 0x3fa   : > { %10282 = vmatpush1.bf16.msra.mxu0 %v10281_v38  ;;  %v4590_v38 = vld [vmem:[#allocation5 + $0x19e0] sm:$0xff] }
 0x3fb   : > { %10320 = vmatpush1.bf16.msra.mxu1 %v10319_v8  ;;  %10343 = vmatprep.subr.bf16.mxu0 %v10342_v60  ;;  %v4591_v8 = vld [vmem:[#allocation5 + $0x19e8] sm:$0xff]  ;;  %v10364_v60 = vpack.c.bf16 %v4573_v12, %v4572_v61  ;;  %v4600_v12 = vld [vmem:[#allocation5 + $0x1a30] sm:$0xff] }
 0x3fc   : > { %10321 = vmatprep.subr.bf16.mxu1 %v11355_v25  ;;  %v10366_v45 = vpack.c.bf16 %v4591_v8, %v4590_v38  ;;  %v10384_v15 = vpack.c.bf16 %v4601_v16, %v4600_v12 }
 0x3fd   : > { %v8184_v41 = vpop.f32.mrb[26].mxu1  ;;  %4363 = vmatmul.mubr.f32.vlgmr.msra.gmra.mrb[40].mxu0 %v12038_v31 }
 0x3fe   : > { %v8185_v0 = vpop.f32.mrb[27].mxu1  ;;  %10345 = vmatpush3.bf16.msra.mxu0 %v10344_v50  ;;  %4676 = vmatprep.mubr.f32.mxu0 %v12040_v32  ;;  %v4592_v50 = vld [vmem:[#allocation5 + $0x19f0] sm:$0xff] }
 0x3ff   : > { %v12271_v58 = vadd.f32 %v8185_v0, %v8184_v41  ;;  %10323 = vmatpush1.bf16.msra.mxu1 %v10322_v2  ;;  %10347 = vmatprep.subr.bf16.mxu0 %v10346_v52  ;;  %v4593_v2 = vld [vmem:[#allocation5 + $0x19f8] sm:$0xff]  ;;  %v4770_v52 = vld [vmem:[#allocation5 + $0x1b10] sm:$0xff] }
 0x400   : > { %10324 = vmatprep.subr.bf16.mxu1 %v11355_v25  ;;  %v10370_v51 = vpack.c.bf16 %v4593_v2, %v4592_v50  ;;  %v10401_v41 = vpack.c.bf16 %v4771_v46, %v4770_v52  ;;  %v4754_v0 = vld [vmem:[#allocation5 + $0x1a90] sm:$0xff]  ;;  %v4602_v50 = vld [vmem:[#allocation5 + $0x1a40] sm:$0xff]  ;;  %v4603_v2 = vld [vmem:[#allocation5 + $0x1a48] sm:$0xff]  ;;  %v10421_v52 = vpack.c.bf16 %v4781_v37, %v4780_v63 }
 0x401   : > { %v4764_v46 = vld [vmem:[#allocation5 + $0x1ae0] sm:$0xff]  ;;  %v10387_v62 = vpack.c.bf16 %v4603_v2, %v4602_v50  ;;  %v4967_v37 = vld [vmem:[#allocation5 + $0x1cc8] sm:$0xff] }
 0x402   : > { %10349 = vmatpush3.bf16.msra.mxu0 %v10348_v47  ;;  %v4755_v47 = vld [vmem:[#allocation5 + $0x1a98] sm:$0xff]  ;;  %v4966_v63 = vld [vmem:[#allocation5 + $0x1cc0] sm:$0xff] }
 0x403   : > { %10326 = vmatpush1.bf16.msra.mxu1 %v10325_v27  ;;  %10351 = vmatprep.subr.bf16.mxu0 %v10350_v5  ;;  %v4772_v27 = vld [vmem:[#allocation5 + $0x1b20] sm:$0xff]  ;;  %v4773_v5 = vld [vmem:[#allocation5 + $0x1b28] sm:$0xff]  ;;  %v10403_v3 = vpack.c.bf16 %v4755_v47, %v4754_v0  ;;  %v4605_v0 = vld [vmem:[#allocation5 + $0x1a58] sm:$0xff] }
 0x404   : > { %v3212_v9 = vpop.f32.mrb[28].mxu0  ;;  %10327 = vmatprep.subr.bf16.mxu1 %v11355_v25  ;;  %v10405_v6 = vpack.c.bf16 %v4773_v5, %v4772_v27  ;;  %v4766_v27 = vld [vmem:[#allocation5 + $0x1af0] sm:$0xff]  ;;  %v4767_v5 = vld [vmem:[#allocation5 + $0x1af8] sm:$0xff] }
 0x405   : > { %v3213_v26 = vadd.f32 %v12255_v55, %v3212_v9  ;;  %v3214_v17 = vpop.f32.mrb[29].mxu0  ;;  %v10334_v55 = vpack.c.bf16 %v4415_v57, %v4414_v54  ;;  %v4597_v9 = vld [vmem:[#allocation5 + $0x1a18] sm:$0xff]  ;;  %v4599_v54 = vld [vmem:[#allocation5 + $0x1a28] sm:$0xff]  ;;  %v10427_v10 = vpack.c.bf16 %v4767_v5, %v4766_v27  ;;  %v4796_v27 = vld [vmem:[#allocation5 + $0x1be0] sm:$0xff] }
 0x406   : > { %10353 = vmatpush3.bf16.msra.mxu0 %v10352_v53  ;;  %v4757_v53 = vld [vmem:[#allocation5 + $0x1aa8] sm:$0xff]  ;;  %v4952_v5 = vld [vmem:[#allocation5 + $0x1c50] sm:$0xff] }
 0x407   : > { %3216 = vst.msk [vmem:[#allocation2 + $0x10] sm:$0xf] %vm1678_vm3, %v3213_v26  ;;  %10329 = vmatpush1.bf16.msra.mxu1 %v10328_v4  ;;  %10355 = vmatprep.subr.bf16.mxu0 %v10354_v14  ;;  %v4774_v4 = vld [vmem:[#allocation5 + $0x1b30] sm:$0xff]  ;;  %v4775_v14 = vld [vmem:[#allocation5 + $0x1b38] sm:$0xff]  ;;  %v10407_v7 = vpack.c.bf16 %v4757_v53, %v4756_v28  ;;  %v4776_v26 = vld [vmem:[#allocation5 + $0x1b40] sm:$0xff] }
 0x408   : > { %10330 = vmatprep.subr.bf16.mxu1 %v11355_v25  ;;  %v10409_v13 = vpack.c.bf16 %v4775_v14, %v4774_v4  ;;  %v4777_v17 = vld [vmem:[#allocation5 + $0x1b48] sm:$0xff]  ;;  %v4768_v4 = vld [vmem:[#allocation5 + $0x1b00] sm:$0xff] }
 0x409   : > { %v10413_v49 = vpack.c.bf16 %v4777_v17, %v4776_v26  ;;  %v4761_v57 = vld [vmem:[#allocation5 + $0x1ac8] sm:$0xff]  ;;  %v4610_v17 = vld [vmem:[#allocation5 + $0x1a80] sm:$0xff] }
 0x40a   : > { %10357 = vmatpush3.bf16.msra.mxu0 %v10356_v30  ;;  %v10378_v30 = vpack.c.bf16 %v4597_v9, %v4596_v18  ;;  %v10415_v61 = vpack.c.bf16 %v4761_v57, %v4760_v56  ;;  %v4607_v28 = vld [vmem:[#allocation5 + $0x1a68] sm:$0xff]  ;;  %v4608_v18 = vld [vmem:[#allocation5 + $0x1a70] sm:$0xff]  ;;  %v4609_v9 = vld [vmem:[#allocation5 + $0x1a78] sm:$0xff] }
 0x40b   : > { %10332 = vmatpush1.bf16.msra.mxu1 %v10331_v43  ;;  %10359 = vmatprep.subr.bf16.mxu0 %v10358_v48  ;;  %v10411_v43 = vpack.c.bf16 %v4759_v24, %v4758_v19  ;;  %v4598_v48 = vld [vmem:[#allocation5 + $0x1a20] sm:$0xff]  ;;  %v4769_v14 = vld [vmem:[#allocation5 + $0x1b08] sm:$0xff]  ;;  %v4787_v19 = vld [vmem:[#allocation5 + $0x1b98] sm:$0xff]  ;;  %v10396_v24 = vpack.c.bf16 %v4609_v9, %v4608_v18 }
 0x40c   : > { %10333 = vmatprep.subr.bf16.mxu1 %v11355_v25  ;;  %v10381_v36 = vpack.c.bf16 %v4599_v54, %v4598_v48  ;;  %v4789_v48 = vld [vmem:[#allocation5 + $0x1ba8] sm:$0xff]  ;;  %v4962_v54 = vld [vmem:[#allocation5 + $0x1ca0] sm:$0xff] }
 0x40d   : > { %v4954_v18 = vld [vmem:[#allocation5 + $0x1c60] sm:$0xff]  ;;  %v4955_v9 = vld [vmem:[#allocation5 + $0x1c68] sm:$0xff] }
 0x40e   : > { %10361 = vmatpush3.bf16.msra.mxu0 %v10360_v20  ;;  %v4779_v20 = vld [vmem:[#allocation5 + $0x1b58] sm:$0xff] }
 0x40f   : > { %10335 = vmatpush1.bf16.msra.mxu1 %v10334_v55  ;;  %10363 = vmatprep.subr.bf16.mxu0 %v10362_v22  ;;  %v10417_v8 = vpack.c.bf16 %v4779_v20, %v4778_v35  ;;  %v4790_v35 = vld [vmem:[#allocation5 + $0x1bb0] sm:$0xff]  ;;  %v4946_v20 = vld [vmem:[#allocation5 + $0x1c20] sm:$0xff] }
 0x410   : > { %10336 = vmatprep.subr.bf16.mxu1 %v11355_v25 }
 0x412   : > { %10365 = vmatpush3.bf16.msra.mxu0 %v10364_v60  ;;  %v4762_v60 = vld [vmem:[#allocation5 + $0x1ad0] sm:$0xff] }
 0x413   : > { %10338 = vmatpush1.bf16.msra.mxu1 %v10337_v44  ;;  %10367 = vmatprep.subr.bf16.mxu0 %v10366_v45  ;;  %v4763_v44 = vld [vmem:[#allocation5 + $0x1ad8] sm:$0xff] }
 0x414   : > { %10339 = vmatprep.subr.bf16.mxu1 %v11355_v25  ;;  %v10419_v21 = vpack.c.bf16 %v4763_v44, %v4762_v60  ;;  %v4948_v60 = vld [vmem:[#allocation5 + $0x1c30] sm:$0xff]  ;;  %v4949_v44 = vld [vmem:[#allocation5 + $0x1c38] sm:$0xff] }
 0x415   : > { %v10466_v50 = vpack.c.bf16 %v4949_v44, %v4948_v60  ;;  %v4960_v60 = vld [vmem:[#allocation5 + $0x1c90] sm:$0xff]  ;;  %v4961_v44 = vld [vmem:[#allocation5 + $0x1c98] sm:$0xff] }
 0x416   : > { %10369 = vmatpush3.bf16.msra.mxu0 %v10368_v59  ;;  %v4765_v59 = vld [vmem:[#allocation5 + $0x1ae8] sm:$0xff] }
 0x417   : > { %10341 = vmatpush1.bf16.msra.mxu1 %v10340_v23  ;;  %10371 = vmatprep.subr.bf16.mxu0 %v10370_v51  ;;  %v4782_v23 = vld [vmem:[#allocation5 + $0x1b70] sm:$0xff]  ;;  %v4783_v51 = vld [vmem:[#allocation5 + $0x1b78] sm:$0xff]  ;;  %v10423_v39 = vpack.c.bf16 %v4765_v59, %v4764_v46  ;;  %v10468_v46 = vpack.c.bf16 %v4967_v37, %v4966_v63  ;;  %v12317_v63 = vld [vmem:[#allocation2 + $0x8] sm:$0xff] }
 0x418   : > { %10402 = vmatprep.subr.bf16.mxu1 %v10401_v41  ;;  %v4604_v41 = vld [vmem:[#allocation5 + $0x1a50] sm:$0xff]  ;;  %v10425_v47 = vpack.c.bf16 %v4783_v51, %v4782_v23  ;;  %v4950_v23 = vld [vmem:[#allocation5 + $0x1c40] sm:$0xff]  ;;  %v4951_v51 = vld [vmem:[#allocation5 + $0x1c48] sm:$0xff] }
 0x419   : > { %v10390_v42 = vpack.c.bf16 %v4605_v0, %v4604_v41  ;;  %v4794_v59 = vld [vmem:[#allocation5 + $0x1bd0] sm:$0xff]  ;;  %v4969_v41 = vld [vmem:[#allocation5 + $0x1cd8] sm:$0xff]  ;;  %v10470_v0 = vpack.c.bf16 %v4951_v51, %v4950_v23  ;;  %v4978_v37 = vld [vmem:[#allocation5 + $0x1d20] sm:$0xff] }
 0x41a   : > { %4555 = vmatmul.mubr.f32.vlgmr.msra.gmra.mrb[40].mxu1 %v12038_v31  ;;  %10373 = vmatpush3.bf16.msra.mxu0 %v10372_v33  ;;  %v4784_v33 = vld [vmem:[#allocation5 + $0x1b80] sm:$0xff] }
 0x41b   : > { %10404 = vmatpush3.bf16.msra.mxu1 %v10403_v3  ;;  %4868 = vmatprep.mubr.f32.mxu1 %v12040_v32  ;;  %v4785_v3 = vld [vmem:[#allocation5 + $0x1b88] sm:$0xff]  ;;  %v4982_v51 = vld [vmem:[#allocation5 + $0x1d40] sm:$0xff] }
 0x41c   : > { %10374 = vmatprep.subr.bf16.mxu0 %v11355_v25  ;;  %10406 = vmatprep.subr.bf16.mxu1 %v10405_v6  ;;  %v4606_v6 = vld [vmem:[#allocation5 + $0x1a60] sm:$0xff]  ;;  %v10429_v53 = vpack.c.bf16 %v4785_v3, %v4784_v33  ;;  %v4953_v33 = vld [vmem:[#allocation5 + $0x1c58] sm:$0xff] }
 0x41d   : > { %4677 = vmatmul.mubr.f32.vlgmr.msra.gmra.mrb[42].mxu0 %v12036_v29 }
 0x41e   : > { %10376 = vmatpush1.bf16.msra.mxu0 %v10375_v40  ;;  %7801 = vmatprep.mubr.msk.f32.mxu0 %vm1534_vm2, %v12042_v34  ;;  %v10393_v40 = vpack.c.bf16 %v4607_v28, %v4606_v6  ;;  %v4971_v6 = vld [vmem:[#allocation5 + $0x1ce8] sm:$0xff] }
 0x41f   : > { %10408 = vmatpush3.bf16.msra.mxu1 %v10407_v7  ;;  %10377 = vmatprep.subr.bf16.mxu0 %v11355_v25  ;;  %v10431_v7 = vpack.c.bf16 %v4769_v14, %v4768_v4  ;;  %v10474_v4 = vpack.c.bf16 %v4953_v33, %v4952_v5 }
 0x420   : > { %10410 = vmatprep.subr.bf16.mxu1 %v10409_v13  ;;  %v4786_v13 = vld [vmem:[#allocation5 + $0x1b90] sm:$0xff] }
 0x421   : > { %v3404_v11 = vpop.f32.mrb[28].mxu1  ;;  %v10434_v26 = vpack.c.bf16 %v4787_v19, %v4786_v13  ;;  %v4799_v13 = vld [vmem:[#allocation5 + $0x1bf8] sm:$0xff]  ;;  %v4972_v19 = vld [vmem:[#allocation5 + $0x1cf0] sm:$0xff] }
 0x422   : > { %v3405_v55 = vadd.f32 %v12271_v58, %v3404_v11  ;;  %v3406_v22 = vpop.f32.mrb[29].mxu1  ;;  %10379 = vmatpush1.bf16.msra.mxu0 %v10378_v30  ;;  %v4611_v30 = vld [vmem:[#allocation5 + $0x1a88] sm:$0xff] }
 0x423   : > { %10412 = vmatpush3.bf16.msra.mxu1 %v10411_v43  ;;  %10380 = vmatprep.subr.bf16.mxu0 %v11355_v25  ;;  %v4788_v43 = vld [vmem:[#allocation5 + $0x1ba0] sm:$0xff]  ;;  %v10399_v56 = vpack.c.bf16 %v4611_v30, %v4610_v17  ;;  %v4791_v22 = vld [vmem:[#allocation5 + $0x1bb8] sm:$0xff] }
 0x424   : > { %3408 = vst.msk [vmem:[#allocation2 + $0x38] sm:$0xf] %vm1678_vm3, %v3405_v55  ;;  %v8219_v38 = vpop.f32.mrb[30].mxu0  ;;  %10414 = vmatprep.subr.bf16.mxu1 %v10413_v49  ;;  %v4963_v49 = vld [vmem:[#allocation5 + $0x1ca8] sm:$0xff]  ;;  %v10437_v57 = vpack.c.bf16 %v4789_v48, %v4788_v43  ;;  %v10440_v16 = vpack.c.bf16 %v4791_v22, %v4790_v35  ;;  %v4800_v30 = vld [vmem:[#allocation5 + $0x1c00] sm:$0xff]  ;;  %v4956_v43 = vld [vmem:[#allocation5 + $0x1c70] sm:$0xff] }
 0x425   : > { %v8220_v45 = vpop.f32.mrb[31].mxu0  ;;  %v10460_v11 = vpack.c.bf16 %v4963_v49, %v4962_v54  ;;  %v4947_v55 = vld [vmem:[#allocation5 + $0x1c28] sm:$0xff]  ;;  %v4957_v48 = vld [vmem:[#allocation5 + $0x1c78] sm:$0xff]  ;;  %v4974_v49 = vld [vmem:[#allocation5 + $0x1d00] sm:$0xff] }
 0x426   : > { %v12291_v58 = vadd.f32 %v8220_v45, %v8219_v38  ;;  %10382 = vmatpush1.bf16.msra.mxu0 %v10381_v36  ;;  %v4964_v36 = vld [vmem:[#allocation5 + $0x1cb0] sm:$0xff]  ;;  %v10462_v12 = vpack.c.bf16 %v4947_v55, %v4946_v20  ;;  %v4793_v45 = vld [vmem:[#allocation5 + $0x1bc8] sm:$0xff]  ;;  %v4958_v55 = vld [vmem:[#allocation5 + $0x1c80] sm:$0xff] }
 0x427   : > { %10416 = vmatpush3.bf16.msra.mxu1 %v10415_v61  ;;  %10383 = vmatprep.subr.bf16.mxu0 %v11355_v25  ;;  %v4965_v61 = vld [vmem:[#allocation5 + $0x1cb8] sm:$0xff]  ;;  %v4801_v54 = vld [vmem:[#allocation5 + $0x1c08] sm:$0xff]  ;;  %v4802_v20 = vld [vmem:[#allocation5 + $0x1c10] sm:$0xff] }
 0x428   : > { %10418 = vmatprep.subr.bf16.mxu1 %v10417_v8  ;;  %v10464_v38 = vpack.c.bf16 %v4965_v61, %v4964_v36  ;;  %v4792_v8 = vld [vmem:[#allocation5 + $0x1bc0] sm:$0xff]  ;;  %v4959_v22 = vld [vmem:[#allocation5 + $0x1c88] sm:$0xff]  ;;  %v4803_v36 = vld [vmem:[#allocation5 + $0x1c18] sm:$0xff] }
 0x429   : > { %v4976_v61 = vld [vmem:[#allocation5 + $0x1d10] sm:$0xff] }
 0x42a   : > { %10385 = vmatpush1.bf16.msra.mxu0 %v10384_v15 }
 0x42b   : > { %10420 = vmatpush3.bf16.msra.mxu1 %v10419_v21  ;;  %10386 = vmatprep.subr.bf16.mxu0 %v11355_v25 }
 0x42c   : > { %10422 = vmatprep.subr.bf16.mxu1 %v10421_v52  ;;  %v10443_v52 = vpack.c.bf16 %v4793_v45, %v4792_v8  ;;  %v10490_v45 = vpack.c.bf16 %v4961_v44, %v4960_v60  ;;  %v5222_v60 = vld [vmem:[#allocation2 + $0x28] sm:$0xff] }
 0x42e   : > { %10388 = vmatpush1.bf16.msra.mxu0 %v10387_v62  ;;  %v4795_v62 = vld [vmem:[#allocation5 + $0x1bd8] sm:$0xff] }
 0x42f   : > { %10424 = vmatpush3.bf16.msra.mxu1 %v10423_v39  ;;  %10389 = vmatprep.subr.bf16.mxu0 %v11355_v25  ;;  %v4968_v39 = vld [vmem:[#allocation5 + $0x1cd0] sm:$0xff] }
 0x430   : > { %10426 = vmatprep.subr.bf16.mxu1 %v10425_v47  ;;  %v10472_v47 = vpack.c.bf16 %v4969_v41, %v4968_v39 }
 0x432   : > { %10391 = vmatpush1.bf16.msra.mxu0 %v10390_v42  ;;  %v4797_v42 = vld [vmem:[#allocation5 + $0x1be8] sm:$0xff] }
 0x433   : > { %10428 = vmatpush3.bf16.msra.mxu1 %v10427_v10  ;;  %10392 = vmatprep.subr.bf16.mxu0 %v11355_v25  ;;  %v4970_v10 = vld [vmem:[#allocation5 + $0x1ce0] sm:$0xff]  ;;  %v10449_v14 = vpack.c.bf16 %v4797_v42, %v4796_v27  ;;  %v4985_v27 = vld [vmem:[#allocation5 + $0x1d58] sm:$0xff]  ;;  %v4987_v42 = vld [vmem:[#allocation5 + $0x1d68] sm:$0xff] }
 0x434   : > { %10430 = vmatprep.subr.bf16.mxu1 %v10429_v53 }
 0x436   : > { %10394 = vmatpush1.bf16.msra.mxu0 %v10393_v40  ;;  %v10476_v40 = vpack.c.bf16 %v4971_v6, %v4970_v10  ;;  %v4988_v10 = vld [vmem:[#allocation5 + $0x1d70] sm:$0xff]  ;;  %v4989_v6 = vld [vmem:[#allocation5 + $0x1d78] sm:$0xff] }
 0x437   : > { %10432 = vmatpush3.bf16.msra.mxu1 %v10431_v7  ;;  %10395 = vmatprep.subr.bf16.mxu0 %v11355_v25  ;;  %v4798_v7 = vld [vmem:[#allocation5 + $0x1bf0] sm:$0xff] }
 0x438   : > { %10433 = vmatprep.subr.bf16.mxu1 %v11355_v25 }
 0x43a   : > { %4869 = vmatmul.mubr.f32.vlgmr.msra.gmra.mrb[42].mxu1 %v12036_v29  ;;  %10397 = vmatpush1.bf16.msra.mxu0 %v10396_v24  ;;  %v4973_v24 = vld [vmem:[#allocation5 + $0x1cf8] sm:$0xff] }
 0x43b   : > { %10435 = vmatpush1.bf16.msra.mxu1 %v10434_v26  ;;  %7802 = vmatprep.mubr.msk.f32.mxu1 %vm1534_vm2, %v12042_v34  ;;  %v10478_v26 = vpack.c.bf16 %v4955_v9, %v4954_v18  ;;  %v10480_v17 = vpack.c.bf16 %v4973_v24, %v4972_v19  ;;  %v4994_v9 = vld [vmem:[#allocation5 + $0x1da0] sm:$0xff] }
 0x43c   : > { %10398 = vmatprep.subr.bf16.mxu0 %v11355_v25  ;;  %10436 = vmatprep.subr.bf16.mxu1 %v11355_v25 }
 0x43e   : > { %10400 = vmatpush1.bf16.msra.mxu0 %v10399_v56  ;;  %v4975_v56 = vld [vmem:[#allocation5 + $0x1d08] sm:$0xff] }
 0x43f   : > { %10438 = vmatpush1.bf16.msra.mxu1 %v10437_v57  ;;  %10461 = vmatprep.subr.bf16.mxu0 %v10460_v11  ;;  %v10482_v57 = vpack.c.bf16 %v4957_v48, %v4956_v43  ;;  %v10455_v11 = vpack.c.bf16 %v4801_v54, %v4800_v30  ;;  %v10484_v35 = vpack.c.bf16 %v4975_v56, %v4974_v49 }
 0x440   : > { %10439 = vmatprep.subr.bf16.mxu1 %v11355_v25 }
 0x441   : > { %v8254_v15 = vpop.f32.mrb[30].mxu1  ;;  %4747 = vmatmul.mubr.f32.vlgmr.msra.gmra.mrb[44].mxu0 %v12038_v31 }
 0x442   : > { %v8255_v21 = vpop.f32.mrb[31].mxu1  ;;  %10463 = vmatpush3.bf16.msra.mxu0 %v10462_v12  ;;  %5060 = vmatprep.mubr.f32.mxu0 %v12040_v32  ;;  %v10446_v32 = vpack.c.bf16 %v4795_v62, %v4794_v59  ;;  %v4977_v12 = vld [vmem:[#allocation5 + $0x1d18] sm:$0xff]  ;;  %v4983_v62 = vld [vmem:[#allocation5 + $0x1d48] sm:$0xff] }
 0x443   : > { %v12307_v2 = vadd.f32 %v8255_v21, %v8254_v15  ;;  %10441 = vmatpush1.bf16.msra.mxu1 %v10440_v16  ;;  %10465 = vmatprep.subr.bf16.mxu0 %v10464_v38  ;;  %v10486_v16 = vpack.c.bf16 %v4959_v22, %v4958_v55  ;;  %v10458_v38 = vpack.c.bf16 %v4803_v36, %v4802_v20  ;;  %v4979_v15 = vld [vmem:[#allocation5 + $0x1d28] sm:$0xff]  ;;  %v5144_v21 = vld [vmem:[#allocation2] sm:$0xff] }
 0x444   : > { %10442 = vmatprep.subr.bf16.mxu1 %v11355_v25  ;;  %v10488_v8 = vpack.c.bf16 %v4977_v12, %v4976_v61  ;;  %v4981_v59 = vld [vmem:[#allocation5 + $0x1d38] sm:$0xff] }
 0x446   : > { %10467 = vmatpush3.bf16.msra.mxu0 %v10466_v50  ;;  %v10520_v50 = vpack.c.bf16 %v12317_v63, %v5144_v21 }
 0x447   : > { %10444 = vmatpush1.bf16.msra.mxu1 %v10443_v52  ;;  %10469 = vmatprep.subr.bf16.mxu0 %v10468_v46  ;;  %v10493_v52 = vpack.c.bf16 %v4979_v15, %v4978_v37  ;;  %v4980_v46 = vld [vmem:[#allocation5 + $0x1d30] sm:$0xff] }
 0x448   : > { %v3596_v3 = vpop.f32.mrb[32].mxu0  ;;  %10445 = vmatprep.subr.bf16.mxu1 %v11355_v25  ;;  %v10496_v23 = vpack.c.bf16 %v4981_v59, %v4980_v46 }
 0x449   : > { %v3597_v28 = vadd.f32 %v12291_v58, %v3596_v3  ;;  %v3598_v53 = vpop.f32.mrb[33].mxu0  ;;  %v10452_v58 = vpack.c.bf16 %v4799_v13, %v4798_v7  ;;  %v4986_v3 = vld [vmem:[#allocation5 + $0x1d60] sm:$0xff]  ;;  %v4993_v7 = vld [vmem:[#allocation5 + $0x1d98] sm:$0xff]  ;;  %v4995_v13 = vld [vmem:[#allocation5 + $0x1da8] sm:$0xff] }
 0x44a   : > { %10471 = vmatpush3.bf16.msra.mxu0 %v10470_v0  ;;  %v4990_v53 = vld [vmem:[#allocation5 + $0x1d80] sm:$0xff]  ;;  %v10517_v19 = vpack.c.bf16 %v4995_v13, %v4994_v9 }
 0x44b   : > { %3600 = vst.msk [vmem:[#allocation2 + $0x14] sm:$0xf] %vm1678_vm3, %v3597_v28  ;;  %10447 = vmatpush1.bf16.msra.mxu1 %v10446_v32  ;;  %10473 = vmatprep.subr.bf16.mxu0 %v10472_v47  ;;  %v10499_v32 = vpack.c.bf16 %v4983_v62, %v4982_v51  ;;  %v4984_v47 = vld [vmem:[#allocation5 + $0x1d50] sm:$0xff]  ;;  %v10508_v28 = vpack.c.bf16 %v4989_v6, %v4988_v10  ;;  %v5298_v62 = vld [vmem:[#allocation2 + $0x4] sm:$0xff] }
 0x44c   : > { %10448 = vmatprep.subr.bf16.mxu1 %v11355_v25  ;;  %v10502_v33 = vpack.c.bf16 %v4985_v27, %v4984_v47  ;;  %v5299_v51 = vld [vmem:[#allocation2 + $0xc] sm:$0xff] }
 0x44e   : > { %10475 = vmatpush3.bf16.msra.mxu0 %v10474_v4  ;;  %v4991_v4 = vld [vmem:[#allocation5 + $0x1d88] sm:$0xff] }
 0x44f   : > { %10450 = vmatpush1.bf16.msra.mxu1 %v10449_v14  ;;  %10477 = vmatprep.subr.bf16.mxu0 %v10476_v40  ;;  %v10511_v14 = vpack.c.bf16 %v4991_v4, %v4990_v53  ;;  %v4992_v40 = vld [vmem:[#allocation5 + $0x1d90] sm:$0xff] }
 0x450   : > { %10451 = vmatprep.subr.bf16.mxu1 %v11355_v25  ;;  %v10514_v18 = vpack.c.bf16 %v4993_v7, %v4992_v40 }
 0x452   : > { %10479 = vmatpush3.bf16.msra.mxu0 %v10478_v26  ;;  %v12346_v61 = vld [vmem:[#allocation2 + $0x10] sm:$0xff] }
 0x453   : > { %10453 = vmatpush1.bf16.msra.mxu1 %v10452_v58  ;;  %10481 = vmatprep.subr.bf16.mxu0 %v10480_v17  ;;  %v10544_v9 = vpack.c.bf16 %v12346_v61, %v12317_v63  ;;  %v5526_v63 = vld [vmem:[#allocation8] sm:$0xff] }
 0x454   : > { %10454 = vmatprep.subr.bf16.mxu1 %v11355_v25 }
 0x456   : > { %10483 = vmatpush3.bf16.msra.mxu0 %v10482_v57 }
 0x457   : > { %10456 = vmatpush1.bf16.msra.mxu1 %v10455_v11  ;;  %10485 = vmatprep.subr.bf16.mxu0 %v10484_v35 }
 0x458   : > { %10457 = vmatprep.subr.bf16.mxu1 %v11355_v25 }
 0x45a   : > { %10487 = vmatpush3.bf16.msra.mxu0 %v10486_v16 }
 0x45b   : > { %10459 = vmatpush1.bf16.msra.mxu1 %v10458_v38  ;;  %10489 = vmatprep.subr.bf16.mxu0 %v10488_v8  ;;  %v5223_v38 = vld [vmem:[#allocation2 + $0x30] sm:$0xff]  ;;  %v12352_v8 = vld [vmem:[#allocation13] sm:$0xf] }
 0x45c   : > { %10519 = vmatprep.subr.bf16.mxu1 %v11355_v25  ;;  %v10526_v44 = vpack.c.bf16 %v5223_v38, %v5222_v60  ;;  %v5533_v38 = vld [vmem:[#allocation8 + $0x38] sm:$0xff]  ;;  %v5620_v60 = vld [vmem:[#allocation8 + $0x88] sm:$0xff] }
 0x45e   : > { %4939 = vmatmul.mubr.f32.vlgmr.msra.gmra.mrb[44].mxu1 %v12038_v31  ;;  %10491 = vmatpush3.bf16.msra.mxu0 %v10490_v45 }
 0x45f   : > { %10521 = vmatpush3.bf16.msra.mxu1 %v10520_v50  ;;  %10492 = vmatprep.subr.bf16.mxu0 %v11355_v25 }
 0x460   : > { %10522 = vmatprep.subr.bf16.mxu1 %v11355_v25  ;;  %8772 = vmatprep.mubr.msk.f32.mxu1 %vm11356_vm4, %v11353_v1 }
 0x461   : > { %5061 = vmatmul.mubr.f32.vlgmr.msra.gmra.mrb[46].mxu0 %v12036_v29 }
 0x462   : > { %10494 = vmatpush1.bf16.msra.mxu0 %v10493_v52  ;;  %7803 = vmatprep.mubr.msk.f32.mxu0 %vm1534_vm2, %v12042_v34 }
 0x463   : > { %10495 = vmatprep.subr.bf16.mxu0 %v11355_v25 }
 0x465   : > { %v3788_v39 = vpop.f32.mrb[32].mxu1 }
 0x466   : > { %v3789_v41 = vadd.f32 %v12307_v2, %v3788_v39  ;;  %v3790_v0 = vpop.f32.mrb[33].mxu1  ;;  %10497 = vmatpush1.bf16.msra.mxu0 %v10496_v23  ;;  %v10505_v2 = vpack.c.bf16 %v4987_v42, %v4986_v3  ;;  %v10532_v39 = vpack.c.bf16 %v5299_v51, %v5298_v62  ;;  %v5375_v3 = vld [vmem:[#allocation2 + $0x34] sm:$0xff]  ;;  %v5374_v42 = vld [vmem:[#allocation2 + $0x2c] sm:$0xff]  ;;  %v5142_v51 = vpop.permute.xlu0 %5141 }
 0x467   : > { %10498 = vmatprep.subr.bf16.mxu0 %v11355_v25 }
 0x468   : > { %3792 = vst.msk [vmem:[#allocation2 + $0x3c] sm:$0xf] %vm1678_vm3, %v3789_v41  ;;  %v8289_v29 = vpop.f32.mrb[34].mxu0 }
 0x469   : > { %v8290_v5 = vpop.f32.mrb[35].mxu0 }
 0x46a   : > { %v8291_v34 = vadd.f32 %v8290_v5, %v8289_v29  ;;  %10500 = vmatpush1.bf16.msra.mxu0 %v10499_v32 }
 0x46b   : > { %10501 = vmatprep.subr.bf16.mxu0 %v11355_v25 }
 0x46e   : > { %10503 = vmatpush1.bf16.msra.mxu0 %v10502_v33 }
 0x46f   : > { %10504 = vmatprep.subr.bf16.mxu0 %v11355_v25  ;;  %v5224_v46 = vld [vmem:[#allocation2 + $0x38] sm:$0xff] }
 0x472   : > { %10506 = vmatpush1.bf16.msra.mxu0 %v10505_v2  ;;  %v10538_v2 = vpack.c.bf16 %v5375_v3, %v5374_v42 }
 0x473   : > { %10507 = vmatprep.subr.bf16.mxu0 %v11355_v25 }
 0x476   : > { %10509 = vmatpush1.bf16.msra.mxu0 %v10508_v28 }
 0x477   : > { %10510 = vmatprep.subr.bf16.mxu0 %v11355_v25 }
 0x47a   : > { %10512 = vmatpush1.bf16.msra.mxu0 %v10511_v14 }
 0x47b   : > { %10513 = vmatprep.subr.bf16.mxu0 %v11355_v25 }
 0x47e   : > { %10515 = vmatpush1.bf16.msra.mxu0 %v10514_v18 }
 0x47f   : > { %10516 = vmatprep.subr.bf16.mxu0 %v11355_v25 }
 0x482   : > { %10518 = vmatpush1.bf16.msra.mxu0 %v10517_v19 }
 0x483   : > { %10549 = vmatprep.subr.bf16.mxu0 %v11355_v25 }
 0x485   : > { %v8324_v24 = vpop.f32.mrb[34].mxu1  ;;  %5131 = vmatmul.mubr.f32.vlgmr.msra.gmra.mrb[48].mxu0 %v12038_v31 }
 0x486   : > { %v8325_v26 = vpop.f32.mrb[35].mxu1  ;;  %8839 = vmatprep.mubr.msk.f32.mxu0 %vm11356_vm4, %v11353_v1 }
 0x487   : > { %v8326_v58 = vadd.f32 %v8325_v26, %v8324_v24 }
 0x48c   : > { %v3980_v17 = vpop.f32.mrb[36].mxu0 }
 0x48d   : > { %v3981_v30 = vadd.f32 %v8291_v34, %v3980_v17  ;;  %v3982_v43 = vpop.f32.mrb[37].mxu0  ;;  %v5527_v17 = vld [vmem:[#allocation8 + $0x8] sm:$0xff] }
 0x48e   : > { %v10550_v43 = vpack.c.bf16 %v5527_v17, %v5526_v63  ;;  %v5699_v63 = vld [vmem:[#allocation8 + $0xb8] sm:$0xff]  ;;  %v5780_v17 = vld [vmem:[#allocation8 + $0x100] sm:$0xff] }
 0x48f   : > { %3984 = vst.msk [vmem:[#allocation2 + $0x18] sm:$0xf] %vm1678_vm3, %v3981_v30  ;;  %v5613_v30 = vld [vmem:[#allocation8 + $0x50] sm:$0xff] }
 0x490   : > { %10551 = vmatpush3.bf16.msra.mxu0 %v10550_v43 }
 0x491   : > { %10552 = vmatprep.subr.bf16.mxu0 %v11355_v25 }
 0x496   : > { %v5300_v5 = vld [vmem:[#allocation2 + $0x14] sm:$0xff] }
 0x4a9   : > { %v4172_v48 = vpop.f32.mrb[36].mxu1 }
 0x4aa   : > { %v4173_v54 = vadd.f32 %v8326_v58, %v4172_v48  ;;  %v4174_v49 = vpop.f32.mrb[37].mxu1  ;;  %v5614_v48 = vld [vmem:[#allocation8 + $0x58] sm:$0xff] }
 0x4ab   : > { %v5529_v49 = vld [vmem:[#allocation8 + $0x18] sm:$0xff] }
 0x4ac   : > { %4176 = vst.msk [vmem:[#allocation2 + $0x40] sm:$0xf] %vm1678_vm3, %v4173_v54  ;;  %v8359_v56 = vpop.f32.mrb[38].mxu0  ;;  %v5528_v54 = vld [vmem:[#allocation8 + $0x10] sm:$0xff] }
 0x4ad   : > { %v8360_v57 = vpop.f32.mrb[39].mxu0 }
 0x4ae   : > { %v8361_v11 = vadd.f32 %v8360_v57, %v8359_v56  ;;  %v10565_v56 = vpack.c.bf16 %v5614_v48, %v5613_v30  ;;  %v5615_v57 = vld [vmem:[#allocation8 + $0x60] sm:$0xff]  ;;  %v5781_v30 = vld [vmem:[#allocation8 + $0x108] sm:$0xff] }
 0x4af   : > { %v10598_v48 = vpack.c.bf16 %v5781_v30, %v5780_v17  ;;  %v6109_v17 = vld [vmem:[#allocation8 + $0x248] sm:$0xff] }
 0x4b3   : > { %v5376_v40 = vld [vmem:[#allocation2 + $0x3c] sm:$0xff] }
 0x4c9   : > { %v8394_v35 = vpop.f32.mrb[38].mxu1 }
 0x4ca   : > { %v8395_v31 = vpop.f32.mrb[39].mxu1 }
 0x4cb   : > { %v8396_v20 = vadd.f32 %v8395_v31, %v8394_v35  ;;  %v10553_v35 = vpack.c.bf16 %v5529_v49, %v5528_v54  ;;  %v5700_v54 = vld [vmem:[#allocation8 + $0xc0] sm:$0xff]  ;;  %v5701_v49 = vld [vmem:[#allocation8 + $0xc8] sm:$0xff] }
 0x4cd   : > { %10554 = vmatpush3.bf16.msra.mxu0 %v10553_v35 }
 0x4ce   : > { %10555 = vmatprep.subr.bf16.mxu0 %v11355_v25 }
 0x4d0   : > { %v4364_v55 = vpop.f32.mrb[40].mxu0 }
 0x4d1   : > { %v4365_v22 = vadd.f32 %v8361_v11, %v4364_v55  ;;  %v4366_v36 = vpop.f32.mrb[41].mxu0  ;;  %v5616_v11 = vld [vmem:[#allocation8 + $0x68] sm:$0xff] }
 0x4d2   : > { %v10568_v31 = vpack.c.bf16 %v5616_v11, %v5615_v57  ;;  %v5531_v55 = vld [vmem:[#allocation8 + $0x28] sm:$0xff]  ;;  %v5618_v36 = vld [vmem:[#allocation8 + $0x78] sm:$0xff]  ;;  %v10586_v11 = vpack.c.bf16 %v5701_v49, %v5700_v54  ;;  %v6110_v49 = vld [vmem:[#allocation8 + $0x250] sm:$0xff] }
 0x4d3   : > { %4368 = vst.msk [vmem:[#allocation2 + $0x1c] sm:$0xf] %vm1678_vm3, %v4365_v22  ;;  %v5617_v22 = vld [vmem:[#allocation8 + $0x70] sm:$0xff]  ;;  %v5783_v57 = vld [vmem:[#allocation8 + $0x118] sm:$0xff]  ;;  %v6029_v54 = vld [vmem:[#allocation8 + $0x208] sm:$0xff] }
 0x4da   : > { %v12348_v12 = vld [vmem:[#allocation2 + $0x18] sm:$0xff] }
 0x4db   : > { %v10523_v16 = vpack.c.bf16 %v12348_v12, %v12346_v61 }
 0x4dd   : > { %10524 = vmatpush3.bf16.msra.mxu1 %v10523_v16  ;;  %v5532_v16 = vld [vmem:[#allocation8 + $0x30] sm:$0xff] }
 0x4de   : > { %10525 = vmatprep.subr.bf16.mxu1 %v11355_v25 }
 0x4e0   : > { %8773 = vmatmul.mubr.msk.f32.vlgmr.msra.gmra.mrb[46].mxu1 %vm528_vm1, %v12352_v8 }
 0x4e1   : > { %10527 = vmatpush3.bf16.msra.mxu1 %v10526_v44  ;;  %8783 = vmatprep.mubr.msk.f32.mxu1 %vm11356_vm4, %v11353_v1  ;;  %v10559_v44 = vpack.c.bf16 %v5533_v38, %v5532_v16  ;;  %v5705_v16 = vld [vmem:[#allocation8 + $0xe8] sm:$0xff]  ;;  %v5786_v38 = vld [vmem:[#allocation8 + $0x130] sm:$0xff] }
 0x4e2   : > { %10528 = vmatprep.subr.bf16.mxu1 %v11355_v25 }
 0x4ed   : > { %v4556_v45 = vpop.f32.mrb[40].mxu1 }
 0x4ee   : > { %v4557_v37 = vadd.f32 %v8396_v20, %v4556_v45  ;;  %v4558_v15 = vpop.f32.mrb[41].mxu1  ;;  %v5530_v20 = vld [vmem:[#allocation8 + $0x20] sm:$0xff] }
 0x4ef   : > { %v10556_v61 = vpack.c.bf16 %v5531_v55, %v5530_v20  ;;  %v5703_v20 = vld [vmem:[#allocation8 + $0xd8] sm:$0xff]  ;;  %v5784_v55 = vld [vmem:[#allocation8 + $0x120] sm:$0xff] }
 0x4f0   : > { %4560 = vst.msk [vmem:[#allocation2 + $0x44] sm:$0xf] %vm1678_vm3, %v4557_v37  ;;  %v8429_v21 = vpop.f32.mrb[42].mxu0 }
 0x4f1   : > { %v8430_v50 = vpop.f32.mrb[43].mxu0  ;;  %10557 = vmatpush3.bf16.msra.mxu0 %v10556_v61 }
 0x4f2   : > { %v8431_v52 = vadd.f32 %v8430_v50, %v8429_v21  ;;  %10558 = vmatprep.subr.bf16.mxu0 %v11355_v25  ;;  %v5534_v21 = vld [vmem:[#allocation8 + $0x40] sm:$0xff]  ;;  %v5535_v50 = vld [vmem:[#allocation8 + $0x48] sm:$0xff] }
 0x4f5   : > { %10560 = vmatpush3.bf16.msra.mxu0 %v10559_v44 }
 0x4f6   : > { %10561 = vmatprep.subr.bf16.mxu0 %v11355_v25 }
 0x4f7   : > { %v5225_v59 = vld [vmem:[#allocation2 + $0x40] sm:$0xff] }
 0x4f8   : > { %v10529_v23 = vpack.c.bf16 %v5225_v59, %v5224_v46  ;;  %v10562_v46 = vpack.c.bf16 %v5535_v50, %v5534_v21  ;;  %v5622_v59 = vld [vmem:[#allocation8 + $0x98] sm:$0xff] }
 0x4f9   : > { %v5943_v21 = vld [vmem:[#allocation8 + $0x198] sm:$0xff] }
 0x4fa   : > { %10530 = vmatpush3.bf16.msra.mxu1 %v10529_v23  ;;  %10563 = vmatpush3.bf16.msra.mxu0 %v10562_v46  ;;  %v5862_v46 = vld [vmem:[#allocation8 + $0x150] sm:$0xff] }
 0x4fb   : > { %10531 = vmatprep.subr.bf16.mxu1 %v11355_v25  ;;  %10579 = vmatprep.subr.bf16.mxu0 %v11355_v25 }
 0x4fd   : > { %8784 = vmatmul.mubr.msk.f32.vlgmr.msra.gmra.mrb[48].mxu1 %vm528_vm1, %v12352_v8 }
 0x4fe   : > { %10533 = vmatpush3.bf16.msra.mxu1 %v10532_v39  ;;  %8794 = vmatprep.mubr.msk.f32.mxu1 %vm11356_vm4, %v11353_v1 }
 0x4ff   : > { %10534 = vmatprep.subr.bf16.mxu1 %v11355_v25 }
 0x50d   : > { %v8464_v41 = vpop.f32.mrb[42].mxu1 }
 0x50e   : > { %v8465_v0 = vpop.f32.mrb[43].mxu1 }
 0x50f   : > { %v8466_v32 = vadd.f32 %v8465_v0, %v8464_v41 }
 0x514   : > { %v4748_v47 = vpop.f32.mrb[44].mxu0 }
 0x515   : > { %v4749_v27 = vadd.f32 %v8431_v52, %v4748_v47  ;;  %v4750_v29 = vpop.f32.mrb[45].mxu0  ;;  %v5621_v52 = vld [vmem:[#allocation8 + $0x90] sm:$0xff] }
 0x516   : > { %v10577_v23 = vpack.c.bf16 %v5622_v59, %v5621_v52  ;;  %v5863_v59 = vld [vmem:[#allocation8 + $0x158] sm:$0xff] }
 0x517   : > { %4752 = vst.msk [vmem:[#allocation2 + $0x20] sm:$0xf] %vm1678_vm3, %v4749_v27 }
 0x51e   : > { %v5301_v34 = vld [vmem:[#allocation2 + $0x1c] sm:$0xff] }
 0x51f   : > { %v10535_v33 = vpack.c.bf16 %v5301_v34, %v5300_v5 }
 0x521   : > { %10536 = vmatpush3.bf16.msra.mxu1 %v10535_v33 }
 0x522   : > { %10537 = vmatprep.subr.bf16.mxu1 %v11355_v25 }
 0x524   : > { %8795 = vmatmul.mubr.msk.f32.vlgmr.msra.gmra.mrb[50].mxu1 %vm528_vm1, %v12352_v8 }
 0x525   : > { %10539 = vmatpush3.bf16.msra.mxu1 %v10538_v2  ;;  %8805 = vmatprep.mubr.msk.f32.mxu1 %vm11356_vm4, %v11353_v1 }
 0x526   : > { %10540 = vmatprep.subr.bf16.mxu1 %v11355_v25 }
 0x531   : > { %v4940_v10 = vpop.f32.mrb[44].mxu1 }
 0x532   : > { %v4941_v6 = vadd.f32 %v8466_v32, %v4940_v10  ;;  %v4942_v28 = vpop.f32.mrb[45].mxu1 }
 0x534   : > { %4944 = vst.msk [vmem:[#allocation2 + $0x48] sm:$0xf] %vm1678_vm3, %v4941_v6  ;;  %v8499_v53 = vpop.f32.mrb[46].mxu0 }
 0x535   : > { %v8500_v4 = vpop.f32.mrb[47].mxu0 }
 0x536   : > { %v8501_v14 = vadd.f32 %v8500_v4, %v8499_v53  ;;  %v5696_v4 = vld [vmem:[#allocation8 + $0xa0] sm:$0xff] }
 0x53b   : > { %v5377_v7 = vld [vmem:[#allocation2 + $0x44] sm:$0xff] }
 0x53c   : > { %v10541_v18 = vpack.c.bf16 %v5377_v7, %v5376_v40  ;;  %v5697_v7 = vld [vmem:[#allocation8 + $0xa8] sm:$0xff] }
 0x53e   : > { %10542 = vmatpush3.bf16.msra.mxu1 %v10541_v18  ;;  %v5778_v18 = vld [vmem:[#allocation8 + $0xf0] sm:$0xff] }
 0x53f   : > { %10543 = vmatprep.subr.bf16.mxu1 %v11355_v25 }
 0x541   : > { %8806 = vmatmul.mubr.msk.f32.vlgmr.msra.gmra.mrb[52].mxu1 %vm528_vm1, %v12352_v8 }
 0x542   : > { %10545 = vmatpush3.bf16.msra.mxu1 %v10544_v9  ;;  %8816 = vmatprep.mubr.msk.f32.mxu1 %vm11356_vm4, %v11353_v1  ;;  %v5779_v9 = vld [vmem:[#allocation8 + $0xf8] sm:$0xff] }
 0x543   : > { %10546 = vmatprep.subr.bf16.mxu1 %v11355_v25 }
 0x558   : > { %v5132_v13 = vpop.f32.mrb[48].mxu0 }
 0x559   : > { %v5133_v19 = vadd.f32 %v8501_v14, %v5132_v13  ;;  %v5134_v24 = vpop.f32.mrb[49].mxu0 }
 0x55a   : > { %v10595_v24 = vpack.c.bf16 %v5779_v9, %v5778_v18  ;;  %v6106_v18 = vld [vmem:[#allocation8 + $0x230] sm:$0xff]  ;;  %v6107_v9 = vld [vmem:[#allocation8 + $0x238] sm:$0xff] }
 0x55b   : > { %5136 = vst.msk [vmem:[#allocation2 + $0x24] sm:$0xf] %vm1678_vm3, %v5133_v19  ;;  %v10580_v19 = vpack.c.bf16 %v5697_v7, %v5696_v4  ;;  %v6025_v7 = vld [vmem:[#allocation8 + $0x1e8] sm:$0xff] }
 0x562   : > { %v5453_v26 = vld [vmem:[#allocation2 + $0x20] sm:$0xff] }
 0x563   : > { %v10547_v58 = vpack.c.bf16 %v5453_v26, %v12348_v12  ;;  %v10571_v12 = vpack.c.bf16 %v5618_v36, %v5617_v22  ;;  %v5698_v26 = vld [vmem:[#allocation8 + $0xb0] sm:$0xff]  ;;  %v5785_v22 = vld [vmem:[#allocation8 + $0x128] sm:$0xff] }
 0x564   : > { %v10583_v43 = vpack.c.bf16 %v5699_v63, %v5698_v26  ;;  %v10604_v61 = vpack.c.bf16 %v5785_v22, %v5784_v55  ;;  %v6027_v26 = vld [vmem:[#allocation8 + $0x1f8] sm:$0xff]  ;;  %v6108_v63 = vld [vmem:[#allocation8 + $0x240] sm:$0xff]  ;;  %v6113_v55 = vld [vmem:[#allocation8 + $0x268] sm:$0xff] }
 0x565   : > { %10548 = vmatpush3.bf16.msra.mxu1 %v10547_v58 }
 0x566   : > { %10564 = vmatprep.subr.bf16.mxu1 %v11355_v25 }
 0x568   : > { %8817 = vmatmul.mubr.msk.f32.vlgmr.msra.gmra.mrb[54].mxu1 %vm528_vm1, %v12352_v8  ;;  %v5619_v8 = vld [vmem:[#allocation8 + $0x80] sm:$0xff] }
 0x569   : > { %8862 = vmatprep.mubr.msk.f32.mxu1 %vm11356_vm4, %v11353_v1  ;;  %10566 = vmatpush3.bf16.msra.mxu1 %v10565_v56  ;;  %v10574_v45 = vpack.c.bf16 %v5620_v60, %v5619_v8  ;;  %v5782_v56 = vld [vmem:[#allocation8 + $0x110] sm:$0xff]  ;;  %v5787_v8 = vld [vmem:[#allocation8 + $0x138] sm:$0xff] }
 0x56a   : > { %10567 = vmatprep.subr.bf16.mxu1 %v11355_v25  ;;  %v10601_v35 = vpack.c.bf16 %v5783_v57, %v5782_v56  ;;  %v10607_v44 = vpack.c.bf16 %v5787_v8, %v5786_v38  ;;  %v6111_v56 = vld [vmem:[#allocation8 + $0x258] sm:$0xff] }
 0x56b   : > { %v6115_v38 = vld [vmem:[#allocation8 + $0x278] sm:$0xff] }
 0x56d   : > { %10569 = vmatpush3.bf16.msra.mxu1 %v10568_v31  ;;  %v5702_v31 = vld [vmem:[#allocation8 + $0xd0] sm:$0xff] }
 0x56e   : > { %10570 = vmatprep.subr.bf16.mxu1 %v11355_v25  ;;  %v10589_v36 = vpack.c.bf16 %v5703_v20, %v5702_v31  ;;  %v6031_v31 = vld [vmem:[#allocation8 + $0x218] sm:$0xff]  ;;  %v6112_v20 = vld [vmem:[#allocation8 + $0x260] sm:$0xff] }
 0x571   : > { %10572 = vmatpush3.bf16.msra.mxu1 %v10571_v12  ;;  %v5704_v12 = vld [vmem:[#allocation8 + $0xe0] sm:$0xff] }
 0x572   : > { %10573 = vmatprep.subr.bf16.mxu1 %v11355_v25  ;;  %v10592_v60 = vpack.c.bf16 %v5705_v16, %v5704_v12  ;;  %v6033_v12 = vld [vmem:[#allocation8 + $0x228] sm:$0xff]  ;;  %v6114_v16 = vld [vmem:[#allocation8 + $0x270] sm:$0xff] }
 0x575   : > { %10575 = vmatpush3.bf16.msra.mxu1 %v10574_v45  ;;  %v5860_v45 = vld [vmem:[#allocation8 + $0x140] sm:$0xff] }
 0x576   : > { %10576 = vmatprep.subr.bf16.mxu1 %v11355_v25 }
 0x579   : > { %10578 = vmatpush3.bf16.msra.mxu1 %v10577_v23  ;;  %v5944_v23 = vld [vmem:[#allocation8 + $0x1a0] sm:$0xff] }
 0x57a   : > { %10594 = vmatprep.subr.bf16.mxu1 %v11355_v25 }
 0x5b3   : > { %v5217_v37 = vpop.f32.mrb[46].mxu1 }
 0x5b4   : > { %v8774_v15 = vpop.f32.mrb[47].mxu1  ;;  %v5218_v62 = vadd.f32 %v5217_v37, %v5142_v51  ;;  %v5861_v37 = vld [vmem:[#allocation8 + $0x148] sm:$0xff] }
 0x5b5   : > { %v5942_v15 = vld [vmem:[#allocation8 + $0x190] sm:$0xff]  ;;  %v10610_v50 = vpack.c.bf16 %v5861_v37, %v5860_v45  ;;  %v6189_v45 = vld [vmem:[#allocation8 + $0x288] sm:$0xff] }
 0x5b6   : > { %v5221_v32 = vmax.f32 %v5218_v62, 0.0  ;;  %v10625_v52 = vpack.c.bf16 %v5943_v21, %v5942_v15  ;;  %v10613_v62 = vpack.c.bf16 %v5863_v59, %v5862_v46  ;;  %v6270_v37 = vld [vmem:[#allocation8 + $0x2d0] sm:$0xff]  ;;  %v6271_v15 = vld [vmem:[#allocation8 + $0x2d8] sm:$0xff]  ;;  %v6272_v59 = vld [vmem:[#allocation8 + $0x2e0] sm:$0xff] }
 0x5b7   : > { %v6191_v46 = vld [vmem:[#allocation8 + $0x298] sm:$0xff] }
 0x5d0   : > { %v5292_v39 = vpop.f32.mrb[48].mxu1 }
 0x5d1   : > { %v5293_v41 = vadd.f32 %v5292_v39, %v5142_v51  ;;  %v8785_v0 = vpop.f32.mrb[49].mxu1 }
 0x5d2   : > { %v5865_v0 = vld [vmem:[#allocation8 + $0x168] sm:$0xff] }
 0x5d3   : > { %v5296_v47 = vmax.f32 %v5293_v41, 0.0  ;;  %v5864_v41 = vld [vmem:[#allocation8 + $0x160] sm:$0xff] }
 0x5d5   : > { %v5297_v27 = vmax.f32 %v5221_v32, %v5296_v47  ;;  %v5946_v32 = vld [vmem:[#allocation8 + $0x1b0] sm:$0xff]  ;;  %v5947_v47 = vld [vmem:[#allocation8 + $0x1b8] sm:$0xff] }
 0x5f7   : > { %v5368_v29 = vpop.f32.mrb[50].mxu1 }
 0x5f8   : > { %v5369_v5 = vadd.f32 %v5368_v29, %v5142_v51  ;;  %v8796_v34 = vpop.f32.mrb[51].mxu1  ;;  %v10631_v29 = vpack.c.bf16 %v5947_v47, %v5946_v32  ;;  %v6275_v32 = vld [vmem:[#allocation8 + $0x2f8] sm:$0xff] }
 0x5f9   : > { %v5867_v34 = vld [vmem:[#allocation8 + $0x178] sm:$0xff] }
 0x5fa   : > { %v5372_v33 = vmax.f32 %v5369_v5, 0.0  ;;  %v5866_v5 = vld [vmem:[#allocation8 + $0x170] sm:$0xff] }
 0x5fc   : > { %v5373_v3 = vmax.f32 %v5297_v27, %v5372_v33  ;;  %v10616_v27 = vpack.c.bf16 %v5865_v0, %v5864_v41  ;;  %v5948_v33 = vld [vmem:[#allocation8 + $0x1c0] sm:$0xff]  ;;  %v6193_v41 = vld [vmem:[#allocation8 + $0x2a8] sm:$0xff]  ;;  %v6274_v0 = vld [vmem:[#allocation8 + $0x2f0] sm:$0xff] }
 0x614   : > { %v5444_v42 = vpop.f32.mrb[52].mxu1 }
 0x615   : > { %v5445_v2 = vadd.f32 %v5444_v42, %v5142_v51  ;;  %v8807_v10 = vpop.f32.mrb[53].mxu1  ;;  %v10619_v42 = vpack.c.bf16 %v5867_v34, %v5866_v5  ;;  %v6195_v5 = vld [vmem:[#allocation8 + $0x2b8] sm:$0xff]  ;;  %v6276_v34 = vld [vmem:[#allocation8 + $0x300] sm:$0xff] }
 0x616   : > { %v5868_v10 = vld [vmem:[#allocation8 + $0x180] sm:$0xff] }
 0x617   : > { %v5448_v6 = vmax.f32 %v5445_v2, 0.0 }
 0x619   : > { %v5449_v28 = vmax.f32 %v5373_v3, %v5448_v6  ;;  %v5949_v3 = vld [vmem:[#allocation8 + $0x1c8] sm:$0xff] }
 0x61a   : > { %v10634_v2 = vpack.c.bf16 %v5949_v3, %v5948_v33  ;;  %v5869_v6 = vld [vmem:[#allocation8 + $0x188] sm:$0xff] }
 0x61b   : > { %v10622_v4 = vpack.c.bf16 %v5869_v6, %v5868_v10  ;;  %v6277_v33 = vld [vmem:[#allocation8 + $0x308] sm:$0xff]  ;;  %v6278_v6 = vld [vmem:[#allocation8 + $0x310] sm:$0xff] }
 0x61c   : > { %v6197_v10 = vld [vmem:[#allocation8 + $0x2c8] sm:$0xff] }
 0x63b   : > { %v5520_v53 = vpop.f32.mrb[54].mxu1 }
 0x63c   : > { %v5521_v14 = vadd.f32 %v5520_v53, %v5142_v51  ;;  %v8818_v40 = vpop.f32.mrb[55].mxu1  ;;  %v5945_v51 = vld [vmem:[#allocation8 + $0x1a8] sm:$0xff]  ;;  %v5951_v53 = vld [vmem:[#allocation8 + $0x1d8] sm:$0xff] }
 0x63d   : > { %v10628_v39 = vpack.c.bf16 %v5945_v51, %v5944_v23  ;;  %v6024_v40 = vld [vmem:[#allocation8 + $0x1e0] sm:$0xff]  ;;  %v6273_v23 = vld [vmem:[#allocation8 + $0x2e8] sm:$0xff] }
 0x63e   : > { %v5524_v13 = vmax.f32 %v5521_v14, 0.0 }
 0x640   : > { %v12400_v58 = vmax.f32 %v5449_v28, %v5524_v13  ;;  %v5950_v28 = vld [vmem:[#allocation8 + $0x1d0] sm:$0xff]  ;;  %v10640_v13 = vpack.c.bf16 %v6025_v7, %v6024_v40  ;;  %v6353_v40 = vld [vmem:[#allocation8 + $0x328] sm:$0xff] }
 0x641   : > { %v10637_v14 = vpack.c.bf16 %v5951_v53, %v5950_v28  ;;  %v6279_v28 = vld [vmem:[#allocation8 + $0x318] sm:$0xff]  ;;  %v6434_v7 = vld [vmem:[#allocation8 + $0x370] sm:$0xff] }
 0x642   : > { %8840 = vmatmul.mubr.msk.f32.vlgmr.msra.gmra.mrb[50].mxu0 %vm5536_vm5, %v12400_v58  ;;  %8863 = vmatmul.mubr.msk.f32.vlgmr.msra.gmra.mrb[56].mxu1 %vm5536_vm5, %v12400_v58 }
 0x643   : > { %10581 = vmatpush3.bf16.msra.mxu0 %v10580_v19  ;;  %10596 = vmatpush3.bf16.msra.mxu1 %v10595_v24  ;;  %v10655_v19 = vpack.c.bf16 %v6107_v9, %v6106_v18  ;;  %v6026_v24 = vld [vmem:[#allocation8 + $0x1f0] sm:$0xff]  ;;  %v6435_v18 = vld [vmem:[#allocation8 + $0x378] sm:$0xff] }
 0x644   : > { %10582 = vmatprep.subr.bf16.mxu0 %v11355_v25  ;;  %10597 = vmatprep.subr.bf16.mxu1 %v11355_v25  ;;  %v10643_v30 = vpack.c.bf16 %v6027_v26, %v6026_v24  ;;  %v6355_v24 = vld [vmem:[#allocation8 + $0x338] sm:$0xff]  ;;  %v6436_v26 = vld [vmem:[#allocation8 + $0x380] sm:$0xff] }
 0x645   : > { %8885 = vmatprep.mubr.msk.f32.mxu0 %vm11356_vm4, %v11353_v1  ;;  %8908 = vmatprep.mubr.msk.f32.mxu1 %vm11356_vm4, %v11353_v1 }
 0x647   : > { %10584 = vmatpush3.bf16.msra.mxu0 %v10583_v43  ;;  %10599 = vmatpush3.bf16.msra.mxu1 %v10598_v48  ;;  %v10658_v43 = vpack.c.bf16 %v6109_v17, %v6108_v63  ;;  %v6028_v48 = vld [vmem:[#allocation8 + $0x200] sm:$0xff]  ;;  %v6437_v63 = vld [vmem:[#allocation8 + $0x388] sm:$0xff] }
 0x648   : > { %10585 = vmatprep.subr.bf16.mxu0 %v11355_v25  ;;  %10600 = vmatprep.subr.bf16.mxu1 %v11355_v25  ;;  %v10646_v57 = vpack.c.bf16 %v6029_v54, %v6028_v48  ;;  %v6357_v48 = vld [vmem:[#allocation8 + $0x348] sm:$0xff]  ;;  %v6438_v54 = vld [vmem:[#allocation8 + $0x390] sm:$0xff] }
 0x64b   : > { %10587 = vmatpush3.bf16.msra.mxu0 %v10586_v11  ;;  %10602 = vmatpush3.bf16.msra.mxu1 %v10601_v35  ;;  %v10661_v11 = vpack.c.bf16 %v6111_v56, %v6110_v49  ;;  %v6030_v35 = vld [vmem:[#allocation8 + $0x210] sm:$0xff]  ;;  %v6439_v49 = vld [vmem:[#allocation8 + $0x398] sm:$0xff] }
 0x64c   : > { %10588 = vmatprep.subr.bf16.mxu0 %v11355_v25  ;;  %10603 = vmatprep.subr.bf16.mxu1 %v11355_v25  ;;  %v10649_v22 = vpack.c.bf16 %v6031_v31, %v6030_v35  ;;  %v6359_v35 = vld [vmem:[#allocation8 + $0x358] sm:$0xff]  ;;  %v6440_v31 = vld [vmem:[#allocation8 + $0x3a0] sm:$0xff] }
 0x64f   : > { %10590 = vmatpush3.bf16.msra.mxu0 %v10589_v36  ;;  %10605 = vmatpush3.bf16.msra.mxu1 %v10604_v61  ;;  %v10664_v36 = vpack.c.bf16 %v6113_v55, %v6112_v20  ;;  %v6032_v61 = vld [vmem:[#allocation8 + $0x220] sm:$0xff]  ;;  %v6441_v20 = vld [vmem:[#allocation8 + $0x3a8] sm:$0xff] }
 0x650   : > { %10591 = vmatprep.subr.bf16.mxu0 %v11355_v25  ;;  %10606 = vmatprep.subr.bf16.mxu1 %v11355_v25  ;;  %v10652_v8 = vpack.c.bf16 %v6033_v12, %v6032_v61  ;;  %v6361_v61 = vld [vmem:[#allocation8 + $0x368] sm:$0xff]  ;;  %v6442_v12 = vld [vmem:[#allocation8 + $0x3b0] sm:$0xff] }
 0x653   : > { %10593 = vmatpush3.bf16.msra.mxu0 %v10592_v60  ;;  %10608 = vmatpush3.bf16.msra.mxu1 %v10607_v44  ;;  %v10667_v60 = vpack.c.bf16 %v6115_v38, %v6114_v16  ;;  %v6188_v44 = vld [vmem:[#allocation8 + $0x280] sm:$0xff]  ;;  %v6443_v16 = vld [vmem:[#allocation8 + $0x3b8] sm:$0xff] }
 0x654   : > { %10609 = vmatprep.subr.bf16.mxu0 %v11355_v25  ;;  %10624 = vmatprep.subr.bf16.mxu1 %v11355_v25  ;;  %v10670_v21 = vpack.c.bf16 %v6189_v45, %v6188_v44  ;;  %v6517_v44 = vld [vmem:[#allocation8 + $0x3c8] sm:$0xff]  ;;  %v6598_v45 = vld [vmem:[#allocation8 + $0x410] sm:$0xff] }
 0x656   : > { %8886 = vmatmul.mubr.msk.f32.vlgmr.msra.gmra.mrb[52].mxu0 %vm5536_vm5, %v12400_v58  ;;  %8909 = vmatmul.mubr.msk.f32.vlgmr.msra.gmra.mrb[58].mxu1 %vm5536_vm5, %v12400_v58 }
 0x657   : > { %10611 = vmatpush3.bf16.msra.mxu0 %v10610_v50  ;;  %10626 = vmatpush3.bf16.msra.mxu1 %v10625_v52  ;;  %v10685_v50 = vpack.c.bf16 %v6271_v15, %v6270_v37  ;;  %v6190_v52 = vld [vmem:[#allocation8 + $0x290] sm:$0xff]  ;;  %v6599_v37 = vld [vmem:[#allocation8 + $0x418] sm:$0xff] }
 0x658   : > { %10612 = vmatprep.subr.bf16.mxu0 %v11355_v25  ;;  %10627 = vmatprep.subr.bf16.mxu1 %v11355_v25  ;;  %v10673_v51 = vpack.c.bf16 %v6191_v46, %v6190_v52  ;;  %v6519_v52 = vld [vmem:[#allocation8 + $0x3d8] sm:$0xff]  ;;  %v6600_v46 = vld [vmem:[#allocation8 + $0x420] sm:$0xff] }
 0x659   : > { %8931 = vmatprep.mubr.msk.f32.mxu0 %vm11356_vm4, %v11353_v1  ;;  %8954 = vmatprep.mubr.msk.f32.mxu1 %vm11356_vm4, %v11353_v1 }
 0x65b   : > { %10614 = vmatpush3.bf16.msra.mxu0 %v10613_v62  ;;  %10629 = vmatpush3.bf16.msra.mxu1 %v10628_v39  ;;  %v10688_v62 = vpack.c.bf16 %v6273_v23, %v6272_v59  ;;  %v6192_v39 = vld [vmem:[#allocation8 + $0x2a0] sm:$0xff]  ;;  %v6601_v59 = vld [vmem:[#allocation8 + $0x428] sm:$0xff] }
 0x65c   : > { %10615 = vmatprep.subr.bf16.mxu0 %v11355_v25  ;;  %10630 = vmatprep.subr.bf16.mxu1 %v11355_v25  ;;  %v10676_v47 = vpack.c.bf16 %v6193_v41, %v6192_v39  ;;  %v6521_v39 = vld [vmem:[#allocation8 + $0x3e8] sm:$0xff]  ;;  %v6602_v41 = vld [vmem:[#allocation8 + $0x430] sm:$0xff] }
 0x65f   : > { %10617 = vmatpush3.bf16.msra.mxu0 %v10616_v27  ;;  %10632 = vmatpush3.bf16.msra.mxu1 %v10631_v29  ;;  %v10691_v27 = vpack.c.bf16 %v6275_v32, %v6274_v0  ;;  %v6194_v29 = vld [vmem:[#allocation8 + $0x2b0] sm:$0xff]  ;;  %v6603_v0 = vld [vmem:[#allocation8 + $0x438] sm:$0xff] }
 0x660   : > { %10618 = vmatprep.subr.bf16.mxu0 %v11355_v25  ;;  %10633 = vmatprep.subr.bf16.mxu1 %v11355_v25  ;;  %v10679_v3 = vpack.c.bf16 %v6195_v5, %v6194_v29  ;;  %v6523_v29 = vld [vmem:[#allocation8 + $0x3f8] sm:$0xff]  ;;  %v6604_v5 = vld [vmem:[#allocation8 + $0x440] sm:$0xff] }
 0x663   : > { %10620 = vmatpush3.bf16.msra.mxu0 %v10619_v42  ;;  %10635 = vmatpush3.bf16.msra.mxu1 %v10634_v2  ;;  %v10694_v42 = vpack.c.bf16 %v6277_v33, %v6276_v34  ;;  %v6196_v2 = vld [vmem:[#allocation8 + $0x2c0] sm:$0xff]  ;;  %v6605_v34 = vld [vmem:[#allocation8 + $0x448] sm:$0xff] }
 0x664   : > { %10621 = vmatprep.subr.bf16.mxu0 %v11355_v25  ;;  %10636 = vmatprep.subr.bf16.mxu1 %v11355_v25  ;;  %v10682_v53 = vpack.c.bf16 %v6197_v10, %v6196_v2  ;;  %v6525_v2 = vld [vmem:[#allocation8 + $0x408] sm:$0xff]  ;;  %v6606_v10 = vld [vmem:[#allocation8 + $0x450] sm:$0xff] }
 0x667   : > { %10623 = vmatpush3.bf16.msra.mxu0 %v10622_v4  ;;  %10638 = vmatpush3.bf16.msra.mxu1 %v10637_v14  ;;  %v10697_v4 = vpack.c.bf16 %v6279_v28, %v6278_v6  ;;  %v6352_v14 = vld [vmem:[#allocation8 + $0x320] sm:$0xff]  ;;  %v6607_v6 = vld [vmem:[#allocation8 + $0x458] sm:$0xff] }
 0x668   : > { %10639 = vmatprep.subr.bf16.mxu0 %v11355_v25  ;;  %10654 = vmatprep.subr.bf16.mxu1 %v11355_v25  ;;  %v10700_v9 = vpack.c.bf16 %v6353_v40, %v6352_v14  ;;  %v6681_v14 = vld [vmem:[#allocation8 + $0x468] sm:$0xff]  ;;  %v6762_v40 = vld [vmem:[#allocation8 + $0x4b0] sm:$0xff] }
 0x66a   : > { %8932 = vmatmul.mubr.msk.f32.vlgmr.msra.gmra.mrb[54].mxu0 %vm5536_vm5, %v12400_v58  ;;  %8955 = vmatmul.mubr.msk.f32.vlgmr.msra.gmra.mrb[60].mxu1 %vm5536_vm5, %v12400_v58 }
 0x66b   : > { %10641 = vmatpush3.bf16.msra.mxu0 %v10640_v13  ;;  %10656 = vmatpush3.bf16.msra.mxu1 %v10655_v19  ;;  %v10715_v13 = vpack.c.bf16 %v6435_v18, %v6434_v7  ;;  %v6354_v19 = vld [vmem:[#allocation8 + $0x330] sm:$0xff]  ;;  %v6763_v7 = vld [vmem:[#allocation8 + $0x4b8] sm:$0xff] }
 0x66c   : > { %10642 = vmatprep.subr.bf16.mxu0 %v11355_v25  ;;  %10657 = vmatprep.subr.bf16.mxu1 %v11355_v25  ;;  %v10703_v17 = vpack.c.bf16 %v6355_v24, %v6354_v19  ;;  %v6683_v19 = vld [vmem:[#allocation8 + $0x478] sm:$0xff]  ;;  %v6764_v24 = vld [vmem:[#allocation8 + $0x4c0] sm:$0xff] }
 0x66d   : > { %8977 = vmatprep.mubr.msk.f32.mxu0 %vm11356_vm4, %v11353_v1  ;;  %9000 = vmatprep.mubr.msk.f32.mxu1 %vm11356_vm4, %v11353_v1 }
 0x66f   : > { %10644 = vmatpush3.bf16.msra.mxu0 %v10643_v30  ;;  %10659 = vmatpush3.bf16.msra.mxu1 %v10658_v43  ;;  %v10718_v30 = vpack.c.bf16 %v6437_v63, %v6436_v26  ;;  %v6356_v43 = vld [vmem:[#allocation8 + $0x340] sm:$0xff]  ;;  %v6765_v26 = vld [vmem:[#allocation8 + $0x4c8] sm:$0xff] }
 0x670   : > { %10645 = vmatprep.subr.bf16.mxu0 %v11355_v25  ;;  %10660 = vmatprep.subr.bf16.mxu1 %v11355_v25  ;;  %v10706_v56 = vpack.c.bf16 %v6357_v48, %v6356_v43  ;;  %v6685_v43 = vld [vmem:[#allocation8 + $0x488] sm:$0xff]  ;;  %v6766_v48 = vld [vmem:[#allocation8 + $0x4d0] sm:$0xff] }
 0x673   : > { %10647 = vmatpush3.bf16.msra.mxu0 %v10646_v57  ;;  %10662 = vmatpush3.bf16.msra.mxu1 %v10661_v11  ;;  %v10721_v57 = vpack.c.bf16 %v6439_v49, %v6438_v54  ;;  %v6358_v11 = vld [vmem:[#allocation8 + $0x350] sm:$0xff]  ;;  %v6767_v54 = vld [vmem:[#allocation8 + $0x4d8] sm:$0xff] }
 0x674   : > { %10648 = vmatprep.subr.bf16.mxu0 %v11355_v25  ;;  %10663 = vmatprep.subr.bf16.mxu1 %v11355_v25  ;;  %v10709_v55 = vpack.c.bf16 %v6359_v35, %v6358_v11  ;;  %v6687_v11 = vld [vmem:[#allocation8 + $0x498] sm:$0xff]  ;;  %v6768_v35 = vld [vmem:[#allocation8 + $0x4e0] sm:$0xff] }
 0x677   : > { %10650 = vmatpush3.bf16.msra.mxu0 %v10649_v22  ;;  %10665 = vmatpush3.bf16.msra.mxu1 %v10664_v36  ;;  %v10724_v22 = vpack.c.bf16 %v6441_v20, %v6440_v31  ;;  %v6360_v36 = vld [vmem:[#allocation8 + $0x360] sm:$0xff]  ;;  %v6769_v31 = vld [vmem:[#allocation8 + $0x4e8] sm:$0xff] }
 0x678   : > { %10651 = vmatprep.subr.bf16.mxu0 %v11355_v25  ;;  %10666 = vmatprep.subr.bf16.mxu1 %v11355_v25  ;;  %v10712_v38 = vpack.c.bf16 %v6361_v61, %v6360_v36  ;;  %v6689_v36 = vld [vmem:[#allocation8 + $0x4a8] sm:$0xff]  ;;  %v6770_v61 = vld [vmem:[#allocation8 + $0x4f0] sm:$0xff] }
 0x67b   : > { %10653 = vmatpush3.bf16.msra.mxu0 %v10652_v8  ;;  %10668 = vmatpush3.bf16.msra.mxu1 %v10667_v60  ;;  %v10727_v8 = vpack.c.bf16 %v6443_v16, %v6442_v12  ;;  %v6516_v60 = vld [vmem:[#allocation8 + $0x3c0] sm:$0xff]  ;;  %v6771_v12 = vld [vmem:[#allocation8 + $0x4f8] sm:$0xff] }
 0x67c   : > { %10669 = vmatprep.subr.bf16.mxu0 %v11355_v25  ;;  %10684 = vmatprep.subr.bf16.mxu1 %v11355_v25  ;;  %v10730_v15 = vpack.c.bf16 %v6517_v44, %v6516_v60  ;;  %v6845_v60 = vld [vmem:[#allocation8 + $0x508] sm:$0xff]  ;;  %v6926_v44 = vld [vmem:[#allocation8 + $0x550] sm:$0xff] }
 0x67e   : > { %8978 = vmatmul.mubr.msk.f32.vlgmr.msra.gmra.mrb[56].mxu0 %vm5536_vm5, %v12400_v58  ;;  %9001 = vmatmul.mubr.msk.f32.vlgmr.msra.gmra.mrb[62].mxu1 %vm5536_vm5, %v12400_v58 }
 0x67f   : > { %10671 = vmatpush3.bf16.msra.mxu0 %v10670_v21  ;;  %10686 = vmatpush3.bf16.msra.mxu1 %v10685_v50  ;;  %v10745_v21 = vpack.c.bf16 %v6599_v37, %v6598_v45  ;;  %v6518_v50 = vld [vmem:[#allocation8 + $0x3d0] sm:$0xff]  ;;  %v6927_v45 = vld [vmem:[#allocation8 + $0x558] sm:$0xff] }
 0x680   : > { %10672 = vmatprep.subr.bf16.mxu0 %v11355_v25  ;;  %10687 = vmatprep.subr.bf16.mxu1 %v11355_v25  ;;  %v10733_v23 = vpack.c.bf16 %v6519_v52, %v6518_v50  ;;  %v6847_v50 = vld [vmem:[#allocation8 + $0x518] sm:$0xff]  ;;  %v6928_v52 = vld [vmem:[#allocation8 + $0x560] sm:$0xff] }
 0x681   : > { %9023 = vmatprep.mubr.msk.f32.mxu0 %vm11356_vm4, %v11353_v1  ;;  %9046 = vmatprep.mubr.msk.f32.mxu1 %vm11356_vm4, %v11353_v1 }
 0x683   : > { %10674 = vmatpush3.bf16.msra.mxu0 %v10673_v51  ;;  %10689 = vmatpush3.bf16.msra.mxu1 %v10688_v62  ;;  %v10748_v51 = vpack.c.bf16 %v6601_v59, %v6600_v46  ;;  %v6520_v62 = vld [vmem:[#allocation8 + $0x3e0] sm:$0xff]  ;;  %v6929_v46 = vld [vmem:[#allocation8 + $0x568] sm:$0xff] }
 0x684   : > { %10675 = vmatprep.subr.bf16.mxu0 %v11355_v25  ;;  %10690 = vmatprep.subr.bf16.mxu1 %v11355_v25  ;;  %v10736_v32 = vpack.c.bf16 %v6521_v39, %v6520_v62  ;;  %v6849_v62 = vld [vmem:[#allocation8 + $0x528] sm:$0xff]  ;;  %v6930_v39 = vld [vmem:[#allocation8 + $0x570] sm:$0xff] }
 0x687   : > { %10677 = vmatpush3.bf16.msra.mxu0 %v10676_v47  ;;  %10692 = vmatpush3.bf16.msra.mxu1 %v10691_v27  ;;  %v10751_v47 = vpack.c.bf16 %v6603_v0, %v6602_v41  ;;  %v6522_v27 = vld [vmem:[#allocation8 + $0x3f0] sm:$0xff]  ;;  %v6931_v41 = vld [vmem:[#allocation8 + $0x578] sm:$0xff] }
 0x688   : > { %10678 = vmatprep.subr.bf16.mxu0 %v11355_v25  ;;  %10693 = vmatprep.subr.bf16.mxu1 %v11355_v25  ;;  %v10739_v33 = vpack.c.bf16 %v6523_v29, %v6522_v27  ;;  %v6851_v27 = vld [vmem:[#allocation8 + $0x538] sm:$0xff]  ;;  %v6932_v29 = vld [vmem:[#allocation8 + $0x580] sm:$0xff] }
 0x68b   : > { %10680 = vmatpush3.bf16.msra.mxu0 %v10679_v3  ;;  %10695 = vmatpush3.bf16.msra.mxu1 %v10694_v42  ;;  %v10754_v3 = vpack.c.bf16 %v6605_v34, %v6604_v5  ;;  %v6524_v42 = vld [vmem:[#allocation8 + $0x400] sm:$0xff]  ;;  %v6933_v5 = vld [vmem:[#allocation8 + $0x588] sm:$0xff] }
 0x68c   : > { %10681 = vmatprep.subr.bf16.mxu0 %v11355_v25  ;;  %10696 = vmatprep.subr.bf16.mxu1 %v11355_v25  ;;  %v10742_v28 = vpack.c.bf16 %v6525_v2, %v6524_v42  ;;  %v6853_v42 = vld [vmem:[#allocation8 + $0x548] sm:$0xff]  ;;  %v6934_v2 = vld [vmem:[#allocation8 + $0x590] sm:$0xff] }
 0x68f   : > { %10683 = vmatpush3.bf16.msra.mxu0 %v10682_v53  ;;  %10698 = vmatpush3.bf16.msra.mxu1 %v10697_v4  ;;  %v10757_v53 = vpack.c.bf16 %v6607_v6, %v6606_v10  ;;  %v6680_v4 = vld [vmem:[#allocation8 + $0x460] sm:$0xff]  ;;  %v6935_v10 = vld [vmem:[#allocation8 + $0x598] sm:$0xff] }
 0x690   : > { %10699 = vmatprep.subr.bf16.mxu0 %v11355_v25  ;;  %10714 = vmatprep.subr.bf16.mxu1 %v11355_v25  ;;  %v10760_v18 = vpack.c.bf16 %v6681_v14, %v6680_v4  ;;  %v7009_v4 = vld [vmem:[#allocation8 + $0x5a8] sm:$0xff] }
 0x692   : > { %9024 = vmatmul.mubr.msk.f32.vlgmr.msra.gmra.mrb[58].mxu0 %vm5536_vm5, %v12400_v58  ;;  %9047 = vmatmul.mubr.msk.f32.vlgmr.msra.gmra.mrb[64].mxu1 %vm5536_vm5, %v12400_v58 }
 0x693   : > { %10701 = vmatpush3.bf16.msra.mxu0 %v10700_v9  ;;  %10716 = vmatpush3.bf16.msra.mxu1 %v10715_v13  ;;  %v10775_v9 = vpack.c.bf16 %v6763_v7, %v6762_v40  ;;  %v6682_v13 = vld [vmem:[#allocation8 + $0x470] sm:$0xff]  ;;  %v7011_v7 = vld [vmem:[#allocation8 + $0x5b8] sm:$0xff] }
 0x694   : > { %10702 = vmatprep.subr.bf16.mxu0 %v11355_v25  ;;  %10717 = vmatprep.subr.bf16.mxu1 %v11355_v25  ;;  %v10763_v63 = vpack.c.bf16 %v6683_v19, %v6682_v13  ;;  %v7010_v40 = vld [vmem:[#allocation8 + $0x5b0] sm:$0xff]  ;;  %v7013_v13 = vld [vmem:[#allocation8 + $0x5c8] sm:$0xff] }
 0x695   : > { %9069 = vmatprep.mubr.msk.f32.mxu0 %vm11356_vm4, %v11353_v1  ;;  %9092 = vmatprep.mubr.msk.f32.mxu1 %vm11356_vm4, %v11353_v1 }
 0x697   : > { %10704 = vmatpush3.bf16.msra.mxu0 %v10703_v17  ;;  %10719 = vmatpush3.bf16.msra.mxu1 %v10718_v30  ;;  %v10778_v17 = vpack.c.bf16 %v6765_v26, %v6764_v24  ;;  %v6684_v30 = vld [vmem:[#allocation8 + $0x480] sm:$0xff]  ;;  %v7014_v24 = vld [vmem:[#allocation8 + $0x5d0] sm:$0xff]  ;;  %v7015_v26 = vld [vmem:[#allocation8 + $0x5d8] sm:$0xff] }
 0x698   : > { %10705 = vmatprep.subr.bf16.mxu0 %v11355_v25  ;;  %10720 = vmatprep.subr.bf16.mxu1 %v11355_v25  ;;  %v10766_v49 = vpack.c.bf16 %v6685_v43, %v6684_v30  ;;  %v7017_v30 = vld [vmem:[#allocation8 + $0x5e8] sm:$0xff] }
 0x69b   : > { %10707 = vmatpush3.bf16.msra.mxu0 %v10706_v56  ;;  %10722 = vmatpush3.bf16.msra.mxu1 %v10721_v57  ;;  %v10781_v56 = vpack.c.bf16 %v6767_v54, %v6766_v48  ;;  %v6686_v57 = vld [vmem:[#allocation8 + $0x490] sm:$0xff] }
 0x69c   : > { %10708 = vmatprep.subr.bf16.mxu0 %v11355_v25  ;;  %10723 = vmatprep.subr.bf16.mxu1 %v11355_v25  ;;  %v10769_v20 = vpack.c.bf16 %v6687_v11, %v6686_v57 }
 0x69f   : > { %10710 = vmatpush3.bf16.msra.mxu0 %v10709_v55  ;;  %10725 = vmatpush3.bf16.msra.mxu1 %v10724_v22  ;;  %v10784_v55 = vpack.c.bf16 %v6769_v31, %v6768_v35  ;;  %v6688_v22 = vld [vmem:[#allocation8 + $0x4a0] sm:$0xff] }
 0x6a0   : > { %10711 = vmatprep.subr.bf16.mxu0 %v11355_v25  ;;  %10726 = vmatprep.subr.bf16.mxu1 %v11355_v25  ;;  %v10772_v16 = vpack.c.bf16 %v6689_v36, %v6688_v22 }
 0x6a3   : > { %10713 = vmatpush3.bf16.msra.mxu0 %v10712_v38  ;;  %10728 = vmatpush3.bf16.msra.mxu1 %v10727_v8  ;;  %v10787_v38 = vpack.c.bf16 %v6771_v12, %v6770_v61  ;;  %v6844_v8 = vld [vmem:[#allocation8 + $0x500] sm:$0xff] }
 0x6a4   : > { %10729 = vmatprep.subr.bf16.mxu0 %v11355_v25  ;;  %10744 = vmatprep.subr.bf16.mxu1 %v11355_v25  ;;  %v10790_v37 = vpack.c.bf16 %v6845_v60, %v6844_v8 }
 0x6a6   : > { %9070 = vmatmul.mubr.msk.f32.vlgmr.msra.gmra.mrb[60].mxu0 %vm5536_vm5, %v12400_v58  ;;  %9093 = vmatmul.mubr.msk.f32.vlgmr.msra.gmra.mrb[66].mxu1 %vm5536_vm5, %v12400_v58 }
 0x6a7   : > { %10731 = vmatpush3.bf16.msra.mxu0 %v10730_v15  ;;  %10746 = vmatpush3.bf16.msra.mxu1 %v10745_v21  ;;  %v10805_v15 = vpack.c.bf16 %v6927_v45, %v6926_v44  ;;  %v6846_v21 = vld [vmem:[#allocation8 + $0x510] sm:$0xff] }
 0x6a8   : > { %10732 = vmatprep.subr.bf16.mxu0 %v11355_v25  ;;  %10747 = vmatprep.subr.bf16.mxu1 %v11355_v25  ;;  %v10793_v59 = vpack.c.bf16 %v6847_v50, %v6846_v21 }
 0x6a9   : > { %9115 = vmatprep.mubr.msk.f32.mxu0 %vm11356_vm4, %v11353_v1  ;;  %9138 = vmatprep.mubr.msk.f32.mxu1 %vm11356_vm4, %v11353_v1 }
 0x6ab   : > { %10734 = vmatpush3.bf16.msra.mxu0 %v10733_v23  ;;  %10749 = vmatpush3.bf16.msra.mxu1 %v10748_v51  ;;  %v10808_v23 = vpack.c.bf16 %v6929_v46, %v6928_v52  ;;  %v6848_v51 = vld [vmem:[#allocation8 + $0x520] sm:$0xff] }
 0x6ac   : > { %10735 = vmatprep.subr.bf16.mxu0 %v11355_v25  ;;  %10750 = vmatprep.subr.bf16.mxu1 %v11355_v25  ;;  %v10796_v0 = vpack.c.bf16 %v6849_v62, %v6848_v51 }
 0x6af   : > { %10737 = vmatpush3.bf16.msra.mxu0 %v10736_v32  ;;  %10752 = vmatpush3.bf16.msra.mxu1 %v10751_v47  ;;  %v10811_v32 = vpack.c.bf16 %v6931_v41, %v6930_v39  ;;  %v6850_v47 = vld [vmem:[#allocation8 + $0x530] sm:$0xff] }
 0x6b0   : > { %10738 = vmatprep.subr.bf16.mxu0 %v11355_v25  ;;  %10753 = vmatprep.subr.bf16.mxu1 %v11355_v25  ;;  %v10799_v34 = vpack.c.bf16 %v6851_v27, %v6850_v47 }
 0x6b3   : > { %10740 = vmatpush3.bf16.msra.mxu0 %v10739_v33  ;;  %10755 = vmatpush3.bf16.msra.mxu1 %v10754_v3  ;;  %v10814_v33 = vpack.c.bf16 %v6933_v5, %v6932_v29  ;;  %v6852_v3 = vld [vmem:[#allocation8 + $0x540] sm:$0xff] }
 0x6b4   : > { %10741 = vmatprep.subr.bf16.mxu0 %v11355_v25  ;;  %10756 = vmatprep.subr.bf16.mxu1 %v11355_v25  ;;  %v10802_v6 = vpack.c.bf16 %v6853_v42, %v6852_v3 }
 0x6b7   : > { %10743 = vmatpush3.bf16.msra.mxu0 %v10742_v28  ;;  %10758 = vmatpush3.bf16.msra.mxu1 %v10757_v53  ;;  %v10817_v28 = vpack.c.bf16 %v6935_v10, %v6934_v2  ;;  %v7008_v53 = vld [vmem:[#allocation8 + $0x5a0] sm:$0xff] }
 0x6b8   : > { %10759 = vmatprep.subr.bf16.mxu0 %v11355_v25  ;;  %10774 = vmatprep.subr.bf16.mxu1 %v11355_v25  ;;  %v10820_v14 = vpack.c.bf16 %v7009_v4, %v7008_v53  ;;  %v7089_v2 = vld [vmem:[#allocation16] sm:$0x1] }
 0x6ba   : > { %9116 = vmatmul.mubr.msk.f32.vlgmr.msra.gmra.mrb[62].mxu0 %vm5536_vm5, %v12400_v58  ;;  %9139 = vmatmul.mubr.msk.f32.vlgmr.msra.gmra.mrb[68].mxu1 %vm5536_vm5, %v12400_v58 }
 0x6bb   : > { %10761 = vmatpush3.bf16.msra.mxu0 %v10760_v18  ;;  %10776 = vmatpush3.bf16.msra.mxu1 %v10775_v9  ;;  %v10823_v18 = vpack.c.bf16 %v7011_v7, %v7010_v40  ;;  %v7012_v9 = vld [vmem:[#allocation8 + $0x5c0] sm:$0xff] }
 0x6bc   : > { %10762 = vmatprep.subr.bf16.mxu0 %v11355_v25  ;;  %10777 = vmatprep.subr.bf16.mxu1 %v11355_v25  ;;  %v10826_v19 = vpack.c.bf16 %v7013_v13, %v7012_v9 }
 0x6bd   : > { %9161 = vmatprep.mubr.msk.f32.mxu0 %vm11356_vm4, %v11353_v1  ;;  %9184 = vmatprep.mubr.msk.f32.mxu1 %vm11356_vm4, %v11353_v1 }
 0x6bf   : > { %10764 = vmatpush3.bf16.msra.mxu0 %v10763_v63  ;;  %10779 = vmatpush3.bf16.msra.mxu1 %v10778_v17  ;;  %v10829_v63 = vpack.c.bf16 %v7015_v26, %v7014_v24  ;;  %v7016_v17 = vld [vmem:[#allocation8 + $0x5e0] sm:$0xff] }
 0x6c0   : > { %10765 = vmatprep.subr.bf16.mxu0 %v11355_v25  ;;  %10780 = vmatprep.subr.bf16.mxu1 %v11355_v25  ;;  %v10832_v43 = vpack.c.bf16 %v7017_v30, %v7016_v17 }
 0x6c3   : > { %10767 = vmatpush3.bf16.msra.mxu0 %v10766_v49  ;;  %10782 = vmatpush3.bf16.msra.mxu1 %v10781_v56 }
 0x6c4   : > { %10768 = vmatprep.subr.bf16.mxu0 %v11355_v25  ;;  %10783 = vmatprep.subr.bf16.mxu1 %v11355_v25 }
 0x6c7   : > { %10770 = vmatpush3.bf16.msra.mxu0 %v10769_v20  ;;  %10785 = vmatpush3.bf16.msra.mxu1 %v10784_v55 }
 0x6c8   : > { %10771 = vmatprep.subr.bf16.mxu0 %v11355_v25  ;;  %10786 = vmatprep.subr.bf16.mxu1 %v11355_v25 }
 0x6cb   : > { %10773 = vmatpush3.bf16.msra.mxu0 %v10772_v16  ;;  %10788 = vmatpush3.bf16.msra.mxu1 %v10787_v38  ;;  %v7090_v38 = vld [vmem:[#allocation4] sm:$0x1] }
 0x6cc   : > { %10789 = vmatprep.subr.bf16.mxu0 %v11355_v25  ;;  %10804 = vmatprep.subr.bf16.mxu1 %v11355_v25 }
 0x6cd   : > { %7093 = vperm.xlu1 %11005, %v7090_v38  }
 0x6ce   : > { %9162 = vmatmul.mubr.msk.f32.vlgmr.msra.gmra.mrb[64].mxu0 %vm5536_vm5, %v12400_v58  ;;  %9185 = vmatmul.mubr.msk.f32.vlgmr.msra.gmra.mrb[70].mxu1 %vm5536_vm5, %v12400_v58 }
 0x6cf   : > { %10791 = vmatpush3.bf16.msra.mxu0 %v10790_v37  ;;  %10806 = vmatpush3.bf16.msra.mxu1 %v10805_v15 }
 0x6d0   : > { %10792 = vmatprep.subr.bf16.mxu0 %v11355_v25  ;;  %10807 = vmatprep.subr.bf16.mxu1 %v11355_v25 }
 0x6d1   : > { %9207 = vmatprep.mubr.msk.f32.mxu0 %vm11356_vm4, %v11353_v1  ;;  %9230 = vmatprep.mubr.msk.f32.mxu1 %vm11356_vm4, %v11353_v1 }
 0x6d3   : > { %10794 = vmatpush3.bf16.msra.mxu0 %v10793_v59  ;;  %10809 = vmatpush3.bf16.msra.mxu1 %v10808_v23 }
 0x6d4   : > { %10795 = vmatprep.subr.bf16.mxu0 %v11355_v25  ;;  %10810 = vmatprep.subr.bf16.mxu1 %v11355_v25 }
 0x6d7   : > { %10797 = vmatpush3.bf16.msra.mxu0 %v10796_v0  ;;  %10812 = vmatpush3.bf16.msra.mxu1 %v10811_v32 }
 0x6d8   : > { %10798 = vmatprep.subr.bf16.mxu0 %v11355_v25  ;;  %10813 = vmatprep.subr.bf16.mxu1 %v11355_v25 }
 0x6db   : > { %10800 = vmatpush3.bf16.msra.mxu0 %v10799_v34  ;;  %10815 = vmatpush3.bf16.msra.mxu1 %v10814_v33 }
 0x6dc   : > { %10801 = vmatprep.subr.bf16.mxu0 %v11355_v25  ;;  %10816 = vmatprep.subr.bf16.mxu1 %v11355_v25 }
 0x6df   : > { %10803 = vmatpush3.bf16.msra.mxu0 %v10802_v6  ;;  %10818 = vmatpush3.bf16.msra.mxu1 %v10817_v28 }
 0x6e0   : > { %10819 = vmatprep.subr.bf16.mxu0 %v11355_v25  ;;  %10834 = vmatprep.subr.bf16.mxu1 %v11355_v25 }
 0x6e2   : > { %9208 = vmatmul.mubr.msk.f32.vlgmr.msra.gmra.mrb[66].mxu0 %vm5536_vm5, %v12400_v58  ;;  %9231 = vmatmul.mubr.msk.f32.vlgmr.msra.gmra.mrb[72].mxu1 %vm5536_vm5, %v12400_v58 }
 0x6e3   : > { %10821 = vmatpush3.bf16.msra.mxu0 %v10820_v14  ;;  %9253 = vmatprep.mubr.msk.f32.mxu0 %vm11356_vm4, %v11353_v1 }
 0x6e4   : > { %10822 = vmatprep.subr.bf16.mxu0 %v11355_v25  ;;  %9264 = vmatprep.mubr.msk.f32.mxu1 %vm11356_vm4, %v11353_v1 }
 0x6e7   : > { %10824 = vmatpush3.bf16.msra.mxu0 %v10823_v18 }
 0x6e8   : > { %10825 = vmatprep.subr.bf16.mxu0 %v11355_v25 }
 0x6eb   : > { %10827 = vmatpush3.bf16.msra.mxu0 %v10826_v19 }
 0x6ec   : > { %10828 = vmatprep.subr.bf16.mxu0 %v11355_v25 }
 0x6ef   : > { %10830 = vmatpush3.bf16.msra.mxu0 %v10829_v63 }
 0x6f0   : > { %10831 = vmatprep.subr.bf16.mxu0 %v11355_v25 }
 0x6f3   : > { %10833 = vmatpush3.bf16.msra.mxu0 %v10832_v43 }
 0x6f4   : > { %10846 = vmatprep.subr.bf16.mxu0 %v11355_v25 }
 0x6f6   : > { %9254 = vmatmul.mubr.msk.f32.vlgmr.msra.gmra.mrb[68].mxu0 %vm5536_vm5, %v12400_v58 }
 0x6f7   : > { %9286 = vmatprep.mubr.msk.f32.mxu0 %vm11356_vm4, %v11353_v1 }
 0x715   : > { %v5606_v48 = vpop.f32.mrb[50].mxu0  ;;  %v5689_v54 = vpop.f32.mrb[56].mxu1 }
 0x716   : > { %5611 = vst.msk [vmem:[#allocation3] sm:$0xf] %vm5610_vm6, %v5606_v48  ;;  %5694 = vst.msk [vmem:[#allocation3 + $0x28] sm:$0xf] %vm5610_vm6, %v5689_v54  ;;  %v8841_v49 = vpop.f32.mrb[51].mxu0  ;;  %v8864_v56 = vpop.f32.mrb[57].mxu1 }
 0x729   : > { %v5772_v57 = vpop.f32.mrb[52].mxu0  ;;  %v5854_v11 = vpop.f32.mrb[58].mxu1 }
 0x72a   : > { %5776 = vst.msk [vmem:[#allocation3 + $0x4] sm:$0xf] %vm5610_vm6, %v5772_v57  ;;  %5858 = vst.msk [vmem:[#allocation3 + $0x2c] sm:$0xf] %vm5610_vm6, %v5854_v11  ;;  %v8887_v35 = vpop.f32.mrb[53].mxu0  ;;  %v8910_v58 = vpop.f32.mrb[59].mxu1 }
 0x72b   : > { %v7482_v11 = vld [vmem:[#allocation17] sm:$0xff]  ;;  %v7483_v35 = vld [vmem:[#allocation17 + $0x8] sm:$0xff] }
 0x72c   : > { %v10865_v58 = vpack.c.bf16 %v7483_v35, %v7482_v11 }
 0x731   : > { %v7100_v8 = vld [vmem:[#allocation3] sm:$0xff]  ;;  %v7178_v10 = vld [vmem:[#allocation3 + $0x28] sm:$0xff] }
 0x73d   : > { %v5936_v31 = vpop.f32.mrb[54].mxu0  ;;  %v6018_v20 = vpop.f32.mrb[60].mxu1 }
 0x73e   : > { %5940 = vst.msk [vmem:[#allocation3 + $0x8] sm:$0xf] %vm5610_vm6, %v5936_v31  ;;  %6022 = vst.msk [vmem:[#allocation3 + $0x30] sm:$0xf] %vm5610_vm6, %v6018_v20  ;;  %v8933_v55 = vpop.f32.mrb[55].mxu0  ;;  %v8956_v22 = vpop.f32.mrb[61].mxu1  ;;  %v7096_v31 = vlaneseq }
 0x740   : > { %v7097_v20 = vshrl.u32 %v7096_v31, 7 }
 0x742   : > { %v7098_v55 = vsub.s32 0, %v7097_v20 }
 0x745   : > { %v7254_v50 = vld [vmem:[#allocation3 + $0x4] sm:$0xff]  ;;  %v7330_v18 = vld [vmem:[#allocation3 + $0x2c] sm:$0xff] }
 0x751   : > { %v6100_v36 = vpop.f32.mrb[56].mxu0  ;;  %v6182_v61 = vpop.f32.mrb[62].mxu1 }
 0x752   : > { %6104 = vst.msk [vmem:[#allocation3 + $0xc] sm:$0xf] %vm5610_vm6, %v6100_v36  ;;  %6186 = vst.msk [vmem:[#allocation3 + $0x34] sm:$0xf] %vm5610_vm6, %v6182_v61  ;;  %v8979_v12 = vpop.f32.mrb[57].mxu0  ;;  %v9002_v16 = vpop.f32.mrb[63].mxu1 }
 0x759   : > { %v12571_v60 = vld [vmem:[#allocation3 + $0x8] sm:$0xff]  ;;  %v7179_v42 = vld [vmem:[#allocation3 + $0x30] sm:$0xff] }
 0x75a   : > { %v10835_v44 = vpack.c.bf16 %v12571_v60, %v7100_v8  ;;  %v10841_v6 = vpack.c.bf16 %v7179_v42, %v7178_v10 }
 0x75c   : > { %10836 = vmatpush3.bf16.msra.mxu1 %v10835_v44 }
 0x75d   : > { %10837 = vmatprep.subr.bf16.mxu1 %v11355_v25 }
 0x765   : > { %v6264_v45 = vpop.f32.mrb[58].mxu0  ;;  %v6346_v37 = vpop.f32.mrb[64].mxu1 }
 0x766   : > { %6268 = vst.msk [vmem:[#allocation3 + $0x10] sm:$0xf] %vm5610_vm6, %v6264_v45  ;;  %6350 = vst.msk [vmem:[#allocation3 + $0x38] sm:$0xf] %vm5610_vm6, %v6346_v37  ;;  %v9025_v15 = vpop.f32.mrb[59].mxu0  ;;  %v9048_v21 = vpop.f32.mrb[65].mxu1 }
 0x76d   : > { %v7255_v52 = vld [vmem:[#allocation3 + $0xc] sm:$0xff]  ;;  %v7331_v14 = vld [vmem:[#allocation3 + $0x34] sm:$0xff] }
 0x76e   : > { %v10847_v46 = vpack.c.bf16 %v7255_v52, %v7254_v50  ;;  %v10853_v19 = vpack.c.bf16 %v7331_v14, %v7330_v18 }
 0x770   : > { %10848 = vmatpush3.bf16.msra.mxu0 %v10847_v46 }
 0x771   : > { %10849 = vmatprep.subr.bf16.mxu0 %v11355_v25 }
 0x779   : > { %v6428_v59 = vpop.f32.mrb[60].mxu0  ;;  %v6510_v23 = vpop.f32.mrb[66].mxu1 }
 0x77a   : > { %6432 = vst.msk [vmem:[#allocation3 + $0x14] sm:$0xf] %vm5610_vm6, %v6428_v59  ;;  %6514 = vst.msk [vmem:[#allocation3 + $0x3c] sm:$0xf] %vm5610_vm6, %v6510_v23  ;;  %v9071_v51 = vpop.f32.mrb[61].mxu0  ;;  %v9094_v62 = vpop.f32.mrb[67].mxu1 }
 0x781   : > { %v7102_v34 = vld [vmem:[#allocation3 + $0x10] sm:$0xff]  ;;  %v7180_v53 = vld [vmem:[#allocation3 + $0x38] sm:$0xff] }
 0x782   : > { %v10859_v48 = vpack.c.bf16 %v7102_v34, %v12571_v60 }
 0x78d   : > { %v6592_v39 = vpop.f32.mrb[62].mxu0  ;;  %v6674_v41 = vpop.f32.mrb[68].mxu1 }
 0x78e   : > { %6596 = vst.msk [vmem:[#allocation3 + $0x18] sm:$0xf] %vm5610_vm6, %v6592_v39  ;;  %6678 = vst.msk [vmem:[#allocation3 + $0x40] sm:$0xf] %vm5610_vm6, %v6674_v41  ;;  %v9117_v0 = vpop.f32.mrb[63].mxu0  ;;  %v9140_v32 = vpop.f32.mrb[69].mxu1 }
 0x795   : > { %v7256_v24 = vld [vmem:[#allocation3 + $0x14] sm:$0xff]  ;;  %v7332_v63 = vld [vmem:[#allocation3 + $0x3c] sm:$0xff] }
 0x7a1   : > { %v6756_v47 = vpop.f32.mrb[64].mxu0  ;;  %v6838_v27 = vpop.f32.mrb[70].mxu1 }
 0x7a2   : > { %6760 = vst.msk [vmem:[#allocation3 + $0x1c] sm:$0xf] %vm5610_vm6, %v6756_v47  ;;  %6842 = vst.msk [vmem:[#allocation3 + $0x44] sm:$0xf] %vm5610_vm6, %v6838_v27  ;;  %v9163_v29 = vpop.f32.mrb[65].mxu0  ;;  %v9186_v5 = vpop.f32.mrb[71].mxu1 }
 0x7a3   : > { %v7484_v47 = vld [vmem:[#allocation19] sm:$0x1] }
 0x7a9   : > { %v7103_v33 = vld [vmem:[#allocation3 + $0x18] sm:$0xff]  ;;  %v7181_v28 = vld [vmem:[#allocation3 + $0x40] sm:$0xff] }
 0x7aa   : > { %v10838_v3 = vpack.c.bf16 %v7103_v33, %v7102_v34  ;;  %v10844_v4 = vpack.c.bf16 %v7181_v28, %v7180_v53 }
 0x7ac   : > { %10839 = vmatpush3.bf16.msra.mxu1 %v10838_v3 }
 0x7ad   : > { %10840 = vmatprep.subr.bf16.mxu1 %v11355_v25 }
 0x7af   : > { %9265 = vmatmul.mubr.msk.f32.vlgmr.msra.gmra.mrb[74].mxu1 %vm528_vm1, %v7089_v2 }
 0x7b0   : > { %10842 = vmatpush3.bf16.msra.mxu1 %v10841_v6  ;;  %9275 = vmatprep.mubr.msk.f32.mxu1 %vm11356_vm4, %v11353_v1 }
 0x7b1   : > { %10843 = vmatprep.subr.bf16.mxu1 %v11355_v25 }
 0x7b4   : > { %10845 = vmatpush3.bf16.msra.mxu1 %v10844_v4 }
 0x7b5   : > { %v6920_v40 = vpop.f32.mrb[66].mxu0  ;;  %v7002_v7 = vpop.f32.mrb[72].mxu1  ;;  %10852 = vmatprep.subr.bf16.mxu1 %v11355_v25 }
 0x7b6   : > { %6924 = vst.msk [vmem:[#allocation3 + $0x20] sm:$0xf] %vm5610_vm6, %v6920_v40  ;;  %7006 = vst.msk [vmem:[#allocation3 + $0x48] sm:$0xf] %vm5610_vm6, %v7002_v7  ;;  %v9209_v9 = vpop.f32.mrb[67].mxu0  ;;  %v9232_v13 = vpop.f32.mrb[73].mxu1 }
 0x7b7   : > { %9276 = vmatmul.mubr.msk.f32.vlgmr.msra.gmra.mrb[76].mxu1 %vm528_vm1, %v7089_v2 }
 0x7b8   : > { %10854 = vmatpush3.bf16.msra.mxu1 %v10853_v19  ;;  %9297 = vmatprep.mubr.msk.f32.mxu1 %vm11356_vm4, %v11353_v1 }
 0x7b9   : > { %10855 = vmatprep.subr.bf16.mxu1 %v11355_v25 }
 0x7bd   : > { %v7257_v26 = vld [vmem:[#allocation3 + $0x1c] sm:$0xff]  ;;  %v7333_v17 = vld [vmem:[#allocation3 + $0x44] sm:$0xff] }
 0x7be   : > { %v10850_v30 = vpack.c.bf16 %v7257_v26, %v7256_v24  ;;  %v10856_v43 = vpack.c.bf16 %v7333_v17, %v7332_v63 }
 0x7c0   : > { %10851 = vmatpush3.bf16.msra.mxu0 %v10850_v30  ;;  %10857 = vmatpush3.bf16.msra.mxu1 %v10856_v43 }
 0x7c1   : > { %10858 = vmatprep.subr.bf16.mxu0 %v11355_v25  ;;  %10864 = vmatprep.subr.bf16.mxu1 %v11355_v25 }
 0x7c3   : > { %9287 = vmatmul.mubr.msk.f32.vlgmr.msra.gmra.mrb[70].mxu0 %vm528_vm1, %v7089_v2  ;;  %9298 = vmatmul.mubr.msk.f32.vlgmr.msra.gmra.mrb[78].mxu1 %vm528_vm1, %v7089_v2 }
 0x7c4   : > { %10860 = vmatpush3.bf16.msra.mxu0 %v10859_v48  ;;  %9308 = vmatprep.mubr.msk.f32.mxu0 %vm11356_vm4, %v11353_v1 }
 0x7c5   : > { %10861 = vmatprep.subr.bf16.mxu0 %v11355_v25  ;;  %9315 = vmatprep.mubr.msk.f32.mxu1 %vm11356_vm4, %v11353_v1  ;;  %v7094_v25 = vpop.permute.xlu1 %7093 }
 0x7c6   : > { %10866 = vmatpush3.bf16.msra.mxu1 %v10865_v58  ;;  %v7099_v36 = vrot.slane %v7094_v25, %v7098_v55 }
 0x7c9   : > { %v7084_v54 = vpop.f32.mrb[68].mxu0 }
 0x7ca   : > { %7088 = vst.msk [vmem:[#allocation3 + $0x24] sm:$0xf] %vm5610_vm6, %v7084_v54  ;;  %v9255_v49 = vpop.f32.mrb[69].mxu0 }
 0x7d1   : > { %v7409_v56 = vld [vmem:[#allocation3 + $0x20] sm:$0xff] }
 0x7d2   : > { %v10862_v57 = vpack.c.bf16 %v7409_v56, %v7103_v33 }
 0x7d4   : > { %10863 = vmatpush3.bf16.msra.mxu0 %v10862_v57 }
 0x7d7   : > { %9309 = vmatmul.mubr.msk.f32.vlgmr.msra.gmra.mrb[72].mxu0 %vm528_vm1, %v7089_v2 }
 0x882   : > { %v7173_v22 = vpop.f32.mrb[74].mxu1 }
 0x883   : > { %v9266_v1 = vpop.f32.mrb[75].mxu1  ;;  %v7174_v61 = vadd.f32 %v7173_v22, %v7099_v36 }
 0x885   : > { %v7177_v16 = vmax.f32 %v7174_v61, 0.0 }
 0x88a   : > { %v7248_v12 = vpop.f32.mrb[76].mxu1 }
 0x88b   : > { %v7249_v38 = vadd.f32 %v7248_v12, %v7099_v36  ;;  %v9277_v8 = vpop.f32.mrb[77].mxu1 }
 0x88d   : > { %v7252_v60 = vmax.f32 %v7249_v38, 0.0 }
 0x88f   : > { %v7253_v44 = vmax.f32 %v7177_v16, %v7252_v60 }
 0x896   : > { %v7324_v45 = vpop.f32.mrb[70].mxu0  ;;  %v7400_v37 = vpop.f32.mrb[78].mxu1 }
 0x897   : > { %v7325_v15 = vadd.f32 %v7324_v45, %v7099_v36  ;;  %v7401_v21 = vadd.f32 %v7400_v37, %v7099_v36  ;;  %v9288_v50 = vpop.f32.mrb[71].mxu0  ;;  %v9299_v52 = vpop.f32.mrb[79].mxu1 }
 0x899   : > { %v7328_v46 = vmax.f32 %v7325_v15, 0.0  ;;  %v7404_v59 = vmax.f32 %v7401_v21, 0.0 }
 0x89b   : > { %v7329_v23 = vmax.f32 %v7253_v44, %v7328_v46 }
 0x89d   : > { %v7405_v51 = vmax.f32 %v7329_v23, %v7404_v59 }
 0x8aa   : > { %v7476_v62 = vpop.f32.mrb[72].mxu0 }
 0x8ab   : > { %v7477_v39 = vadd.f32 %v7476_v62, %v7099_v36  ;;  %v9310_v41 = vpop.f32.mrb[73].mxu0 }
 0x8ad   : > { %v7480_v0 = vmax.f32 %v7477_v39, 0.0 }
 0x8af   : > { %v7481_v32 = vmax.f32 %v7405_v51, %v7480_v0 }
 0x8b1   : > { %9316 = vmatmul.mubr.msk.f32.vlgmr.msra.gmra.mrb[80].mxu1 %vm1534_vm2, %v7481_v32 }
 0x984   : > { %v7554_v27 = vpop.f32.mrb[80].mxu1 }
 0x985   : > { %v7555_v29 = vadd.f32 %v7554_v27, %v7484_v47  ;;  %v9317_v5 = vpop.f32.mrb[81].mxu1 }
 0x987   : > { %7559 = vst.msk [vmem:[%s499_s24] sm:$0x1] %vm7558_vm7, %v7555_v29 }
 0x988   : > { %11271 = shalt.err (!%p11268_p4)
}
 0x989   : > { %s11272_s13 = scalar_lea.hbm %s12614_s22, 16  ;;  %s11276_s30 = scalar_lea.hbm %s12667_s11, 32 }
 0x98a   : > { %p11273_p12 = scmp.ne.s32.totalorder %s12614_s22, %s11272_s13  ;;  %p11277_p11 = scmp.lt.u32.totalorder %s12614_s22, %s12667_s11 }
 0x98b   : > { %p11278_p13 = scmp.lt.u32.totalorder %s11276_s30, %s11272_s13  ;;  %p11280_p6 = scmp.lt.u32.totalorder %s11272_s13, %s12614_s22 }
 0x98c   : > { %p11274_p7 = pnand %p11273_p12, %p12704_p9 }
 0x98d   : > { %p11279_p1 = por %p11278_p13, %p11277_p11 }
 0x98e   : > { %p11275_p8 = pneg %p11274_p7 }
 0x98f   : > { %p11281_p5 = por %p11280_p6, %p11279_p1 }
 0x991   : > { %p11282_p10 = pnand %p11281_p5, %p11275_p8 }
 0x993   : > { %11285 = shalt.err (!%p11282_p10)
}
 0x994   : > { %10904 = dma.vmem_to_hbm [thread:$0]  (%p12704_p9), %s12616_s26, 16, %s12614_s22, %s7561_s12  }
 0x995 PF: > { %s12705_s16 = sld [smem:[#allocation29_spill]]  ;;  %s12706_s29 = sld [smem:[#allocation27_spill]] }
 0x996   : > { %s12707_s18 = sld [smem:[#allocation32_spill]] }
 0x99b   : > { %p10956_p0 = scmp.ge.s32.totalorder %s12705_s16, 2  ;;  %s7585_s24 = sand.u32 1, %s12706_s29  }
 0x99c   : > { %p12708_p2 = scmp.ne.s32.totalorder %s12707_s18, 0  ;;  %s7586_s2 = scalar_lea.sflag [#allocation7], %s7585_s24 }
 0x99e   : > { %p10935_p3 = pnand %p10956_p0, %p12708_p2 }
 0x9a0   : > { %11323 = dma.done.wait (!%p10935_p3), %s7586_s2, 16  }
 0x9a1   : > { %11325 = vsyncadd (!%p10935_p3), %s7586_s2, 4294967280  ;;  %s12709_s22 = sld [smem:[#allocation30_spill]]  ;;  %s12710_s23 = sld [smem:[#allocation28_spill]] }
 0x9a2   : > { %s12711_s21 = sld [smem:[#allocation31_spill]]  ;;  %s12712_s19 = smov %s11332_s20 }
 0x9a7   : > { %p28_p4 = scmp.ge.s32.totalorder %s12709_s22, 4   ;;  %s12713_s20 = smov %s12710_s23 }
 0x9a9   :  { %30 = sbr.rel (!%p28_p4) target bundleno = 11 (0xb), region = 175 }
 0x9b0   :  { %7590 = vsyncpa [#allocation6], 1 }
 0x9b1   :  { %7592 = vsyncpa [#allocation6 + $0x1], 1 }
 0x9b2   :  { %7593 = vsyncpa [#allocation9], 1 }
 0x9b3   :  { %7594 = vsyncpa [#allocation12], 1 }
 0x9b4   :  { %7595 = vsyncpa [#allocation15], 1 }
 0x9b5   :  { %7596 = vsyncpa [#allocation18], 1 }
 0x9b6   :  { %7597 = vsyncpa [#allocation7], 1 }
 0x9b7   :  { %7599 = vsyncpa [#allocation7 + $0x1], 1 }

</bundles_post_ra>
